<compile_context>
chip_gen: v5e
topology: v5e:2x2
jax: 0.10.0
libtpu: 0.0.40
codegen_flags: <defaults>
</compile_context>

<pallas_src>
import jax
import jax.numpy as jnp
import numpy as np
from jax.experimental import pallas as pl
from jax.experimental.pallas import tpu as pltpu

# ---- static sizes: StackedNet(s=(16, 16), k=3) ----
W_IN, H_IN = 16, 16
K = 3
N_CLS, N0 = 10, K + 1                 # 10, 4
N1, N2 = N0 * 2, N0 * 4               # 8, 16
K1, K2 = 4, 2
P1, P2 = K1 // 2, K2 // 2             # 2, 1
X1, X2 = W_IN // 4, H_IN // 4         # 4, 4
N3 = N2 * X1 * X2                     # 256
N4, N5, N6, N7, N8 = N3 // 2, N3 // 4, N3 // 8, N3 // 16, N3 // 32  # 128..8

HP1 = W_IN + 2 * P1                   # 20  (padded conv1 input width)
OH1 = HP1 - K1 + 1                    # 17  (conv1 output spatial)
PH1 = OH1 // 2                        # 8   (after 2x2 maxpool)
HP2 = PH1 + 2 * P2                    # 10  (padded conv2 input width)
OH2 = HP2 - K2 + 1                    # 9   (conv2 output spatial)
PH2 = OH2 // 2                        # 4   (after 2x2 maxpool)

ROW1 = HP1 * N0                       # 80  lanes / padded conv1 input row  (w*N0 + ci)
CW1 = OH1 * N1                        # 136 lanes / conv1 output row        (w*N1 + co)
ROW2 = (OH1 - 1) * N1                 # 128 lanes / pooled conv1 row (spread: 2*N1*j + co)
CW2 = OH2 * N2                        # 144 lanes / conv2 output row        (w*N2 + co)
ROW3 = (OH2 - 1) * N2                 # 128 lanes / pooled conv2 row (spread: 2*N2*j + co)
NFEAT = PH2 * ROW3                    # 512 spread flattened features
FC_PAD = 128                          # lane-dense width for the small fc layers

MAX_BATCH_TILE = 128                  # images per grid step (fills MXU M, fits v7x VMEM)


def stacked_net_kernel(x_ref, w1_ref, b1_ref, w2_ref, b2_ref,
                       f1w_ref, f1b_ref, f2w_ref, f2b_ref, f3w_ref, f3b_ref,
                       f4w_ref, f4b_ref, f5w_ref, f5b_ref, f6w_ref, f6b_ref,
                       out_ref):
    """Fused conv1->pool->relu->conv2->pool->relu->fc1..fc6->log_softmax.

    One grid step processes a whole batch tile; every matmul has M = Bt.
    Feature maps are kept as one 2-D (Bt, W*C) array per spatial row, so each
    conv output row is a single banded matmul and pooling never compacts lanes
    (the spread layout is folded into the next layer's wrapper-built weight).
    """
    bt = x_ref.shape[0]
    f32 = jnp.float32

    # ---- conv1: one (Bt, K1*ROW1) @ (K1*ROW1, CW1) matmul per output row -------
    zrow1 = jnp.zeros((bt, ROW1), f32)
    in_rows = [zrow1] * P1 + [x_ref[:, r, :] for r in range(H_IN)] + [zrow1] * P1
    w1 = w1_ref[...]
    b1 = jnp.broadcast_to(b1_ref[...], (bt, CW1))        # hoisted out of the row loop
    c1 = []
    for h in range(2 * PH1):                              # rows 0..15 (row 16 unused by pool)
        patch = jnp.concatenate([in_rows[h + kh] for kh in range(K1)], axis=-1)
        c1.append(jnp.dot(patch, w1, preferred_element_type=f32) + b1)   # (Bt, 136)

    # ---- 2x2 max-pool + relu (spread lane layout, no compaction) ---------------
    p1 = []
    for i in range(PH1):
        m = jnp.maximum(c1[2 * i], c1[2 * i + 1])         # pool along H (whole rows)
        m = jnp.maximum(m[:, :ROW2], m[:, N1:])           # pool along W (shifted lanes)
        p1.append(jnp.maximum(m, 0.0))                    # (Bt, 128)

    # ---- conv2: one (Bt, K2*ROW2) @ (K2*ROW2, CW2) matmul per output row -------
    zrow2 = jnp.zeros((bt, ROW2), f32)
    prow = [zrow2] * P2 + p1 + [zrow2] * P2               # H zero-padding in-kernel
    w2 = w2_ref[...]
    b2 = jnp.broadcast_to(b2_ref[...], (bt, CW2))
    c2 = []
    for h in range(2 * PH2):                              # rows 0..7 (row 8 unused by pool)
        patch = jnp.concatenate([prow[h + kh] for kh in range(K2)], axis=-1)
        c2.append(jnp.dot(patch, w2, preferred_element_type=f32) + b2)   # (Bt, 144)
    # TODO(synk): Dropout2d / F.dropout are identity in eval mode (implemented);
    #             training-mode random masks are not implemented.

    p2 = []
    for i in range(PH2):
        m = jnp.maximum(c2[2 * i], c2[2 * i + 1])
        m = jnp.maximum(m[:, :ROW3], m[:, N2:])
        p2.append(jnp.maximum(m, 0.0))                    # (Bt, 128)

    # ---- flatten (spread layout; compaction + (C,H,W) order folded into fc1) ---
    feat = jnp.concatenate(p2, axis=-1)                   # (Bt, 512)

    # ---- fc1..fc5 (+relu), lane-dense 128-wide activations ---------------------
    act = feat
    for w_r, b_r in ((f1w_ref, f1b_ref), (f2w_ref, f2b_ref), (f3w_ref, f3b_ref),
                     (f4w_ref, f4b_ref), (f5w_ref, f5b_ref)):
        act = jnp.maximum(
            jnp.dot(act, w_r[...], preferred_element_type=f32) + b_r[...], 0.0)
    logits = jnp.dot(act, f6w_ref[...], preferred_element_type=f32) + f6b_ref[...]

    # ---- log_softmax over the 10 real classes ----------------------------------
    mx = jnp.max(logits, axis=1, keepdims=True)
    s = logits - mx
    lse = jnp.log(jnp.sum(jnp.exp(s), axis=1, keepdims=True))
    out_ref[...] = s - lse


# ------------------- wrapper-side weight folding (pure JAX glue) -----------------

def _conv1_row_matrix(conv1_w):
    """PyTorch (N1,N0,K1,K1) conv1 weight -> dense banded (K1*ROW1, CW1) matrix.

    Row index p = kh*ROW1 + w_in*N0 + ci  (patch = K1 concatenated padded rows);
    col index q = w*N1 + co; entry = conv1_w[co, ci, kh, w_in - w] if the tap is
    in range, else 0.
    """
    p = np.arange(K1 * ROW1)
    q = np.arange(CW1)
    kh = p // ROW1
    w_in = (p % ROW1) // N0
    ci = p % N0
    w = q // N1
    co = q % N1
    kw = w_in[:, None] - w[None, :]
    valid = (kw >= 0) & (kw < K1)
    kw_c = np.clip(kw, 0, K1 - 1)
    vals = conv1_w[co[None, :], ci[:, None], kh[:, None], kw_c]
    return jnp.where(valid, vals, 0.0).astype(jnp.float32)


def _conv2_row_matrix(conv2_w):
    """PyTorch (N2,N1,K2,K2) conv2 weight -> dense banded (K2*ROW2, CW2) matrix.

    Inputs are pooled conv1 rows in the spread layout (lane 2*N1*j + ci; lanes
    with ci >= N1 are garbage and get zero weights).  conv2's W padding (P2=1)
    is folded into the kw offset; its H padding is the kernel's zero rows.
    """
    p = np.arange(K2 * ROW2)
    q = np.arange(CW2)
    kh = p // ROW2
    j = (p % ROW2) // (2 * N1)
    cis = p % (2 * N1)
    w = q // N2
    co = q % N2
    kw = j[:, None] - w[None, :] + P2
    valid = (kw >= 0) & (kw < K2) & (cis[:, None] < N1)
    kw_c = np.clip(kw, 0, K2 - 1)
    ci_c = np.minimum(cis, N1 - 1)
    vals = conv2_w[co[None, :], ci_c[:, None], kh[:, None], kw_c]
    return jnp.where(valid, vals, 0.0).astype(jnp.float32)


def _fc1_matrix(fc1_w):
    """PyTorch (N4,N3) fc1 weight -> (NFEAT, N4) matrix indexed by spread lanes.

    Spread feature lane r = i*ROW3 + 2*N2*j + co maps to PyTorch flat feature
    index co*PH2*PH2 + i*PH2 + j (the (C,H,W) view order); garbage lanes -> 0.
    """
    r = np.arange(NFEAT)
    i = r // ROW3
    j = (r % ROW3) // (2 * N2)
    t = r % (2 * N2)
    valid = t < N2
    co = np.minimum(t, N2 - 1)
    flat = co * (PH2 * PH2) + i * PH2 + j
    rows = jnp.transpose(fc1_w)[flat, :]
    return jnp.where(valid[:, None], rows, 0.0).astype(jnp.float32)


def _pad_fc(w, b, k_pad, n_pad):
    """PyTorch (out,in) linear -> zero-padded (k_pad, n_pad) matrix + (1,n_pad) bias."""
    wt = jnp.transpose(w).astype(jnp.float32)
    wp = jnp.zeros((k_pad, n_pad), jnp.float32).at[:wt.shape[0], :wt.shape[1]].set(wt)
    bp = jnp.zeros((1, n_pad), jnp.float32).at[0, :b.shape[0]].set(b.astype(jnp.float32))
    return wp, bp


def init_params(key):
    ks = jax.random.split(key, 16)

    def init(k, shape, scale=0.1):
        return jax.random.normal(k, shape, jnp.float32) * scale

    p = {
        "conv1_w": init(ks[0], (N1, N0, K1, K1)),   # PyTorch layout (out, in, kh, kw)
        "conv1_b": init(ks[1], (N1,)),
        "conv2_w": init(ks[2], (N2, N1, K2, K2)),
        "conv2_b": init(ks[3], (N2,)),
    }
    fc_dims = [(N3, N4), (N4, N5), (N5, N6), (N6, N7), (N7, N8), (N8, N_CLS)]
    for i, (din, dout) in enumerate(fc_dims):
        p[f"fc{i + 1}_w"] = init(ks[4 + 2 * i], (dout, din))   # PyTorch layout (out, in)
        p[f"fc{i + 1}_b"] = init(ks[5 + 2 * i], (dout,))
    return p


@jax.jit
def stacked_net_forward(x_nchw, p):
    B = x_nchw.shape[0]

    # glue: NCHW -> per-row (B, H, W*C) layout, W zero-padded for conv1
    x = jnp.transpose(x_nchw, (0, 2, 3, 1)).astype(jnp.float32)      # NHWC
    x = jnp.pad(x, ((0, 0), (0, 0), (P1, P1), (0, 0)))               # pad W only (H pad in-kernel)
    x_rows = x.reshape(B, H_IN, ROW1)

    # batch tiling
    bt = min(B, MAX_BATCH_TILE)
    b_pad = ((B + bt - 1) // bt) * bt
    if b_pad != B:
        x_rows = jnp.pad(x_rows, ((0, b_pad - B), (0, 0), (0, 0)))

    # fold conv taps / pooled spread-lane layout / flatten order into the weights
    w1 = _conv1_row_matrix(p["conv1_w"])
    b1 = jnp.tile(p["conv1_b"].astype(jnp.float32), OH1)[None, :]    # (1, 136)
    w2 = _conv2_row_matrix(p["conv2_w"])
    b2 = jnp.tile(p["conv2_b"].astype(jnp.float32), OH2)[None, :]    # (1, 144)
    f1w = _fc1_matrix(p["fc1_w"])                                    # (512, 128)
    f1b = p["fc1_b"].astype(jnp.float32)[None, :]                    # (1, 128)
    f2w, f2b = _pad_fc(p["fc2_w"], p["fc2_b"], FC_PAD, FC_PAD)
    f3w, f3b = _pad_fc(p["fc3_w"], p["fc3_b"], FC_PAD, FC_PAD)
    f4w, f4b = _pad_fc(p["fc4_w"], p["fc4_b"], FC_PAD, FC_PAD)
    f5w, f5b = _pad_fc(p["fc5_w"], p["fc5_b"], FC_PAD, FC_PAD)
    f6w, f6b = _pad_fc(p["fc6_w"], p["fc6_b"], FC_PAD, N_CLS)

    weights = (w1, b1, w2, b2, f1w, f1b, f2w, f2b, f3w, f3b, f4w, f4b,
               f5w, f5b, f6w, f6b)

    def _const_spec(a):
        return pl.BlockSpec(a.shape, lambda g: (0, 0))               # all weights are 2-D

    out = pl.pallas_call(
        stacked_net_kernel,
        out_shape=jax.ShapeDtypeStruct((b_pad, N_CLS), jnp.float32),
        grid=(b_pad // bt,),
        in_specs=[pl.BlockSpec((bt, H_IN, ROW1), lambda g: (g, 0, 0))]
                 + [_const_spec(a) for a in weights],
        out_specs=pl.BlockSpec((bt, N_CLS), lambda g: (g, 0)),
        compiler_params=pltpu.CompilerParams(
            dimension_semantics=("parallel",),      # v7x: shard batch tiles over both TCs
            vmem_limit_bytes=32 * 1024 * 1024),
    )(x_rows, *weights)
    return out[:B]


def reference_forward(x_nchw, p):
    """Pure-JAX reference of the PyTorch module (eval mode)."""
    x = x_nchw.astype(jnp.float32)
    dn = ("NCHW", "OIHW", "NCHW")
    y = jax.lax.conv_general_dilated(x, p["conv1_w"], (1, 1), [(P1, P1), (P1, P1)],
                                     dimension_numbers=dn,
                                     precision=jax.lax.Precision.HIGHEST)
    y = y + p["conv1_b"][None, :, None, None]
    y = jax.lax.reduce_window(y, -jnp.inf, jax.lax.max, (1, 1, 2, 2), (1, 1, 2, 2), "VALID")
    y = jnp.maximum(y, 0.0)
    y = jax.lax.conv_general_dilated(y, p["conv2_w"], (1, 1), [(P2, P2), (P2, P2)],
                                     dimension_numbers=dn,
                                     precision=jax.lax.Precision.HIGHEST)
    y = y + p["conv2_b"][None, :, None, None]
    y = jax.lax.reduce_window(y, -jnp.inf, jax.lax.max, (1, 1, 2, 2), (1, 1, 2, 2), "VALID")
    y = jnp.maximum(y, 0.0)
    h = y.reshape(y.shape[0], -1)
    for i in range(1, 6):
        h = jnp.maximum(h @ p[f"fc{i}_w"].T + p[f"fc{i}_b"], 0.0)
    logits = h @ p["fc6_w"].T + p["fc6_b"]
    return jax.nn.log_softmax(logits, axis=1)


if __name__ == "__main__":
    key = jax.random.PRNGKey(0)
    k_x, k_p = jax.random.split(key)
    B = 2
    x = jax.random.normal(k_x, (B, N0, H_IN, W_IN), jnp.float32)  # NCHW, like PyTorch
    params = init_params(k_p)

    out = stacked_net_forward(x, params)
    out = jax.block_until_ready(out)

    assert out.shape == (B, N_CLS), out.shape
    # log_softmax rows must exponentiate-sum to 1
    assert jnp.allclose(jnp.sum(jnp.exp(out), axis=1), 1.0, atol=1e-4)
    # match the pure-JAX reference of the PyTorch module (eval mode)
    ref = reference_forward(x, params)
    assert jnp.allclose(out, ref, atol=1e-2, rtol=1e-2), float(jnp.max(jnp.abs(out - ref)))
    print("KERNEL_OK")
</pallas_src>

<mosaic_0001>
module attributes {stable_mosaic.version = 11 : i64} {
  func.func @stacked_net_kernel(%arg0: i32, %arg1: memref<2x16x80xf32, #tpu.memory_space<vmem>>, %arg2: memref<320x136xf32, #tpu.memory_space<vmem>>, %arg3: memref<1x136xf32, #tpu.memory_space<vmem>>, %arg4: memref<256x144xf32, #tpu.memory_space<vmem>>, %arg5: memref<1x144xf32, #tpu.memory_space<vmem>>, %arg6: memref<512x128xf32, #tpu.memory_space<vmem>>, %arg7: memref<1x128xf32, #tpu.memory_space<vmem>>, %arg8: memref<128x128xf32, #tpu.memory_space<vmem>>, %arg9: memref<1x128xf32, #tpu.memory_space<vmem>>, %arg10: memref<128x128xf32, #tpu.memory_space<vmem>>, %arg11: memref<1x128xf32, #tpu.memory_space<vmem>>, %arg12: memref<128x128xf32, #tpu.memory_space<vmem>>, %arg13: memref<1x128xf32, #tpu.memory_space<vmem>>, %arg14: memref<128x128xf32, #tpu.memory_space<vmem>>, %arg15: memref<1x128xf32, #tpu.memory_space<vmem>>, %arg16: memref<128x10xf32, #tpu.memory_space<vmem>>, %arg17: memref<1x10xf32, #tpu.memory_space<vmem>>, %arg18: memref<2x10xf32, #tpu.memory_space<vmem>>) attributes {dimension_semantics = [#tpu.dimension_semantics<parallel>], iteration_bounds = array<i64: 1>, scalar_prefetch = 0 : i64, scratch_operands = 0 : i64, tpu.core_type = #tpu.core_type<tc>, window_params = [{transform_indices = @transform_0, window_bounds = array<i64: 2, 16, 80>}, {pipeline_mode = #tpu.pipeline_mode<synchronous>, transform_indices = @transform_1, window_bounds = array<i64: 320, 136>}, {pipeline_mode = #tpu.pipeline_mode<synchronous>, transform_indices = @transform_2, window_bounds = array<i64: 1, 136>}, {pipeline_mode = #tpu.pipeline_mode<synchronous>, transform_indices = @transform_3, window_bounds = array<i64: 256, 144>}, {pipeline_mode = #tpu.pipeline_mode<synchronous>, transform_indices = @transform_4, window_bounds = array<i64: 1, 144>}, {pipeline_mode = #tpu.pipeline_mode<synchronous>, transform_indices = @transform_5, window_bounds = array<i64: 512, 128>}, {pipeline_mode = #tpu.pipeline_mode<synchronous>, transform_indices = @transform_6, window_bounds = array<i64: 1, 128>}, {pipeline_mode = #tpu.pipeline_mode<synchronous>, transform_indices = @transform_7, window_bounds = array<i64: 128, 128>}, {pipeline_mode = #tpu.pipeline_mode<synchronous>, transform_indices = @transform_8, window_bounds = array<i64: 1, 128>}, {pipeline_mode = #tpu.pipeline_mode<synchronous>, transform_indices = @transform_9, window_bounds = array<i64: 128, 128>}, {pipeline_mode = #tpu.pipeline_mode<synchronous>, transform_indices = @transform_10, window_bounds = array<i64: 1, 128>}, {pipeline_mode = #tpu.pipeline_mode<synchronous>, transform_indices = @transform_11, window_bounds = array<i64: 128, 128>}, {pipeline_mode = #tpu.pipeline_mode<synchronous>, transform_indices = @transform_12, window_bounds = array<i64: 1, 128>}, {pipeline_mode = #tpu.pipeline_mode<synchronous>, transform_indices = @transform_13, window_bounds = array<i64: 128, 128>}, {pipeline_mode = #tpu.pipeline_mode<synchronous>, transform_indices = @transform_14, window_bounds = array<i64: 1, 128>}, {pipeline_mode = #tpu.pipeline_mode<synchronous>, transform_indices = @transform_15, window_bounds = array<i64: 128, 10>}, {pipeline_mode = #tpu.pipeline_mode<synchronous>, transform_indices = @transform_16, window_bounds = array<i64: 1, 10>}, {transform_indices = @transform_17, window_bounds = array<i64: 2, 10>}]} {
    %cst = arith.constant 0.000000e+00 : f32
    %0 = vector.broadcast %cst : f32 to vector<2x80xf32>
    %c0 = arith.constant 0 : index
    %c0_0 = arith.constant 0 : index
    %c0_1 = arith.constant 0 : index
    %1 = vector.load %arg1[%c0, %c0_0, %c0_1] : memref<2x16x80xf32, #tpu.memory_space<vmem>>, vector<2x1x80xf32>
    %2 = vector.shape_cast %1 : vector<2x1x80xf32> to vector<2x80xf32>
    %c0_2 = arith.constant 0 : index
    %c1 = arith.constant 1 : index
    %c0_3 = arith.constant 0 : index
    %3 = vector.load %arg1[%c0_2, %c1, %c0_3] : memref<2x16x80xf32, #tpu.memory_space<vmem>>, vector<2x1x80xf32>
    %4 = vector.shape_cast %3 : vector<2x1x80xf32> to vector<2x80xf32>
    %c0_4 = arith.constant 0 : index
    %c2 = arith.constant 2 : index
    %c0_5 = arith.constant 0 : index
    %5 = vector.load %arg1[%c0_4, %c2, %c0_5] : memref<2x16x80xf32, #tpu.memory_space<vmem>>, vector<2x1x80xf32>
    %6 = vector.shape_cast %5 : vector<2x1x80xf32> to vector<2x80xf32>
    %c0_6 = arith.constant 0 : index
    %c3 = arith.constant 3 : index
    %c0_7 = arith.constant 0 : index
    %7 = vector.load %arg1[%c0_6, %c3, %c0_7] : memref<2x16x80xf32, #tpu.memory_space<vmem>>, vector<2x1x80xf32>
    %8 = vector.shape_cast %7 : vector<2x1x80xf32> to vector<2x80xf32>
    %c0_8 = arith.constant 0 : index
    %c4 = arith.constant 4 : index
    %c0_9 = arith.constant 0 : index
    %9 = vector.load %arg1[%c0_8, %c4, %c0_9] : memref<2x16x80xf32, #tpu.memory_space<vmem>>, vector<2x1x80xf32>
    %10 = vector.shape_cast %9 : vector<2x1x80xf32> to vector<2x80xf32>
    %c0_10 = arith.constant 0 : index
    %c5 = arith.constant 5 : index
    %c0_11 = arith.constant 0 : index
    %11 = vector.load %arg1[%c0_10, %c5, %c0_11] : memref<2x16x80xf32, #tpu.memory_space<vmem>>, vector<2x1x80xf32>
    %12 = vector.shape_cast %11 : vector<2x1x80xf32> to vector<2x80xf32>
    %c0_12 = arith.constant 0 : index
    %c6 = arith.constant 6 : index
    %c0_13 = arith.constant 0 : index
    %13 = vector.load %arg1[%c0_12, %c6, %c0_13] : memref<2x16x80xf32, #tpu.memory_space<vmem>>, vector<2x1x80xf32>
    %14 = vector.shape_cast %13 : vector<2x1x80xf32> to vector<2x80xf32>
    %c0_14 = arith.constant 0 : index
    %c7 = arith.constant 7 : index
    %c0_15 = arith.constant 0 : index
    %15 = vector.load %arg1[%c0_14, %c7, %c0_15] : memref<2x16x80xf32, #tpu.memory_space<vmem>>, vector<2x1x80xf32>
    %16 = vector.shape_cast %15 : vector<2x1x80xf32> to vector<2x80xf32>
    %c0_16 = arith.constant 0 : index
    %c8 = arith.constant 8 : index
    %c0_17 = arith.constant 0 : index
    %17 = vector.load %arg1[%c0_16, %c8, %c0_17] : memref<2x16x80xf32, #tpu.memory_space<vmem>>, vector<2x1x80xf32>
    %18 = vector.shape_cast %17 : vector<2x1x80xf32> to vector<2x80xf32>
    %c0_18 = arith.constant 0 : index
    %c9 = arith.constant 9 : index
    %c0_19 = arith.constant 0 : index
    %19 = vector.load %arg1[%c0_18, %c9, %c0_19] : memref<2x16x80xf32, #tpu.memory_space<vmem>>, vector<2x1x80xf32>
    %20 = vector.shape_cast %19 : vector<2x1x80xf32> to vector<2x80xf32>
    %c0_20 = arith.constant 0 : index
    %c10 = arith.constant 10 : index
    %c0_21 = arith.constant 0 : index
    %21 = vector.load %arg1[%c0_20, %c10, %c0_21] : memref<2x16x80xf32, #tpu.memory_space<vmem>>, vector<2x1x80xf32>
    %22 = vector.shape_cast %21 : vector<2x1x80xf32> to vector<2x80xf32>
    %c0_22 = arith.constant 0 : index
    %c11 = arith.constant 11 : index
    %c0_23 = arith.constant 0 : index
    %23 = vector.load %arg1[%c0_22, %c11, %c0_23] : memref<2x16x80xf32, #tpu.memory_space<vmem>>, vector<2x1x80xf32>
    %24 = vector.shape_cast %23 : vector<2x1x80xf32> to vector<2x80xf32>
    %c0_24 = arith.constant 0 : index
    %c12 = arith.constant 12 : index
    %c0_25 = arith.constant 0 : index
    %25 = vector.load %arg1[%c0_24, %c12, %c0_25] : memref<2x16x80xf32, #tpu.memory_space<vmem>>, vector<2x1x80xf32>
    %26 = vector.shape_cast %25 : vector<2x1x80xf32> to vector<2x80xf32>
    %c0_26 = arith.constant 0 : index
    %c13 = arith.constant 13 : index
    %c0_27 = arith.constant 0 : index
    %27 = vector.load %arg1[%c0_26, %c13, %c0_27] : memref<2x16x80xf32, #tpu.memory_space<vmem>>, vector<2x1x80xf32>
    %28 = vector.shape_cast %27 : vector<2x1x80xf32> to vector<2x80xf32>
    %c0_28 = arith.constant 0 : index
    %c14 = arith.constant 14 : index
    %c0_29 = arith.constant 0 : index
    %29 = vector.load %arg1[%c0_28, %c14, %c0_29] : memref<2x16x80xf32, #tpu.memory_space<vmem>>, vector<2x1x80xf32>
    %30 = vector.shape_cast %29 : vector<2x1x80xf32> to vector<2x80xf32>
    %c0_30 = arith.constant 0 : index
    %c15 = arith.constant 15 : index
    %c0_31 = arith.constant 0 : index
    %31 = vector.load %arg1[%c0_30, %c15, %c0_31] : memref<2x16x80xf32, #tpu.memory_space<vmem>>, vector<2x1x80xf32>
    %32 = vector.shape_cast %31 : vector<2x1x80xf32> to vector<2x80xf32>
    %c0_32 = arith.constant 0 : index
    %c0_33 = arith.constant 0 : index
    %33 = vector.load %arg2[%c0_32, %c0_33] : memref<320x136xf32, #tpu.memory_space<vmem>>, vector<320x136xf32>
    %c0_34 = arith.constant 0 : index
    %c0_35 = arith.constant 0 : index
    %34 = vector.load %arg3[%c0_34, %c0_35] : memref<1x136xf32, #tpu.memory_space<vmem>>, vector<1x136xf32>
    %35 = vector.shape_cast %34 : vector<1x136xf32> to vector<1x136xf32>
    %36 = vector.broadcast %35 : vector<1x136xf32> to vector<2x136xf32>
    %37 = tpu.concatenate %0, %0, %2, %4 in 1 : vector<2x80xf32>, vector<2x80xf32>, vector<2x80xf32>, vector<2x80xf32> -> vector<2x320xf32>
    %cst_36 = arith.constant dense<0.000000e+00> : vector<2x136xf32>
    %38 = tpu.matmul %37, %33, %cst_36 {dimension_numbers = #tpu.dot_dimension_numbers<[1], [0], [0], [1], [0, 0, 1, 1], [], []>} : vector<2x320xf32>, vector<320x136xf32>, vector<2x136xf32> -> vector<2x136xf32>
    %39 = arith.addf %38, %36 : vector<2x136xf32>
    %40 = tpu.concatenate %0, %2, %4, %6 in 1 : vector<2x80xf32>, vector<2x80xf32>, vector<2x80xf32>, vector<2x80xf32> -> vector<2x320xf32>
    %cst_37 = arith.constant dense<0.000000e+00> : vector<2x136xf32>
    %41 = tpu.matmul %40, %33, %cst_37 {dimension_numbers = #tpu.dot_dimension_numbers<[1], [0], [0], [1], [0, 0, 1, 1], [], []>} : vector<2x320xf32>, vector<320x136xf32>, vector<2x136xf32> -> vector<2x136xf32>
    %42 = arith.addf %41, %36 : vector<2x136xf32>
    %43 = tpu.concatenate %2, %4, %6, %8 in 1 : vector<2x80xf32>, vector<2x80xf32>, vector<2x80xf32>, vector<2x80xf32> -> vector<2x320xf32>
    %cst_38 = arith.constant dense<0.000000e+00> : vector<2x136xf32>
    %44 = tpu.matmul %43, %33, %cst_38 {dimension_numbers = #tpu.dot_dimension_numbers<[1], [0], [0], [1], [0, 0, 1, 1], [], []>} : vector<2x320xf32>, vector<320x136xf32>, vector<2x136xf32> -> vector<2x136xf32>
    %45 = arith.addf %44, %36 : vector<2x136xf32>
    %46 = tpu.concatenate %4, %6, %8, %10 in 1 : vector<2x80xf32>, vector<2x80xf32>, vector<2x80xf32>, vector<2x80xf32> -> vector<2x320xf32>
    %cst_39 = arith.constant dense<0.000000e+00> : vector<2x136xf32>
    %47 = tpu.matmul %46, %33, %cst_39 {dimension_numbers = #tpu.dot_dimension_numbers<[1], [0], [0], [1], [0, 0, 1, 1], [], []>} : vector<2x320xf32>, vector<320x136xf32>, vector<2x136xf32> -> vector<2x136xf32>
    %48 = arith.addf %47, %36 : vector<2x136xf32>
    %49 = tpu.concatenate %6, %8, %10, %12 in 1 : vector<2x80xf32>, vector<2x80xf32>, vector<2x80xf32>, vector<2x80xf32> -> vector<2x320xf32>
    %cst_40 = arith.constant dense<0.000000e+00> : vector<2x136xf32>
    %50 = tpu.matmul %49, %33, %cst_40 {dimension_numbers = #tpu.dot_dimension_numbers<[1], [0], [0], [1], [0, 0, 1, 1], [], []>} : vector<2x320xf32>, vector<320x136xf32>, vector<2x136xf32> -> vector<2x136xf32>
    %51 = arith.addf %50, %36 : vector<2x136xf32>
    %52 = tpu.concatenate %8, %10, %12, %14 in 1 : vector<2x80xf32>, vector<2x80xf32>, vector<2x80xf32>, vector<2x80xf32> -> vector<2x320xf32>
    %cst_41 = arith.constant dense<0.000000e+00> : vector<2x136xf32>
    %53 = tpu.matmul %52, %33, %cst_41 {dimension_numbers = #tpu.dot_dimension_numbers<[1], [0], [0], [1], [0, 0, 1, 1], [], []>} : vector<2x320xf32>, vector<320x136xf32>, vector<2x136xf32> -> vector<2x136xf32>
    %54 = arith.addf %53, %36 : vector<2x136xf32>
    %55 = tpu.concatenate %10, %12, %14, %16 in 1 : vector<2x80xf32>, vector<2x80xf32>, vector<2x80xf32>, vector<2x80xf32> -> vector<2x320xf32>
    %cst_42 = arith.constant dense<0.000000e+00> : vector<2x136xf32>
    %56 = tpu.matmul %55, %33, %cst_42 {dimension_numbers = #tpu.dot_dimension_numbers<[1], [0], [0], [1], [0, 0, 1, 1], [], []>} : vector<2x320xf32>, vector<320x136xf32>, vector<2x136xf32> -> vector<2x136xf32>
    %57 = arith.addf %56, %36 : vector<2x136xf32>
    %58 = tpu.concatenate %12, %14, %16, %18 in 1 : vector<2x80xf32>, vector<2x80xf32>, vector<2x80xf32>, vector<2x80xf32> -> vector<2x320xf32>
    %cst_43 = arith.constant dense<0.000000e+00> : vector<2x136xf32>
    %59 = tpu.matmul %58, %33, %cst_43 {dimension_numbers = #tpu.dot_dimension_numbers<[1], [0], [0], [1], [0, 0, 1, 1], [], []>} : vector<2x320xf32>, vector<320x136xf32>, vector<2x136xf32> -> vector<2x136xf32>
    %60 = arith.addf %59, %36 : vector<2x136xf32>
    %61 = tpu.concatenate %14, %16, %18, %20 in 1 : vector<2x80xf32>, vector<2x80xf32>, vector<2x80xf32>, vector<2x80xf32> -> vector<2x320xf32>
    %cst_44 = arith.constant dense<0.000000e+00> : vector<2x136xf32>
    %62 = tpu.matmul %61, %33, %cst_44 {dimension_numbers = #tpu.dot_dimension_numbers<[1], [0], [0], [1], [0, 0, 1, 1], [], []>} : vector<2x320xf32>, vector<320x136xf32>, vector<2x136xf32> -> vector<2x136xf32>
    %63 = arith.addf %62, %36 : vector<2x136xf32>
    %64 = tpu.concatenate %16, %18, %20, %22 in 1 : vector<2x80xf32>, vector<2x80xf32>, vector<2x80xf32>, vector<2x80xf32> -> vector<2x320xf32>
    %cst_45 = arith.constant dense<0.000000e+00> : vector<2x136xf32>
    %65 = tpu.matmul %64, %33, %cst_45 {dimension_numbers = #tpu.dot_dimension_numbers<[1], [0], [0], [1], [0, 0, 1, 1], [], []>} : vector<2x320xf32>, vector<320x136xf32>, vector<2x136xf32> -> vector<2x136xf32>
    %66 = arith.addf %65, %36 : vector<2x136xf32>
    %67 = tpu.concatenate %18, %20, %22, %24 in 1 : vector<2x80xf32>, vector<2x80xf32>, vector<2x80xf32>, vector<2x80xf32> -> vector<2x320xf32>
    %cst_46 = arith.constant dense<0.000000e+00> : vector<2x136xf32>
    %68 = tpu.matmul %67, %33, %cst_46 {dimension_numbers = #tpu.dot_dimension_numbers<[1], [0], [0], [1], [0, 0, 1, 1], [], []>} : vector<2x320xf32>, vector<320x136xf32>, vector<2x136xf32> -> vector<2x136xf32>
    %69 = arith.addf %68, %36 : vector<2x136xf32>
    %70 = tpu.concatenate %20, %22, %24, %26 in 1 : vector<2x80xf32>, vector<2x80xf32>, vector<2x80xf32>, vector<2x80xf32> -> vector<2x320xf32>
    %cst_47 = arith.constant dense<0.000000e+00> : vector<2x136xf32>
    %71 = tpu.matmul %70, %33, %cst_47 {dimension_numbers = #tpu.dot_dimension_numbers<[1], [0], [0], [1], [0, 0, 1, 1], [], []>} : vector<2x320xf32>, vector<320x136xf32>, vector<2x136xf32> -> vector<2x136xf32>
    %72 = arith.addf %71, %36 : vector<2x136xf32>
    %73 = tpu.concatenate %22, %24, %26, %28 in 1 : vector<2x80xf32>, vector<2x80xf32>, vector<2x80xf32>, vector<2x80xf32> -> vector<2x320xf32>
    %cst_48 = arith.constant dense<0.000000e+00> : vector<2x136xf32>
    %74 = tpu.matmul %73, %33, %cst_48 {dimension_numbers = #tpu.dot_dimension_numbers<[1], [0], [0], [1], [0, 0, 1, 1], [], []>} : vector<2x320xf32>, vector<320x136xf32>, vector<2x136xf32> -> vector<2x136xf32>
    %75 = arith.addf %74, %36 : vector<2x136xf32>
    %76 = tpu.concatenate %24, %26, %28, %30 in 1 : vector<2x80xf32>, vector<2x80xf32>, vector<2x80xf32>, vector<2x80xf32> -> vector<2x320xf32>
    %cst_49 = arith.constant dense<0.000000e+00> : vector<2x136xf32>
    %77 = tpu.matmul %76, %33, %cst_49 {dimension_numbers = #tpu.dot_dimension_numbers<[1], [0], [0], [1], [0, 0, 1, 1], [], []>} : vector<2x320xf32>, vector<320x136xf32>, vector<2x136xf32> -> vector<2x136xf32>
    %78 = arith.addf %77, %36 : vector<2x136xf32>
    %79 = tpu.concatenate %26, %28, %30, %32 in 1 : vector<2x80xf32>, vector<2x80xf32>, vector<2x80xf32>, vector<2x80xf32> -> vector<2x320xf32>
    %cst_50 = arith.constant dense<0.000000e+00> : vector<2x136xf32>
    %80 = tpu.matmul %79, %33, %cst_50 {dimension_numbers = #tpu.dot_dimension_numbers<[1], [0], [0], [1], [0, 0, 1, 1], [], []>} : vector<2x320xf32>, vector<320x136xf32>, vector<2x136xf32> -> vector<2x136xf32>
    %81 = arith.addf %80, %36 : vector<2x136xf32>
    %82 = tpu.concatenate %28, %30, %32, %0 in 1 : vector<2x80xf32>, vector<2x80xf32>, vector<2x80xf32>, vector<2x80xf32> -> vector<2x320xf32>
    %cst_51 = arith.constant dense<0.000000e+00> : vector<2x136xf32>
    %83 = tpu.matmul %82, %33, %cst_51 {dimension_numbers = #tpu.dot_dimension_numbers<[1], [0], [0], [1], [0, 0, 1, 1], [], []>} : vector<2x320xf32>, vector<320x136xf32>, vector<2x136xf32> -> vector<2x136xf32>
    %84 = arith.addf %83, %36 : vector<2x136xf32>
    %85 = arith.maximumf %39, %42 : vector<2x136xf32>
    %86 = vector.extract_strided_slice %85 {offsets = [0, 0], sizes = [2, 128], strides = [1, 1]} : vector<2x136xf32> to vector<2x128xf32>
    %87 = vector.extract_strided_slice %85 {offsets = [0, 8], sizes = [2, 128], strides = [1, 1]} : vector<2x136xf32> to vector<2x128xf32>
    %88 = arith.maximumf %86, %87 : vector<2x128xf32>
    %cst_52 = arith.constant 0.000000e+00 : f32
    %89 = vector.broadcast %cst_52 : f32 to vector<2x128xf32>
    %90 = arith.maximumf %88, %89 : vector<2x128xf32>
    %91 = arith.maximumf %45, %48 : vector<2x136xf32>
    %92 = vector.extract_strided_slice %91 {offsets = [0, 0], sizes = [2, 128], strides = [1, 1]} : vector<2x136xf32> to vector<2x128xf32>
    %93 = vector.extract_strided_slice %91 {offsets = [0, 8], sizes = [2, 128], strides = [1, 1]} : vector<2x136xf32> to vector<2x128xf32>
    %94 = arith.maximumf %92, %93 : vector<2x128xf32>
    %cst_53 = arith.constant 0.000000e+00 : f32
    %95 = vector.broadcast %cst_53 : f32 to vector<2x128xf32>
    %96 = arith.maximumf %94, %95 : vector<2x128xf32>
    %97 = arith.maximumf %51, %54 : vector<2x136xf32>
    %98 = vector.extract_strided_slice %97 {offsets = [0, 0], sizes = [2, 128], strides = [1, 1]} : vector<2x136xf32> to vector<2x128xf32>
    %99 = vector.extract_strided_slice %97 {offsets = [0, 8], sizes = [2, 128], strides = [1, 1]} : vector<2x136xf32> to vector<2x128xf32>
    %100 = arith.maximumf %98, %99 : vector<2x128xf32>
    %cst_54 = arith.constant 0.000000e+00 : f32
    %101 = vector.broadcast %cst_54 : f32 to vector<2x128xf32>
    %102 = arith.maximumf %100, %101 : vector<2x128xf32>
    %103 = arith.maximumf %57, %60 : vector<2x136xf32>
    %104 = vector.extract_strided_slice %103 {offsets = [0, 0], sizes = [2, 128], strides = [1, 1]} : vector<2x136xf32> to vector<2x128xf32>
    %105 = vector.extract_strided_slice %103 {offsets = [0, 8], sizes = [2, 128], strides = [1, 1]} : vector<2x136xf32> to vector<2x128xf32>
    %106 = arith.maximumf %104, %105 : vector<2x128xf32>
    %cst_55 = arith.constant 0.000000e+00 : f32
    %107 = vector.broadcast %cst_55 : f32 to vector<2x128xf32>
    %108 = arith.maximumf %106, %107 : vector<2x128xf32>
    %109 = arith.maximumf %63, %66 : vector<2x136xf32>
    %110 = vector.extract_strided_slice %109 {offsets = [0, 0], sizes = [2, 128], strides = [1, 1]} : vector<2x136xf32> to vector<2x128xf32>
    %111 = vector.extract_strided_slice %109 {offsets = [0, 8], sizes = [2, 128], strides = [1, 1]} : vector<2x136xf32> to vector<2x128xf32>
    %112 = arith.maximumf %110, %111 : vector<2x128xf32>
    %cst_56 = arith.constant 0.000000e+00 : f32
    %113 = vector.broadcast %cst_56 : f32 to vector<2x128xf32>
    %114 = arith.maximumf %112, %113 : vector<2x128xf32>
    %115 = arith.maximumf %69, %72 : vector<2x136xf32>
    %116 = vector.extract_strided_slice %115 {offsets = [0, 0], sizes = [2, 128], strides = [1, 1]} : vector<2x136xf32> to vector<2x128xf32>
    %117 = vector.extract_strided_slice %115 {offsets = [0, 8], sizes = [2, 128], strides = [1, 1]} : vector<2x136xf32> to vector<2x128xf32>
    %118 = arith.maximumf %116, %117 : vector<2x128xf32>
    %cst_57 = arith.constant 0.000000e+00 : f32
    %119 = vector.broadcast %cst_57 : f32 to vector<2x128xf32>
    %120 = arith.maximumf %118, %119 : vector<2x128xf32>
    %121 = arith.maximumf %75, %78 : vector<2x136xf32>
    %122 = vector.extract_strided_slice %121 {offsets = [0, 0], sizes = [2, 128], strides = [1, 1]} : vector<2x136xf32> to vector<2x128xf32>
    %123 = vector.extract_strided_slice %121 {offsets = [0, 8], sizes = [2, 128], strides = [1, 1]} : vector<2x136xf32> to vector<2x128xf32>
    %124 = arith.maximumf %122, %123 : vector<2x128xf32>
    %cst_58 = arith.constant 0.000000e+00 : f32
    %125 = vector.broadcast %cst_58 : f32 to vector<2x128xf32>
    %126 = arith.maximumf %124, %125 : vector<2x128xf32>
    %127 = arith.maximumf %81, %84 : vector<2x136xf32>
    %128 = vector.extract_strided_slice %127 {offsets = [0, 0], sizes = [2, 128], strides = [1, 1]} : vector<2x136xf32> to vector<2x128xf32>
    %129 = vector.extract_strided_slice %127 {offsets = [0, 8], sizes = [2, 128], strides = [1, 1]} : vector<2x136xf32> to vector<2x128xf32>
    %130 = arith.maximumf %128, %129 : vector<2x128xf32>
    %cst_59 = arith.constant 0.000000e+00 : f32
    %131 = vector.broadcast %cst_59 : f32 to vector<2x128xf32>
    %132 = arith.maximumf %130, %131 : vector<2x128xf32>
    %cst_60 = arith.constant 0.000000e+00 : f32
    %133 = vector.broadcast %cst_60 : f32 to vector<2x128xf32>
    %c0_61 = arith.constant 0 : index
    %c0_62 = arith.constant 0 : index
    %134 = vector.load %arg4[%c0_61, %c0_62] : memref<256x144xf32, #tpu.memory_space<vmem>>, vector<256x144xf32>
    %c0_63 = arith.constant 0 : index
    %c0_64 = arith.constant 0 : index
    %135 = vector.load %arg5[%c0_63, %c0_64] : memref<1x144xf32, #tpu.memory_space<vmem>>, vector<1x144xf32>
    %136 = vector.shape_cast %135 : vector<1x144xf32> to vector<1x144xf32>
    %137 = vector.broadcast %136 : vector<1x144xf32> to vector<2x144xf32>
    %138 = tpu.concatenate %133, %90 in 1 : vector<2x128xf32>, vector<2x128xf32> -> vector<2x256xf32>
    %cst_65 = arith.constant dense<0.000000e+00> : vector<2x144xf32>
    %139 = tpu.matmul %138, %134, %cst_65 {dimension_numbers = #tpu.dot_dimension_numbers<[1], [0], [0], [1], [0, 0, 1, 1], [], []>} : vector<2x256xf32>, vector<256x144xf32>, vector<2x144xf32> -> vector<2x144xf32>
    %140 = arith.addf %139, %137 : vector<2x144xf32>
    %141 = tpu.concatenate %90, %96 in 1 : vector<2x128xf32>, vector<2x128xf32> -> vector<2x256xf32>
    %cst_66 = arith.constant dense<0.000000e+00> : vector<2x144xf32>
    %142 = tpu.matmul %141, %134, %cst_66 {dimension_numbers = #tpu.dot_dimension_numbers<[1], [0], [0], [1], [0, 0, 1, 1], [], []>} : vector<2x256xf32>, vector<256x144xf32>, vector<2x144xf32> -> vector<2x144xf32>
    %143 = arith.addf %142, %137 : vector<2x144xf32>
    %144 = tpu.concatenate %96, %102 in 1 : vector<2x128xf32>, vector<2x128xf32> -> vector<2x256xf32>
    %cst_67 = arith.constant dense<0.000000e+00> : vector<2x144xf32>
    %145 = tpu.matmul %144, %134, %cst_67 {dimension_numbers = #tpu.dot_dimension_numbers<[1], [0], [0], [1], [0, 0, 1, 1], [], []>} : vector<2x256xf32>, vector<256x144xf32>, vector<2x144xf32> -> vector<2x144xf32>
    %146 = arith.addf %145, %137 : vector<2x144xf32>
    %147 = tpu.concatenate %102, %108 in 1 : vector<2x128xf32>, vector<2x128xf32> -> vector<2x256xf32>
    %cst_68 = arith.constant dense<0.000000e+00> : vector<2x144xf32>
    %148 = tpu.matmul %147, %134, %cst_68 {dimension_numbers = #tpu.dot_dimension_numbers<[1], [0], [0], [1], [0, 0, 1, 1], [], []>} : vector<2x256xf32>, vector<256x144xf32>, vector<2x144xf32> -> vector<2x144xf32>
    %149 = arith.addf %148, %137 : vector<2x144xf32>
    %150 = tpu.concatenate %108, %114 in 1 : vector<2x128xf32>, vector<2x128xf32> -> vector<2x256xf32>
    %cst_69 = arith.constant dense<0.000000e+00> : vector<2x144xf32>
    %151 = tpu.matmul %150, %134, %cst_69 {dimension_numbers = #tpu.dot_dimension_numbers<[1], [0], [0], [1], [0, 0, 1, 1], [], []>} : vector<2x256xf32>, vector<256x144xf32>, vector<2x144xf32> -> vector<2x144xf32>
    %152 = arith.addf %151, %137 : vector<2x144xf32>
    %153 = tpu.concatenate %114, %120 in 1 : vector<2x128xf32>, vector<2x128xf32> -> vector<2x256xf32>
    %cst_70 = arith.constant dense<0.000000e+00> : vector<2x144xf32>
    %154 = tpu.matmul %153, %134, %cst_70 {dimension_numbers = #tpu.dot_dimension_numbers<[1], [0], [0], [1], [0, 0, 1, 1], [], []>} : vector<2x256xf32>, vector<256x144xf32>, vector<2x144xf32> -> vector<2x144xf32>
    %155 = arith.addf %154, %137 : vector<2x144xf32>
    %156 = tpu.concatenate %120, %126 in 1 : vector<2x128xf32>, vector<2x128xf32> -> vector<2x256xf32>
    %cst_71 = arith.constant dense<0.000000e+00> : vector<2x144xf32>
    %157 = tpu.matmul %156, %134, %cst_71 {dimension_numbers = #tpu.dot_dimension_numbers<[1], [0], [0], [1], [0, 0, 1, 1], [], []>} : vector<2x256xf32>, vector<256x144xf32>, vector<2x144xf32> -> vector<2x144xf32>
    %158 = arith.addf %157, %137 : vector<2x144xf32>
    %159 = tpu.concatenate %126, %132 in 1 : vector<2x128xf32>, vector<2x128xf32> -> vector<2x256xf32>
    %cst_72 = arith.constant dense<0.000000e+00> : vector<2x144xf32>
    %160 = tpu.matmul %159, %134, %cst_72 {dimension_numbers = #tpu.dot_dimension_numbers<[1], [0], [0], [1], [0, 0, 1, 1], [], []>} : vector<2x256xf32>, vector<256x144xf32>, vector<2x144xf32> -> vector<2x144xf32>
    %161 = arith.addf %160, %137 : vector<2x144xf32>
    %162 = arith.maximumf %140, %143 : vector<2x144xf32>
    %163 = vector.extract_strided_slice %162 {offsets = [0, 0], sizes = [2, 128], strides = [1, 1]} : vector<2x144xf32> to vector<2x128xf32>
    %164 = vector.extract_strided_slice %162 {offsets = [0, 16], sizes = [2, 128], strides = [1, 1]} : vector<2x144xf32> to vector<2x128xf32>
    %165 = arith.maximumf %163, %164 : vector<2x128xf32>
    %cst_73 = arith.constant 0.000000e+00 : f32
    %166 = vector.broadcast %cst_73 : f32 to vector<2x128xf32>
    %167 = arith.maximumf %165, %166 : vector<2x128xf32>
    %168 = arith.maximumf %146, %149 : vector<2x144xf32>
    %169 = vector.extract_strided_slice %168 {offsets = [0, 0], sizes = [2, 128], strides = [1, 1]} : vector<2x144xf32> to vector<2x128xf32>
    %170 = vector.extract_strided_slice %168 {offsets = [0, 16], sizes = [2, 128], strides = [1, 1]} : vector<2x144xf32> to vector<2x128xf32>
    %171 = arith.maximumf %169, %170 : vector<2x128xf32>
    %cst_74 = arith.constant 0.000000e+00 : f32
    %172 = vector.broadcast %cst_74 : f32 to vector<2x128xf32>
    %173 = arith.maximumf %171, %172 : vector<2x128xf32>
    %174 = arith.maximumf %152, %155 : vector<2x144xf32>
    %175 = vector.extract_strided_slice %174 {offsets = [0, 0], sizes = [2, 128], strides = [1, 1]} : vector<2x144xf32> to vector<2x128xf32>
    %176 = vector.extract_strided_slice %174 {offsets = [0, 16], sizes = [2, 128], strides = [1, 1]} : vector<2x144xf32> to vector<2x128xf32>
    %177 = arith.maximumf %175, %176 : vector<2x128xf32>
    %cst_75 = arith.constant 0.000000e+00 : f32
    %178 = vector.broadcast %cst_75 : f32 to vector<2x128xf32>
    %179 = arith.maximumf %177, %178 : vector<2x128xf32>
    %180 = arith.maximumf %158, %161 : vector<2x144xf32>
    %181 = vector.extract_strided_slice %180 {offsets = [0, 0], sizes = [2, 128], strides = [1, 1]} : vector<2x144xf32> to vector<2x128xf32>
    %182 = vector.extract_strided_slice %180 {offsets = [0, 16], sizes = [2, 128], strides = [1, 1]} : vector<2x144xf32> to vector<2x128xf32>
    %183 = arith.maximumf %181, %182 : vector<2x128xf32>
    %cst_76 = arith.constant 0.000000e+00 : f32
    %184 = vector.broadcast %cst_76 : f32 to vector<2x128xf32>
    %185 = arith.maximumf %183, %184 : vector<2x128xf32>
    %186 = tpu.concatenate %167, %173, %179, %185 in 1 : vector<2x128xf32>, vector<2x128xf32>, vector<2x128xf32>, vector<2x128xf32> -> vector<2x512xf32>
    %c0_77 = arith.constant 0 : index
    %c0_78 = arith.constant 0 : index
    %187 = vector.load %arg6[%c0_77, %c0_78] : memref<512x128xf32, #tpu.memory_space<vmem>>, vector<512x128xf32>
    %cst_79 = arith.constant dense<0.000000e+00> : vector<2x128xf32>
    %188 = tpu.matmul %186, %187, %cst_79 {dimension_numbers = #tpu.dot_dimension_numbers<[1], [0], [0], [1], [0, 0, 1, 1], [], []>} : vector<2x512xf32>, vector<512x128xf32>, vector<2x128xf32> -> vector<2x128xf32>
    %c0_80 = arith.constant 0 : index
    %c0_81 = arith.constant 0 : index
    %189 = vector.load %arg7[%c0_80, %c0_81] : memref<1x128xf32, #tpu.memory_space<vmem>>, vector<1x128xf32>
    %190 = vector.broadcast %189 : vector<1x128xf32> to vector<2x128xf32>
    %191 = arith.addf %188, %190 : vector<2x128xf32>
    %cst_82 = arith.constant 0.000000e+00 : f32
    %192 = vector.broadcast %cst_82 : f32 to vector<2x128xf32>
    %193 = arith.maximumf %191, %192 : vector<2x128xf32>
    %c0_83 = arith.constant 0 : index
    %c0_84 = arith.constant 0 : index
    %194 = vector.load %arg8[%c0_83, %c0_84] : memref<128x128xf32, #tpu.memory_space<vmem>>, vector<128x128xf32>
    %cst_85 = arith.constant dense<0.000000e+00> : vector<2x128xf32>
    %195 = tpu.matmul %193, %194, %cst_85 {dimension_numbers = #tpu.dot_dimension_numbers<[1], [0], [0], [1], [0, 0, 1, 1], [], []>} : vector<2x128xf32>, vector<128x128xf32>, vector<2x128xf32> -> vector<2x128xf32>
    %c0_86 = arith.constant 0 : index
    %c0_87 = arith.constant 0 : index
    %196 = vector.load %arg9[%c0_86, %c0_87] : memref<1x128xf32, #tpu.memory_space<vmem>>, vector<1x128xf32>
    %197 = vector.broadcast %196 : vector<1x128xf32> to vector<2x128xf32>
    %198 = arith.addf %195, %197 : vector<2x128xf32>
    %cst_88 = arith.constant 0.000000e+00 : f32
    %199 = vector.broadcast %cst_88 : f32 to vector<2x128xf32>
    %200 = arith.maximumf %198, %199 : vector<2x128xf32>
    %c0_89 = arith.constant 0 : index
    %c0_90 = arith.constant 0 : index
    %201 = vector.load %arg10[%c0_89, %c0_90] : memref<128x128xf32, #tpu.memory_space<vmem>>, vector<128x128xf32>
    %cst_91 = arith.constant dense<0.000000e+00> : vector<2x128xf32>
    %202 = tpu.matmul %200, %201, %cst_91 {dimension_numbers = #tpu.dot_dimension_numbers<[1], [0], [0], [1], [0, 0, 1, 1], [], []>} : vector<2x128xf32>, vector<128x128xf32>, vector<2x128xf32> -> vector<2x128xf32>
    %c0_92 = arith.constant 0 : index
    %c0_93 = arith.constant 0 : index
    %203 = vector.load %arg11[%c0_92, %c0_93] : memref<1x128xf32, #tpu.memory_space<vmem>>, vector<1x128xf32>
    %204 = vector.broadcast %203 : vector<1x128xf32> to vector<2x128xf32>
    %205 = arith.addf %202, %204 : vector<2x128xf32>
    %cst_94 = arith.constant 0.000000e+00 : f32
    %206 = vector.broadcast %cst_94 : f32 to vector<2x128xf32>
    %207 = arith.maximumf %205, %206 : vector<2x128xf32>
    %c0_95 = arith.constant 0 : index
    %c0_96 = arith.constant 0 : index
    %208 = vector.load %arg12[%c0_95, %c0_96] : memref<128x128xf32, #tpu.memory_space<vmem>>, vector<128x128xf32>
    %cst_97 = arith.constant dense<0.000000e+00> : vector<2x128xf32>
    %209 = tpu.matmul %207, %208, %cst_97 {dimension_numbers = #tpu.dot_dimension_numbers<[1], [0], [0], [1], [0, 0, 1, 1], [], []>} : vector<2x128xf32>, vector<128x128xf32>, vector<2x128xf32> -> vector<2x128xf32>
    %c0_98 = arith.constant 0 : index
    %c0_99 = arith.constant 0 : index
    %210 = vector.load %arg13[%c0_98, %c0_99] : memref<1x128xf32, #tpu.memory_space<vmem>>, vector<1x128xf32>
    %211 = vector.broadcast %210 : vector<1x128xf32> to vector<2x128xf32>
    %212 = arith.addf %209, %211 : vector<2x128xf32>
    %cst_100 = arith.constant 0.000000e+00 : f32
    %213 = vector.broadcast %cst_100 : f32 to vector<2x128xf32>
    %214 = arith.maximumf %212, %213 : vector<2x128xf32>
    %c0_101 = arith.constant 0 : index
    %c0_102 = arith.constant 0 : index
    %215 = vector.load %arg14[%c0_101, %c0_102] : memref<128x128xf32, #tpu.memory_space<vmem>>, vector<128x128xf32>
    %cst_103 = arith.constant dense<0.000000e+00> : vector<2x128xf32>
    %216 = tpu.matmul %214, %215, %cst_103 {dimension_numbers = #tpu.dot_dimension_numbers<[1], [0], [0], [1], [0, 0, 1, 1], [], []>} : vector<2x128xf32>, vector<128x128xf32>, vector<2x128xf32> -> vector<2x128xf32>
    %c0_104 = arith.constant 0 : index
    %c0_105 = arith.constant 0 : index
    %217 = vector.load %arg15[%c0_104, %c0_105] : memref<1x128xf32, #tpu.memory_space<vmem>>, vector<1x128xf32>
    %218 = vector.broadcast %217 : vector<1x128xf32> to vector<2x128xf32>
    %219 = arith.addf %216, %218 : vector<2x128xf32>
    %cst_106 = arith.constant 0.000000e+00 : f32
    %220 = vector.broadcast %cst_106 : f32 to vector<2x128xf32>
    %221 = arith.maximumf %219, %220 : vector<2x128xf32>
    %c0_107 = arith.constant 0 : index
    %c0_108 = arith.constant 0 : index
    %222 = vector.load %arg16[%c0_107, %c0_108] : memref<128x10xf32, #tpu.memory_space<vmem>>, vector<128x10xf32>
    %cst_109 = arith.constant dense<0.000000e+00> : vector<2x10xf32>
    %223 = tpu.matmul %221, %222, %cst_109 {dimension_numbers = #tpu.dot_dimension_numbers<[1], [0], [0], [1], [0, 0, 1, 1], [], []>} : vector<2x128xf32>, vector<128x10xf32>, vector<2x10xf32> -> vector<2x10xf32>
    %c0_110 = arith.constant 0 : index
    %c0_111 = arith.constant 0 : index
    %224 = vector.load %arg17[%c0_110, %c0_111] : memref<1x10xf32, #tpu.memory_space<vmem>>, vector<1x10xf32>
    %225 = vector.broadcast %224 : vector<1x10xf32> to vector<2x10xf32>
    %226 = arith.addf %223, %225 : vector<2x10xf32>
    %cst_112 = arith.constant dense<0xFF800000> : vector<2xf32>
    %227 = vector.multi_reduction <maximumf>, %226, %cst_112 [1] : vector<2x10xf32> to vector<2xf32>
    %228 = vector.shape_cast %227 : vector<2xf32> to vector<2x1xf32>
    %229 = vector.broadcast %228 : vector<2x1xf32> to vector<2x10xf32>
    %230 = arith.subf %226, %229 : vector<2x10xf32>
    %231 = math.exp %230 : vector<2x10xf32>
    %cst_113 = arith.constant dense<0.000000e+00> : vector<2xf32>
    %232 = vector.multi_reduction <add>, %231, %cst_113 [1] : vector<2x10xf32> to vector<2xf32>
    %233 = vector.shape_cast %232 : vector<2xf32> to vector<2x1xf32>
    %234 = math.log %233 : vector<2x1xf32>
    %235 = vector.broadcast %234 : vector<2x1xf32> to vector<2x10xf32>
    %236 = arith.subf %230, %235 : vector<2x10xf32>
    %c0_114 = arith.constant 0 : index
    %c0_115 = arith.constant 0 : index
    %237 = vector.load %arg18[%c0_114, %c0_115] : memref<2x10xf32, #tpu.memory_space<vmem>>, vector<2x10xf32>
    tpu.vector_store %arg18[%c0_114, %c0_115], %236 {strides = array<i32>} : memref<2x10xf32, #tpu.memory_space<vmem>>, vector<2x10xf32>,
    return
  }
  func.func @transform_0(%arg0: i32) -> (i32, i32, i32) {
    %c0_i32 = arith.constant 0 : i32
    %c0_i32_0 = arith.constant 0 : i32
    %c0_i32_1 = arith.constant 0 : i32
    return %arg0, %c0_i32, %c0_i32_0 : i32, i32, i32
  }
  func.func @transform_1(%arg0: i32) -> (i32, i32) {
    %c0_i32 = arith.constant 0 : i32
    %c0_i32_0 = arith.constant 0 : i32
    %c0_i32_1 = arith.constant 0 : i32
    return %c0_i32, %c0_i32_0 : i32, i32
  }
  func.func @transform_2(%arg0: i32) -> (i32, i32) {
    %c0_i32 = arith.constant 0 : i32
    %c0_i32_0 = arith.constant 0 : i32
    %c0_i32_1 = arith.constant 0 : i32
    return %c0_i32, %c0_i32_0 : i32, i32
  }
  func.func @transform_3(%arg0: i32) -> (i32, i32) {
    %c0_i32 = arith.constant 0 : i32
    %c0_i32_0 = arith.constant 0 : i32
    %c0_i32_1 = arith.constant 0 : i32
    return %c0_i32, %c0_i32_0 : i32, i32
  }
  func.func @transform_4(%arg0: i32) -> (i32, i32) {
    %c0_i32 = arith.constant 0 : i32
    %c0_i32_0 = arith.constant 0 : i32
    %c0_i32_1 = arith.constant 0 : i32
    return %c0_i32, %c0_i32_0 : i32, i32
  }
  func.func @transform_5(%arg0: i32) -> (i32, i32) {
    %c0_i32 = arith.constant 0 : i32
    %c0_i32_0 = arith.constant 0 : i32
    %c0_i32_1 = arith.constant 0 : i32
    return %c0_i32, %c0_i32_0 : i32, i32
  }
  func.func @transform_6(%arg0: i32) -> (i32, i32) {
    %c0_i32 = arith.constant 0 : i32
    %c0_i32_0 = arith.constant 0 : i32
    %c0_i32_1 = arith.constant 0 : i32
    return %c0_i32, %c0_i32_0 : i32, i32
  }
  func.func @transform_7(%arg0: i32) -> (i32, i32) {
    %c0_i32 = arith.constant 0 : i32
    %c0_i32_0 = arith.constant 0 : i32
    %c0_i32_1 = arith.constant 0 : i32
    return %c0_i32, %c0_i32_0 : i32, i32
  }
  func.func @transform_8(%arg0: i32) -> (i32, i32) {
    %c0_i32 = arith.constant 0 : i32
    %c0_i32_0 = arith.constant 0 : i32
    %c0_i32_1 = arith.constant 0 : i32
    return %c0_i32, %c0_i32_0 : i32, i32
  }
  func.func @transform_9(%arg0: i32) -> (i32, i32) {
    %c0_i32 = arith.constant 0 : i32
    %c0_i32_0 = arith.constant 0 : i32
    %c0_i32_1 = arith.constant 0 : i32
    return %c0_i32, %c0_i32_0 : i32, i32
  }
  func.func @transform_10(%arg0: i32) -> (i32, i32) {
    %c0_i32 = arith.constant 0 : i32
    %c0_i32_0 = arith.constant 0 : i32
    %c0_i32_1 = arith.constant 0 : i32
    return %c0_i32, %c0_i32_0 : i32, i32
  }
  func.func @transform_11(%arg0: i32) -> (i32, i32) {
    %c0_i32 = arith.constant 0 : i32
    %c0_i32_0 = arith.constant 0 : i32
    %c0_i32_1 = arith.constant 0 : i32
    return %c0_i32, %c0_i32_0 : i32, i32
  }
  func.func @transform_12(%arg0: i32) -> (i32, i32) {
    %c0_i32 = arith.constant 0 : i32
    %c0_i32_0 = arith.constant 0 : i32
    %c0_i32_1 = arith.constant 0 : i32
    return %c0_i32, %c0_i32_0 : i32, i32
  }
  func.func @transform_13(%arg0: i32) -> (i32, i32) {
    %c0_i32 = arith.constant 0 : i32
    %c0_i32_0 = arith.constant 0 : i32
    %c0_i32_1 = arith.constant 0 : i32
    return %c0_i32, %c0_i32_0 : i32, i32
  }
  func.func @transform_14(%arg0: i32) -> (i32, i32) {
    %c0_i32 = arith.constant 0 : i32
    %c0_i32_0 = arith.constant 0 : i32
    %c0_i32_1 = arith.constant 0 : i32
    return %c0_i32, %c0_i32_0 : i32, i32
  }
  func.func @transform_15(%arg0: i32) -> (i32, i32) {
    %c0_i32 = arith.constant 0 : i32
    %c0_i32_0 = arith.constant 0 : i32
    %c0_i32_1 = arith.constant 0 : i32
    return %c0_i32, %c0_i32_0 : i32, i32
  }
  func.func @transform_16(%arg0: i32) -> (i32, i32) {
    %c0_i32 = arith.constant 0 : i32
    %c0_i32_0 = arith.constant 0 : i32
    %c0_i32_1 = arith.constant 0 : i32
    return %c0_i32, %c0_i32_0 : i32, i32
  }
  func.func @transform_17(%arg0: i32) -> (i32, i32) {
    %c0_i32 = arith.constant 0 : i32
    %c0_i32_0 = arith.constant 0 : i32
    return %arg0, %c0_i32 : i32, i32
  }
}

</mosaic_0001>

<bundles_post_ra>
// kernel: tile.13
= control target key start
LH: loop header
LB: loop body
LE: loop exit
PB: predicated region body
PF: predicated region fallthrough
CT: control target
= control target key end

     0   :  { %s34_s0 = inlined_call_operand.vmem [shape: f32[8], index: 0, kind: input, shape index: {}]   ;;  %s35_s1 = inlined_call_operand.vmem [shape: f32[17,8], index: 1, kind: output, shape index: {}]  }
   0x1   :  { %v4_v0 = vld [vmem:[%s34_s0] ss:$0 sm:$0xff] }
   0x2   :  { %5 = vst [vmem:[%s35_s1] sm:$0xff] %v4_v0 }
   0x3   :  { %10 = vst [vmem:[%s35_s1 + $0x8] sm:$0xff] %v4_v0 }
   0x4   :  { %11 = vst [vmem:[%s35_s1 + $0x10] sm:$0xff] %v4_v0 }

// kernel: tile.14
= control target key start
LH: loop header
LB: loop body
LE: loop exit
PB: predicated region body
PF: predicated region fallthrough
CT: control target
= control target key end

     0   :  { %s139_s10 = smov 120   ;;  %s140_s11 = smov 104   ;;  %vm4_vm0 = vcmask 64512   ;;  %vm10_vm1 = vcmask 1048512   ;;  %vm16_vm2 = vcmask 982912   ;;  %vm22_vm3 = vcmask 917312   ;;  %s218_s0 = inlined_call_operand.vmem [shape: f32[17,8], index: 0, kind: input, shape index: {}]   ;;  %s219_s1 = inlined_call_operand.vmem [shape: f32[1,136], index: 1, kind: output, shape index: {}]  }
   0x1   :  { %v108_v0 = vld [vmem:[%s218_s0 + $0xf] sm:$0x1]   ;;  %v110_v1 = vld [vmem:[%s218_s0 + $0xd] sm:$0x1]   ;;  %v112_v2 = vld [vmem:[%s218_s0 + $0xb] sm:$0x1]  }
   0x2   :  { %8 = vrot.lane.b32.xlu0 %v108_v0, %s139_s10  ;;  %20 = vrot.lane.b32.xlu1 %v110_v1, %s140_s11  ;;  %s141_s14 = smov 88   ;;  %v109_v3 = vld [vmem:[%s218_s0 + $0xe] sm:$0x1]   ;;  %v111_v4 = vld [vmem:[%s218_s0 + $0xc] sm:$0x1]   ;;  %s142_s19 = smov 112  }
   0x3   :  { %32 = vrot.lane.b32.xlu2 %v112_v2, %s141_s14  ;;  %s143_s20 = smov 96   ;;  %v113_v5 = vld [vmem:[%s218_s0 + $0xa] sm:$0x1]   ;;  %s144_s23 = smov 80   ;;  %v114_v6 = vld [vmem:[%s218_s0 + $0x9] sm:$0x1]  }
   0x4   :  { %v115_v7 = vld [vmem:[%s218_s0 + $0x8] sm:$0x1]   ;;  %s145_s28 = smov 72   ;;  %s146_s29 = smov 64   ;;  %v116_v8 = vld [vmem:[%s218_s0 + $0x7] sm:$0x1]  }
   0x5   :  { %s147_s3 = smov 56   ;;  %v117_v9 = vld [vmem:[%s218_s0 + $0x6] sm:$0x1]   ;;  %v118_v10 = vld [vmem:[%s218_s0 + $0x5] sm:$0x1]   ;;  %s148_s8 = smov 48  }
   0x6   :  { %s149_s9 = smov 40   ;;  %v119_v11 = vld [vmem:[%s218_s0 + $0x4] sm:$0x1]   ;;  %s150_s12 = smov 32   ;;  %v120_v12 = vld [vmem:[%s218_s0 + $0x3] sm:$0x1]  }
   0x7   :  { %v121_v13 = vld [vmem:[%s218_s0 + $0x2] sm:$0x1]   ;;  %s151_s17 = smov 24   ;;  %s152_s18 = smov 16   ;;  %v122_v14 = vld [vmem:[%s218_s0 + $0x1] sm:$0x1]  }
   0x8   :  { %s153_s21 = smov 8   ;;  %s2_s22 = smov 3  ;;  %vm28_vm4 = vcmask 851712   ;;  %vm34_vm5 = vcmask 786112   ;;  %vm40_vm6 = vcmask 720512   ;;  %vm46_vm7 = vcmask 654912  }
   0x9   :  { %v3_v15 = vld [vmem:[%s218_s0] ss:$16 sm:%s2_s22]   ;;  %vm52_vm8 = vcmask 589312   ;;  %vm58_vm9 = vcmask 523712   ;;  %vm64_vm10 = vcmask 458112   ;;  %vm70_vm11 = vcmask 392512  }
   0xa   :  { %14 = vrot.lane.b32.xlu0 %v109_v3, %s142_s19  ;;  %26 = vrot.lane.b32.xlu1 %v111_v4, %s143_s20  ;;  %5 = vst.msk [vmem:[#allocation0] ss:$8 sm:$0x3] %vm4_vm0, %v3_v15   ;;  %vm76_vm12 = vcmask 326912   ;;  %vm82_vm13 = vcmask 261312   ;;  %vm88_vm14 = vcmask 195712  }
   0xb   :  { %38 = vrot.lane.b32.xlu2 %v113_v5, %s144_s23  ;;  %vm94_vm15 = vcmask 130112  }
  0x11   :  { %v103_v16 = vld [vmem:[#allocation0 + $0x8] sm:$0x1] }
  0x12   :  { %44 = vrot.lane.b32.xlu0 %v114_v6, %s145_s28  ;;  %50 = vrot.lane.b32.xlu1 %v115_v7, %s146_s29  ;;  %123 = vst [vmem:[%s219_s1 + $0x1] sm:$0x1] %v103_v16 }
  0x13   :  { %56 = vrot.lane.b32.xlu2 %v116_v8, %s147_s3 }
  0x1a   :  { %62 = vrot.lane.b32.xlu0 %v117_v9, %s148_s8  ;;  %68 = vrot.lane.b32.xlu1 %v118_v10, %s149_s9 }
  0x1b   :  { %74 = vrot.lane.b32.xlu2 %v119_v11, %s150_s12 }
  0x22   :  { %80 = vrot.lane.b32.xlu0 %v120_v12, %s151_s17  ;;  %86 = vrot.lane.b32.xlu1 %v121_v13, %s152_s18 }
  0x23   :  { %92 = vrot.lane.b32.xlu2 %v122_v14, %s153_s21 }
  0x5d   :  { %v33_v17 = vpop.permute.xlu2 %32  }
  0x65   :  { %v39_v18 = vpop.permute.xlu2 %38  }
  0x6d   :  { %v57_v19 = vpop.permute.xlu2 %56  }
  0x74   :  { %v9_v20 = vpop.permute.xlu0 %8   ;;  %v21_v21 = vpop.permute.xlu1 %20  }
  0x75   :  { %11 = vst.msk [vmem:[#allocation0] sm:$0x1] %vm10_vm1, %v9_v20   ;;  %v75_v22 = vpop.permute.xlu2 %74  }
  0x7c   :  { %v15_v23 = vpop.permute.xlu0 %14   ;;  %v27_v24 = vpop.permute.xlu1 %26  }
  0x7d   :  { %17 = vst.msk [vmem:[#allocation0] sm:$0x1] %vm16_vm2, %v15_v23   ;;  %v93_v25 = vpop.permute.xlu2 %92  }
  0x7e   :  { %23 = vst.msk [vmem:[#allocation0] sm:$0x1] %vm22_vm3, %v21_v21  }
  0x7f   :  { %29 = vst.msk [vmem:[#allocation0] sm:$0x1] %vm28_vm4, %v27_v24  }
  0x80   :  { %35 = vst.msk [vmem:[#allocation0] sm:$0x1] %vm34_vm5, %v33_v17  }
  0x81   :  { %41 = vst.msk [vmem:[#allocation0] sm:$0x1] %vm40_vm6, %v39_v18  }
  0x84   :  { %v45_v26 = vpop.permute.xlu0 %44   ;;  %v51_v27 = vpop.permute.xlu1 %50  }
  0x85   :  { %47 = vst.msk [vmem:[#allocation0] sm:$0x1] %vm46_vm7, %v45_v26  }
  0x86   :  { %53 = vst.msk [vmem:[#allocation0] sm:$0x1] %vm52_vm8, %v51_v27  }
  0x87   :  { %59 = vst.msk [vmem:[#allocation0] sm:$0x1] %vm58_vm9, %v57_v19  }
  0x8c   :  { %v63_v28 = vpop.permute.xlu0 %62   ;;  %v69_v29 = vpop.permute.xlu1 %68  }
  0x8d   :  { %65 = vst.msk [vmem:[#allocation0] sm:$0x1] %vm64_vm10, %v63_v28  }
  0x8e   :  { %71 = vst.msk [vmem:[#allocation0] sm:$0x1] %vm70_vm11, %v69_v29  }
  0x8f   :  { %77 = vst.msk [vmem:[#allocation0] sm:$0x1] %vm76_vm12, %v75_v22  }
  0x94   :  { %v81_v30 = vpop.permute.xlu0 %80   ;;  %v87_v31 = vpop.permute.xlu1 %86  }
  0x95   :  { %83 = vst.msk [vmem:[#allocation0] sm:$0x1] %vm82_vm13, %v81_v30  }
  0x96   :  { %89 = vst.msk [vmem:[#allocation0] sm:$0x1] %vm88_vm14, %v87_v31  }
  0x97   :  { %95 = vst.msk [vmem:[#allocation0] sm:$0x1] %vm94_vm15, %v93_v25  }
  0x9e   :  { %v98_v32 = vld [vmem:[#allocation0] sm:$0x1] }
  0x9f   :  { %101 = vst [vmem:[%s219_s1] sm:$0x1] %v98_v32 }

// kernel: tile.18
= control target key start
LH: loop header
LB: loop body
LE: loop exit
PB: predicated region body
PF: predicated region fallthrough
CT: control target
= control target key end

     0   :  { %s28_s0 = inlined_call_operand.vmem [shape: f32[16], index: 0, kind: input, shape index: {}]   ;;  %s29_s1 = inlined_call_operand.vmem [shape: f32[9,16], index: 1, kind: output, shape index: {}]  }
   0x1   :  { %v4_v0 = vld [vmem:[%s28_s0] ss:$0 sm:$0xff] }
   0x2   :  { %5 = vst [vmem:[%s29_s1] sm:$0xff] %v4_v0 }
   0x3   :  { %8 = vst [vmem:[%s29_s1 + $0x8] sm:$0xff] %v4_v0 }

// kernel: tile.19
= control target key start
LH: loop header
LB: loop body
LE: loop exit
PB: predicated region body
PF: predicated region fallthrough
CT: control target
= control target key end

     0   :  { %s75_s10 = smov 112   ;;  %s76_s11 = smov 80   ;;  %vm4_vm0 = vcmask 130048   ;;  %vm10_vm1 = vcmask 1048448   ;;  %vm16_vm2 = vcmask 917248   ;;  %vm22_vm3 = vcmask 786048   ;;  %s122_s0 = inlined_call_operand.vmem [shape: f32[9,16], index: 0, kind: input, shape index: {}]   ;;  %s123_s1 = inlined_call_operand.vmem [shape: f32[1,144], index: 1, kind: output, shape index: {}]  }
   0x1   :  { %v60_v0 = vld [vmem:[%s122_s0 + $0x7] sm:$0x1]   ;;  %v62_v1 = vld [vmem:[%s122_s0 + $0x5] sm:$0x1]   ;;  %v64_v2 = vld [vmem:[%s122_s0 + $0x3] sm:$0x1]  }
   0x2   :  { %8 = vrot.lane.b32.xlu0 %v60_v0, %s75_s10  ;;  %20 = vrot.lane.b32.xlu1 %v62_v1, %s76_s11  ;;  %s77_s14 = smov 48   ;;  %v61_v3 = vld [vmem:[%s122_s0 + $0x6] sm:$0x1]   ;;  %v63_v4 = vld [vmem:[%s122_s0 + $0x4] sm:$0x1]   ;;  %s78_s21 = smov 96  }
   0x3   :  { %32 = vrot.lane.b32.xlu2 %v64_v2, %s77_s14  ;;  %v65_v5 = vld [vmem:[%s122_s0 + $0x2] sm:$0x1]   ;;  %s79_s22 = smov 64   ;;  %s80_s23 = smov 32   ;;  %v66_v6 = vld [vmem:[%s122_s0 + $0x1] sm:$0x1]  }
   0x4   :  { %s81_s26 = smov 16   ;;  %s2_s27 = smov 3  ;;  %vm28_vm4 = vcmask 654848   ;;  %vm34_vm5 = vcmask 523648   ;;  %vm40_vm6 = vcmask 392448   ;;  %vm46_vm7 = vcmask 261248  }
   0x5   :  { %v3_v7 = vld [vmem:[%s122_s0] ss:$8 sm:%s2_s27]  }
   0x6   :  { %5 = vst.msk [vmem:[#allocation0] ss:$8 sm:$0x3] %vm4_vm0, %v3_v7  }
   0xa   :  { %14 = vrot.lane.b32.xlu0 %v61_v3, %s78_s21  ;;  %26 = vrot.lane.b32.xlu1 %v63_v4, %s79_s22 }
   0xb   :  { %38 = vrot.lane.b32.xlu2 %v65_v5, %s80_s23 }
   0xd   :  { %v55_v8 = vld [vmem:[#allocation0 + $0x8] sm:$0x1] }
   0xe   :  { %67 = vst [vmem:[%s123_s1 + $0x1] sm:$0x1] %v55_v8 }
  0x12   :  { %44 = vrot.lane.b32.xlu0 %v66_v6, %s81_s26 }
  0x5d   :  { %v33_v9 = vpop.permute.xlu2 %32  }
  0x65   :  { %v39_v10 = vpop.permute.xlu2 %38  }
  0x74   :  { %v9_v11 = vpop.permute.xlu0 %8   ;;  %v21_v12 = vpop.permute.xlu1 %20  }
  0x75   :  { %11 = vst.msk [vmem:[#allocation0] sm:$0x1] %vm10_vm1, %v9_v11  }
  0x7c   :  { %v15_v13 = vpop.permute.xlu0 %14   ;;  %v27_v14 = vpop.permute.xlu1 %26  }
  0x7d   :  { %17 = vst.msk [vmem:[#allocation0] sm:$0x1] %vm16_vm2, %v15_v13  }
  0x7e   :  { %23 = vst.msk [vmem:[#allocation0] sm:$0x1] %vm22_vm3, %v21_v12  }
  0x7f   :  { %29 = vst.msk [vmem:[#allocation0] sm:$0x1] %vm28_vm4, %v27_v14  }
  0x80   :  { %35 = vst.msk [vmem:[#allocation0] sm:$0x1] %vm34_vm5, %v33_v9  }
  0x81   :  { %41 = vst.msk [vmem:[#allocation0] sm:$0x1] %vm40_vm6, %v39_v10  }
  0x84   :  { %v45_v15 = vpop.permute.xlu0 %44  }
  0x85   :  { %47 = vst.msk [vmem:[#allocation0] sm:$0x1] %vm46_vm7, %v45_v15  }
  0x8c   :  { %v50_v16 = vld [vmem:[#allocation0] sm:$0x1] }
  0x8d   :  { %53 = vst [vmem:[%s123_s1] sm:$0x1] %v50_v16 }

// kernel: stacked_net_forward.1
= control target key start
LH: loop header
LB: loop body
LE: loop exit
PB: predicated region body
PF: predicated region fallthrough
CT: control target
= control target key end

     0   :  { %s9033_s0 = inlined_call_operand.vmem [shape: f32[2,16,80], index: 0, kind: input, shape index: {}]   ;;  %s9034_s1 = inlined_call_operand.vmem [shape: f32[320,136], index: 1, kind: input, shape index: {}]   ;;  %s9035_s2 = inlined_call_operand.vmem [shape: f32[1,136], index: 2, kind: input, shape index: {}]   ;;  %s9036_s3 = inlined_call_operand.vmem [shape: f32[256,144], index: 3, kind: input, shape index: {}]   ;;  %s9037_s4 = inlined_call_operand.vmem [shape: f32[1,144], index: 4, kind: input, shape index: {}]   ;;  %s9038_s5 = inlined_call_operand.vmem [shape: f32[512,128], index: 5, kind: input, shape index: {}]   ;;  %s9039_s6 = inlined_call_operand.vmem [shape: f32[1,128], index: 6, kind: input, shape index: {}]   ;;  %s9040_s7 = inlined_call_operand.vmem [shape: f32[128,128], index: 7, kind: input, shape index: {}]   ;;  %s9041_s8 = inlined_call_operand.vmem [shape: f32[1,128], index: 8, kind: input, shape index: {}]   ;;  %s9042_s9 = inlined_call_operand.vmem [shape: f32[128,128], index: 9, kind: input, shape index: {}]   ;;  %s9043_s10 = inlined_call_operand.vmem [shape: f32[1,128], index: 10, kind: input, shape index: {}]   ;;  %s9044_s11 = inlined_call_operand.vmem [shape: f32[128,128], index: 11, kind: input, shape index: {}]   ;;  %s9045_s12 = inlined_call_operand.vmem [shape: f32[1,128], index: 12, kind: input, shape index: {}]   ;;  %s9046_s13 = inlined_call_operand.vmem [shape: f32[128,128], index: 13, kind: input, shape index: {}]   ;;  %s9047_s14 = inlined_call_operand.vmem [shape: f32[1,128], index: 14, kind: input, shape index: {}]   ;;  %s9048_s15 = inlined_call_operand.vmem [shape: f32[128,10], index: 15, kind: input, shape index: {}]   ;;  %s9049_s16 = inlined_call_operand.vmem [shape: f32[1,10], index: 16, kind: input, shape index: {}]   ;;  %s9050_s17 = inlined_call_operand.hbm [shape: f32[2,10], index: 17, kind: output, shape index: {}]  }
   0x1   :  { %9415 = sst [smem:[#allocation58_spill]] %s9033_s0 }
   0x2   :  { %9416 = sst [smem:[#allocation59_spill]] %s9034_s1 }
   0x3   :  { %s9417_s26 = sld [smem:[#allocation58_spill]]  ;;  %vm178_vm0 = vcmask 1041409   ;;  %s4031_s25 = smov 112  }
   0x4   :  { %s9419_s22 = sld [smem:[#allocation59_spill]]  ;;  %s4032_s27 = smov 32  }
   0x5   :  { %s4033_s0 = smov 80  }
   0x9   :  { %v59_v0 = vld [vmem:[%s9417_s26 + $0x1] sm:$0x1]  ;;  %v60_v1 = vld [vmem:[%s9417_s26 + $0x11] sm:$0x1]  ;;  %v57_v3 = vld [vmem:[%s9417_s26] sm:$0x1] }
   0xa   :  { %v185_v2 = vrot.slane %v60_v1, 7  ;;  %v58_v4 = vld [vmem:[%s9417_s26 + $0x10] sm:$0x1]  ;;  %v62_v6 = vld [vmem:[%s9417_s26 + $0x12] sm:$0x1]  ;;  %v4148_v8 = vld [vmem:[%s9419_s22 + $0xf8] sm:$0xff] }
   0xb   :  { %v177_v5 = vrot.slane %v58_v4, 7  ;;  %v4153_v9 = vld [vmem:[%s9419_s22 + $0xe8] sm:$0xff]  ;;  %257 = vmatpush.msra.mxu3 %v4148_v8  ;;  %v325_v11 = vrot.slane %v62_v6, 7  ;;  %v4168_v12 = vld [vmem:[%s9419_s22 + $0xd8] sm:$0xff]  ;;  %v61_v13 = vld [vmem:[%s9417_s26 + $0x2] sm:$0x1] }
   0xc   :  { %v4143_v7 = vsel %vm178_vm0, %v185_v2, %v59_v0  ;;  %v4177_v14 = vld [vmem:[%s9419_s22 + $0xc8] sm:$0xff]  ;;  %v4182_v15 = vld [vmem:[%s9419_s22 + $0xf0] sm:$0xff]  ;;  %v4194_v17 = vld [vmem:[%s9419_s22 + $0xe0] sm:$0xff] }
   0xd   :  { %9418 = vst [vmem:[#allocation5_spill] sm:$0xff] %v4143_v7  ;;  %187 = vrot.lane.b32.xlu0 %v4143_v7, %s4031_s25  ;;  %v4158_v10 = vsel %vm178_vm0, %v177_v5, %v57_v3  ;;  %320 = vrot.lane.b32.xlu2 %v4143_v7, %s4032_s27  ;;  %v4187_v16 = vld [vmem:[%s9419_s22 + $0x1f0] sm:$0xff]  ;;  %v4199_v18 = vld [vmem:[%s9419_s22 + $0x1e0] sm:$0xff]  ;;  %v4202_v19 = vsel %vm178_vm0, %v325_v11, %v61_v13 }
   0xe   :  { %9420 = vst [vmem:[#allocation6_spill] sm:$0xff] %v4158_v10  ;;  %180 = vrot.lane.b32.xlu1 %v4158_v10, %s4032_s27  ;;  %258 = vmatpush.msra.mxu3 %v4153_v9  ;;  %v4207_v20 = vld [vmem:[%s9419_s22 + $0xb8] sm:$0xff]  ;;  %v4215_v21 = vld [vmem:[%s9419_s22 + $0xd0] sm:$0xff]  ;;  %v4220_v22 = vld [vmem:[%s9419_s22 + $0xa8] sm:$0xff] }
   0xf   :  { %9421 = vst [vmem:[#allocation7_spill] sm:$0xff] %v4182_v15  ;;  %197 = vmatpush.msra.mxu0 %v4182_v15  ;;  %217 = vmatpush.msra.mxu1 %v4187_v16  ;;  %v4226_v23 = vld [vmem:[%s9419_s22 + $0x1d0] sm:$0xff]  ;;  %v4234_v24 = vld [vmem:[%s9419_s22 + $0xc0] sm:$0xff]  ;;  %v4241_v25 = vld [vmem:[%s9419_s22 + $0x98] sm:$0xff] }
  0x10   :  { %9422 = vst [vmem:[#allocation8_spill] sm:$0xff] %v4187_v16  ;;  %259 = vmatpush.msra.mxu3 %v4168_v12  ;;  %v4247_v26 = vld [vmem:[%s9419_s22 + $0x1c0] sm:$0xff]  ;;  %v66_v27 = vld [vmem:[%s9417_s26 + $0x14] sm:$0x1]  ;;  %v4256_v28 = vld [vmem:[%s9419_s22 + $0x88] sm:$0xff] }
  0x11   :  { %9423 = vst [vmem:[#allocation9_spill] sm:$0xff] %v4199_v18  ;;  %198 = vmatpush.msra.mxu0 %v4194_v17  ;;  %218 = vmatpush.msra.mxu1 %v4199_v18  ;;  %v4262_v29 = vld [vmem:[%s9419_s22 + $0xb0] sm:$0xff]  ;;  %v604_v30 = vrot.slane %v66_v27, 7  ;;  %v65_v33 = vld [vmem:[%s9417_s26 + $0x4] sm:$0x1]  ;;  %v4299_v37 = vld [vmem:[%s9419_s22 + $0x78] sm:$0xff] }
  0x12   :  { %9424 = vst [vmem:[#allocation10_spill] sm:$0xff] %v4202_v19  ;;  %260 = vmatpush.msra.mxu3 %v4177_v14  ;;  %v4267_v31 = vld [vmem:[%s9419_s22 + $0x270] sm:$0xff]  ;;  %v4282_v34 = vld [vmem:[%s9419_s22 + $0x260] sm:$0xff]  ;;  %v4316_v40 = vld [vmem:[%s9419_s22 + $0x68] sm:$0xff] }
  0x13   :  { %199 = vmatpush.msra.mxu0 %v4215_v21  ;;  %9425 = vst [vmem:[#allocation11_spill] sm:$0xff] %v4247_v26  ;;  %219 = vmatpush.msra.mxu1 %v4226_v23  ;;  %v4273_v32 = vld [vmem:[%s9419_s22 + $0x1b0] sm:$0xff]  ;;  %v4289_v35 = vld [vmem:[%s9419_s22 + $0xa0] sm:$0xff]  ;;  %v4311_v39 = vsel %vm178_vm0, %v604_v30, %v65_v33  ;;  %v4344_v45 = vld [vmem:[%s9419_s22 + $0x58] sm:$0xff] }
  0x14   :  { %261 = vmatpush.msra.mxu3 %v4207_v20  ;;  %9426 = vst [vmem:[#allocation12_spill] sm:$0xff] %v4273_v32  ;;  %245 = vmatpush.msra.mxu2 %v4267_v31  ;;  %v4294_v36 = vld [vmem:[%s9419_s22 + $0x250] sm:$0xff]  ;;  %v4308_v38 = vld [vmem:[%s9419_s22 + $0x1a0] sm:$0xff]  ;;  %v4349_v46 = vld [vmem:[%s9419_s22 + $0x48] sm:$0xff] }
  0x15   :  { %327 = vrot.lane.b32.xlu0 %v4202_v19, %s4031_s25  ;;  %200 = vmatpush.msra.mxu0 %v4234_v24  ;;  %9427 = vst [vmem:[#allocation13_spill] sm:$0xff] %v4308_v38  ;;  %v4322_v41 = vld [vmem:[%s9419_s22 + $0x90] sm:$0xff]  ;;  %v4339_v44 = vld [vmem:[%s9419_s22 + $0x240] sm:$0xff]  ;;  %v4374_v50 = vld [vmem:[%s9419_s22 + $0x38] sm:$0xff] }
  0x16   :  { %317 = vrot.lane.b32.xlu1 %v4158_v10, %s4033_s0  ;;  %262 = vmatpush.msra.mxu3 %v4220_v22  ;;  %9428 = vst [vmem:[#allocation14_spill] sm:$0xff] %v4311_v39  ;;  %v4331_v42 = vld [vmem:[%s9419_s22 + $0x190] sm:$0xff]  ;;  %v4357_v47 = vld [vmem:[%s9419_s22 + $0x80] sm:$0xff] }
  0x17   :  { %220 = vmatpush.msra.mxu1 %v4247_v26  ;;  %201 = vmatpush.msra.mxu0 %v4262_v29  ;;  %9429 = vst [vmem:[#allocation15_spill] sm:$0xff] %v4331_v42  ;;  %v64_v43 = vld [vmem:[%s9417_s26 + $0x13] sm:$0x1]  ;;  %v4364_v48 = vld [vmem:[%s9419_s22 + $0x180] sm:$0xff] }
  0x18   :  { %263 = vmatpush.msra.mxu3 %v4241_v25  ;;  %246 = vmatpush.msra.mxu2 %v4282_v34  ;;  %9430 = vst [vmem:[#allocation16_spill] sm:$0xff] %v4349_v46  ;;  %v4369_v49 = vld [vmem:[%s9419_s22 + $0x230] sm:$0xff]  ;;  %v63_v53 = vld [vmem:[%s9417_s26 + $0x3] sm:$0x1]  ;;  %v465_v54 = vrot.slane %v64_v43, 7 }
  0x19   :  { %221 = vmatpush.msra.mxu1 %v4273_v32  ;;  %202 = vmatpush.msra.mxu0 %v4289_v35  ;;  %9431 = vst [vmem:[#allocation17_spill] sm:$0xff] %v4357_v47  ;;  %v4380_v51 = vld [vmem:[%s9419_s22 + $0x70] sm:$0xff]  ;;  %v4396_v55 = vld [vmem:[%s9419_s22 + $0x220] sm:$0xff] }
  0x1a   :  { %264 = vmatpush.msra.mxu3 %v4256_v28  ;;  %247 = vmatpush.msra.mxu2 %v4294_v36  ;;  %9432 = vst [vmem:[#allocation18_spill] sm:$0xff] %v4364_v48  ;;  %v4385_v52 = vld [vmem:[%s9419_s22 + $0x170] sm:$0xff]  ;;  %v4402_v56 = vld [vmem:[%s9419_s22 + $0x60] sm:$0xff] }
  0x1b   :  { %222 = vmatpush.msra.mxu1 %v4308_v38  ;;  %203 = vmatpush.msra.mxu0 %v4322_v41  ;;  %9433 = vst [vmem:[#allocation19_spill] sm:$0xff] %v4374_v50  ;;  %v4407_v57 = vld [vmem:[%s9419_s22 + $0x160] sm:$0xff] }
  0x1c   :  { %265 = vmatpush.msra.mxu3 %v4299_v37  ;;  %9434 = vst [vmem:[#allocation20_spill] sm:$0xff] %v4380_v51  ;;  %248 = vmatpush.msra.mxu2 %v4339_v44 }
  0x1d   :  { %457 = vrot.lane.b32.xlu0 %v4143_v7, %s4033_s0  ;;  %223 = vmatpush.msra.mxu1 %v4331_v42  ;;  %9435 = vst [vmem:[#allocation21_spill] sm:$0xff] %v4385_v52 }
  0x1e   :  { %606 = vrot.lane.b32.xlu1 %v4311_v39, %s4031_s25  ;;  %266 = vmatpush.msra.mxu3 %v4316_v40  ;;  %9436 = vst [vmem:[#allocation22_spill] sm:$0xff] %v4407_v57 }
  0x1f   :  { %204 = vmatpush.msra.mxu0 %v4357_v47  ;;  %224 = vmatpush.msra.mxu1 %v4364_v48 }
  0x20   :  { %267 = vmatpush.msra.mxu3 %v4344_v45  ;;  %249 = vmatpush.msra.mxu2 %v4369_v49 }
  0x21   :  { %205 = vmatpush.msra.mxu0 %v4380_v51 }
  0x22   :  { %268 = vmatpush.msra.mxu3 %v4349_v46 }
  0x23   :  { %22 = vsyncpa [#allocation3], 0  ;;  %v4415_v58 = vld [vmem:[%s9419_s22 + $0x28] sm:$0xff]  ;;  %225 = vmatpush.msra.mxu1 %v4385_v52  ;;  %v4419_v59 = vsel %vm178_vm0, %v465_v54, %v63_v53  ;;  %250 = vmatpush.msra.mxu2 %v4396_v55  ;;  %v4427_v60 = vld [vmem:[%s9419_s22 + $0x50] sm:$0xff]  ;;  %v9076_v10 = vmov 0.0   ;;  %v9461_v46 = vmov 0.0  }
  0x24   :  { %9437 = vst [vmem:[#allocation23_spill] sm:$0xff] %v4415_v58  ;;  %269 = vmatpush.msra.mxu3 %v4374_v50  ;;  %206 = vmatpush.msra.mxu0 %v4402_v56  ;;  %v4432_v61 = vld [vmem:[%s9419_s22 + $0x150] sm:$0xff]  ;;  %v4437_v62 = vld [vmem:[%s9419_s22 + $0x18] sm:$0xff]  ;;  %v4448_v63 = vld [vmem:[%s9419_s22 + $0x40] sm:$0xff]  ;;  %vm194_vm1 = vcmask 523264   ;;  %vm190_vm2 = vcmask 261120  }
  0x25   :  { %9438 = vst [vmem:[#allocation24_spill] sm:$0xff] %v4419_v59  ;;  %226 = vmatpush.msra.mxu1 %v4407_v57  ;;  %596 = vrot.lane.b32.xlu0 %v4202_v19, %s4033_s0  ;;  %v4453_v0 = vld [vmem:[%s9419_s22 + $0x140] sm:$0xff]  ;;  %v4458_v1 = vld [vmem:[%s9419_s22 + $0x8] sm:$0xff]  ;;  %v4465_v2 = vld [vmem:[%s9419_s22 + $0x210] sm:$0xff]  ;;  %vm192_vm3 = vcmask 916480   ;;  %vm330_vm4 = vcmask 654336  }
  0x26   :  { %9439 = vst [vmem:[#allocation25_spill] sm:$0xff] %v4427_v60  ;;  %270 = vmatpush.msra.mxu3 %v4415_v58  ;;  %599 = vrot.lane.b32.xlu1 %v4419_v59, %s4032_s27  ;;  %v4471_v3 = vld [vmem:[%s9419_s22 + $0x30] sm:$0xff]  ;;  %v4485_v5 = vld [vmem:[%s9419_s22 + $0x200] sm:$0xff]  ;;  %v4504_v13 = vld [vmem:[%s9419_s22 + $0x1f8] sm:$0xff]  ;;  %s4035_s30 = smov 120   ;;  %vm2404_vm6 = vcmask 982016  }
  0x27   :  { %9440 = vst [vmem:[#allocation26_spill] sm:$0xff] %v4432_v61  ;;  %207 = vmatpush.msra.mxu0 %v4427_v60  ;;  %227 = vmatpush.msra.mxu1 %v4432_v61  ;;  %v4480_v4 = vld [vmem:[%s9419_s22 + $0x130] sm:$0xff]  ;;  %v4491_v6 = vld [vmem:[%s9419_s22 + $0x20] sm:$0xff]  ;;  %v4523_v33 = vld [vmem:[%s9419_s22 + $0x1e8] sm:$0xff]  ;;  %vm3604_vm7 = vcmask 74752  }
  0x28   :  { %9441 = vst [vmem:[#allocation27_spill] sm:$0xff] %v4437_v62  ;;  %271 = vmatpush.msra.mxu3 %v4437_v62  ;;  %467 = vrot.lane.b32.xlu2 %v4419_v59, %s4031_s25  ;;  %v4499_v11 = vld [vmem:[%s9419_s22 + $0x120] sm:$0xff]  ;;  %v4510_v27 = vld [vmem:[%s9419_s22 + $0x10] sm:$0xff]  ;;  %v4542_v54 = vld [vmem:[%s9419_s22 + $0x278] sm:$0xff] }
  0x29   :  { %9442 = vst [vmem:[#allocation28_spill] sm:$0xff] %v4448_v63  ;;  %208 = vmatpush.msra.mxu0 %v4448_v63  ;;  %228 = vmatpush.msra.mxu1 %v4453_v0  ;;  %v4518_v30 = vld [vmem:[%s9419_s22 + $0x110] sm:$0xff]  ;;  %v4529_v43 = vld [vmem:[%s9419_s22] sm:$0xff]  ;;  %v4551_v7 = vld [vmem:[%s9419_s22 + $0x268] sm:$0xff] }
  0x2a   :  { %9443 = vst [vmem:[#allocation29_spill] sm:$0xff] %v4453_v0  ;;  %272 = vmatpush.msra.mxu3 %v4458_v1  ;;  %251 = vmatpush.msra.mxu2 %v4465_v2  ;;  %v4537_v53 = vld [vmem:[%s9419_s22 + $0x100] sm:$0xff]  ;;  %v4565_v62 = vld [vmem:[%s9419_s22 + $0x258] sm:$0xff]  ;;  %v4570_v58 = vld [vmem:[%s9419_s22 + $0x1c8] sm:$0xff] }
  0x2b   :  { %9444 = vst [vmem:[#allocation30_spill] sm:$0xff] %v4458_v1  ;;  %209 = vmatpush.msra.mxu0 %v4471_v3  ;;  %229 = vmatpush.msra.mxu1 %v4480_v4  ;;  %v4556_v1 = vld [vmem:[%s9419_s22 + $0x1d8] sm:$0xff]  ;;  %vm4780_vm5 = vmneg %vm330_vm4 }
  0x2c   :  { %9445 = vst [vmem:[#allocation31_spill] sm:$0xff] %v4471_v3  ;;  %356 = vmatpush.msrb.mxu3 %v4187_v16  ;;  %252 = vmatpush.msra.mxu2 %v4485_v5  ;;  %v4584_v50 = vld [vmem:[%s9419_s22 + $0x1b8] sm:$0xff] }
  0x2d   :  { %9446 = vst [vmem:[#allocation32_spill] sm:$0xff] %v4480_v4  ;;  %210 = vmatpush.msra.mxu0 %v4491_v6  ;;  %230 = vmatpush.msra.mxu1 %v4499_v11 }
  0x2e   :  { %9447 = vst [vmem:[#allocation33_spill] sm:$0xff] %v4491_v6  ;;  %357 = vmatpush.msrb.mxu3 %v4199_v18  ;;  %277 = vmatpush.msrb.mxu2 %v4504_v13 }
  0x2f   :  { %9448 = vst [vmem:[#allocation34_spill] sm:$0xff] %v4499_v11  ;;  %211 = vmatpush.msra.mxu0 %v4510_v27  ;;  %231 = vmatpush.msra.mxu1 %v4518_v30 }
  0x30   :  { %9449 = vst [vmem:[#allocation35_spill] sm:$0xff] %v4510_v27  ;;  %358 = vmatpush.msrb.mxu3 %v4226_v23  ;;  %278 = vmatpush.msrb.mxu2 %v4523_v33 }
  0x31   :  { %9450 = vst [vmem:[#allocation36_spill] sm:$0xff] %v4518_v30  ;;  %212 = vmatpush.msra.mxu0 %v4529_v43  ;;  %232 = vmatpush.msra.mxu1 %v4537_v53 }
  0x32   :  { %9451 = vst [vmem:[#allocation37_spill] sm:$0xff] %v4529_v43  ;;  %359 = vmatpush.msrb.mxu3 %v4247_v26  ;;  %279 = vmatpush.msrb.mxu2 %v4556_v1  ;;  %v4600_v26 = vld [vmem:[%s9419_s22 + $0x1a8] sm:$0xff] }
  0x33   :  { %9452 = vst [vmem:[#allocation38_spill] sm:$0xff] %v4537_v53  ;;  %305 = vmatpush.msrb.mxu0 %v4542_v54  ;;  %336 = vmatpush.msrb.mxu1 %v4182_v15 }
  0x34   :  { %9453 = vst [vmem:[#allocation39_spill] sm:$0xff] %v4542_v54  ;;  %360 = vmatpush.msrb.mxu3 %v4273_v32  ;;  %v4579_v32 = vld [vmem:[%s9419_s22 + $0x248] sm:$0xff]  ;;  %280 = vmatpush.msrb.mxu2 %v4570_v58 }
  0x35   :  { %9454 = vst [vmem:[#allocation40_spill] sm:$0xff] %v4551_v7  ;;  %306 = vmatpush.msrb.mxu0 %v4551_v7  ;;  %337 = vmatpush.msrb.mxu1 %v4194_v17 }
  0x36   :  { %9455 = vst [vmem:[#allocation41_spill] sm:$0xff] %v4565_v62  ;;  %361 = vmatpush.msrb.mxu3 %v4308_v38  ;;  %v4593_v38 = vld [vmem:[%s9419_s22 + $0x238] sm:$0xff]  ;;  %281 = vmatpush.msrb.mxu2 %v4584_v50 }
  0x37   :  { %9456 = vst [vmem:[#allocation42_spill] sm:$0xff] %v4579_v32  ;;  %307 = vmatpush.msrb.mxu0 %v4565_v62  ;;  %338 = vmatpush.msrb.mxu1 %v4215_v21 }
  0x38   :  { %362 = vmatpush.msrb.mxu3 %v4331_v42  ;;  %9457 = vst [vmem:[#allocation43_spill] sm:$0xff] %v4593_v38  ;;  %460 = vrot.lane.b32.xlu2 %v4202_v19, %s4032_s27  ;;  %v4610_v42 = vld [vmem:[%s9419_s22 + $0x228] sm:$0xff]  ;;  %v4624_v19 = vld [vmem:[%s9419_s22 + $0x218] sm:$0xff] }
  0x39   :  { %308 = vmatpush.msrb.mxu0 %v4579_v32  ;;  %339 = vmatpush.msrb.mxu1 %v4234_v24  ;;  %9458 = vst [vmem:[#allocation44_spill] sm:$0xff] %v4610_v42 }
  0x3a   :  { %363 = vmatpush.msrb.mxu3 %v4364_v48  ;;  %282 = vmatpush.msrb.mxu2 %v4600_v26  ;;  %v4617_v48 = vld [vmem:[%s9419_s22 + $0x198] sm:$0xff]  ;;  %9459 = vst [vmem:[#allocation45_spill] sm:$0xff] %v4624_v19 }
  0x3b   :  { %309 = vmatpush.msrb.mxu0 %v4593_v38  ;;  %273 = vmatmul.f32.vlgmr.msra.gmra.mxu3 %v9076_v10  ;;  %v4638_v10 = vld [vmem:[%s9419_s22 + $0x208] sm:$0xff] }
  0x3c   :  { %364 = vmatpush.msrb.mxu3 %v4385_v52  ;;  %340 = vmatpush.msrb.mxu1 %v4262_v29  ;;  %v4631_v52 = vld [vmem:[%s9419_s22 + $0x188] sm:$0xff]  ;;  %9460 = vst [vmem:[#allocation46_spill] sm:$0xff] %v4638_v10 }
  0x3d   :  { %310 = vmatpush.msrb.mxu0 %v4610_v42  ;;  %283 = vmatpush.msrb.mxu2 %v4617_v48 }
  0x3e   :  { %365 = vmatpush.msrb.mxu3 %v4407_v57  ;;  %341 = vmatpush.msrb.mxu1 %v4289_v35  ;;  %v4645_v57 = vld [vmem:[%s9419_s22 + $0x178] sm:$0xff] }
  0x3f   :  { %311 = vmatpush.msrb.mxu0 %v4624_v19  ;;  %284 = vmatpush.msrb.mxu2 %v4631_v52 }
  0x40   :  { %366 = vmatpush.msrb.mxu3 %v4432_v61  ;;  %342 = vmatpush.msrb.mxu1 %v4322_v41  ;;  %v4656_v61 = vld [vmem:[%s9419_s22 + $0x168] sm:$0xff] }
  0x41   :  { %312 = vmatpush.msrb.mxu0 %v4638_v10  ;;  %285 = vmatpush.msrb.mxu2 %v4645_v57 }
  0x42   :  { %367 = vmatpush.msrb.mxu3 %v4453_v0  ;;  %213 = vmatmul.f32.vlgmr.msra.gmra.mxu0 %v9461_v46  ;;  %v4666_v46 = vld [vmem:[%s9419_s22 + $0x158] sm:$0xff] }
  0x43   :  { %343 = vmatpush.msrb.mxu1 %v4357_v47  ;;  %384 = vmatpush.msra.mxu0 %v4267_v31 }
  0x44   :  { %368 = vmatpush.msrb.mxu3 %v4480_v4  ;;  %735 = vrot.lane.b32.xlu0 %v4419_v59, %s4033_s0  ;;  %v4675_v4 = vld [vmem:[%s9419_s22 + $0x148] sm:$0xff]  ;;  %v4684_v59 = vld [vmem:[%s9419_s22 + $0x138] sm:$0xff] }
  0x45   :  { %286 = vmatpush.msrb.mxu2 %v4656_v61  ;;  %344 = vmatpush.msrb.mxu1 %v4380_v51  ;;  %9462 = vst [vmem:[#allocation47_spill] sm:$0xff] %v4684_v59 }
  0x46   :  { %369 = vmatpush.msrb.mxu3 %v4499_v11  ;;  %385 = vmatpush.msra.mxu0 %v4282_v34 }
  0x47   :  { %287 = vmatpush.msrb.mxu2 %v4666_v46  ;;  %345 = vmatpush.msrb.mxu1 %v4402_v56 }
  0x48   :  { %370 = vmatpush.msrb.mxu3 %v4518_v30  ;;  %386 = vmatpush.msra.mxu0 %v4294_v36  ;;  %v4693_v30 = vld [vmem:[%s9419_s22 + $0x128] sm:$0xff] }
  0x49   :  { %288 = vmatpush.msrb.mxu2 %v4675_v4  ;;  %346 = vmatpush.msrb.mxu1 %v4427_v60 }
  0x4a   :  { %371 = vmatpush.msrb.mxu3 %v4537_v53  ;;  %387 = vmatpush.msra.mxu0 %v4339_v44  ;;  %v4702_v53 = vld [vmem:[%s9419_s22 + $0x118] sm:$0xff] }
  0x4b   :  { %289 = vmatpush.msrb.mxu2 %v4684_v59  ;;  %347 = vmatpush.msrb.mxu1 %v4448_v63 }
  0x4c   :  { %475 = vmatpush.msra.mxu3 %v4182_v15  ;;  %388 = vmatpush.msra.mxu0 %v4369_v49  ;;  %v4711_v15 = vld [vmem:[%s9419_s22 + $0x108] sm:$0xff] }
  0x4d   :  { %290 = vmatpush.msrb.mxu2 %v4693_v30  ;;  %348 = vmatpush.msrb.mxu1 %v4471_v3 }
  0x4e   :  { %476 = vmatpush.msra.mxu3 %v4194_v17  ;;  %389 = vmatpush.msra.mxu0 %v4396_v55 }
  0x4f   :  { %291 = vmatpush.msrb.mxu2 %v4702_v53  ;;  %349 = vmatpush.msrb.mxu1 %v4491_v6 }
  0x50   :  { %477 = vmatpush.msra.mxu3 %v4215_v21  ;;  %390 = vmatpush.msra.mxu0 %v4465_v2 }
  0x51   :  { %292 = vmatpush.msrb.mxu2 %v4711_v15  ;;  %350 = vmatpush.msrb.mxu1 %v4510_v27 }
  0x52   :  { %478 = vmatpush.msra.mxu3 %v4234_v24  ;;  %391 = vmatpush.msra.mxu0 %v4485_v5 }
  0x53   :  { %874 = vrot.lane.b32.xlu0 %v4311_v39, %s4033_s0  ;;  %351 = vmatpush.msrb.mxu1 %v4529_v43 }
  0x54   :  { %479 = vmatpush.msra.mxu3 %v4262_v29 }
  0x56   :  { %480 = vmatpush.msra.mxu3 %v4289_v35 }
  0x58   :  { %481 = vmatpush.msra.mxu3 %v4322_v41 }
  0x5a   :  { %482 = vmatpush.msra.mxu3 %v4357_v47  ;;  %v70_v47 = vld [vmem:[%s9417_s26 + $0x16] sm:$0x1] }
  0x5c   :  { %483 = vmatpush.msra.mxu3 %v4380_v51  ;;  %v882_v51 = vrot.slane %v70_v47, 7 }
  0x5e   :  { %484 = vmatpush.msra.mxu3 %v4402_v56 }
  0x60   :  { %485 = vmatpush.msra.mxu3 %v4427_v60  ;;  %v69_v60 = vld [vmem:[%s9417_s26 + $0x6] sm:$0x1] }
  0x62   :  { %486 = vmatpush.msra.mxu3 %v4448_v63 }
  0x64   :  { %487 = vmatpush.msra.mxu3 %v4471_v3  ;;  %v4743_v3 = vsel %vm178_vm0, %v882_v51, %v69_v60 }
  0x65   :  { %9463 = vst [vmem:[#allocation48_spill] sm:$0xff] %v4743_v3  ;;  %884 = vrot.lane.b32.xlu1 %v4743_v3, %s4031_s25  ;;  %v9467_v3 = vld [vmem:[#allocation6_spill] sm:$0xff] }
  0x66   :  { %488 = vmatpush.msra.mxu3 %v4491_v6 }
  0x67   :  { %v321_v51 = vpop.permute.xlu2 %320 }
  0x68   :  { %489 = vmatpush.msra.mxu3 %v4510_v27  ;;  %v9475_v27 = vld [vmem:[#allocation15_spill] sm:$0xff] }
  0x6a   :  { %490 = vmatpush.msra.mxu3 %v4529_v43 }
  0x7f   :  { %v188_v63 = vpop.permute.xlu0 %187 }
  0x80   :  { %v181_v6 = vpop.permute.xlu1 %180  ;;  %3634 = vmatmul.msk.f32.vlgmr.msra.gmra.mxu2 %vm194_vm1, %v188_v63  ;;  %3635 = vmatmul.msk.f32.vlgmr.msrb.gmra.mxu0 %vm194_vm1, %v188_v63 }
  0x81   :  { %v191_v43 = vsel %vm190_vm2, 0.0, %v181_v6  ;;  %396 = vmatpush.msra.mxu2 %v4148_v8  ;;  %416 = vmatpush.msrb.mxu0 %v4504_v13 }
  0x82   :  { %v193_v47 = vsel %vm192_vm3, %v191_v43, %v188_v63 }
  0x83   :  { %233 = vmatmul.f32.vlgmr.msra.gmra.mxu1 %v193_v47  ;;  %397 = vmatpush.msra.mxu2 %v4153_v9 }
  0x84   :  { %417 = vmatpush.msrb.mxu0 %v4523_v33  ;;  %444 = vmatpush.msra.mxu1 %v4542_v54 }
  0x85   :  { %398 = vmatpush.msra.mxu2 %v4168_v12 }
  0x86   :  { %418 = vmatpush.msrb.mxu0 %v4556_v1  ;;  %445 = vmatpush.msra.mxu1 %v4551_v7 }
  0x87   :  { %399 = vmatpush.msra.mxu2 %v4177_v14  ;;  %v4760_v60 = vpop.permute.xlu0 %327 }
  0x88   :  { %419 = vmatpush.msrb.mxu0 %v4570_v58  ;;  %446 = vmatpush.msra.mxu1 %v4565_v62  ;;  %v318_v63 = vpop.permute.xlu1 %317 }
  0x89   :  { %v332_v6 = vsel %vm190_vm2, %v318_v63, %v321_v51  ;;  %400 = vmatpush.msra.mxu2 %v4207_v20  ;;  %3638 = vmatmul.msk.f32.vlgmr.msra.gmra.mxu0 %vm194_vm1, %v4760_v60 }
  0x8a   :  { %420 = vmatpush.msrb.mxu0 %v4584_v50  ;;  %293 = vmatmul.f32.vlgmr.msrb.gmra.mxu2 %v193_v47  ;;  %v4771_v43 = vsel %vm192_vm3, %v332_v6, %v4760_v60  ;;  %v9466_v6 = vld [vmem:[#allocation16_spill] sm:$0xff]  ;;  %v9485_v47 = vld [vmem:[#allocation7_spill] sm:$0xff] }
  0x8b   :  { %447 = vmatpush.msra.mxu1 %v4579_v32  ;;  %372 = vmatmul.f32.vlgmr.msrb.gmra.mxu3 %v4771_v43 }
  0x8c   :  { %401 = vmatpush.msra.mxu2 %v4220_v22  ;;  %421 = vmatpush.msrb.mxu0 %v4600_v26 }
  0x8d   :  { %448 = vmatpush.msra.mxu1 %v4593_v38  ;;  %583 = vmatpush.msrb.mxu3 %v4542_v54  ;;  %v9474_v54 = vld [vmem:[#allocation27_spill] sm:$0xff] }
  0x8e   :  { %402 = vmatpush.msra.mxu2 %v4241_v25  ;;  %422 = vmatpush.msrb.mxu0 %v4617_v48 }
  0x8f   :  { %449 = vmatpush.msra.mxu1 %v4610_v42  ;;  %584 = vmatpush.msrb.mxu3 %v4551_v7  ;;  %v4805_v51 = vpop.permute.xlu0 %457  ;;  %v9472_v7 = vld [vmem:[#allocation23_spill] sm:$0xff] }
  0x90   :  { %3637 = vmatmul.msk.f32.vlgmr.msrb.gmra.mxu1 %vm4780_vm5, %v318_v63  ;;  %403 = vmatpush.msra.mxu2 %v4256_v28 }
  0x91   :  { %423 = vmatpush.msrb.mxu0 %v4631_v52  ;;  %450 = vmatpush.msra.mxu1 %v4624_v19 }
  0x92   :  { %585 = vmatpush.msrb.mxu3 %v4565_v62  ;;  %404 = vmatpush.msra.mxu2 %v4299_v37  ;;  %v9470_v62 = vld [vmem:[#allocation19_spill] sm:$0xff] }
  0x93   :  { %424 = vmatpush.msrb.mxu0 %v4645_v57  ;;  %451 = vmatpush.msra.mxu1 %v4638_v10 }
  0x94   :  { %586 = vmatpush.msrb.mxu3 %v4579_v32  ;;  %405 = vmatpush.msra.mxu2 %v4316_v40  ;;  %v9469_v32 = vld [vmem:[#allocation11_spill] sm:$0xff] }
  0x95   :  { %495 = vmatpush.msrb.mxu1 %v4187_v16  ;;  %425 = vmatpush.msrb.mxu0 %v4656_v61 }
  0x96   :  { %587 = vmatpush.msrb.mxu3 %v4593_v38  ;;  %406 = vmatpush.msra.mxu2 %v4344_v45  ;;  %v4815_v38 = vsel %vm330_vm4, %v9467_v3, %v4805_v51  ;;  %v9473_v3 = vld [vmem:[#allocation13_spill] sm:$0xff] }
  0x97   :  { %496 = vmatpush.msrb.mxu1 %v4199_v18  ;;  %426 = vmatpush.msrb.mxu0 %v4666_v46  ;;  %9468 = vst [vmem:[#allocation16_spill] sm:$0xff] %v4815_v38 }
  0x98   :  { %588 = vmatpush.msrb.mxu3 %v4610_v42  ;;  %407 = vmatpush.msra.mxu2 %v9466_v6  ;;  %v9471_v42 = vld [vmem:[#allocation12_spill] sm:$0xff] }
  0x99   :  { %497 = vmatpush.msrb.mxu1 %v4226_v23  ;;  %427 = vmatpush.msrb.mxu0 %v4675_v4 }
  0x9a   :  { %589 = vmatpush.msrb.mxu3 %v4624_v19  ;;  %408 = vmatpush.msra.mxu2 %v9470_v62  ;;  %v68_v19 = vld [vmem:[%s9417_s26 + $0x15] sm:$0x1] }
  0x9b   :  { %498 = vmatpush.msrb.mxu1 %v9469_v32  ;;  %428 = vmatpush.msrb.mxu0 %v4684_v59  ;;  %v67_v59 = vld [vmem:[%s9417_s26 + $0x5] sm:$0x1] }
  0x9c   :  { %590 = vmatpush.msrb.mxu3 %v4638_v10  ;;  %409 = vmatpush.msra.mxu2 %v9472_v7  ;;  %v743_v10 = vrot.slane %v68_v19, 7 }
  0x9d   :  { %499 = vmatpush.msrb.mxu1 %v9471_v42  ;;  %491 = vmatmul.f32.vlgmr.msra.gmra.mxu3 %v4815_v38  ;;  %v9476_v38 = vld [vmem:[#allocation30_spill] sm:$0xff] }
  0x9e   :  { %634 = vmatpush.msra.mxu3 %v4187_v16  ;;  %429 = vmatpush.msrb.mxu0 %v4693_v30  ;;  %v9477_v16 = vld [vmem:[#allocation18_spill] sm:$0xff]  ;;  %v4846_v19 = vsel %vm178_vm0, %v743_v10, %v67_v59  ;;  %v9482_v59 = vld [vmem:[#allocation32_spill] sm:$0xff] }
  0x9f   :  { %500 = vmatpush.msrb.mxu1 %v9473_v3  ;;  %410 = vmatpush.msra.mxu2 %v9474_v54  ;;  %9478 = vst [vmem:[#allocation6_spill] sm:$0xff] %v4846_v19  ;;  %v9481_v10 = vld [vmem:[#allocation26_spill] sm:$0xff] }
  0xa0   :  { %635 = vmatpush.msra.mxu3 %v4199_v18  ;;  %430 = vmatpush.msrb.mxu0 %v4702_v53  ;;  %v9479_v18 = vld [vmem:[#allocation21_spill] sm:$0xff] }
  0xa1   :  { %501 = vmatpush.msrb.mxu1 %v9475_v27  ;;  %411 = vmatpush.msra.mxu2 %v9476_v38 }
  0xa2   :  { %636 = vmatpush.msra.mxu3 %v4226_v23  ;;  %431 = vmatpush.msrb.mxu0 %v4711_v15 }
  0xa3   :  { %3640 = vmatmul.msk.f32.vlgmr.msra.gmra.mxu2 %vm4780_vm5, %v318_v63  ;;  %502 = vmatpush.msrb.mxu1 %v9477_v16  ;;  %v9480_v63 = vld [vmem:[#allocation22_spill] sm:$0xff] }
  0xa4   :  { %523 = vmatpush.msrb.mxu2 %v4267_v31  ;;  %535 = vmatpush.msra.mxu0 %v4148_v8 }
  0xa5   :  { %637 = vmatpush.msra.mxu3 %v9469_v32  ;;  %503 = vmatpush.msrb.mxu1 %v9479_v18 }
  0xa6   :  { %524 = vmatpush.msrb.mxu2 %v4282_v34  ;;  %536 = vmatpush.msra.mxu0 %v4153_v9 }
  0xa7   :  { %638 = vmatpush.msra.mxu3 %v9471_v42  ;;  %877 = vrot.lane.b32.xlu1 %v4846_v19, %s4032_s27 }
  0xa8   :  { %537 = vmatpush.msra.mxu0 %v4168_v12  ;;  %504 = vmatpush.msrb.mxu1 %v9480_v63 }
  0xa9   :  { %525 = vmatpush.msrb.mxu2 %v4294_v36  ;;  %639 = vmatpush.msra.mxu3 %v9473_v3 }
  0xaa   :  { %505 = vmatpush.msrb.mxu1 %v9481_v10  ;;  %538 = vmatpush.msra.mxu0 %v4177_v14 }
  0xab   :  { %526 = vmatpush.msrb.mxu2 %v4339_v44  ;;  %640 = vmatpush.msra.mxu3 %v9475_v27 }
  0xac   :  { %432 = vmatmul.f32.vlgmr.msrb.gmra.mxu0 %v4771_v43  ;;  %3641 = vmatmul.msk.f32.vlgmr.msra.gmra.mxu1 %vm194_vm1, %v4760_v60  ;;  %v9483_v60 = vld [vmem:[#allocation36_spill] sm:$0xff]  ;;  %v9484_v43 = vld [vmem:[#allocation38_spill] sm:$0xff] }
  0xad   :  { %506 = vmatpush.msrb.mxu1 %v4453_v0  ;;  %527 = vmatpush.msrb.mxu2 %v4369_v49 }
  0xae   :  { %539 = vmatpush.msra.mxu0 %v4207_v20  ;;  %641 = vmatpush.msra.mxu3 %v9477_v16 }
  0xaf   :  { %507 = vmatpush.msrb.mxu1 %v9482_v59  ;;  %528 = vmatpush.msrb.mxu2 %v4396_v55 }
  0xb0   :  { %540 = vmatpush.msra.mxu0 %v4220_v22  ;;  %642 = vmatpush.msra.mxu3 %v9479_v18 }
  0xb1   :  { %745 = vrot.lane.b32.xlu2 %v4846_v19, %s4031_s25  ;;  %508 = vmatpush.msrb.mxu1 %v4499_v11 }
  0xb2   :  { %529 = vmatpush.msrb.mxu2 %v4465_v2  ;;  %541 = vmatpush.msra.mxu0 %v4241_v25 }
  0xb3   :  { %643 = vmatpush.msra.mxu3 %v9480_v63  ;;  %509 = vmatpush.msrb.mxu1 %v9483_v60 }
  0xb4   :  { %530 = vmatpush.msrb.mxu2 %v4485_v5  ;;  %542 = vmatpush.msra.mxu0 %v4256_v28 }
  0xb5   :  { %644 = vmatpush.msra.mxu3 %v9481_v10  ;;  %510 = vmatpush.msrb.mxu1 %v9484_v43 }
  0xb6   :  { %555 = vmatpush.msra.mxu2 %v4504_v13  ;;  %543 = vmatpush.msra.mxu0 %v4299_v37 }
  0xb7   :  { %645 = vmatpush.msra.mxu3 %v4453_v0  ;;  %614 = vmatpush.msra.mxu1 %v9485_v47  ;;  %v468_v0 = vpop.permute.xlu2 %467 }
  0xb8   :  { %556 = vmatpush.msra.mxu2 %v4523_v33  ;;  %544 = vmatpush.msra.mxu0 %v4316_v40 }
  0xb9   :  { %646 = vmatpush.msra.mxu3 %v9482_v59  ;;  %615 = vmatpush.msra.mxu1 %v4194_v17 }
  0xba   :  { %557 = vmatpush.msra.mxu2 %v4556_v1  ;;  %545 = vmatpush.msra.mxu0 %v4344_v45 }
  0xbb   :  { %647 = vmatpush.msra.mxu3 %v4499_v11  ;;  %616 = vmatpush.msra.mxu1 %v4215_v21  ;;  %v9489_v11 = vld [vmem:[#allocation28_spill] sm:$0xff] }
  0xbc   :  { %558 = vmatpush.msra.mxu2 %v4570_v58  ;;  %546 = vmatpush.msra.mxu0 %v9466_v6 }
  0xbd   :  { %648 = vmatpush.msra.mxu3 %v9483_v60  ;;  %617 = vmatpush.msra.mxu1 %v4234_v24 }
  0xbe   :  { %559 = vmatpush.msra.mxu2 %v4584_v50  ;;  %738 = vrot.lane.b32.xlu2 %v4311_v39, %s4032_s27  ;;  %v4914_v39 = vpop.permute.xlu1 %606 }
  0xbf   :  { %547 = vmatpush.msra.mxu0 %v9470_v62  ;;  %649 = vmatpush.msra.mxu3 %v9484_v43  ;;  %v9487_v43 = vld [vmem:[#allocation20_spill] sm:$0xff] }
  0xc0   :  { %560 = vmatpush.msra.mxu2 %v4600_v26  ;;  %3643 = vmatmul.msk.f32.vlgmr.msrb.gmra.mxu3 %vm194_vm1, %v468_v0 }
  0xc1   :  { %618 = vmatpush.msra.mxu1 %v4262_v29  ;;  %753 = vmatpush.msrb.mxu3 %v9485_v47  ;;  %v9486_v47 = vld [vmem:[#allocation17_spill] sm:$0xff] }
  0xc2   :  { %548 = vmatpush.msra.mxu0 %v9472_v7  ;;  %561 = vmatpush.msra.mxu2 %v4617_v48 }
  0xc3   :  { %619 = vmatpush.msra.mxu1 %v4289_v35  ;;  %754 = vmatpush.msrb.mxu3 %v4194_v17  ;;  %v461_v17 = vpop.permute.xlu2 %460 }
  0xc4   :  { %549 = vmatpush.msra.mxu0 %v9474_v54  ;;  %562 = vmatpush.msra.mxu2 %v4631_v52 }
  0xc5   :  { %620 = vmatpush.msra.mxu1 %v4322_v41  ;;  %755 = vmatpush.msrb.mxu3 %v4215_v21  ;;  %v471_v21 = vsel %vm190_vm2, %v4805_v51, %v461_v17  ;;  %v9490_v51 = vld [vmem:[#allocation47_spill] sm:$0xff] }
  0xc6   :  { %550 = vmatpush.msra.mxu0 %v9476_v38  ;;  %563 = vmatpush.msra.mxu2 %v4645_v57  ;;  %v600_v60 = vpop.permute.xlu1 %599  ;;  %v9491_v17 = vld [vmem:[#allocation31_spill] sm:$0xff] }
  0xc7   :  { %621 = vmatpush.msra.mxu1 %v9486_v47  ;;  %756 = vmatpush.msrb.mxu3 %v4234_v24  ;;  %v9488_v24 = vld [vmem:[#allocation25_spill] sm:$0xff] }
  0xc8   :  { %662 = vmatpush.msrb.mxu0 %v4267_v31  ;;  %1013 = vrot.lane.b32.xlu0 %v4846_v19, %s4033_s0  ;;  %v597_v19 = vpop.permute.xlu0 %596 }
  0xc9   :  { %564 = vmatpush.msra.mxu2 %v4656_v61  ;;  %622 = vmatpush.msra.mxu1 %v9487_v43 }
  0xca   :  { %663 = vmatpush.msrb.mxu0 %v4282_v34  ;;  %757 = vmatpush.msrb.mxu3 %v4262_v29  ;;  %v472_v29 = vsel %vm192_vm3, %v471_v21, %v468_v0 }
  0xcb   :  { %565 = vmatpush.msra.mxu2 %v4666_v46  ;;  %623 = vmatpush.msra.mxu1 %v4402_v56 }
  0xcc   :  { %664 = vmatpush.msrb.mxu0 %v4294_v36  ;;  %758 = vmatpush.msrb.mxu3 %v4289_v35  ;;  %v610_v35 = vsel %vm190_vm2, %v597_v19, %v600_v60  ;;  %v9493_v60 = vld [vmem:[#allocation16_spill] sm:$0xff] }
  0xcd   :  { %566 = vmatpush.msra.mxu2 %v4675_v4  ;;  %624 = vmatpush.msra.mxu1 %v9488_v24 }
  0xce   :  { %665 = vmatpush.msrb.mxu0 %v4339_v44  ;;  %759 = vmatpush.msrb.mxu3 %v4322_v41  ;;  %v4954_v41 = vsel %vm192_vm3, %v610_v35, %v4914_v39 }
  0xcf   :  { %3642 = vmatmul.msk.f32.vlgmr.msrb.gmra.mxu2 %vm194_vm1, %v468_v0  ;;  %625 = vmatpush.msra.mxu1 %v9489_v11  ;;  %v9492_v0 = vld [vmem:[#allocation33_spill] sm:$0xff] }
  0xd0   :  { %567 = vmatpush.msra.mxu2 %v9490_v51  ;;  %666 = vmatpush.msrb.mxu0 %v4369_v49  ;;  %v5022_v35 = vpop.permute.xlu0 %735 }
  0xd1   :  { %760 = vmatpush.msrb.mxu3 %v9486_v47  ;;  %511 = vmatmul.f32.vlgmr.msrb.gmra.mxu1 %v472_v29  ;;  %v9494_v47 = vld [vmem:[#allocation35_spill] sm:$0xff] }
  0xd2   :  { %568 = vmatpush.msra.mxu2 %v4693_v30  ;;  %626 = vmatpush.msra.mxu1 %v9491_v17 }
  0xd3   :  { %667 = vmatpush.msrb.mxu0 %v4396_v55  ;;  %761 = vmatpush.msrb.mxu3 %v9487_v43  ;;  %v9495_v43 = vld [vmem:[#allocation5_spill] sm:$0xff] }
  0xd4   :  { %569 = vmatpush.msra.mxu2 %v4702_v53  ;;  %627 = vmatpush.msra.mxu1 %v9492_v0  ;;  %v4966_v21 = vsel %vm330_vm4, %v9495_v43, %v597_v19  ;;  %v9497_v19 = vld [vmem:[#allocation39_spill] sm:$0xff]  ;;  %v9514_v43 = vld [vmem:[#allocation29_spill] sm:$0xff] }
  0xd5   :  { %668 = vmatpush.msrb.mxu0 %v4465_v2  ;;  %762 = vmatpush.msrb.mxu3 %v4402_v56  ;;  %v9496_v56 = vld [vmem:[#allocation37_spill] sm:$0xff] }
  0xd6   :  { %551 = vmatmul.f32.vlgmr.msra.gmra.mxu0 %v9493_v60  ;;  %650 = vmatmul.f32.vlgmr.msra.gmra.mxu3 %v4954_v41  ;;  %v5060_v60 = vld [vmem:[%s9419_s22 + $0x1e0] sm:$0xff] }
  0xd7   :  { %570 = vmatpush.msra.mxu2 %v4711_v15  ;;  %628 = vmatpush.msra.mxu1 %v9494_v47  ;;  %9510 = vst [vmem:[#allocation12_spill] sm:$0xff] %v5060_v60 }
  0xd8   :  { %669 = vmatpush.msrb.mxu0 %v4485_v5  ;;  %763 = vmatpush.msrb.mxu3 %v9488_v24  ;;  %v9498_v24 = vld [vmem:[#allocation40_spill] sm:$0xff] }
  0xd9   :  { %571 = vmatmul.f32.vlgmr.msra.gmra.mxu2 %v472_v29  ;;  %629 = vmatpush.msra.mxu1 %v9496_v56  ;;  %v73_v29 = vld [vmem:[%s9417_s26 + $0x8] sm:$0x1] }
  0xda   :  { %694 = vmatpush.msra.mxu0 %v4504_v13  ;;  %674 = vmatpush.msrb.mxu2 %v4148_v8  ;;  %v9499_v8 = vld [vmem:[#allocation41_spill] sm:$0xff] }
  0xdb   :  { %764 = vmatpush.msrb.mxu3 %v9489_v11  ;;  %630 = vmatmul.f32.vlgmr.msra.gmra.mxu1 %v4966_v21  ;;  %v9505_v11 = vld [vmem:[#allocation8_spill] sm:$0xff] }
  0xdc   :  { %675 = vmatpush.msrb.mxu2 %v4153_v9  ;;  %695 = vmatpush.msra.mxu0 %v4523_v33  ;;  %v9500_v9 = vld [vmem:[#allocation42_spill] sm:$0xff] }
  0xdd   :  { %722 = vmatpush.msrb.mxu1 %v9497_v19  ;;  %765 = vmatpush.msrb.mxu3 %v9491_v17  ;;  %v9508_v17 = vld [vmem:[#allocation10_spill] sm:$0xff] }
  0xde   :  { %676 = vmatpush.msrb.mxu2 %v4168_v12  ;;  %696 = vmatpush.msra.mxu0 %v4556_v1  ;;  %v9501_v12 = vld [vmem:[#allocation43_spill] sm:$0xff] }
  0xdf   :  { %723 = vmatpush.msrb.mxu1 %v9498_v24  ;;  %766 = vmatpush.msrb.mxu3 %v9492_v0  ;;  %v5051_v0 = vld [vmem:[%s9419_s22 + $0x1f0] sm:$0xff] }
  0xe0   :  { %3644 = vmatmul.msk.f32.vlgmr.msrb.gmra.mxu0 %vm194_vm1, %v4914_v39  ;;  %677 = vmatpush.msrb.mxu2 %v4177_v14  ;;  %v9502_v14 = vld [vmem:[#allocation44_spill] sm:$0xff]  ;;  %9509 = vst [vmem:[#allocation19_spill] sm:$0xff] %v5051_v0 }
  0xe1   :  { %697 = vmatpush.msra.mxu0 %v4570_v58  ;;  %724 = vmatpush.msrb.mxu1 %v9499_v8 }
  0xe2   :  { %767 = vmatpush.msrb.mxu3 %v9494_v47  ;;  %678 = vmatpush.msrb.mxu2 %v4207_v20  ;;  %v9503_v20 = vld [vmem:[#allocation45_spill] sm:$0xff] }
  0xe3   :  { %698 = vmatpush.msra.mxu0 %v4584_v50  ;;  %725 = vmatpush.msrb.mxu1 %v9500_v9  ;;  %v71_v47 = vld [vmem:[%s9417_s26 + $0x7] sm:$0x1] }
  0xe4   :  { %768 = vmatpush.msrb.mxu3 %v9496_v56  ;;  %679 = vmatpush.msrb.mxu2 %v4220_v22  ;;  %v74_v22 = vld [vmem:[%s9417_s26 + $0x18] sm:$0x1]  ;;  %v9518_v56 = vld [vmem:[#allocation38_spill] sm:$0xff] }
  0xe5   :  { %699 = vmatpush.msra.mxu0 %v4600_v26  ;;  %726 = vmatpush.msrb.mxu1 %v9501_v12 }
  0xe6   :  { %861 = vmatpush.msra.mxu3 %v9497_v19  ;;  %680 = vmatpush.msrb.mxu2 %v4241_v25  ;;  %v9504_v25 = vld [vmem:[#allocation46_spill] sm:$0xff] }
  0xe7   :  { %700 = vmatpush.msra.mxu0 %v4617_v48  ;;  %727 = vmatpush.msrb.mxu1 %v9502_v14 }
  0xe8   :  { %862 = vmatpush.msra.mxu3 %v9498_v24  ;;  %681 = vmatpush.msrb.mxu2 %v4256_v28  ;;  %v1160_v28 = vrot.slane %v74_v22, 7  ;;  %v5215_v24 = vld [vmem:[%s9419_s22 + $0x58] sm:$0xff]  ;;  %v5275_v22 = vld [vmem:[%s9419_s22 + $0x28] sm:$0xff] }
  0xe9   :  { %701 = vmatpush.msra.mxu0 %v4631_v52  ;;  %728 = vmatpush.msrb.mxu1 %v9503_v20 }
  0xea   :  { %863 = vmatpush.msra.mxu3 %v9499_v8  ;;  %682 = vmatpush.msrb.mxu2 %v4299_v37  ;;  %v9506_v37 = vld [vmem:[#allocation9_spill] sm:$0xff] }
  0xeb   :  { %702 = vmatpush.msra.mxu0 %v4645_v57  ;;  %729 = vmatpush.msrb.mxu1 %v9504_v25  ;;  %v5232_v8 = vld [vmem:[%s9419_s22 + $0x48] sm:$0xff] }
  0xec   :  { %864 = vmatpush.msra.mxu3 %v9500_v9  ;;  %683 = vmatpush.msrb.mxu2 %v4316_v40  ;;  %v5027_v40 = vsel %vm178_vm0, %v1160_v28, %v73_v29  ;;  %v5243_v9 = vld [vmem:[%s9419_s22 + $0xc0] sm:$0xff]  ;;  %v5288_v28 = vpop.f32.mrf.mxu0  ;;  %v5294_v29 = vld [vmem:[%s9419_s22 + $0x18] sm:$0xff] }
  0xed   :  { %773 = vmatpush.msra.mxu1 %v9505_v11  ;;  %703 = vmatpush.msra.mxu0 %v4656_v61  ;;  %9507 = vst [vmem:[#allocation11_spill] sm:$0xff] %v5027_v40  ;;  %v79_v11 = vld [vmem:[%s9417_s26 + $0xb] sm:$0x1] }
  0xee   :  { %865 = vmatpush.msra.mxu3 %v9501_v12  ;;  %684 = vmatpush.msrb.mxu2 %v4344_v45  ;;  %v5035_v45 = vsel %vm330_vm4, %v9508_v17, %v5022_v35  ;;  %9523 = vst [vmem:[#allocation22_spill] sm:$0xff] %v5243_v9  ;;  %v5310_v17 = vld [vmem:[%s9419_s22 + $0x8] sm:$0xff] }
  0xef   :  { %774 = vmatpush.msra.mxu1 %v9506_v37  ;;  %704 = vmatpush.msra.mxu0 %v4666_v46  ;;  %v5304_v37 = vpop.permute.xlu1 %884 }
  0xf0   :  { %866 = vmatpush.msra.mxu3 %v9502_v14  ;;  %685 = vmatpush.msrb.mxu2 %v9466_v6  ;;  %v72_v6 = vld [vmem:[%s9417_s26 + $0x17] sm:$0x1]  ;;  %v5253_v14 = vld [vmem:[%s9419_s22 + $0x38] sm:$0xff] }
  0xf1   :  { %775 = vmatpush.msra.mxu1 %v4226_v23  ;;  %705 = vmatpush.msra.mxu0 %v4675_v4 }
  0xf2   :  { %867 = vmatpush.msra.mxu3 %v9503_v20  ;;  %1162 = vrot.lane.b32.xlu1 %v5027_v40, %s4031_s25  ;;  %v5268_v20 = vld [vmem:[%s9419_s22 + $0xb0] sm:$0xff] }
  0xf3   :  { %776 = vmatpush.msra.mxu1 %v9469_v32  ;;  %686 = vmatpush.msrb.mxu2 %v9470_v62  ;;  %v1021_v62 = vrot.slane %v72_v6, 7  ;;  %9524 = vst [vmem:[#allocation26_spill] sm:$0xff] %v5268_v20  ;;  %v5320_v6 = vld [vmem:[%s9419_s22 + $0x80] sm:$0xff] }
  0xf4   :  { %706 = vmatpush.msra.mxu0 %v9490_v51  ;;  %868 = vmatpush.msra.mxu3 %v9504_v25  ;;  %v5282_v25 = vld [vmem:[%s9419_s22 + $0xa0] sm:$0xff]  ;;  %9528 = vst [vmem:[#allocation20_spill] sm:$0xff] %v5320_v6 }
  0xf5   :  { %769 = vmatmul.f32.vlgmr.msrb.gmra.mxu3 %v5035_v45  ;;  %777 = vmatpush.msra.mxu1 %v9471_v42  ;;  %9525 = vst [vmem:[#allocation32_spill] sm:$0xff] %v5282_v25 }
  0xf6   :  { %912 = vmatpush.msrb.mxu3 %v5051_v0  ;;  %687 = vmatpush.msrb.mxu2 %v9472_v7  ;;  %v5074_v7 = vsel %vm178_vm0, %v1021_v62, %v71_v47  ;;  %v5328_v47 = vld [vmem:[%s9419_s22 + $0x270] sm:$0xff] }
  0xf7   :  { %707 = vmatpush.msra.mxu0 %v4693_v30  ;;  %778 = vmatpush.msra.mxu1 %v9473_v3  ;;  %9511 = vst [vmem:[#allocation23_spill] sm:$0xff] %v5074_v7 }
  0xf8   :  { %913 = vmatpush.msrb.mxu3 %v5060_v60  ;;  %688 = vmatpush.msrb.mxu2 %v9474_v54  ;;  %v5081_v54 = vld [vmem:[%s9419_s22 + $0xf8] sm:$0xff] }
  0xf9   :  { %708 = vmatpush.msra.mxu0 %v4702_v53  ;;  %779 = vmatpush.msra.mxu1 %v9475_v27 }
  0xfa   :  { %914 = vmatpush.msrb.mxu3 %v4226_v23  ;;  %689 = vmatpush.msrb.mxu2 %v9476_v38  ;;  %v78_v23 = vld [vmem:[%s9417_s26 + $0x1a] sm:$0x1] }
  0xfb   :  { %709 = vmatpush.msra.mxu0 %v4711_v15  ;;  %690 = vmatmul.f32.vlgmr.msrb.gmra.mxu2 %v4966_v21  ;;  %v1438_v38 = vrot.slane %v78_v23, 7  ;;  %v86_v23 = vld [vmem:[%s9417_s26 + $0x1e] sm:$0x1] }
  0xfc   :  { %780 = vmatpush.msra.mxu1 %v9477_v16  ;;  %801 = vmatpush.msra.mxu2 %v4267_v31  ;;  %v5095_v31 = vld [vmem:[%s9419_s22 + $0xe8] sm:$0xff] }
  0xfd   :  { %813 = vmatpush.msrb.mxu0 %v5081_v54  ;;  %915 = vmatpush.msrb.mxu3 %v9469_v32  ;;  %v9512_v32 = vld [vmem:[#allocation48_spill] sm:$0xff] }
  0xfe   :  { %1155 = vrot.lane.b32.xlu1 %v5074_v7, %s4032_s27  ;;  %781 = vmatpush.msra.mxu1 %v9479_v18 }
  0xff   :  { %802 = vmatpush.msra.mxu2 %v4282_v34  ;;  %814 = vmatpush.msrb.mxu0 %v5095_v31  ;;  %v5106_v34 = vld [vmem:[%s9419_s22 + $0xd8] sm:$0xff] }
 0x100   :  { %916 = vmatpush.msrb.mxu3 %v9471_v42  ;;  %1152 = vrot.lane.b32.xlu0 %v9512_v32, %s4033_s0  ;;  %v77_v42 = vld [vmem:[%s9417_s26 + $0xa] sm:$0x1] }
 0x101   :  { %782 = vmatpush.msra.mxu1 %v9480_v63  ;;  %803 = vmatpush.msra.mxu2 %v4294_v36  ;;  %v5118_v36 = vld [vmem:[%s9419_s22 + $0xc8] sm:$0xff] }
 0x102   :  { %815 = vmatpush.msrb.mxu0 %v5106_v34  ;;  %917 = vmatpush.msrb.mxu3 %v9473_v3  ;;  %v5126_v3 = vsel %vm178_vm0, %v1438_v38, %v77_v42  ;;  %v5343_v38 = vld [vmem:[%s9419_s22 + $0x70] sm:$0xff]  ;;  %v5349_v42 = vld [vmem:[%s9419_s22 + $0x260] sm:$0xff] }
 0x103   :  { %783 = vmatpush.msra.mxu1 %v9481_v10  ;;  %804 = vmatpush.msra.mxu2 %v4339_v44  ;;  %9513 = vst [vmem:[#allocation13_spill] sm:$0xff] %v5126_v3  ;;  %v5133_v44 = vld [vmem:[%s9419_s22 + $0xb8] sm:$0xff]  ;;  %v5323_v62 = vpop.f32.mrf.mxu2 }
 0x104   :  { %816 = vmatpush.msrb.mxu0 %v5118_v36  ;;  %918 = vmatpush.msrb.mxu3 %v9475_v27  ;;  %v9515_v27 = vld [vmem:[#allocation34_spill] sm:$0xff]  ;;  %9529 = vst [vmem:[#allocation25_spill] sm:$0xff] %v5343_v38 }
 0x105   :  { %710 = vmatmul.f32.vlgmr.msra.gmra.mxu0 %v4954_v41  ;;  %3645 = vmatmul.msk.f32.vlgmr.msrb.gmra.mxu1 %vm194_vm1, %v4914_v39  ;;  %v76_v39 = vld [vmem:[%s9417_s26 + $0x19] sm:$0x1]  ;;  %9530 = vst [vmem:[#allocation28_spill] sm:$0xff] %v5349_v42 }
 0x106   :  { %784 = vmatpush.msra.mxu1 %v9514_v43  ;;  %805 = vmatpush.msra.mxu2 %v4369_v49  ;;  %v5147_v49 = vld [vmem:[%s9419_s22 + $0xa8] sm:$0xff]  ;;  %v5161_v41 = vld [vmem:[%s9419_s22 + $0x98] sm:$0xff] }
 0x107   :  { %817 = vmatpush.msrb.mxu0 %v5133_v44  ;;  %919 = vmatpush.msrb.mxu3 %v9477_v16  ;;  %v1299_v16 = vrot.slane %v76_v39, 7  ;;  %v1994_v39 = vrot.slane %v86_v23, 7  ;;  %v274_v23 = vpop.f32.mrf.mxu3 }
 0x108   :  { %1440 = vrot.lane.b32.xlu1 %v5126_v3, %s4031_s25  ;;  %785 = vmatpush.msra.mxu1 %v9482_v59 }
 0x109   :  { %806 = vmatpush.msra.mxu2 %v4396_v55  ;;  %818 = vmatpush.msrb.mxu0 %v5147_v49  ;;  %v75_v55 = vld [vmem:[%s9417_s26 + $0x9] sm:$0x1] }
 0x10a   :  { %920 = vmatpush.msrb.mxu3 %v9479_v18  ;;  %1023 = vrot.lane.b32.xlu2 %v5074_v7, %s4031_s25  ;;  %v9516_v18 = vld [vmem:[#allocation36_spill] sm:$0xff]  ;;  %v5175_v21 = vsel %vm178_vm0, %v1299_v16, %v75_v55  ;;  %v5365_v16 = vld [vmem:[%s9419_s22 + $0x250] sm:$0xff] }
 0x10b   :  { %786 = vmatpush.msra.mxu1 %v9515_v27  ;;  %807 = vmatpush.msra.mxu2 %v4465_v2  ;;  %v5170_v2 = vld [vmem:[%s9419_s22 + $0x88] sm:$0xff]  ;;  %9517 = vst [vmem:[#allocation27_spill] sm:$0xff] %v5175_v21  ;;  %v5248_v12 = vpop.permute.xlu2 %745  ;;  %v5384_v55 = vld [vmem:[%s9419_s22 + $0x240] sm:$0xff] }
 0x10c   :  { %819 = vmatpush.msrb.mxu0 %v5161_v41  ;;  %921 = vmatpush.msrb.mxu3 %v9480_v63  ;;  %v82_v63 = vld [vmem:[%s9417_s26 + $0x1c] sm:$0x1]  ;;  %9532 = vst [vmem:[#allocation31_spill] sm:$0xff] %v5365_v16 }
 0x10d   :  { %787 = vmatpush.msra.mxu1 %v9516_v18  ;;  %808 = vmatpush.msra.mxu2 %v4485_v5  ;;  %v5182_v5 = vld [vmem:[%s9419_s22 + $0x78] sm:$0xff]  ;;  %v1716_v19 = vrot.slane %v82_v63, 7  ;;  %9534 = vst [vmem:[#allocation16_spill] sm:$0xff] %v5384_v55  ;;  %v5395_v63 = vld [vmem:[%s9419_s22 + $0x40] sm:$0xff] }
 0x10e   :  { %820 = vmatpush.msrb.mxu0 %v5170_v2  ;;  %922 = vmatpush.msrb.mxu3 %v9481_v10  ;;  %v5201_v10 = vld [vmem:[%s9419_s22 + $0x68] sm:$0xff]  ;;  %9535 = vst [vmem:[#allocation35_spill] sm:$0xff] %v5395_v63 }
 0x10f   :  { %833 = vmatpush.msrb.mxu2 %v4504_v13  ;;  %788 = vmatpush.msra.mxu1 %v9518_v56  ;;  %v5195_v13 = vld [vmem:[%s9419_s22 + $0xf0] sm:$0xff] }
 0x110   :  { %821 = vmatpush.msrb.mxu0 %v5182_v5  ;;  %923 = vmatpush.msrb.mxu3 %v9514_v43  ;;  %9519 = vst [vmem:[#allocation15_spill] sm:$0xff] %v5195_v13 }
 0x111   :  { %1433 = vrot.lane.b32.xlu1 %v5175_v21, %s4032_s27  ;;  %834 = vmatpush.msrb.mxu2 %v4523_v33  ;;  %v5209_v33 = vld [vmem:[%s9419_s22 + $0xe0] sm:$0xff] }
 0x112   :  { %892 = vmatpush.msrb.mxu1 %v5195_v13  ;;  %822 = vmatpush.msrb.mxu0 %v5201_v10  ;;  %9520 = vst [vmem:[#allocation30_spill] sm:$0xff] %v5209_v33 }
 0x113   :  { %924 = vmatpush.msrb.mxu3 %v9482_v59  ;;  %835 = vmatpush.msrb.mxu2 %v4556_v1  ;;  %v81_v59 = vld [vmem:[%s9417_s26 + $0xc] sm:$0x1]  ;;  %v5226_v1 = vld [vmem:[%s9419_s22 + $0xd0] sm:$0xff] }
 0x114   :  { %893 = vmatpush.msrb.mxu1 %v5209_v33  ;;  %823 = vmatpush.msrb.mxu0 %v5215_v24  ;;  %9521 = vst [vmem:[#allocation18_spill] sm:$0xff] %v5226_v1 }
 0x115   :  { %925 = vmatpush.msrb.mxu3 %v9515_v27  ;;  %836 = vmatpush.msrb.mxu2 %v4570_v58  ;;  %v5238_v58 = vsel %vm178_vm0, %v1716_v19, %v81_v59  ;;  %v5372_v27 = vpop.f32.mrf.mxu0  ;;  %v5405_v59 = vld [vmem:[%s9419_s22 + $0x230] sm:$0xff] }
 0x116   :  { %894 = vmatpush.msrb.mxu1 %v5226_v1  ;;  %824 = vmatpush.msrb.mxu0 %v5232_v8  ;;  %9522 = vst [vmem:[#allocation21_spill] sm:$0xff] %v5238_v58 }
 0x117   :  { %926 = vmatpush.msrb.mxu3 %v9516_v18  ;;  %837 = vmatpush.msrb.mxu2 %v4584_v50  ;;  %v80_v50 = vld [vmem:[%s9417_s26 + $0x1b] sm:$0x1]  ;;  %9537 = vst [vmem:[#allocation37_spill] sm:$0xff] %v5405_v59 }
 0x118   :  { %895 = vmatpush.msrb.mxu1 %v5243_v9  ;;  %1016 = vrot.lane.b32.xlu2 %v9512_v32, %s4032_s27 }
 0x119   :  { %825 = vmatpush.msrb.mxu0 %v5253_v14  ;;  %927 = vmatpush.msrb.mxu3 %v9518_v56  ;;  %v878_v56 = vpop.permute.xlu1 %877 }
 0x11a   :  { %1718 = vrot.lane.b32.xlu1 %v5238_v58, %s4031_s25  ;;  %838 = vmatpush.msrb.mxu2 %v4600_v26  ;;  %v1577_v26 = vrot.slane %v80_v50, 7 }
 0x11b   :  { %3647 = vmatmul.msk.f32.vlgmr.msra.gmra.mxu3 %vm194_vm1, %v5248_v12  ;;  %896 = vmatpush.msrb.mxu1 %v5268_v20 }
 0x11c   :  { %1031 = vmatpush.msra.mxu3 %v5195_v13  ;;  %826 = vmatpush.msrb.mxu0 %v5275_v22 }
 0x11d   :  { %839 = vmatpush.msrb.mxu2 %v4617_v48  ;;  %897 = vmatpush.msrb.mxu1 %v5282_v25  ;;  %v5301_v48 = vld [vmem:[%s9419_s22 + $0x90] sm:$0xff] }
 0x11e   :  { %1032 = vmatpush.msra.mxu3 %v5209_v33  ;;  %827 = vmatpush.msrb.mxu0 %v5294_v29  ;;  %9526 = vst [vmem:[#allocation7_spill] sm:$0xff] %v5301_v48 }
 0x11f   :  { %840 = vmatpush.msrb.mxu2 %v4631_v52  ;;  %898 = vmatpush.msrb.mxu1 %v5301_v48  ;;  %v5314_v52 = vsel %vm178_vm0, %v1577_v26, %v79_v11  ;;  %v5420_v26 = vld [vmem:[%s9419_s22 + $0x30] sm:$0xff]  ;;  %v5426_v11 = vld [vmem:[%s9419_s22 + $0x220] sm:$0xff] }
 0x120   :  { %1033 = vmatpush.msra.mxu3 %v5226_v1  ;;  %828 = vmatpush.msrb.mxu0 %v5310_v17  ;;  %9527 = vst [vmem:[#allocation17_spill] sm:$0xff] %v5314_v52 }
 0x121   :  { %841 = vmatpush.msrb.mxu2 %v4645_v57  ;;  %899 = vmatpush.msrb.mxu1 %v5320_v6  ;;  %v739_v57 = vpop.permute.xlu2 %738  ;;  %9538 = vst [vmem:[#allocation39_spill] sm:$0xff] %v5420_v26 }
 0x122   :  { %940 = vmatpush.msra.mxu0 %v5328_v47  ;;  %1034 = vmatpush.msra.mxu3 %v5243_v9  ;;  %v749_v43 = vsel %vm190_vm2, %v5022_v35, %v739_v57  ;;  %v5378_v35 = vld [vmem:[%s9419_s22 + $0x50] sm:$0xff]  ;;  %9539 = vst [vmem:[#allocation40_spill] sm:$0xff] %v5426_v11  ;;  %v84_v57 = vld [vmem:[%s9417_s26 + $0x1d] sm:$0x1] }
 0x123   :  { %1291 = vrot.lane.b32.xlu0 %v5074_v7, %s4033_s0  ;;  %1711 = vrot.lane.b32.xlu1 %v5314_v52, %s4032_s27  ;;  %9533 = vst [vmem:[#allocation33_spill] sm:$0xff] %v5378_v35  ;;  %v750_v18 = vsel %vm192_vm3, %v749_v43, %v5248_v12  ;;  %v5438_v43 = vpop.f32.mrf.mxu0 }
 0x124   :  { %842 = vmatpush.msrb.mxu2 %v4656_v61  ;;  %900 = vmatpush.msrb.mxu1 %v5343_v38  ;;  %v5357_v61 = vld [vmem:[%s9419_s22 + $0x60] sm:$0xff] }
 0x125   :  { %941 = vmatpush.msra.mxu0 %v5349_v42  ;;  %1035 = vmatpush.msra.mxu3 %v5268_v20  ;;  %9531 = vst [vmem:[#allocation47_spill] sm:$0xff] %v5357_v61 }
 0x126   :  { %843 = vmatpush.msrb.mxu2 %v4666_v46  ;;  %901 = vmatpush.msrb.mxu1 %v5357_v61  ;;  %v85_v46 = vld [vmem:[%s9417_s26 + $0xe] sm:$0x1] }
 0x127   :  { %942 = vmatpush.msra.mxu0 %v5365_v16  ;;  %1036 = vmatpush.msra.mxu3 %v5282_v25  ;;  %v5399_v19 = vsel %vm178_vm0, %v1994_v39, %v85_v46  ;;  %v5443_v39 = vld [vmem:[%s9419_s22 + $0x20] sm:$0xff]  ;;  %v1855_v46 = vrot.slane %v84_v57, 7 }
 0x128   :  { %844 = vmatpush.msrb.mxu2 %v4675_v4  ;;  %902 = vmatpush.msrb.mxu1 %v5378_v35  ;;  %v875_v4 = vpop.permute.xlu0 %874  ;;  %9536 = vst [vmem:[#allocation5_spill] sm:$0xff] %v5399_v19  ;;  %v9542_v57 = vld [vmem:[#allocation24_spill] sm:$0xff] }
 0x129   :  { %943 = vmatpush.msra.mxu0 %v5384_v55  ;;  %1037 = vmatpush.msra.mxu3 %v5301_v48  ;;  %v888_v50 = vsel %vm190_vm2, %v875_v4, %v878_v56  ;;  %9540 = vst [vmem:[#allocation41_spill] sm:$0xff] %v5443_v39  ;;  %v5459_v56 = vld [vmem:[%s9419_s22 + $0x10] sm:$0xff]  ;;  %v5476_v7 = vsel %vm330_vm4, %v9542_v57, %v875_v4  ;;  %v5491_v4 = vld [vmem:[%s9419_s22] sm:$0xff]  ;;  %v5524_v48 = vld [vmem:[%s9419_s22 + $0x1d8] sm:$0xff] }
 0x12a   :  { %3646 = vmatmul.msk.f32.vlgmr.msra.gmra.mxu2 %vm194_vm1, %v5248_v12  ;;  %903 = vmatpush.msrb.mxu1 %v5395_v63  ;;  %v5408_v12 = vpop.f32.mrf.mxu2  ;;  %9541 = vst [vmem:[#allocation42_spill] sm:$0xff] %v5459_v56 }
 0x12b   :  { %845 = vmatpush.msrb.mxu2 %v9490_v51  ;;  %944 = vmatpush.msra.mxu0 %v5405_v59  ;;  %v5415_v51 = vpop.f32.mrf.mxu1  ;;  %9546 = vst [vmem:[#allocation46_spill] sm:$0xff] %v5524_v48 }
 0x12c   :  { %1038 = vmatpush.msra.mxu3 %v5320_v6  ;;  %789 = vmatmul.f32.vlgmr.msra.gmra.mxu1 %v750_v18  ;;  %v5506_v6 = vld [vmem:[%s9419_s22 + $0x1e8] sm:$0xff] }
 0x12d   :  { %1996 = vrot.lane.b32.xlu1 %v5399_v19, %s4031_s25  ;;  %846 = vmatpush.msrb.mxu2 %v4693_v30  ;;  %v5433_v30 = vsel %vm192_vm3, %v888_v50, %v5304_v37  ;;  %v5465_v50 = vld [vmem:[%s9419_s22 + $0x200] sm:$0xff] }
 0x12e   :  { %904 = vmatpush.msrb.mxu1 %v5420_v26  ;;  %945 = vmatpush.msra.mxu0 %v5426_v11 }
 0x12f   :  { %1039 = vmatpush.msra.mxu3 %v5343_v38  ;;  %847 = vmatpush.msrb.mxu2 %v4702_v53  ;;  %v5449_v53 = vld [vmem:[%s9419_s22 + $0x210] sm:$0xff] }
 0x130   :  { %905 = vmatpush.msrb.mxu1 %v5443_v39  ;;  %946 = vmatpush.msra.mxu0 %v5449_v53 }
 0x131   :  { %1040 = vmatpush.msra.mxu3 %v5357_v61  ;;  %829 = vmatmul.f32.vlgmr.msrb.gmra.mxu0 %v5035_v45  ;;  %v83_v45 = vld [vmem:[%s9417_s26 + $0xd] sm:$0x1]  ;;  %v5485_v61 = vld [vmem:[%s9419_s22 + $0x1f8] sm:$0xff] }
 0x132   :  { %928 = vmatmul.f32.vlgmr.msrb.gmra.mxu3 %v5433_v30  ;;  %848 = vmatpush.msrb.mxu2 %v4711_v15  ;;  %v169_v15 = vld [vmem:[%s9035_s2] sm:$0x3]  ;;  %v413_v32 = vpop.f32.mrf.mxu2 }
 0x133   :  { %906 = vmatpush.msrb.mxu1 %v5459_v56  ;;  %947 = vmatpush.msra.mxu0 %v5465_v50  ;;  %v5479_v58 = vperm.slane %v169_v15, 1  ;;  %v353_v38 = vpop.f32.mrf.mxu1  ;;  %v5498_v57 = vperm.slane %v169_v15, 0 }
 0x134   :  { %1041 = vmatpush.msra.mxu3 %v5378_v35  ;;  %849 = vmatmul.f32.vlgmr.msrb.gmra.mxu2 %v750_v18  ;;  %v5496_v18 = vsel %vm178_vm0, %v1855_v46, %v83_v45  ;;  %v5512_v46 = vld [vmem:[%s9419_s22 + $0x278] sm:$0xff]  ;;  %v433_v45 = vpop.f32.mrf.mxu0 }
 0x135   :  { %9543 = vst [vmem:[#allocation43_spill] sm:$0xff] %v5479_v58  ;;  %952 = vmatpush.msra.mxu2 %v5081_v54  ;;  %972 = vmatpush.msrb.mxu0 %v5485_v61  ;;  %v414_v35 = vadd.f32 %v413_v32, %v5479_v58  ;;  %v275_v15 = vadd.f32 %v274_v23, %v5479_v58  ;;  %v373_v32 = vpop.f32.mrf.mxu3  ;;  %v5530_v23 = vld [vmem:[%s9419_s22 + $0x268] sm:$0xff] }
 0x136   :  { %907 = vmatpush.msrb.mxu1 %v5491_v4  ;;  %1042 = vmatpush.msra.mxu3 %v5395_v63  ;;  %9544 = vst [vmem:[#allocation44_spill] sm:$0xff] %v5496_v18  ;;  %v354_v63 = vadd.f32 %v353_v38, %v5498_v57 }
 0x137   :  { %9545 = vst [vmem:[#allocation45_spill] sm:$0xff] %v5498_v57  ;;  %908 = vmatmul.f32.vlgmr.msrb.gmra.mxu1 %v5476_v7  ;;  %953 = vmatpush.msra.mxu2 %v5095_v31  ;;  %v434_v38 = vadd.f32 %v433_v45, %v414_v35  ;;  %v295_v58 = vadd.f32 %v5408_v12, %v275_v15  ;;  %v5557_v12 = vld [vmem:[%s9419_s22 + $0x1b8] sm:$0xff]  ;;  %v5563_v45 = vld [vmem:[%s9419_s22 + $0x248] sm:$0xff] }
 0x138   :  { %973 = vmatpush.msrb.mxu0 %v5506_v6  ;;  %1000 = vmatpush.msra.mxu1 %v5512_v46  ;;  %9548 = vst [vmem:[#allocation9_spill] sm:$0xff] %v5563_v45 }
 0x139   :  { %1989 = vrot.lane.b32.xlu1 %v5496_v18, %s4032_s27  ;;  %1043 = vmatpush.msra.mxu3 %v5420_v26  ;;  %v374_v26 = vadd.f32 %v373_v32, %v354_v63  ;;  %v5541_v18 = vld [vmem:[%s9419_s22 + $0x1c8] sm:$0xff]  ;;  %v215_v63 = vadd.f32 %v5288_v28, %v5498_v57  ;;  %v315_v32 = vadd.f32 %v5372_v27, %v295_v58 }
 0x13a   :  { %954 = vmatpush.msra.mxu2 %v5106_v34  ;;  %974 = vmatpush.msrb.mxu0 %v5524_v48 }
 0x13b   :  { %1001 = vmatpush.msra.mxu1 %v5530_v23  ;;  %1044 = vmatpush.msra.mxu3 %v5443_v39  ;;  %v5547_v39 = vld [vmem:[%s9419_s22 + $0x258] sm:$0xff]  ;;  %v453_v35 = vpop.f32.mrf.mxu1  ;;  %v235_v28 = vadd.f32 %v5415_v51, %v215_v63  ;;  %v394_v57 = vadd.f32 %v5438_v43, %v374_v26  ;;  %v5597_v26 = vld [vmem:[%s9419_s22 + $0x228] sm:$0xff] }
 0x13c   :  { %3648 = vmatmul.msk.f32.vlgmr.msra.gmra.mxu0 %vm194_vm1, %v5304_v37  ;;  %955 = vmatpush.msra.mxu2 %v5118_v36  ;;  %9547 = vst [vmem:[#allocation8_spill] sm:$0xff] %v5547_v39  ;;  %v454_v15 = vadd.f32 %v453_v35, %v434_v38  ;;  %v5580_v38 = vld [vmem:[%s9419_s22 + $0x238] sm:$0xff]  ;;  %v5607_v43 = vld [vmem:[%s9419_s22 + $0x188] sm:$0xff] }
 0x13d   :  { %975 = vmatpush.msrb.mxu0 %v5541_v18  ;;  %1002 = vmatpush.msra.mxu1 %v5547_v39  ;;  %9549 = vst [vmem:[#allocation10_spill] sm:$0xff] %v5580_v38  ;;  %v255_v58 = vadd.f32 %v5323_v62, %v235_v28  ;;  %v5591_v51 = vld [vmem:[%s9419_s22 + $0x198] sm:$0xff]  ;;  %v5637_v28 = vld [vmem:[%s9419_s22 + $0x168] sm:$0xff] }
 0x13e   :  { %1045 = vmatpush.msra.mxu3 %v5459_v56  ;;  %956 = vmatpush.msra.mxu2 %v5133_v44  ;;  %v5574_v56 = vld [vmem:[%s9419_s22 + $0x1a8] sm:$0xff]  ;;  %v2397_v27 = vmax.f32 %v315_v32, %v454_v15  ;;  %9550 = vst [vmem:[#allocation29_spill] sm:$0xff] %v5597_v26  ;;  %v5613_v35 = vld [vmem:[%s9419_s22 + $0x218] sm:$0xff] }
 0x13f   :  { %976 = vmatpush.msrb.mxu0 %v5557_v12  ;;  %1003 = vmatpush.msra.mxu1 %v5563_v45  ;;  %v5601_v62 = vmax.f32 %v255_v58, %v394_v57  ;;  %9552 = vst [vmem:[#allocation36_spill] sm:$0xff] %v5613_v35  ;;  %v5621_v57 = vld [vmem:[%s9419_s22 + $0x178] sm:$0xff]  ;;  %v5628_v15 = vld [vmem:[%s9419_s22 + $0x208] sm:$0xff]  ;;  %v5650_v58 = vpop.permute.xlu0 %1013 }
 0x140   :  { %1046 = vmatpush.msra.mxu3 %v5491_v4  ;;  %957 = vmatpush.msra.mxu2 %v5147_v49  ;;  %9553 = vst [vmem:[#allocation38_spill] sm:$0xff] %v5628_v15  ;;  %v5647_v32 = vld [vmem:[%s9419_s22 + $0x158] sm:$0xff] }
 0x141   :  { %977 = vmatpush.msrb.mxu0 %v5574_v56  ;;  %1004 = vmatpush.msra.mxu1 %v5580_v38  ;;  %9551 = vst [vmem:[#allocation34_spill] sm:$0xff] %v5601_v62  ;;  %v3676_v63 = vpack.i.bf16 %v2397_v27, %v5601_v62  ;;  %v5656_v27 = vld [vmem:[%s9419_s22 + $0x1d0] sm:$0xff] }
 0x142   :  { %1139 = vmatpush.msrb.mxu3 %v5512_v46  ;;  %2128 = vrot.lane.b32.xlu1 %v5399_v19, %s4032_s27  ;;  %v9554_v62 = vld [vmem:[#allocation14_spill] sm:$0xff]  ;;  %v5675_v19 = vld [vmem:[%s9419_s22 + $0x1c0] sm:$0xff] }
 0x143   :  { %958 = vmatpush.msra.mxu2 %v5161_v41  ;;  %978 = vmatpush.msrb.mxu0 %v5591_v51  ;;  %9555 = vst [vmem:[#allocation24_spill] sm:$0xff] %v5675_v19 }
 0x144   :  { %1005 = vmatpush.msra.mxu1 %v5597_v26  ;;  %1140 = vmatpush.msrb.mxu3 %v5530_v23 }
 0x145   :  { %959 = vmatpush.msra.mxu2 %v5170_v2  ;;  %979 = vmatpush.msrb.mxu0 %v5607_v43 }
 0x146   :  { %1006 = vmatpush.msra.mxu1 %v5613_v35  ;;  %1141 = vmatpush.msrb.mxu3 %v5547_v39  ;;  %v5733_v39 = vld [vmem:[%s9419_s22 + $0x180] sm:$0xff] }
 0x147   :  { %960 = vmatpush.msra.mxu2 %v5182_v5  ;;  %980 = vmatpush.msrb.mxu0 %v5621_v57 }
 0x148   :  { %1007 = vmatpush.msra.mxu1 %v5628_v15  ;;  %1142 = vmatpush.msrb.mxu3 %v5563_v45  ;;  %v5718_v45 = vld [vmem:[%s9419_s22 + $0x190] sm:$0xff] }
 0x149   :  { %961 = vmatpush.msra.mxu2 %v5201_v10  ;;  %981 = vmatpush.msrb.mxu0 %v5637_v28 }
 0x14a   :  { %1051 = vmatpush.msrb.mxu1 %v5051_v0  ;;  %1143 = vmatpush.msrb.mxu3 %v5580_v38  ;;  %v5682_v38 = vld [vmem:[%s9419_s22 + $0x138] sm:$0xff] }
 0x14b   :  { %3677 = vrot.lane.b32.xlu1 %v3676_v63, %s4035_s30  ;;  %962 = vmatpush.msra.mxu2 %v5215_v24  ;;  %v5663_v63 = vld [vmem:[%s9419_s22 + $0x148] sm:$0xff] }
 0x14c   :  { %1052 = vmatpush.msrb.mxu1 %v5060_v60  ;;  %982 = vmatpush.msrb.mxu0 %v5647_v32 }
 0x14d   :  { %1144 = vmatpush.msrb.mxu3 %v5597_v26  ;;  %963 = vmatpush.msra.mxu2 %v5232_v8  ;;  %v5670_v26 = vsel %vm330_vm4, %v9554_v62, %v5650_v58  ;;  %v5689_v62 = vld [vmem:[%s9419_s22 + $0x1b0] sm:$0xff] }
 0x14e   :  { %1053 = vmatpush.msrb.mxu1 %v5656_v27  ;;  %983 = vmatpush.msrb.mxu0 %v5663_v63  ;;  %9556 = vst [vmem:[#allocation14_spill] sm:$0xff] %v5689_v62 }
 0x14f   :  { %1145 = vmatpush.msrb.mxu3 %v5613_v35  ;;  %964 = vmatpush.msra.mxu2 %v5253_v14  ;;  %v5698_v35 = vld [vmem:[%s9419_s22 + $0x128] sm:$0xff] }
 0x150   :  { %1054 = vmatpush.msrb.mxu1 %v5675_v19  ;;  %984 = vmatpush.msrb.mxu0 %v5682_v38 }
 0x151   :  { %1146 = vmatpush.msrb.mxu3 %v5628_v15  ;;  %965 = vmatpush.msra.mxu2 %v5275_v22  ;;  %v5704_v15 = vld [vmem:[%s9419_s22 + $0x1a0] sm:$0xff] }
 0x152   :  { %1055 = vmatpush.msrb.mxu1 %v5689_v62  ;;  %1047 = vmatmul.f32.vlgmr.msra.gmra.mxu3 %v5670_v26  ;;  %9557 = vst [vmem:[#allocation49_spill] sm:$0xff] %v5704_v15 }
 0x153   :  { %1190 = vmatpush.msra.mxu3 %v5051_v0  ;;  %985 = vmatpush.msrb.mxu0 %v5698_v35  ;;  %v5712_v0 = vld [vmem:[%s9419_s22 + $0x118] sm:$0xff] }
 0x154   :  { %1056 = vmatpush.msrb.mxu1 %v5704_v15  ;;  %966 = vmatpush.msra.mxu2 %v5294_v29 }
 0x155   :  { %1191 = vmatpush.msra.mxu3 %v5060_v60  ;;  %986 = vmatpush.msrb.mxu0 %v5712_v0  ;;  %v5726_v60 = vld [vmem:[%s9419_s22 + $0x108] sm:$0xff] }
 0x156   :  { %1057 = vmatpush.msrb.mxu1 %v5718_v45  ;;  %967 = vmatpush.msra.mxu2 %v5310_v17 }
 0x157   :  { %1192 = vmatpush.msra.mxu3 %v5656_v27  ;;  %987 = vmatpush.msrb.mxu0 %v5726_v60 }
 0x158   :  { %968 = vmatmul.f32.vlgmr.msra.gmra.mxu2 %v5476_v7  ;;  %1058 = vmatpush.msrb.mxu1 %v5733_v39  ;;  %v5744_v7 = vld [vmem:[%s9419_s22 + $0x170] sm:$0xff] }
 0x159   :  { %1079 = vmatpush.msrb.mxu2 %v5328_v47  ;;  %1091 = vmatpush.msra.mxu0 %v5081_v54  ;;  %9558 = vst [vmem:[#allocation50_spill] sm:$0xff] %v5744_v7 }
 0x15a   :  { %1193 = vmatpush.msra.mxu3 %v5675_v19  ;;  %1301 = vrot.lane.b32.xlu2 %v5175_v21, %s4031_s25  ;;  %v5755_v19 = vld [vmem:[%s9419_s22 + $0x160] sm:$0xff] }
 0x15b   :  { %1059 = vmatpush.msrb.mxu1 %v5744_v7  ;;  %1080 = vmatpush.msrb.mxu2 %v5349_v42  ;;  %9559 = vst [vmem:[#allocation51_spill] sm:$0xff] %v5755_v19 }
 0x15c   :  { %1092 = vmatpush.msra.mxu0 %v5095_v31  ;;  %1194 = vmatpush.msra.mxu3 %v5689_v62  ;;  %v5764_v62 = vld [vmem:[%s9419_s22 + $0x150] sm:$0xff] }
 0x15d   :  { %1430 = vrot.lane.b32.xlu0 %v5027_v40, %s4033_s0  ;;  %1060 = vmatpush.msrb.mxu1 %v5755_v19  ;;  %9560 = vst [vmem:[#allocation52_spill] sm:$0xff] %v5764_v62 }
 0x15e   :  { %1081 = vmatpush.msrb.mxu2 %v5365_v16  ;;  %1093 = vmatpush.msra.mxu0 %v5106_v34 }
 0x15f   :  { %1195 = vmatpush.msra.mxu3 %v5704_v15  ;;  %1061 = vmatpush.msrb.mxu1 %v5764_v62  ;;  %v5777_v15 = vld [vmem:[%s9419_s22 + $0x140] sm:$0xff] }
 0x160   :  { %1082 = vmatpush.msrb.mxu2 %v5384_v55  ;;  %1094 = vmatpush.msra.mxu0 %v5118_v36  ;;  %9561 = vst [vmem:[#allocation53_spill] sm:$0xff] %v5777_v15 }
 0x161   :  { %1196 = vmatpush.msra.mxu3 %v5718_v45  ;;  %988 = vmatmul.f32.vlgmr.msrb.gmra.mxu0 %v5433_v30  ;;  %v5796_v30 = vld [vmem:[%s9419_s22 + $0x120] sm:$0xff] }
 0x162   :  { %3649 = vmatmul.msk.f32.vlgmr.msra.gmra.mxu1 %vm194_vm1, %v5304_v37  ;;  %1083 = vmatpush.msrb.mxu2 %v5405_v59  ;;  %v5787_v37 = vld [vmem:[%s9419_s22 + $0x130] sm:$0xff]  ;;  %9563 = vst [vmem:[#allocation55_spill] sm:$0xff] %v5796_v30 }
 0x163   :  { %1062 = vmatpush.msrb.mxu1 %v5777_v15  ;;  %1095 = vmatpush.msra.mxu0 %v5133_v44  ;;  %9562 = vst [vmem:[#allocation54_spill] sm:$0xff] %v5787_v37 }
 0x164   :  { %1197 = vmatpush.msra.mxu3 %v5733_v39  ;;  %1294 = vrot.lane.b32.xlu2 %v5027_v40, %s4032_s27  ;;  %v5805_v40 = vld [vmem:[%s9419_s22 + $0x110] sm:$0xff] }
 0x165   :  { %1063 = vmatpush.msrb.mxu1 %v5787_v37  ;;  %1084 = vmatpush.msrb.mxu2 %v5426_v11  ;;  %9564 = vst [vmem:[#allocation56_spill] sm:$0xff] %v5805_v40 }
 0x166   :  { %1096 = vmatpush.msra.mxu0 %v5147_v49  ;;  %1198 = vmatpush.msra.mxu3 %v5744_v7  ;;  %v5815_v7 = vld [vmem:[%s9419_s22 + $0x100] sm:$0xff] }
 0x167   :  { %1064 = vmatpush.msrb.mxu1 %v5796_v30  ;;  %1085 = vmatpush.msrb.mxu2 %v5449_v53  ;;  %9565 = vst [vmem:[#allocation57_spill] sm:$0xff] %v5815_v7 }
 0x168   :  { %1097 = vmatpush.msra.mxu0 %v5161_v41  ;;  %1199 = vmatpush.msra.mxu3 %v5755_v19 }
 0x169   :  { %1065 = vmatpush.msrb.mxu1 %v5805_v40  ;;  %1086 = vmatpush.msrb.mxu2 %v5465_v50 }
 0x16a   :  { %1098 = vmatpush.msra.mxu0 %v5170_v2  ;;  %1200 = vmatpush.msra.mxu3 %v5764_v62  ;;  %v9570_v62 = vld [vmem:[#allocation47_spill] sm:$0xff] }
 0x16b   :  { %1111 = vmatpush.msra.mxu2 %v5485_v61  ;;  %1066 = vmatpush.msrb.mxu1 %v5815_v7 }
 0x16c   :  { %1099 = vmatpush.msra.mxu0 %v5182_v5  ;;  %1201 = vmatpush.msra.mxu3 %v5777_v15  ;;  %v5870_v15 = vpop.f32.mrf.mxu3 }
 0x16d   :  { %1579 = vrot.lane.b32.xlu2 %v5314_v52, %s4031_s25  ;;  %1112 = vmatpush.msra.mxu2 %v5506_v6  ;;  %v1024_v52 = vpop.permute.xlu2 %1023 }
 0x16e   :  { %1170 = vmatpush.msra.mxu1 %v5195_v13  ;;  %1100 = vmatpush.msra.mxu0 %v5201_v10 }
 0x16f   :  { %1202 = vmatpush.msra.mxu3 %v5787_v37  ;;  %1113 = vmatpush.msra.mxu2 %v5524_v48  ;;  %v9569_v37 = vld [vmem:[#allocation25_spill] sm:$0xff] }
 0x170   :  { %1171 = vmatpush.msra.mxu1 %v5209_v33  ;;  %1101 = vmatpush.msra.mxu0 %v5215_v24 }
 0x171   :  { %1203 = vmatpush.msra.mxu3 %v5796_v30  ;;  %1114 = vmatpush.msra.mxu2 %v5541_v18  ;;  %v5858_v30 = vpop.f32.mrf.mxu2 }
 0x172   :  { %1172 = vmatpush.msra.mxu1 %v5226_v1  ;;  %1102 = vmatpush.msra.mxu0 %v5232_v8 }
 0x173   :  { %1204 = vmatpush.msra.mxu3 %v5805_v40  ;;  %1115 = vmatpush.msra.mxu2 %v5557_v12  ;;  %v5852_v40 = vpop.permute.xlu1 %1162 }
 0x174   :  { %1173 = vmatpush.msra.mxu1 %v5243_v9  ;;  %1103 = vmatpush.msra.mxu0 %v5253_v14 }
 0x175   :  { %1205 = vmatpush.msra.mxu3 %v5815_v7  ;;  %1572 = vrot.lane.b32.xlu2 %v5126_v3, %s4032_s27  ;;  %v9566_v7 = vld [vmem:[#allocation7_spill] sm:$0xff] }
 0x176   :  { %1116 = vmatpush.msra.mxu2 %v5574_v56  ;;  %3651 = vmatmul.msk.f32.vlgmr.msrb.gmra.mxu3 %vm194_vm1, %v1024_v52 }
 0x177   :  { %1174 = vmatpush.msra.mxu1 %v5268_v20  ;;  %1309 = vmatpush.msrb.mxu3 %v5195_v13  ;;  %v9567_v13 = vld [vmem:[#allocation20_spill] sm:$0xff] }
 0x178   :  { %1104 = vmatpush.msra.mxu0 %v5275_v22  ;;  %1117 = vmatpush.msra.mxu2 %v5591_v51 }
 0x179   :  { %1175 = vmatpush.msra.mxu1 %v5282_v25  ;;  %1310 = vmatpush.msrb.mxu3 %v5209_v33  ;;  %v9568_v33 = vld [vmem:[#allocation44_spill] sm:$0xff] }
 0x17a   :  { %1105 = vmatpush.msra.mxu0 %v5294_v29  ;;  %1118 = vmatpush.msra.mxu2 %v5607_v43 }
 0x17b   :  { %1176 = vmatpush.msra.mxu1 %v9566_v7  ;;  %1311 = vmatpush.msrb.mxu3 %v5226_v1  ;;  %v1017_v1 = vpop.permute.xlu2 %1016  ;;  %v1156_v3 = vpop.permute.xlu1 %1155 }
 0x17c   :  { %1106 = vmatpush.msra.mxu0 %v5310_v17  ;;  %1119 = vmatpush.msra.mxu2 %v5621_v57 }
 0x17d   :  { %1177 = vmatpush.msra.mxu1 %v9567_v13  ;;  %1312 = vmatpush.msrb.mxu3 %v5243_v9  ;;  %v5872_v9 = vpop.f32.mrf.mxu0 }
 0x17e   :  { %1218 = vmatpush.msrb.mxu0 %v5328_v47  ;;  %1569 = vrot.lane.b32.xlu0 %v5175_v21, %s4033_s0  ;;  %v1027_v21 = vsel %vm190_vm2, %v5650_v58, %v1017_v1  ;;  %v512_v58 = vpop.f32.mrf.mxu1 }
 0x17f   :  { %1857 = vrot.lane.b32.xlu2 %v9568_v33, %s4031_s25  ;;  %1120 = vmatpush.msra.mxu2 %v5637_v28  ;;  %v9571_v33 = vld [vmem:[#allocation33_spill] sm:$0xff]  ;;  %v1028_v19 = vsel %vm192_vm3, %v1027_v21, %v1024_v52  ;;  %v9574_v21 = vld [vmem:[#allocation39_spill] sm:$0xff] }
 0x180   :  { %1178 = vmatpush.msra.mxu1 %v9569_v37  ;;  %1219 = vmatpush.msrb.mxu0 %v5349_v42 }
 0x181   :  { %1313 = vmatpush.msrb.mxu3 %v5268_v20  ;;  %1121 = vmatpush.msra.mxu2 %v5647_v32  ;;  %v1153_v20 = vpop.permute.xlu0 %1152 }
 0x182   :  { %1179 = vmatpush.msra.mxu1 %v9570_v62  ;;  %1220 = vmatpush.msrb.mxu0 %v5365_v16  ;;  %v9572_v16 = vld [vmem:[#allocation35_spill] sm:$0xff]  ;;  %v1166_v1 = vsel %vm190_vm2, %v1153_v20, %v1156_v3  ;;  %v88_v3 = vld [vmem:[%s9417_s26 + $0x1f] sm:$0x1] }
 0x183   :  { %1314 = vmatpush.msrb.mxu3 %v5282_v25  ;;  %1122 = vmatpush.msra.mxu2 %v5663_v63  ;;  %v572_v25 = vpop.f32.mrf.mxu2 }
 0x184   :  { %1180 = vmatpush.msra.mxu1 %v9571_v33  ;;  %1221 = vmatpush.msrb.mxu0 %v5384_v55  ;;  %v9577_v55 = vld [vmem:[#allocation6_spill] sm:$0xff] }
 0x185   :  { %1315 = vmatpush.msrb.mxu3 %v9566_v7  ;;  %3650 = vmatmul.msk.f32.vlgmr.msrb.gmra.mxu2 %vm194_vm1, %v1024_v52  ;;  %v9573_v7 = vld [vmem:[#allocation21_spill] sm:$0xff]  ;;  %v5898_v52 = vsel %vm192_vm3, %v1166_v1, %v5852_v40  ;;  %v2133_v1 = vrot.slane %v88_v3, 7  ;;  %v5916_v42 = vsel %vm330_vm4, %v9577_v55, %v1153_v20  ;;  %v9579_v20 = vld [vmem:[#allocation43_spill] sm:$0xff] }
 0x186   :  { %1123 = vmatpush.msra.mxu2 %v5682_v38  ;;  %1181 = vmatpush.msra.mxu1 %v9572_v16 }
 0x187   :  { %1222 = vmatpush.msrb.mxu0 %v5405_v59  ;;  %1316 = vmatpush.msrb.mxu3 %v9567_v13  ;;  %v9575_v13 = vld [vmem:[#allocation41_spill] sm:$0xff]  ;;  %v671_v59 = vpop.f32.mrf.mxu0 }
 0x188   :  { %1067 = vmatmul.f32.vlgmr.msrb.gmra.mxu1 %v1028_v19  ;;  %1850 = vrot.lane.b32.xlu2 %v9573_v7, %s4032_s27  ;;  %v592_v7 = vpop.f32.mrf.mxu3 }
 0x189   :  { %1124 = vmatpush.msra.mxu2 %v5698_v35  ;;  %1182 = vmatpush.msra.mxu1 %v9574_v21 }
 0x18a   :  { %1223 = vmatpush.msrb.mxu0 %v5426_v11  ;;  %1317 = vmatpush.msrb.mxu3 %v9569_v37  ;;  %v9576_v37 = vld [vmem:[#allocation42_spill] sm:$0xff] }
 0x18b   :  { %1125 = vmatpush.msra.mxu2 %v5712_v0  ;;  %1183 = vmatpush.msra.mxu1 %v9575_v13  ;;  %v87_v11 = vld [vmem:[%s9417_s26 + $0xf] sm:$0x1] }
 0x18c   :  { %1224 = vmatpush.msrb.mxu0 %v5449_v53  ;;  %1318 = vmatpush.msrb.mxu3 %v9570_v62  ;;  %v5924_v3 = vsel %vm178_vm0, %v2133_v1, %v87_v11  ;;  %v631_v62 = vpop.f32.mrf.mxu1 }
 0x18d   :  { %1107 = vmatmul.f32.vlgmr.msra.gmra.mxu0 %v5670_v26  ;;  %1206 = vmatmul.f32.vlgmr.msra.gmra.mxu3 %v5898_v52  ;;  %v691_v26 = vpop.f32.mrf.mxu2  ;;  %9578 = vst [vmem:[#allocation41_spill] sm:$0xff] %v5924_v3 }
 0x18e   :  { %1126 = vmatpush.msra.mxu2 %v5726_v60  ;;  %1184 = vmatpush.msra.mxu1 %v9576_v37  ;;  %v692_v55 = vadd.f32 %v691_v26, %v9579_v20 }
 0x18f   :  { %1225 = vmatpush.msrb.mxu0 %v5465_v50  ;;  %1319 = vmatpush.msrb.mxu3 %v9571_v33  ;;  %v9580_v33 = vld [vmem:[#allocation45_spill] sm:$0xff] }
 0x190   :  { %1127 = vmatmul.f32.vlgmr.msra.gmra.mxu2 %v1028_v19  ;;  %1185 = vmatpush.msra.mxu1 %v5491_v4  ;;  %v711_v19 = vpop.f32.mrf.mxu0  ;;  %v632_v11 = vadd.f32 %v631_v62, %v9580_v33  ;;  %v651_v1 = vpop.f32.mrf.mxu3  ;;  %v493_v26 = vadd.f32 %v5870_v15, %v9580_v33  ;;  %v9582_v33 = vld [vmem:[#allocation9_spill] sm:$0xff] }
 0x191   :  { %1250 = vmatpush.msra.mxu0 %v5485_v61  ;;  %1230 = vmatpush.msrb.mxu2 %v5081_v54  ;;  %v712_v62 = vadd.f32 %v711_v19, %v692_v55  ;;  %v9583_v19 = vld [vmem:[#allocation10_spill] sm:$0xff] }
 0x192   :  { %1320 = vmatpush.msrb.mxu3 %v9572_v16  ;;  %1186 = vmatmul.f32.vlgmr.msra.gmra.mxu1 %v5916_v42  ;;  %v553_v16 = vadd.f32 %v5872_v9, %v9579_v20  ;;  %v513_v15 = vadd.f32 %v512_v58, %v493_v26  ;;  %v9585_v26 = vld [vmem:[#allocation29_spill] sm:$0xff] }
 0x193   :  { %1231 = vmatpush.msrb.mxu2 %v5095_v31  ;;  %1251 = vmatpush.msra.mxu0 %v5506_v6 }
 0x194   :  { %1278 = vmatpush.msrb.mxu1 %v5512_v46  ;;  %2135 = vrot.lane.b32.xlu2 %v5924_v3, %s4031_s25  ;;  %v652_v3 = vadd.f32 %v651_v1, %v632_v11  ;;  %v731_v9 = vpop.f32.mrf.mxu1  ;;  %v9584_v11 = vld [vmem:[#allocation5_spill] sm:$0xff]  ;;  %v533_v58 = vadd.f32 %v5858_v30, %v513_v15  ;;  %v9588_v30 = vld [vmem:[#allocation38_spill] sm:$0xff]  ;;  %v9591_v15 = vld [vmem:[#allocation48_spill] sm:$0xff] }
 0x195   :  { %1321 = vmatpush.msrb.mxu3 %v9574_v21  ;;  %1232 = vmatpush.msrb.mxu2 %v5106_v34  ;;  %v573_v21 = vadd.f32 %v572_v25, %v553_v16  ;;  %v732_v55 = vadd.f32 %v731_v9, %v712_v62  ;;  %v9590_v62 = vld [vmem:[#allocation12_spill] sm:$0xff]  ;;  %v5983_v9 = vpop.permute.xlu0 %1291 }
 0x196   :  { %1252 = vmatpush.msra.mxu0 %v5524_v48  ;;  %1279 = vmatpush.msrb.mxu1 %v5530_v23  ;;  %v9581_v48 = vld [vmem:[#allocation8_spill] sm:$0xff]  ;;  %v672_v16 = vadd.f32 %v671_v59, %v652_v3  ;;  %v9589_v3 = vld [vmem:[#allocation19_spill] sm:$0xff] }
 0x197   :  { %1322 = vmatpush.msrb.mxu3 %v9575_v13  ;;  %3652 = vmatmul.msk.f32.vlgmr.msrb.gmra.mxu0 %vm194_vm1, %v5852_v40  ;;  %v593_v25 = vadd.f32 %v592_v7, %v573_v21  ;;  %v9587_v7 = vld [vmem:[#allocation36_spill] sm:$0xff] }
 0x198   :  { %1233 = vmatpush.msrb.mxu2 %v5118_v36  ;;  %1253 = vmatpush.msra.mxu0 %v5541_v18  ;;  %v5966_v59 = vmax.f32 %v533_v58, %v672_v16  ;;  %v9593_v16 = vld [vmem:[#allocation14_spill] sm:$0xff] }
 0x199   :  { %1280 = vmatpush.msrb.mxu1 %v9581_v48  ;;  %1323 = vmatpush.msrb.mxu3 %v9576_v37  ;;  %v2410_v1 = vmax.f32 %v593_v25, %v732_v55  ;;  %v5994_v55 = vsel %vm330_vm4, %v9591_v15, %v5983_v9  ;;  %v9592_v25 = vld [vmem:[#allocation24_spill] sm:$0xff]  ;;  %v9595_v58 = vld [vmem:[#allocation50_spill] sm:$0xff]  ;;  %v9603_v15 = vld [vmem:[#allocation53_spill] sm:$0xff] }
 0x19a   :  { %1234 = vmatpush.msrb.mxu2 %v5133_v44  ;;  %1254 = vmatpush.msra.mxu0 %v5557_v12  ;;  %9586 = vst [vmem:[#allocation42_spill] sm:$0xff] %v5966_v59 }
 0x19b   :  { %1281 = vmatpush.msrb.mxu1 %v9582_v33  ;;  %1324 = vmatpush.msrb.mxu3 %v5491_v4  ;;  %v3681_v21 = vpack.i.bf16 %v2410_v1, %v5966_v59  ;;  %v9596_v1 = vld [vmem:[#allocation28_spill] sm:$0xff]  ;;  %v9605_v59 = vld [vmem:[#allocation54_spill] sm:$0xff] }
 0x19c   :  { %1235 = vmatpush.msrb.mxu2 %v5147_v49  ;;  %1255 = vmatpush.msra.mxu0 %v5574_v56 }
 0x19d   :  { %1282 = vmatpush.msrb.mxu1 %v9583_v19  ;;  %1417 = vmatpush.msra.mxu3 %v5512_v46 }
 0x19e   :  { %2264 = vrot.lane.b32.xlu2 %v9584_v11, %s4033_s0  ;;  %1236 = vmatpush.msrb.mxu2 %v5161_v41  ;;  %v9594_v11 = vld [vmem:[#allocation49_spill] sm:$0xff] }
 0x19f   :  { %1256 = vmatpush.msra.mxu0 %v5591_v51  ;;  %1283 = vmatpush.msrb.mxu1 %v9585_v26 }
 0x1a0   :  { %1418 = vmatpush.msra.mxu3 %v5530_v23  ;;  %1237 = vmatpush.msrb.mxu2 %v5170_v2 }
 0x1a1   :  { %1257 = vmatpush.msra.mxu0 %v5607_v43  ;;  %1284 = vmatpush.msrb.mxu1 %v9587_v7 }
 0x1a2   :  { %1419 = vmatpush.msra.mxu3 %v9581_v48  ;;  %1238 = vmatpush.msrb.mxu2 %v5182_v5 }
 0x1a3   :  { %1285 = vmatpush.msrb.mxu1 %v9588_v30  ;;  %1258 = vmatpush.msra.mxu0 %v5621_v57 }
 0x1a4   :  { %1420 = vmatpush.msra.mxu3 %v9582_v33  ;;  %1239 = vmatpush.msrb.mxu2 %v5201_v10 }
 0x1a5   :  { %1329 = vmatpush.msra.mxu1 %v9589_v3  ;;  %1259 = vmatpush.msra.mxu0 %v5637_v28 }
 0x1a6   :  { %1421 = vmatpush.msra.mxu3 %v9583_v19  ;;  %3682 = vrot.lane.b32.xlu2 %v3681_v21, %s4035_s30  ;;  %v9597_v21 = vld [vmem:[#allocation13_spill] sm:$0xff] }
 0x1a7   :  { %1330 = vmatpush.msra.mxu1 %v9590_v62  ;;  %1240 = vmatpush.msrb.mxu2 %v5215_v24 }
 0x1a8   :  { %1260 = vmatpush.msra.mxu0 %v5647_v32  ;;  %1422 = vmatpush.msra.mxu3 %v9585_v26 }
 0x1a9   :  { %1331 = vmatpush.msra.mxu1 %v5656_v27  ;;  %1241 = vmatpush.msrb.mxu2 %v5232_v8 }
 0x1aa   :  { %1261 = vmatpush.msra.mxu0 %v5663_v63  ;;  %1423 = vmatpush.msra.mxu3 %v9587_v7 }
 0x1ab   :  { %1332 = vmatpush.msra.mxu1 %v9592_v25  ;;  %1242 = vmatpush.msrb.mxu2 %v5253_v14 }
 0x1ac   :  { %1262 = vmatpush.msra.mxu0 %v5682_v38  ;;  %1424 = vmatpush.msra.mxu3 %v9588_v30 }
 0x1ad   :  { %1325 = vmatmul.f32.vlgmr.msrb.gmra.mxu3 %v5994_v55  ;;  %1333 = vmatpush.msra.mxu1 %v9593_v16 }
 0x1ae   :  { %1468 = vmatpush.msrb.mxu3 %v9589_v3  ;;  %1243 = vmatpush.msrb.mxu2 %v5275_v22  ;;  %v9599_v3 = vld [vmem:[#allocation31_spill] sm:$0xff] }
 0x1af   :  { %1263 = vmatpush.msra.mxu0 %v5698_v35  ;;  %1334 = vmatpush.msra.mxu1 %v9594_v11 }
 0x1b0   :  { %1469 = vmatpush.msrb.mxu3 %v9590_v62  ;;  %1244 = vmatpush.msrb.mxu2 %v5294_v29  ;;  %v9601_v62 = vld [vmem:[#allocation16_spill] sm:$0xff] }
 0x1b1   :  { %1264 = vmatpush.msra.mxu0 %v5712_v0  ;;  %1335 = vmatpush.msra.mxu1 %v5718_v45 }
 0x1b2   :  { %1470 = vmatpush.msrb.mxu3 %v5656_v27  ;;  %1245 = vmatpush.msrb.mxu2 %v5310_v17 }
 0x1b3   :  { %1265 = vmatpush.msra.mxu0 %v5726_v60  ;;  %1246 = vmatmul.f32.vlgmr.msrb.gmra.mxu2 %v5916_v42  ;;  %v9598_v42 = vld [vmem:[#allocation51_spill] sm:$0xff] }
 0x1b4   :  { %1336 = vmatpush.msra.mxu1 %v5733_v39  ;;  %1357 = vmatpush.msra.mxu2 %v5328_v47 }
 0x1b5   :  { %1369 = vmatpush.msrb.mxu0 %v5081_v54  ;;  %1471 = vmatpush.msrb.mxu3 %v9592_v25  ;;  %v9600_v54 = vld [vmem:[#allocation52_spill] sm:$0xff] }
 0x1b6   :  { %1337 = vmatpush.msra.mxu1 %v9595_v58  ;;  %1358 = vmatpush.msra.mxu2 %v9596_v1 }
 0x1b7   :  { %1370 = vmatpush.msrb.mxu0 %v5095_v31  ;;  %1472 = vmatpush.msrb.mxu3 %v9593_v16  ;;  %v9602_v31 = vld [vmem:[#allocation37_spill] sm:$0xff] }
 0x1b8   :  { %1708 = vrot.lane.b32.xlu0 %v9597_v21, %s4033_s0  ;;  %1338 = vmatpush.msra.mxu1 %v9598_v42  ;;  %v6082_v21 = vpop.permute.xlu1 %1440 }
 0x1b9   :  { %1359 = vmatpush.msra.mxu2 %v9599_v3  ;;  %1371 = vmatpush.msrb.mxu0 %v5106_v34  ;;  %v9604_v34 = vld [vmem:[#allocation40_spill] sm:$0xff] }
 0x1ba   :  { %1473 = vmatpush.msrb.mxu3 %v9594_v11  ;;  %1339 = vmatpush.msra.mxu1 %v9600_v54 }
 0x1bb   :  { %1360 = vmatpush.msra.mxu2 %v9601_v62  ;;  %1372 = vmatpush.msrb.mxu0 %v5118_v36  ;;  %v9606_v36 = vld [vmem:[#allocation55_spill] sm:$0xff] }
 0x1bc   :  { %1474 = vmatpush.msrb.mxu3 %v5718_v45  ;;  %1266 = vmatmul.f32.vlgmr.msra.gmra.mxu0 %v5898_v52  ;;  %v1302_v52 = vpop.permute.xlu2 %1301 }
 0x1bd   :  { %3653 = vmatmul.msk.f32.vlgmr.msrb.gmra.mxu1 %vm194_vm1, %v5852_v40  ;;  %1361 = vmatpush.msra.mxu2 %v9602_v31  ;;  %v9607_v40 = vld [vmem:[#allocation56_spill] sm:$0xff] }
 0x1be   :  { %1340 = vmatpush.msra.mxu1 %v9603_v15  ;;  %1373 = vmatpush.msrb.mxu0 %v5133_v44  ;;  %v9608_v44 = vld [vmem:[#allocation57_spill] sm:$0xff] }
 0x1bf   :  { %1475 = vmatpush.msrb.mxu3 %v5733_v39  ;;  %1362 = vmatpush.msra.mxu2 %v9604_v34 }
 0x1c0   :  { %1341 = vmatpush.msra.mxu1 %v9605_v59  ;;  %1374 = vmatpush.msrb.mxu0 %v5147_v49  ;;  %v9609_v49 = vld [vmem:[#allocation15_spill] sm:$0xff] }
 0x1c1   :  { %1476 = vmatpush.msrb.mxu3 %v9595_v58  ;;  %1363 = vmatpush.msra.mxu2 %v5449_v53 }
 0x1c2   :  { %1342 = vmatpush.msra.mxu1 %v9606_v36  ;;  %1375 = vmatpush.msrb.mxu0 %v5161_v41  ;;  %v9610_v41 = vld [vmem:[#allocation46_spill] sm:$0xff] }
 0x1c3   :  { %1477 = vmatpush.msrb.mxu3 %v9598_v42  ;;  %1364 = vmatpush.msra.mxu2 %v5465_v50 }
 0x1c4   :  { %1343 = vmatpush.msra.mxu1 %v9607_v40  ;;  %1376 = vmatpush.msrb.mxu0 %v5170_v2  ;;  %v9611_v2 = vld [vmem:[#allocation30_spill] sm:$0xff] }
 0x1c5   :  { %1478 = vmatpush.msrb.mxu3 %v9600_v54  ;;  %1389 = vmatpush.msrb.mxu2 %v5485_v61 }
 0x1c6   :  { %1344 = vmatpush.msra.mxu1 %v9608_v44  ;;  %1377 = vmatpush.msrb.mxu0 %v5182_v5  ;;  %v9612_v5 = vld [vmem:[#allocation18_spill] sm:$0xff] }
 0x1c7   :  { %1479 = vmatpush.msrb.mxu3 %v9603_v15  ;;  %1390 = vmatpush.msrb.mxu2 %v5506_v6 }
 0x1c8   :  { %1448 = vmatpush.msrb.mxu1 %v9609_v49  ;;  %1378 = vmatpush.msrb.mxu0 %v5201_v10  ;;  %v9613_v10 = vld [vmem:[#allocation22_spill] sm:$0xff] }
 0x1c9   :  { %1480 = vmatpush.msrb.mxu3 %v9605_v59  ;;  %1391 = vmatpush.msrb.mxu2 %v9610_v41 }
 0x1ca   :  { %1449 = vmatpush.msrb.mxu1 %v9611_v2  ;;  %1379 = vmatpush.msrb.mxu0 %v5215_v24  ;;  %v9614_v24 = vld [vmem:[#allocation26_spill] sm:$0xff] }
 0x1cb   :  { %1481 = vmatpush.msrb.mxu3 %v9606_v36  ;;  %1392 = vmatpush.msrb.mxu2 %v5541_v18 }
 0x1cc   :  { %1450 = vmatpush.msrb.mxu1 %v9612_v5  ;;  %1380 = vmatpush.msrb.mxu0 %v5232_v8  ;;  %v9615_v8 = vld [vmem:[#allocation32_spill] sm:$0xff] }
 0x1cd   :  { %1482 = vmatpush.msrb.mxu3 %v9607_v40  ;;  %1393 = vmatpush.msrb.mxu2 %v5557_v12 }
 0x1ce   :  { %1451 = vmatpush.msrb.mxu1 %v9613_v10  ;;  %1381 = vmatpush.msrb.mxu0 %v5253_v14  ;;  %v9616_v14 = vld [vmem:[#allocation7_spill] sm:$0xff] }
 0x1cf   :  { %1483 = vmatpush.msrb.mxu3 %v9608_v44  ;;  %1394 = vmatpush.msrb.mxu2 %v5574_v56  ;;  %v6101_v44 = vpop.f32.mrf.mxu0 }
 0x1d0   :  { %1452 = vmatpush.msrb.mxu1 %v9614_v24  ;;  %3655 = vmatmul.msk.f32.vlgmr.msra.gmra.mxu3 %vm194_vm1, %v1302_v52 }
 0x1d1   :  { %1587 = vmatpush.msra.mxu3 %v9609_v49  ;;  %1382 = vmatpush.msrb.mxu0 %v5275_v22  ;;  %v9617_v22 = vld [vmem:[#allocation20_spill] sm:$0xff]  ;;  %v6088_v49 = vpop.f32.mrf.mxu2 }
 0x1d2   :  { %1395 = vmatpush.msrb.mxu2 %v5591_v51  ;;  %1453 = vmatpush.msrb.mxu1 %v9615_v8 }
 0x1d3   :  { %1588 = vmatpush.msra.mxu3 %v9611_v2  ;;  %1383 = vmatpush.msrb.mxu0 %v5294_v29  ;;  %v9618_v29 = vld [vmem:[#allocation17_spill] sm:$0xff] }
 0x1d4   :  { %1396 = vmatpush.msrb.mxu2 %v5607_v43  ;;  %1454 = vmatpush.msrb.mxu1 %v9616_v14  ;;  %v9619_v2 = vld [vmem:[#allocation25_spill] sm:$0xff] }
 0x1d5   :  { %1589 = vmatpush.msra.mxu3 %v9612_v5  ;;  %1384 = vmatpush.msrb.mxu0 %v5310_v17  ;;  %v1295_v17 = vpop.permute.xlu2 %1294  ;;  %v6099_v5 = vpop.f32.mrf.mxu3 }
 0x1d6   :  { %1397 = vmatpush.msrb.mxu2 %v5621_v57  ;;  %1455 = vmatpush.msrb.mxu1 %v9617_v22 }
 0x1d7   :  { %1496 = vmatpush.msra.mxu0 %v5328_v47  ;;  %1590 = vmatpush.msra.mxu3 %v9613_v10  ;;  %v1305_v47 = vsel %vm190_vm2, %v5983_v9, %v1295_v17  ;;  %v9620_v10 = vld [vmem:[#allocation47_spill] sm:$0xff]  ;;  %v1434_v9 = vpop.permute.xlu1 %1433 }
 0x1d8   :  { %1847 = vrot.lane.b32.xlu0 %v9618_v29, %s4033_s0  ;;  %1398 = vmatpush.msrb.mxu2 %v5637_v28  ;;  %v1306_v29 = vsel %vm192_vm3, %v1305_v47, %v1302_v52  ;;  %v9622_v17 = vld [vmem:[#allocation35_spill] sm:$0xff]  ;;  %v949_v47 = vpop.f32.mrf.mxu0 }
 0x1d9   :  { %1456 = vmatpush.msrb.mxu1 %v9619_v2  ;;  %1497 = vmatpush.msra.mxu0 %v9596_v1  ;;  %v9621_v1 = vld [vmem:[#allocation33_spill] sm:$0xff] }
 0x1da   :  { %1591 = vmatpush.msra.mxu3 %v9614_v24  ;;  %1399 = vmatpush.msrb.mxu2 %v5647_v32  ;;  %v1431_v24 = vpop.permute.xlu0 %1430 }
 0x1db   :  { %1457 = vmatpush.msrb.mxu1 %v9620_v10  ;;  %1498 = vmatpush.msra.mxu0 %v9599_v3  ;;  %v1444_v3 = vsel %vm190_vm2, %v1431_v24, %v1434_v9 }
 0x1dc   :  { %1592 = vmatpush.msra.mxu3 %v9615_v8  ;;  %1400 = vmatpush.msrb.mxu2 %v5663_v63  ;;  %v790_v8 = vpop.f32.mrf.mxu1 }
 0x1dd   :  { %1458 = vmatpush.msrb.mxu1 %v9621_v1  ;;  %1499 = vmatpush.msra.mxu0 %v9601_v62  ;;  %v850_v62 = vpop.f32.mrf.mxu2 }
 0x1de   :  { %1593 = vmatpush.msra.mxu3 %v9616_v14  ;;  %3654 = vmatmul.msk.f32.vlgmr.msra.gmra.mxu2 %vm194_vm1, %v1302_v52  ;;  %v9623_v14 = vld [vmem:[#allocation21_spill] sm:$0xff]  ;;  %v9624_v52 = vld [vmem:[#allocation39_spill] sm:$0xff] }
 0x1df   :  { %1401 = vmatpush.msrb.mxu2 %v5682_v38  ;;  %1459 = vmatpush.msrb.mxu1 %v9622_v17 }
 0x1e0   :  { %1500 = vmatpush.msra.mxu0 %v9602_v31  ;;  %1594 = vmatpush.msra.mxu3 %v9617_v22  ;;  %v6127_v31 = vsel %vm192_vm3, %v1444_v3, %v6082_v21  ;;  %v870_v22 = vpop.f32.mrf.mxu3 }
 0x1e1   :  { %1345 = vmatmul.f32.vlgmr.msra.gmra.mxu1 %v1306_v29  ;;  %1986 = vrot.lane.b32.xlu0 %v9623_v14, %s4033_s0  ;;  %v6580_v14 = vld [vmem:[%s9419_s22 + $0x138] sm:$0xff] }
 0x1e2   :  { %1402 = vmatpush.msrb.mxu2 %v5698_v35  ;;  %1460 = vmatpush.msrb.mxu1 %v9624_v52 }
 0x1e3   :  { %1501 = vmatpush.msra.mxu0 %v9604_v34  ;;  %1595 = vmatpush.msra.mxu3 %v9619_v2  ;;  %v9625_v34 = vld [vmem:[#allocation23_spill] sm:$0xff] }
 0x1e4   :  { %1403 = vmatpush.msrb.mxu2 %v5712_v0  ;;  %1461 = vmatpush.msrb.mxu1 %v9575_v13  ;;  %v6139_v2 = vsel %vm330_vm4, %v9625_v34, %v1431_v24  ;;  %v9627_v24 = vld [vmem:[#allocation45_spill] sm:$0xff]  ;;  %v831_v34 = vadd.f32 %v6101_v44, %v9579_v20 }
 0x1e5   :  { %1502 = vmatpush.msra.mxu0 %v5449_v53  ;;  %1596 = vmatpush.msra.mxu3 %v9620_v10  ;;  %v969_v53 = vpop.f32.mrf.mxu2  ;;  %v909_v10 = vpop.f32.mrf.mxu1  ;;  %v771_v3 = vadd.f32 %v6099_v5, %v9627_v24 }
 0x1e6   :  { %1385 = vmatmul.f32.vlgmr.msrb.gmra.mxu0 %v5994_v55  ;;  %1484 = vmatmul.f32.vlgmr.msrb.gmra.mxu3 %v6127_v31  ;;  %v6147_v55 = vld [vmem:[%s9419_s22 + $0xf8] sm:$0xff]  ;;  %v910_v9 = vadd.f32 %v909_v10, %v9627_v24  ;;  %v851_v5 = vadd.f32 %v850_v62, %v831_v34 }
 0x1e7   :  { %1404 = vmatpush.msrb.mxu2 %v5726_v60  ;;  %1462 = vmatpush.msrb.mxu1 %v9576_v37  ;;  %v791_v10 = vadd.f32 %v790_v8, %v771_v3  ;;  %v6498_v3 = vld [vmem:[%s9419_s22 + $0x188] sm:$0xff] }
 0x1e8   :  { %1503 = vmatpush.msra.mxu0 %v5465_v50  ;;  %1597 = vmatpush.msra.mxu3 %v9621_v1  ;;  %v6156_v50 = vld [vmem:[%s9419_s22 + $0xe8] sm:$0xff]  ;;  %v989_v1 = vpop.f32.mrf.mxu0  ;;  %v871_v62 = vadd.f32 %v870_v22, %v851_v5  ;;  %v6520_v5 = vld [vmem:[%s9419_s22 + $0x80] sm:$0xff] }
 0x1e9   :  { %1405 = vmatmul.f32.vlgmr.msrb.gmra.mxu2 %v1306_v29  ;;  %1463 = vmatpush.msrb.mxu1 %v5491_v4  ;;  %v9626_v29 = vld [vmem:[#allocation44_spill] sm:$0xff]  ;;  %v811_v8 = vadd.f32 %v6088_v49, %v791_v10  ;;  %9652 = vst [vmem:[#allocation53_spill] sm:$0xff] %v6520_v5 }
 0x1ea   :  { %1528 = vmatpush.msrb.mxu0 %v5485_v61  ;;  %1508 = vmatpush.msra.mxu2 %v6147_v55  ;;  %v970_v61 = vadd.f32 %v969_v53, %v9579_v20  ;;  %v6184_v53 = vld [vmem:[%s9419_s22 + $0xc8] sm:$0xff] }
 0x1eb   :  { %1598 = vmatpush.msra.mxu3 %v9622_v17  ;;  %1464 = vmatmul.f32.vlgmr.msrb.gmra.mxu1 %v6139_v2  ;;  %v6169_v17 = vld [vmem:[%s9419_s22 + $0xd8] sm:$0xff] }
 0x1ec   :  { %1509 = vmatpush.msra.mxu2 %v6156_v50  ;;  %1529 = vmatpush.msrb.mxu0 %v5506_v6  ;;  %v929_v6 = vpop.f32.mrf.mxu3 }
 0x1ed   :  { %1556 = vmatpush.msra.mxu1 %v5512_v46  ;;  %2125 = vrot.lane.b32.xlu0 %v9626_v29, %s4033_s0  ;;  %v1009_v44 = vpop.f32.mrf.mxu1 }
 0x1ee   :  { %1599 = vmatpush.msra.mxu3 %v9624_v52  ;;  %1510 = vmatpush.msra.mxu2 %v6169_v17  ;;  %v990_v52 = vadd.f32 %v989_v1, %v970_v61 }
 0x1ef   :  { %1530 = vmatpush.msrb.mxu0 %v9610_v41  ;;  %1557 = vmatpush.msra.mxu1 %v5530_v23  ;;  %v930_v41 = vadd.f32 %v929_v6, %v910_v9  ;;  %v6488_v9 = vld [vmem:[%s9419_s22 + $0xa0] sm:$0xff]  ;;  %v6492_v6 = vpop.permute.xlu1 %1718 }
 0x1f0   :  { %1600 = vmatpush.msra.mxu3 %v9575_v13  ;;  %3656 = vmatmul.msk.f32.vlgmr.msra.gmra.mxu0 %vm194_vm1, %v6082_v21  ;;  %v6193_v13 = vld [vmem:[%s9419_s22 + $0xb8] sm:$0xff]  ;;  %v6268_v49 = vpop.permute.xlu0 %1569  ;;  %9650 = vst [vmem:[#allocation16_spill] sm:$0xff] %v6488_v9 }
 0x1f1   :  { %1511 = vmatpush.msra.mxu2 %v6184_v53  ;;  %1531 = vmatpush.msrb.mxu0 %v5541_v18  ;;  %v1010_v18 = vadd.f32 %v1009_v44, %v990_v52  ;;  %v950_v61 = vadd.f32 %v949_v47, %v930_v41  ;;  %v6474_v47 = vld [vmem:[%s9419_s22 + $0xb0] sm:$0xff]  ;;  %v6514_v41 = vld [vmem:[%s9419_s22 + $0x178] sm:$0xff]  ;;  %v6528_v44 = vld [vmem:[%s9419_s22 + $0x168] sm:$0xff] }
 0x1f2   :  { %1558 = vmatpush.msra.mxu1 %v9581_v48  ;;  %1601 = vmatpush.msra.mxu3 %v9576_v37  ;;  %v6202_v37 = vld [vmem:[%s9419_s22 + $0xa8] sm:$0xff]  ;;  %9649 = vst [vmem:[#allocation52_spill] sm:$0xff] %v6474_v47  ;;  %v6506_v52 = vld [vmem:[%s9419_s22 + $0x90] sm:$0xff] }
 0x1f3   :  { %1512 = vmatpush.msra.mxu2 %v6193_v13  ;;  %1532 = vmatpush.msrb.mxu0 %v5557_v12  ;;  %v9628_v12 = vld [vmem:[#allocation41_spill] sm:$0xff]  ;;  %v2422_v1 = vmax.f32 %v871_v62, %v1010_v18  ;;  %9651 = vst [vmem:[#allocation37_spill] sm:$0xff] %v6506_v52  ;;  %v6538_v62 = vld [vmem:[%s9419_s22 + $0x70] sm:$0xff] }
 0x1f4   :  { %1559 = vmatpush.msra.mxu1 %v9582_v33  ;;  %1602 = vmatpush.msra.mxu3 %v5491_v4  ;;  %v6213_v4 = vld [vmem:[%s9419_s22 + $0x98] sm:$0xff]  ;;  %v6531_v10 = vpop.f32.mrf.mxu3  ;;  %9653 = vst [vmem:[#allocation40_spill] sm:$0xff] %v6538_v62 }
 0x1f5   :  { %1513 = vmatpush.msra.mxu2 %v6202_v37  ;;  %1533 = vmatpush.msrb.mxu0 %v5574_v56  ;;  %v6223_v56 = vld [vmem:[%s9419_s22 + $0x88] sm:$0xff] }
 0x1f6   :  { %1560 = vmatpush.msra.mxu1 %v9583_v19  ;;  %1695 = vmatpush.msrb.mxu3 %v5512_v46  ;;  %v6226_v46 = vmax.f32 %v811_v8, %v950_v61 }
 0x1f7   :  { %2267 = vrot.lane.b32.xlu0 %v9628_v12, %s4032_s27  ;;  %1514 = vmatpush.msra.mxu2 %v6213_v4  ;;  %v6546_v12 = vld [vmem:[%s9419_s22 + $0x158] sm:$0xff] }
 0x1f8   :  { %1534 = vmatpush.msrb.mxu0 %v5591_v51  ;;  %1561 = vmatpush.msra.mxu1 %v9585_v26  ;;  %9629 = vst [vmem:[#allocation6_spill] sm:$0xff] %v6226_v46  ;;  %v6234_v51 = vld [vmem:[%s9419_s22 + $0x78] sm:$0xff] }
 0x1f9   :  { %1696 = vmatpush.msrb.mxu3 %v5530_v23  ;;  %1515 = vmatpush.msra.mxu2 %v6223_v56  ;;  %v3686_v23 = vpack.i.bf16 %v2422_v1, %v6226_v46  ;;  %v6554_v1 = vld [vmem:[%s9419_s22 + $0x60] sm:$0xff] }
 0x1fa   :  { %1535 = vmatpush.msrb.mxu0 %v5607_v43  ;;  %1562 = vmatpush.msra.mxu1 %v9587_v7  ;;  %v6244_v43 = vld [vmem:[%s9419_s22 + $0x1f0] sm:$0xff]  ;;  %9654 = vst [vmem:[#allocation54_spill] sm:$0xff] %v6554_v1 }
 0x1fb   :  { %1697 = vmatpush.msrb.mxu3 %v9581_v48  ;;  %1516 = vmatpush.msra.mxu2 %v6234_v51  ;;  %v6250_v48 = vld [vmem:[%s9419_s22 + $0x68] sm:$0xff] }
 0x1fc   :  { %1536 = vmatpush.msrb.mxu0 %v5621_v57  ;;  %1563 = vmatpush.msra.mxu1 %v9588_v30  ;;  %v6265_v57 = vld [vmem:[%s9419_s22 + $0x58] sm:$0xff] }
 0x1fd   :  { %1698 = vmatpush.msrb.mxu3 %v9582_v33  ;;  %1517 = vmatpush.msra.mxu2 %v6250_v48  ;;  %v6258_v33 = vld [vmem:[%s9419_s22 + $0x1e0] sm:$0xff]  ;;  %9631 = vst [vmem:[#allocation9_spill] sm:$0xff] %v6265_v57 }
 0x1fe   :  { %1607 = vmatpush.msrb.mxu1 %v6244_v43  ;;  %1537 = vmatpush.msrb.mxu0 %v5637_v28  ;;  %9630 = vst [vmem:[#allocation8_spill] sm:$0xff] %v6258_v33  ;;  %v6276_v28 = vld [vmem:[%s9419_s22 + $0x48] sm:$0xff] }
 0x1ff   :  { %1699 = vmatpush.msrb.mxu3 %v9583_v19  ;;  %3687 = vrot.lane.b32.xlu0 %v3686_v23, %s4035_s30  ;;  %9632 = vst [vmem:[#allocation10_spill] sm:$0xff] %v6276_v28  ;;  %v9633_v19 = vld [vmem:[#allocation11_spill] sm:$0xff]  ;;  %v6562_v23 = vld [vmem:[%s9419_s22 + $0x148] sm:$0xff] }
 0x200   :  { %1608 = vmatpush.msrb.mxu1 %v6258_v33  ;;  %1518 = vmatpush.msra.mxu2 %v6265_v57  ;;  %v6284_v22 = vsel %vm330_vm4, %v9633_v19, %v6268_v49 }
 0x201   :  { %1538 = vmatpush.msrb.mxu0 %v5647_v32  ;;  %1700 = vmatpush.msrb.mxu3 %v9585_v26  ;;  %v6290_v32 = vld [vmem:[%s9419_s22 + $0x38] sm:$0xff]  ;;  %v6355_v26 = vld [vmem:[%s9419_s22 + $0x240] sm:$0xff] }
 0x202   :  { %1609 = vmatpush.msrb.mxu1 %v5656_v27  ;;  %1519 = vmatpush.msra.mxu2 %v6276_v28  ;;  %9634 = vst [vmem:[#allocation5_spill] sm:$0xff] %v6290_v32 }
 0x203   :  { %1539 = vmatpush.msrb.mxu0 %v5663_v63  ;;  %1701 = vmatpush.msrb.mxu3 %v9587_v7  ;;  %v6301_v63 = vld [vmem:[%s9419_s22 + $0x28] sm:$0xff]  ;;  %v6367_v7 = vld [vmem:[%s9419_s22 + $0x230] sm:$0xff] }
 0x204   :  { %1610 = vmatpush.msrb.mxu1 %v9592_v25  ;;  %1520 = vmatpush.msra.mxu2 %v6290_v32  ;;  %9635 = vst [vmem:[#allocation29_spill] sm:$0xff] %v6301_v63 }
 0x205   :  { %1540 = vmatpush.msrb.mxu0 %v5682_v38  ;;  %1702 = vmatpush.msrb.mxu3 %v9588_v30  ;;  %v6310_v38 = vld [vmem:[%s9419_s22 + $0x18] sm:$0xff]  ;;  %v6385_v30 = vld [vmem:[%s9419_s22 + $0x210] sm:$0xff]  ;;  %v6575_v46 = vpop.f32.mrf.mxu1 }
 0x206   :  { %1603 = vmatmul.f32.vlgmr.msra.gmra.mxu3 %v6284_v22  ;;  %1611 = vmatpush.msrb.mxu1 %v9593_v16  ;;  %9636 = vst [vmem:[#allocation36_spill] sm:$0xff] %v6310_v38 }
 0x207   :  { %1746 = vmatpush.msra.mxu3 %v6244_v43  ;;  %1521 = vmatpush.msra.mxu2 %v6301_v63  ;;  %9641 = vst [vmem:[#allocation24_spill] sm:$0xff] %v6385_v30 }
 0x208   :  { %1541 = vmatpush.msrb.mxu0 %v5698_v35  ;;  %1612 = vmatpush.msrb.mxu1 %v9594_v11  ;;  %v6319_v35 = vld [vmem:[%s9419_s22 + $0x8] sm:$0xff]  ;;  %v6501_v34 = vpop.f32.mrf.mxu2 }
 0x209   :  { %1747 = vmatpush.msra.mxu3 %v6258_v33  ;;  %1522 = vmatpush.msra.mxu2 %v6310_v38  ;;  %9637 = vst [vmem:[#allocation38_spill] sm:$0xff] %v6319_v35 }
 0x20a   :  { %1542 = vmatpush.msrb.mxu0 %v5712_v0  ;;  %1613 = vmatpush.msrb.mxu1 %v5718_v45  ;;  %v6328_v0 = vld [vmem:[%s9419_s22 + $0x270] sm:$0xff]  ;;  %v6533_v18 = vpop.f32.mrf.mxu0 }
 0x20b   :  { %1748 = vmatpush.msra.mxu3 %v5656_v27  ;;  %1523 = vmatpush.msra.mxu2 %v6319_v35  ;;  %9638 = vst [vmem:[#allocation19_spill] sm:$0xff] %v6328_v0  ;;  %v6346_v27 = vld [vmem:[%s9419_s22 + $0x250] sm:$0xff] }
 0x20c   :  { %1543 = vmatpush.msrb.mxu0 %v5726_v60  ;;  %1524 = vmatmul.f32.vlgmr.msra.gmra.mxu2 %v6139_v2  ;;  %v6337_v60 = vld [vmem:[%s9419_s22 + $0x260] sm:$0xff]  ;;  %9640 = vst [vmem:[#allocation48_spill] sm:$0xff] %v6346_v27  ;;  %v6482_v2 = vld [vmem:[%s9419_s22 + $0x198] sm:$0xff] }
 0x20d   :  { %1614 = vmatpush.msrb.mxu1 %v5733_v39  ;;  %1635 = vmatpush.msrb.mxu2 %v6328_v0  ;;  %9639 = vst [vmem:[#allocation12_spill] sm:$0xff] %v6337_v60 }
 0x20e   :  { %1647 = vmatpush.msra.mxu0 %v6147_v55  ;;  %1749 = vmatpush.msra.mxu3 %v9592_v25  ;;  %v6402_v25 = vld [vmem:[%s9419_s22 + $0x1f8] sm:$0xff] }
 0x20f   :  { %1615 = vmatpush.msrb.mxu1 %v9595_v58  ;;  %1636 = vmatpush.msrb.mxu2 %v6337_v60  ;;  %9642 = vst [vmem:[#allocation14_spill] sm:$0xff] %v6402_v25 }
 0x210   :  { %1648 = vmatpush.msra.mxu0 %v6156_v50  ;;  %1750 = vmatpush.msra.mxu3 %v9593_v16  ;;  %v9643_v16 = vld [vmem:[#allocation57_spill] sm:$0xff] }
 0x211   :  { %1616 = vmatpush.msrb.mxu1 %v9598_v42  ;;  %1637 = vmatpush.msrb.mxu2 %v6346_v27 }
 0x212   :  { %1649 = vmatpush.msra.mxu0 %v6169_v17  ;;  %1751 = vmatpush.msra.mxu3 %v9594_v11  ;;  %v6411_v11 = vld [vmem:[%s9419_s22 + $0x1e8] sm:$0xff] }
 0x213   :  { %1617 = vmatpush.msrb.mxu1 %v9600_v54  ;;  %1638 = vmatpush.msrb.mxu2 %v6355_v26  ;;  %9644 = vst [vmem:[#allocation49_spill] sm:$0xff] %v6411_v11  ;;  %v1128_v29 = vpop.f32.mrf.mxu2 }
 0x214   :  { %1650 = vmatpush.msra.mxu0 %v6184_v53  ;;  %1752 = vmatpush.msra.mxu3 %v5718_v45  ;;  %v6376_v45 = vld [vmem:[%s9419_s22 + $0x220] sm:$0xff] }
 0x215   :  { %1544 = vmatmul.f32.vlgmr.msrb.gmra.mxu0 %v6127_v31  ;;  %3657 = vmatmul.msk.f32.vlgmr.msra.gmra.mxu1 %vm194_vm1, %v6082_v21  ;;  %v6425_v21 = vld [vmem:[%s9419_s22 + $0x1d8] sm:$0xff]  ;;  %v1580_v31 = vpop.permute.xlu2 %1579 }
 0x216   :  { %1618 = vmatpush.msrb.mxu1 %v9603_v15  ;;  %1639 = vmatpush.msrb.mxu2 %v6367_v7 }
 0x217   :  { %1651 = vmatpush.msra.mxu0 %v6193_v13  ;;  %1753 = vmatpush.msra.mxu3 %v5733_v39  ;;  %v6394_v39 = vld [vmem:[%s9419_s22 + $0x200] sm:$0xff] }
 0x218   :  { %1619 = vmatpush.msrb.mxu1 %v9605_v59  ;;  %1640 = vmatpush.msrb.mxu2 %v6376_v45 }
 0x219   :  { %1652 = vmatpush.msra.mxu0 %v6202_v37  ;;  %1754 = vmatpush.msra.mxu3 %v9595_v58  ;;  %v6417_v58 = vld [vmem:[%s9419_s22 + $0xf0] sm:$0xff] }
 0x21a   :  { %1620 = vmatpush.msrb.mxu1 %v9606_v36  ;;  %1641 = vmatpush.msrb.mxu2 %v6385_v30  ;;  %9645 = vst [vmem:[#allocation50_spill] sm:$0xff] %v6417_v58 }
 0x21b   :  { %1653 = vmatpush.msra.mxu0 %v6213_v4  ;;  %1755 = vmatpush.msra.mxu3 %v9598_v42  ;;  %v6431_v42 = vld [vmem:[%s9419_s22 + $0xe0] sm:$0xff] }
 0x21c   :  { %1621 = vmatpush.msrb.mxu1 %v9607_v40  ;;  %1642 = vmatpush.msrb.mxu2 %v6394_v39  ;;  %9646 = vst [vmem:[#allocation28_spill] sm:$0xff] %v6431_v42 }
 0x21d   :  { %1654 = vmatpush.msra.mxu0 %v6223_v56  ;;  %1756 = vmatpush.msra.mxu3 %v9600_v54  ;;  %v6445_v54 = vld [vmem:[%s9419_s22 + $0xd0] sm:$0xff]  ;;  %v1573_v61 = vpop.permute.xlu2 %1572 }
 0x21e   :  { %1667 = vmatpush.msra.mxu2 %v6402_v25  ;;  %1622 = vmatpush.msrb.mxu1 %v9643_v16  ;;  %9647 = vst [vmem:[#allocation51_spill] sm:$0xff] %v6445_v54  ;;  %v1583_v8 = vsel %vm190_vm2, %v6268_v49, %v1573_v61  ;;  %v6568_v49 = vld [vmem:[%s9419_s22 + $0x50] sm:$0xff] }
 0x21f   :  { %1655 = vmatpush.msra.mxu0 %v6234_v51  ;;  %1757 = vmatpush.msra.mxu3 %v9603_v15  ;;  %v6453_v15 = vld [vmem:[%s9419_s22 + $0x1b8] sm:$0xff]  ;;  %9655 = vst [vmem:[#allocation55_spill] sm:$0xff] %v6568_v49  ;;  %v1584_v61 = vsel %vm192_vm3, %v1583_v8, %v1580_v31  ;;  %v6595_v8 = vld [vmem:[%s9419_s22 + $0x128] sm:$0xff] }
 0x220   :  { %1668 = vmatpush.msra.mxu2 %v6411_v11  ;;  %1726 = vmatpush.msra.mxu1 %v6417_v58 }
 0x221   :  { %1656 = vmatpush.msra.mxu0 %v6250_v48  ;;  %1758 = vmatpush.msra.mxu3 %v9605_v59  ;;  %v6439_v59 = vld [vmem:[%s9419_s22 + $0x1c8] sm:$0xff] }
 0x222   :  { %1669 = vmatpush.msra.mxu2 %v6425_v21  ;;  %1727 = vmatpush.msra.mxu1 %v6431_v42 }
 0x223   :  { %1657 = vmatpush.msra.mxu0 %v6265_v57  ;;  %1759 = vmatpush.msra.mxu3 %v9606_v36  ;;  %v6459_v36 = vld [vmem:[%s9419_s22 + $0xc0] sm:$0xff] }
 0x224   :  { %1670 = vmatpush.msra.mxu2 %v6439_v59  ;;  %1728 = vmatpush.msra.mxu1 %v6445_v54  ;;  %9648 = vst [vmem:[#allocation31_spill] sm:$0xff] %v6459_v36 }
 0x225   :  { %1658 = vmatpush.msra.mxu0 %v6276_v28  ;;  %1760 = vmatpush.msra.mxu3 %v9607_v40  ;;  %v6467_v40 = vld [vmem:[%s9419_s22 + $0x1a8] sm:$0xff] }
 0x226   :  { %1671 = vmatpush.msra.mxu2 %v6453_v15  ;;  %1729 = vmatpush.msra.mxu1 %v6459_v36 }
 0x227   :  { %1659 = vmatpush.msra.mxu0 %v6290_v32  ;;  %1761 = vmatpush.msra.mxu3 %v9643_v16  ;;  %v1712_v16 = vpop.permute.xlu1 %1711 }
 0x228   :  { %1672 = vmatpush.msra.mxu2 %v6467_v40  ;;  %3659 = vmatmul.msk.f32.vlgmr.msrb.gmra.mxu3 %vm194_vm1, %v1580_v31 }
 0x229   :  { %1730 = vmatpush.msra.mxu1 %v6474_v47  ;;  %1865 = vmatpush.msrb.mxu3 %v6417_v58  ;;  %v1187_v58 = vpop.f32.mrf.mxu1 }
 0x22a   :  { %1660 = vmatpush.msra.mxu0 %v6301_v63  ;;  %1673 = vmatpush.msra.mxu2 %v6482_v2  ;;  %v1709_v19 = vpop.permute.xlu0 %1708 }
 0x22b   :  { %1731 = vmatpush.msra.mxu1 %v6488_v9  ;;  %1866 = vmatpush.msrb.mxu3 %v6431_v42 }
 0x22c   :  { %1661 = vmatpush.msra.mxu0 %v6310_v38  ;;  %1674 = vmatpush.msra.mxu2 %v6498_v3 }
 0x22d   :  { %1732 = vmatpush.msra.mxu1 %v6506_v52  ;;  %1867 = vmatpush.msrb.mxu3 %v6445_v54  ;;  %v6619_v54 = vld [vmem:[%s9419_s22 + $0x20] sm:$0xff] }
 0x22e   :  { %1662 = vmatpush.msra.mxu0 %v6319_v35  ;;  %1675 = vmatpush.msra.mxu2 %v6514_v41 }
 0x22f   :  { %1733 = vmatpush.msra.mxu1 %v6520_v5  ;;  %1868 = vmatpush.msrb.mxu3 %v6459_v36 }
 0x230   :  { %1774 = vmatpush.msrb.mxu0 %v6328_v0  ;;  %1676 = vmatpush.msra.mxu2 %v6528_v44 }
 0x231   :  { %1734 = vmatpush.msra.mxu1 %v6538_v62  ;;  %1869 = vmatpush.msrb.mxu3 %v6474_v47  ;;  %v1227_v47 = vpop.f32.mrf.mxu0 }
 0x232   :  { %1775 = vmatpush.msrb.mxu0 %v6337_v60  ;;  %1677 = vmatpush.msra.mxu2 %v6546_v12 }
 0x233   :  { %1735 = vmatpush.msra.mxu1 %v6554_v1  ;;  %1870 = vmatpush.msrb.mxu3 %v6488_v9  ;;  %v6586_v9 = vld [vmem:[%s9419_s22 + $0x40] sm:$0xff] }
 0x234   :  { %1776 = vmatpush.msrb.mxu0 %v6346_v27  ;;  %1678 = vmatpush.msra.mxu2 %v6562_v23  ;;  %9656 = vst [vmem:[#allocation56_spill] sm:$0xff] %v6586_v9 }
 0x235   :  { %1736 = vmatpush.msra.mxu1 %v6568_v49  ;;  %1871 = vmatpush.msrb.mxu3 %v6506_v52  ;;  %v6601_v52 = vld [vmem:[%s9419_s22 + $0x30] sm:$0xff] }
 0x236   :  { %1777 = vmatpush.msrb.mxu0 %v6355_v26  ;;  %3658 = vmatmul.msk.f32.vlgmr.msrb.gmra.mxu2 %vm194_vm1, %v1580_v31  ;;  %v1722_v31 = vsel %vm190_vm2, %v1709_v19, %v1712_v16  ;;  %9657 = vst [vmem:[#allocation15_spill] sm:$0xff] %v6601_v52  ;;  %v6609_v16 = vld [vmem:[%s9419_s22 + $0x118] sm:$0xff] }
 0x237   :  { %1679 = vmatpush.msra.mxu2 %v6580_v14  ;;  %1737 = vmatpush.msra.mxu1 %v6586_v9  ;;  %v6614_v36 = vsel %vm192_vm3, %v1722_v31, %v6492_v6  ;;  %v6629_v31 = vld [vmem:[%s9419_s22 + $0x108] sm:$0xff] }
 0x238   :  { %1778 = vmatpush.msrb.mxu0 %v6367_v7  ;;  %1872 = vmatpush.msrb.mxu3 %v6520_v5  ;;  %v1148_v5 = vpop.f32.mrf.mxu3 }
 0x239   :  { %1623 = vmatmul.f32.vlgmr.msrb.gmra.mxu1 %v1584_v61  ;;  %1680 = vmatpush.msra.mxu2 %v6595_v8 }
 0x23a   :  { %1738 = vmatpush.msra.mxu1 %v6601_v52  ;;  %1779 = vmatpush.msrb.mxu0 %v6376_v45 }
 0x23b   :  { %1873 = vmatpush.msrb.mxu3 %v6538_v62  ;;  %1681 = vmatpush.msra.mxu2 %v6609_v16  ;;  %v6635_v62 = vld [vmem:[%s9419_s22 + $0x10] sm:$0xff] }
 0x23c   :  { %1739 = vmatpush.msra.mxu1 %v6619_v54  ;;  %1780 = vmatpush.msrb.mxu0 %v6385_v30  ;;  %v6649_v30 = vld [vmem:[%s9419_s22] sm:$0xff] }
 0x23d   :  { %1874 = vmatpush.msrb.mxu3 %v6554_v1  ;;  %1663 = vmatmul.f32.vlgmr.msra.gmra.mxu0 %v6284_v22  ;;  %v1247_v1 = vpop.f32.mrf.mxu2  ;;  %v9658_v22 = vld [vmem:[#allocation27_spill] sm:$0xff] }
 0x23e   :  { %1762 = vmatmul.f32.vlgmr.msra.gmra.mxu3 %v6614_v36  ;;  %1682 = vmatpush.msra.mxu2 %v6629_v31  ;;  %v6641_v42 = vsel %vm330_vm4, %v9658_v22, %v1709_v19  ;;  %v1248_v19 = vadd.f32 %v1247_v1, %v9579_v20  ;;  %v1188_v22 = vadd.f32 %v1187_v58, %v9627_v24 }
 0x23f   :  { %1740 = vmatpush.msra.mxu1 %v6635_v62  ;;  %1781 = vmatpush.msrb.mxu0 %v6394_v39  ;;  %v1049_v1 = vadd.f32 %v6531_v10, %v9627_v24  ;;  %v1109_v58 = vadd.f32 %v6533_v18, %v9579_v20  ;;  %v6685_v18 = vld [vmem:[%s9419_s22 + $0x258] sm:$0xff] }
 0x240   :  { %1875 = vmatpush.msrb.mxu3 %v6568_v49  ;;  %1683 = vmatmul.f32.vlgmr.msra.gmra.mxu2 %v1584_v61  ;;  %v1267_v61 = vpop.f32.mrf.mxu0  ;;  %v6661_v49 = vld [vmem:[%s9419_s22 + $0x278] sm:$0xff] }
 0x241   :  { %1786 = vmatpush.msrb.mxu2 %v6147_v55  ;;  %1806 = vmatpush.msra.mxu0 %v6402_v25  ;;  %v1207_v25 = vpop.f32.mrf.mxu3  ;;  %v1129_v10 = vadd.f32 %v1128_v29, %v1109_v58 }
 0x242   :  { %1741 = vmatpush.msra.mxu1 %v6649_v30  ;;  %1876 = vmatpush.msrb.mxu3 %v6586_v9  ;;  %v6674_v9 = vld [vmem:[%s9419_s22 + $0x268] sm:$0xff] }
 0x243   :  { %1742 = vmatmul.f32.vlgmr.msra.gmra.mxu1 %v6641_v42  ;;  %1787 = vmatpush.msrb.mxu2 %v6156_v50 }
 0x244   :  { %1807 = vmatpush.msra.mxu0 %v6411_v11  ;;  %1834 = vmatpush.msrb.mxu1 %v6661_v49  ;;  %v1268_v11 = vadd.f32 %v1267_v61, %v1248_v19  ;;  %v1287_v19 = vpop.f32.mrf.mxu1  ;;  %v1069_v61 = vadd.f32 %v6575_v46, %v1049_v1  ;;  %v6704_v46 = vld [vmem:[%s9419_s22 + $0x238] sm:$0xff] }
 0x245   :  { %1877 = vmatpush.msrb.mxu3 %v6601_v52  ;;  %1788 = vmatpush.msrb.mxu2 %v6169_v17  ;;  %v1208_v52 = vadd.f32 %v1207_v25, %v1188_v22  ;;  %v6695_v25 = vld [vmem:[%s9419_s22 + $0x248] sm:$0xff]  ;;  %v1149_v22 = vadd.f32 %v1148_v5, %v1129_v10 }
 0x246   :  { %1808 = vmatpush.msra.mxu0 %v6425_v21  ;;  %1835 = vmatpush.msrb.mxu1 %v6674_v9  ;;  %v1288_v29 = vadd.f32 %v1287_v19, %v1268_v11  ;;  %v1089_v11 = vadd.f32 %v6501_v34, %v1069_v61  ;;  %v6725_v34 = vld [vmem:[%s9419_s22 + $0x218] sm:$0xff]  ;;  %v6735_v10 = vld [vmem:[%s9419_s22 + $0x208] sm:$0xff]  ;;  %v6753_v61 = vld [vmem:[%s9419_s22 + $0x1d0] sm:$0xff] }
 0x247   :  { %1878 = vmatpush.msrb.mxu3 %v6619_v54  ;;  %3660 = vmatmul.msk.f32.vlgmr.msrb.gmra.mxu0 %vm194_vm1, %v6492_v6  ;;  %v1228_v58 = vadd.f32 %v1227_v47, %v1208_v52  ;;  %v6714_v47 = vld [vmem:[%s9419_s22 + $0x228] sm:$0xff]  ;;  %9660 = vst [vmem:[#allocation30_spill] sm:$0xff] %v6725_v34 }
 0x248   :  { %1789 = vmatpush.msrb.mxu2 %v6184_v53  ;;  %1809 = vmatpush.msra.mxu0 %v6439_v59  ;;  %v2434_v1 = vmax.f32 %v1149_v22, %v1288_v29  ;;  %9661 = vst [vmem:[#allocation18_spill] sm:$0xff] %v6735_v10  ;;  %v9663_v29 = vld [vmem:[#allocation13_spill] sm:$0xff] }
 0x249   :  { %1836 = vmatpush.msrb.mxu1 %v6685_v18  ;;  %1879 = vmatpush.msrb.mxu3 %v6635_v62  ;;  %v6718_v52 = vmax.f32 %v1089_v11, %v1228_v58  ;;  %9662 = vst [vmem:[#allocation22_spill] sm:$0xff] %v6753_v61  ;;  %v6767_v58 = vld [vmem:[%s9419_s22 + $0x1c0] sm:$0xff]  ;;  %v6776_v11 = vld [vmem:[%s9419_s22 + $0x1b0] sm:$0xff] }
 0x24a   :  { %1790 = vmatpush.msrb.mxu2 %v6193_v13  ;;  %1810 = vmatpush.msra.mxu0 %v6453_v15  ;;  %v6747_v19 = vpop.permute.xlu0 %1847  ;;  %9664 = vst [vmem:[#allocation26_spill] sm:$0xff] %v6767_v58 }
 0x24b   :  { %1837 = vmatpush.msrb.mxu1 %v6695_v25  ;;  %1880 = vmatpush.msrb.mxu3 %v6649_v30  ;;  %9659 = vst [vmem:[#allocation46_spill] sm:$0xff] %v6718_v52  ;;  %v3691_v5 = vpack.i.bf16 %v2434_v1, %v6718_v52  ;;  %v6762_v22 = vsel %vm330_vm4, %v9663_v29, %v6747_v19  ;;  %v6786_v1 = vld [vmem:[%s9419_s22 + $0x1a0] sm:$0xff]  ;;  %v6814_v52 = vld [vmem:[%s9419_s22 + $0x170] sm:$0xff] }
 0x24c   :  { %1791 = vmatpush.msrb.mxu2 %v6202_v37  ;;  %1811 = vmatpush.msra.mxu0 %v6467_v40  ;;  %9665 = vst [vmem:[#allocation32_spill] sm:$0xff] %v6776_v11  ;;  %v6805_v29 = vld [vmem:[%s9419_s22 + $0x180] sm:$0xff] }
 0x24d   :  { %1838 = vmatpush.msrb.mxu1 %v6704_v46  ;;  %1973 = vmatpush.msra.mxu3 %v6661_v49  ;;  %9666 = vst [vmem:[#allocation7_spill] sm:$0xff] %v6786_v1 }
 0x24e   :  { %1792 = vmatpush.msrb.mxu2 %v6213_v4  ;;  %1812 = vmatpush.msra.mxu0 %v6482_v2  ;;  %9668 = vst [vmem:[#allocation25_spill] sm:$0xff] %v6805_v29 }
 0x24f   :  { %1839 = vmatpush.msrb.mxu1 %v6714_v47  ;;  %1974 = vmatpush.msra.mxu3 %v6674_v9  ;;  %9669 = vst [vmem:[#allocation47_spill] sm:$0xff] %v6814_v52 }
 0x250   :  { %1793 = vmatpush.msrb.mxu2 %v6223_v56  ;;  %1813 = vmatpush.msra.mxu0 %v6498_v3 }
 0x251   :  { %1840 = vmatpush.msrb.mxu1 %v6725_v34  ;;  %1975 = vmatpush.msra.mxu3 %v6685_v18 }
 0x252   :  { %1794 = vmatpush.msrb.mxu2 %v6234_v51  ;;  %1814 = vmatpush.msra.mxu0 %v6514_v41 }
 0x253   :  { %1841 = vmatpush.msrb.mxu1 %v6735_v10  ;;  %1976 = vmatpush.msra.mxu3 %v6695_v25 }
 0x254   :  { %1795 = vmatpush.msrb.mxu2 %v6250_v48  ;;  %1815 = vmatpush.msra.mxu0 %v6528_v44 }
 0x255   :  { %1885 = vmatpush.msra.mxu1 %v6244_v43  ;;  %1977 = vmatpush.msra.mxu3 %v6704_v46 }
 0x256   :  { %3692 = vrot.lane.b32.xlu1 %v3691_v5, %s4035_s30  ;;  %1796 = vmatpush.msrb.mxu2 %v6265_v57  ;;  %v6795_v5 = vld [vmem:[%s9419_s22 + $0x190] sm:$0xff] }
 0x257   :  { %1886 = vmatpush.msra.mxu1 %v6258_v33  ;;  %1816 = vmatpush.msra.mxu0 %v6546_v12  ;;  %9667 = vst [vmem:[#allocation20_spill] sm:$0xff] %v6795_v5 }
 0x258   :  { %1978 = vmatpush.msra.mxu3 %v6714_v47  ;;  %1797 = vmatpush.msrb.mxu2 %v6276_v28 }
 0x259   :  { %1887 = vmatpush.msra.mxu1 %v6753_v61  ;;  %1817 = vmatpush.msra.mxu0 %v6562_v23 }
 0x25a   :  { %1979 = vmatpush.msra.mxu3 %v6725_v34  ;;  %1798 = vmatpush.msrb.mxu2 %v6290_v32 }
 0x25b   :  { %1888 = vmatpush.msra.mxu1 %v6767_v58  ;;  %1818 = vmatpush.msra.mxu0 %v6580_v14 }
 0x25c   :  { %1980 = vmatpush.msra.mxu3 %v6735_v10  ;;  %1799 = vmatpush.msrb.mxu2 %v6301_v63 }
 0x25d   :  { %1889 = vmatpush.msra.mxu1 %v6776_v11  ;;  %1881 = vmatmul.f32.vlgmr.msrb.gmra.mxu3 %v6762_v22 }
 0x25e   :  { %2024 = vmatpush.msrb.mxu3 %v6244_v43  ;;  %1819 = vmatpush.msra.mxu0 %v6595_v8 }
 0x25f   :  { %1890 = vmatpush.msra.mxu1 %v6786_v1  ;;  %1800 = vmatpush.msrb.mxu2 %v6310_v38 }
 0x260   :  { %2025 = vmatpush.msrb.mxu3 %v6258_v33  ;;  %1820 = vmatpush.msra.mxu0 %v6609_v16  ;;  %v9682_v33 = vld [vmem:[#allocation51_spill] sm:$0xff] }
 0x261   :  { %1891 = vmatpush.msra.mxu1 %v6795_v5  ;;  %1801 = vmatpush.msrb.mxu2 %v6319_v35 }
 0x262   :  { %2026 = vmatpush.msrb.mxu3 %v6753_v61  ;;  %1821 = vmatpush.msra.mxu0 %v6629_v31  ;;  %v9680_v61 = vld [vmem:[#allocation50_spill] sm:$0xff] }
 0x263   :  { %1802 = vmatmul.f32.vlgmr.msrb.gmra.mxu2 %v6641_v42  ;;  %1892 = vmatpush.msra.mxu1 %v6805_v29  ;;  %v6823_v42 = vld [vmem:[%s9419_s22 + $0x160] sm:$0xff] }
 0x264   :  { %1913 = vmatpush.msra.mxu2 %v6328_v0  ;;  %1925 = vmatpush.msrb.mxu0 %v6147_v55  ;;  %9670 = vst [vmem:[#allocation33_spill] sm:$0xff] %v6823_v42 }
 0x265   :  { %2027 = vmatpush.msrb.mxu3 %v6767_v58  ;;  %1893 = vmatpush.msra.mxu1 %v6814_v52  ;;  %v6832_v58 = vld [vmem:[%s9419_s22 + $0x150] sm:$0xff] }
 0x266   :  { %1914 = vmatpush.msra.mxu2 %v6337_v60  ;;  %1926 = vmatpush.msrb.mxu0 %v6156_v50  ;;  %9671 = vst [vmem:[#allocation35_spill] sm:$0xff] %v6832_v58 }
 0x267   :  { %2028 = vmatpush.msrb.mxu3 %v6776_v11  ;;  %1894 = vmatpush.msra.mxu1 %v6823_v42  ;;  %v6881_v11 = vld [vmem:[%s9419_s22 + $0x100] sm:$0xff] }
 0x268   :  { %1915 = vmatpush.msra.mxu2 %v6346_v27  ;;  %1927 = vmatpush.msrb.mxu0 %v6169_v17  ;;  %9678 = vst [vmem:[#allocation57_spill] sm:$0xff] %v6881_v11 }
 0x269   :  { %2029 = vmatpush.msrb.mxu3 %v6786_v1  ;;  %1895 = vmatpush.msra.mxu1 %v6832_v58  ;;  %v6845_v1 = vld [vmem:[%s9419_s22 + $0x140] sm:$0xff] }
 0x26a   :  { %1916 = vmatpush.msra.mxu2 %v6355_v26  ;;  %1928 = vmatpush.msrb.mxu0 %v6184_v53  ;;  %9672 = vst [vmem:[#allocation39_spill] sm:$0xff] %v6845_v1 }
 0x26b   :  { %2030 = vmatpush.msrb.mxu3 %v6795_v5  ;;  %1822 = vmatmul.f32.vlgmr.msra.gmra.mxu0 %v6614_v36  ;;  %v6854_v36 = vld [vmem:[%s9419_s22 + $0x130] sm:$0xff]  ;;  %v6863_v5 = vld [vmem:[%s9419_s22 + $0x120] sm:$0xff] }
 0x26c   :  { %3661 = vmatmul.msk.f32.vlgmr.msrb.gmra.mxu1 %vm194_vm1, %v6492_v6  ;;  %1917 = vmatpush.msra.mxu2 %v6367_v7  ;;  %9673 = vst [vmem:[#allocation23_spill] sm:$0xff] %v6854_v36  ;;  %v9674_v6 = vld [vmem:[#allocation24_spill] sm:$0xff] }
 0x26d   :  { %1896 = vmatpush.msra.mxu1 %v6845_v1  ;;  %1929 = vmatpush.msrb.mxu0 %v6193_v13  ;;  %9675 = vst [vmem:[#allocation41_spill] sm:$0xff] %v6863_v5 }
 0x26e   :  { %2031 = vmatpush.msrb.mxu3 %v6805_v29  ;;  %1918 = vmatpush.msra.mxu2 %v6376_v45  ;;  %v6872_v29 = vld [vmem:[%s9419_s22 + $0x110] sm:$0xff] }
 0x26f   :  { %1897 = vmatpush.msra.mxu1 %v6854_v36  ;;  %1930 = vmatpush.msrb.mxu0 %v6202_v37  ;;  %9676 = vst [vmem:[#allocation11_spill] sm:$0xff] %v6872_v29 }
 0x270   :  { %2032 = vmatpush.msrb.mxu3 %v6814_v52  ;;  %1919 = vmatpush.msra.mxu2 %v9674_v6  ;;  %v9677_v52 = vld [vmem:[#allocation14_spill] sm:$0xff] }
 0x271   :  { %1898 = vmatpush.msra.mxu1 %v6863_v5  ;;  %1931 = vmatpush.msrb.mxu0 %v6213_v4 }
 0x272   :  { %2033 = vmatpush.msrb.mxu3 %v6823_v42  ;;  %1920 = vmatpush.msra.mxu2 %v6394_v39  ;;  %v9679_v42 = vld [vmem:[#allocation49_spill] sm:$0xff] }
 0x273   :  { %1899 = vmatpush.msra.mxu1 %v6872_v29  ;;  %1932 = vmatpush.msrb.mxu0 %v6223_v56 }
 0x274   :  { %2034 = vmatpush.msrb.mxu3 %v6832_v58  ;;  %1945 = vmatpush.msrb.mxu2 %v9677_v52  ;;  %v9681_v58 = vld [vmem:[#allocation28_spill] sm:$0xff] }
 0x275   :  { %1900 = vmatpush.msra.mxu1 %v6881_v11  ;;  %1933 = vmatpush.msrb.mxu0 %v6234_v51 }
 0x276   :  { %2035 = vmatpush.msrb.mxu3 %v6845_v1  ;;  %1946 = vmatpush.msrb.mxu2 %v9679_v42  ;;  %v1858_v1 = vpop.permute.xlu2 %1857 }
 0x277   :  { %2004 = vmatpush.msrb.mxu1 %v9680_v61  ;;  %1934 = vmatpush.msrb.mxu0 %v6250_v48 }
 0x278   :  { %2036 = vmatpush.msrb.mxu3 %v6854_v36  ;;  %1947 = vmatpush.msrb.mxu2 %v6425_v21  ;;  %v9683_v36 = vld [vmem:[#allocation31_spill] sm:$0xff] }
 0x279   :  { %2005 = vmatpush.msrb.mxu1 %v9681_v58  ;;  %1935 = vmatpush.msrb.mxu0 %v6265_v57  ;;  %v1386_v57 = vpop.f32.mrf.mxu0 }
 0x27a   :  { %2037 = vmatpush.msrb.mxu3 %v6863_v5  ;;  %1948 = vmatpush.msrb.mxu2 %v6439_v59  ;;  %v9684_v5 = vld [vmem:[#allocation52_spill] sm:$0xff] }
 0x27b   :  { %2006 = vmatpush.msrb.mxu1 %v9682_v33  ;;  %1936 = vmatpush.msrb.mxu0 %v6276_v28  ;;  %v6915_v28 = vpop.f32.mrf.mxu2 }
 0x27c   :  { %2038 = vmatpush.msrb.mxu3 %v6872_v29  ;;  %1949 = vmatpush.msrb.mxu2 %v6453_v15  ;;  %v9685_v29 = vld [vmem:[#allocation16_spill] sm:$0xff] }
 0x27d   :  { %2007 = vmatpush.msrb.mxu1 %v9683_v36  ;;  %1937 = vmatpush.msrb.mxu0 %v6290_v32  ;;  %v6911_v32 = vpop.permute.xlu1 %1996 }
 0x27e   :  { %2039 = vmatpush.msrb.mxu3 %v6881_v11  ;;  %1950 = vmatpush.msrb.mxu2 %v6467_v40  ;;  %v9686_v11 = vld [vmem:[#allocation37_spill] sm:$0xff] }
 0x27f   :  { %3663 = vmatmul.msk.f32.vlgmr.msra.gmra.mxu3 %vm194_vm1, %v1858_v1  ;;  %2008 = vmatpush.msrb.mxu1 %v9684_v5 }
 0x280   :  { %2143 = vmatpush.msra.mxu3 %v9680_v61  ;;  %1938 = vmatpush.msrb.mxu0 %v6301_v63  ;;  %v9687_v61 = vld [vmem:[#allocation53_spill] sm:$0xff]  ;;  %v1326_v63 = vpop.f32.mrf.mxu3 }
 0x281   :  { %1951 = vmatpush.msrb.mxu2 %v6482_v2  ;;  %2009 = vmatpush.msrb.mxu1 %v9685_v29 }
 0x282   :  { %2144 = vmatpush.msra.mxu3 %v9681_v58  ;;  %1939 = vmatpush.msrb.mxu0 %v6310_v38  ;;  %v1851_v58 = vpop.permute.xlu2 %1850  ;;  %v9688_v38 = vld [vmem:[#allocation40_spill] sm:$0xff] }
 0x283   :  { %1952 = vmatpush.msrb.mxu2 %v6498_v3  ;;  %2010 = vmatpush.msrb.mxu1 %v9686_v11 }
 0x284   :  { %2145 = vmatpush.msra.mxu3 %v9682_v33  ;;  %1940 = vmatpush.msrb.mxu0 %v6319_v35  ;;  %v1861_v33 = vsel %vm190_vm2, %v6747_v19, %v1851_v58  ;;  %v9689_v35 = vld [vmem:[#allocation54_spill] sm:$0xff]  ;;  %v1987_v19 = vpop.permute.xlu0 %1986  ;;  %v9691_v58 = vld [vmem:[#allocation56_spill] sm:$0xff] }
 0x285   :  { %1953 = vmatpush.msrb.mxu2 %v6514_v41  ;;  %2011 = vmatpush.msrb.mxu1 %v9687_v61 }
 0x286   :  { %2052 = vmatpush.msra.mxu0 %v6328_v0  ;;  %2146 = vmatpush.msra.mxu3 %v9683_v36  ;;  %v9690_v36 = vld [vmem:[#allocation55_spill] sm:$0xff]  ;;  %v1346_v0 = vpop.f32.mrf.mxu1 }
 0x287   :  { %1954 = vmatpush.msrb.mxu2 %v6528_v44  ;;  %2012 = vmatpush.msrb.mxu1 %v9688_v38 }
 0x288   :  { %2053 = vmatpush.msra.mxu0 %v6337_v60  ;;  %2147 = vmatpush.msra.mxu3 %v9684_v5  ;;  %v1862_v5 = vsel %vm192_vm3, %v1861_v33, %v1858_v1  ;;  %v1990_v60 = vpop.permute.xlu1 %1989  ;;  %v9692_v33 = vld [vmem:[#allocation15_spill] sm:$0xff] }
 0x289   :  { %1955 = vmatpush.msrb.mxu2 %v6546_v12  ;;  %2013 = vmatpush.msrb.mxu1 %v9689_v35 }
 0x28a   :  { %2054 = vmatpush.msra.mxu0 %v6346_v27  ;;  %2148 = vmatpush.msra.mxu3 %v9685_v29  ;;  %v2000_v27 = vsel %vm190_vm2, %v1987_v19, %v1990_v60  ;;  %v1406_v29 = vpop.f32.mrf.mxu2 }
 0x28b   :  { %1956 = vmatpush.msrb.mxu2 %v6562_v23  ;;  %2014 = vmatpush.msrb.mxu1 %v9690_v36  ;;  %v6950_v60 = vsel %vm192_vm3, %v2000_v27, %v6911_v32  ;;  %v9693_v27 = vld [vmem:[#allocation17_spill] sm:$0xff] }
 0x28c   :  { %2055 = vmatpush.msra.mxu0 %v6355_v26  ;;  %2149 = vmatpush.msra.mxu3 %v9686_v11  ;;  %v1505_v11 = vpop.f32.mrf.mxu0 }
 0x28d   :  { %3662 = vmatmul.msk.f32.vlgmr.msra.gmra.mxu2 %vm194_vm1, %v1858_v1  ;;  %2015 = vmatpush.msrb.mxu1 %v9691_v58  ;;  %v1426_v1 = vpop.f32.mrf.mxu3 }
 0x28e   :  { %1957 = vmatpush.msrb.mxu2 %v6580_v14  ;;  %2056 = vmatpush.msra.mxu0 %v6367_v7 }
 0x28f   :  { %2150 = vmatpush.msra.mxu3 %v9687_v61  ;;  %1901 = vmatmul.f32.vlgmr.msra.gmra.mxu1 %v1862_v5 }
 0x290   :  { %1958 = vmatpush.msrb.mxu2 %v6595_v8  ;;  %2016 = vmatpush.msrb.mxu1 %v9692_v33 }
 0x291   :  { %2057 = vmatpush.msra.mxu0 %v6376_v45  ;;  %2151 = vmatpush.msra.mxu3 %v9688_v38  ;;  %v6962_v38 = vsel %vm330_vm4, %v9693_v27, %v1987_v19  ;;  %v1327_v27 = vadd.f32 %v1326_v63, %v9627_v24 }
 0x292   :  { %1959 = vmatpush.msrb.mxu2 %v6609_v16  ;;  %2017 = vmatpush.msrb.mxu1 %v6619_v54  ;;  %v1525_v61 = vpop.f32.mrf.mxu2 }
 0x293   :  { %2058 = vmatpush.msra.mxu0 %v9674_v6  ;;  %2152 = vmatpush.msra.mxu3 %v9689_v35  ;;  %v1465_v35 = vpop.f32.mrf.mxu1 }
 0x294   :  { %1941 = vmatmul.f32.vlgmr.msrb.gmra.mxu0 %v6762_v22  ;;  %2040 = vmatmul.f32.vlgmr.msrb.gmra.mxu3 %v6950_v60  ;;  %v1526_v22 = vadd.f32 %v1525_v61, %v9579_v20  ;;  %v1545_v19 = vpop.f32.mrf.mxu0  ;;  %v1387_v61 = vadd.f32 %v1386_v57, %v9579_v20  ;;  %v1347_v57 = vadd.f32 %v1346_v0, %v1327_v27  ;;  %v9698_v27 = vld [vmem:[#allocation10_spill] sm:$0xff] }
 0x295   :  { %1960 = vmatpush.msrb.mxu2 %v6629_v31  ;;  %2018 = vmatpush.msrb.mxu1 %v6635_v62 }
 0x296   :  { %2059 = vmatpush.msra.mxu0 %v6394_v39  ;;  %2153 = vmatpush.msra.mxu3 %v9690_v36  ;;  %v1367_v0 = vadd.f32 %v6915_v28, %v1347_v57  ;;  %v9702_v57 = vld [vmem:[#allocation32_spill] sm:$0xff] }
 0x297   :  { %1961 = vmatmul.f32.vlgmr.msrb.gmra.mxu2 %v1862_v5  ;;  %2019 = vmatpush.msrb.mxu1 %v6649_v30  ;;  %v1466_v5 = vadd.f32 %v1465_v35, %v9627_v24 }
 0x298   :  { %2084 = vmatpush.msrb.mxu0 %v9677_v52  ;;  %2064 = vmatpush.msra.mxu2 %v6147_v55  ;;  %v1485_v55 = vpop.f32.mrf.mxu3 }
 0x299   :  { %2154 = vmatpush.msra.mxu3 %v9691_v58  ;;  %2020 = vmatmul.f32.vlgmr.msrb.gmra.mxu1 %v6962_v38  ;;  %v1486_v35 = vadd.f32 %v1485_v55, %v1466_v5  ;;  %v7022_v5 = vpop.permute.xlu0 %2125  ;;  %v9697_v55 = vld [vmem:[#allocation22_spill] sm:$0xff] }
 0x29a   :  { %2065 = vmatpush.msra.mxu2 %v6156_v50  ;;  %2085 = vmatpush.msrb.mxu0 %v9679_v42  ;;  %v1546_v50 = vadd.f32 %v1545_v19, %v1526_v22 }
 0x29b   :  { %2112 = vmatpush.msra.mxu1 %v6661_v49  ;;  %2155 = vmatpush.msra.mxu3 %v9692_v33  ;;  %v1407_v33 = vadd.f32 %v1406_v29, %v1387_v61  ;;  %v1506_v22 = vadd.f32 %v1505_v11, %v1486_v35  ;;  %v9699_v61 = vld [vmem:[#allocation21_spill] sm:$0xff]  ;;  %v9700_v35 = vld [vmem:[#allocation26_spill] sm:$0xff] }
 0x29c   :  { %2066 = vmatpush.msra.mxu2 %v6169_v17  ;;  %2086 = vmatpush.msrb.mxu0 %v6425_v21  ;;  %v1565_v17 = vpop.f32.mrf.mxu1 }
 0x29d   :  { %2113 = vmatpush.msra.mxu1 %v6674_v9  ;;  %2156 = vmatpush.msra.mxu3 %v6619_v54  ;;  %v1566_v63 = vadd.f32 %v1565_v17, %v1546_v50  ;;  %v1427_v29 = vadd.f32 %v1426_v1, %v1407_v33  ;;  %v7003_v11 = vmax.f32 %v1367_v0, %v1506_v22  ;;  %v9695_v33 = vld [vmem:[#allocation8_spill] sm:$0xff]  ;;  %v9696_v1 = vld [vmem:[#allocation9_spill] sm:$0xff] }
 0x29e   :  { %3664 = vmatmul.msk.f32.vlgmr.msra.gmra.mxu0 %vm194_vm1, %v6911_v32  ;;  %2067 = vmatpush.msra.mxu2 %v6184_v53  ;;  %v7029_v50 = vsel %vm330_vm4, %v9699_v61, %v7022_v5  ;;  %v9701_v17 = vld [vmem:[#allocation5_spill] sm:$0xff]  ;;  %v9705_v22 = vld [vmem:[#allocation36_spill] sm:$0xff] }
 0x29f   :  { %2087 = vmatpush.msrb.mxu0 %v6439_v59  ;;  %2114 = vmatpush.msra.mxu1 %v6685_v18  ;;  %v2446_v19 = vmax.f32 %v1427_v29, %v1566_v63  ;;  %9694 = vst [vmem:[#allocation27_spill] sm:$0xff] %v7003_v11  ;;  %v9703_v63 = vld [vmem:[#allocation29_spill] sm:$0xff]  ;;  %v9704_v29 = vld [vmem:[#allocation7_spill] sm:$0xff]  ;;  %v9706_v0 = vld [vmem:[#allocation20_spill] sm:$0xff] }
 0x2a0   :  { %2157 = vmatpush.msra.mxu3 %v6635_v62  ;;  %2068 = vmatpush.msra.mxu2 %v6193_v13  ;;  %v9711_v61 = vld [vmem:[#allocation12_spill] sm:$0xff] }
 0x2a1   :  { %2088 = vmatpush.msrb.mxu0 %v6453_v15  ;;  %2115 = vmatpush.msra.mxu1 %v6695_v25  ;;  %v3696_v28 = vpack.i.bf16 %v2446_v19, %v7003_v11  ;;  %v9707_v19 = vld [vmem:[#allocation38_spill] sm:$0xff]  ;;  %v9712_v11 = vld [vmem:[#allocation33_spill] sm:$0xff] }
 0x2a2   :  { %2158 = vmatpush.msra.mxu3 %v6649_v30  ;;  %2069 = vmatpush.msra.mxu2 %v6202_v37 }
 0x2a3   :  { %2089 = vmatpush.msrb.mxu0 %v6467_v40  ;;  %2116 = vmatpush.msra.mxu1 %v6704_v46 }
 0x2a4   :  { %2251 = vmatpush.msrb.mxu3 %v6661_v49  ;;  %2070 = vmatpush.msra.mxu2 %v6213_v4 }
 0x2a5   :  { %2090 = vmatpush.msrb.mxu0 %v6482_v2  ;;  %2117 = vmatpush.msra.mxu1 %v6714_v47 }
 0x2a6   :  { %2252 = vmatpush.msrb.mxu3 %v6674_v9  ;;  %2071 = vmatpush.msra.mxu2 %v6223_v56 }
 0x2a7   :  { %2091 = vmatpush.msrb.mxu0 %v6498_v3  ;;  %2118 = vmatpush.msra.mxu1 %v6725_v34 }
 0x2a8   :  { %2253 = vmatpush.msrb.mxu3 %v6685_v18  ;;  %2072 = vmatpush.msra.mxu2 %v6234_v51 }
 0x2a9   :  { %2092 = vmatpush.msrb.mxu0 %v6514_v41  ;;  %2119 = vmatpush.msra.mxu1 %v6735_v10 }
 0x2aa   :  { %2254 = vmatpush.msrb.mxu3 %v6695_v25  ;;  %2073 = vmatpush.msra.mxu2 %v6250_v48 }
 0x2ab   :  { %2163 = vmatpush.msrb.mxu1 %v6244_v43  ;;  %2093 = vmatpush.msrb.mxu0 %v6528_v44 }
 0x2ac   :  { %2255 = vmatpush.msrb.mxu3 %v6704_v46  ;;  %3697 = vrot.lane.b32.xlu2 %v3696_v28, %s4035_s30  ;;  %v9709_v28 = vld [vmem:[#allocation19_spill] sm:$0xff] }
 0x2ad   :  { %2164 = vmatpush.msrb.mxu1 %v9695_v33  ;;  %2074 = vmatpush.msra.mxu2 %v9696_v1 }
 0x2ae   :  { %2094 = vmatpush.msrb.mxu0 %v6546_v12  ;;  %2256 = vmatpush.msrb.mxu3 %v6714_v47 }
 0x2af   :  { %2165 = vmatpush.msrb.mxu1 %v9697_v55  ;;  %2075 = vmatpush.msra.mxu2 %v9698_v27 }
 0x2b0   :  { %2095 = vmatpush.msrb.mxu0 %v6562_v23  ;;  %2257 = vmatpush.msrb.mxu3 %v6725_v34  ;;  %v9714_v34 = vld [vmem:[#allocation35_spill] sm:$0xff] }
 0x2b1   :  { %2166 = vmatpush.msrb.mxu1 %v9700_v35  ;;  %2076 = vmatpush.msra.mxu2 %v9701_v17 }
 0x2b2   :  { %2096 = vmatpush.msrb.mxu0 %v6580_v14  ;;  %2258 = vmatpush.msrb.mxu3 %v6735_v10  ;;  %v9713_v10 = vld [vmem:[#allocation48_spill] sm:$0xff] }
 0x2b3   :  { %2159 = vmatmul.f32.vlgmr.msra.gmra.mxu3 %v7029_v50  ;;  %2167 = vmatpush.msrb.mxu1 %v9702_v57 }
 0x2b4   :  { %2296 = vmatpush.msra.mxu3 %v6244_v43  ;;  %2077 = vmatpush.msra.mxu2 %v9703_v63  ;;  %v9708_v43 = vld [vmem:[#allocation25_spill] sm:$0xff] }
 0x2b5   :  { %2097 = vmatpush.msrb.mxu0 %v6595_v8  ;;  %2168 = vmatpush.msrb.mxu1 %v9704_v29 }
 0x2b6   :  { %2297 = vmatpush.msra.mxu3 %v9695_v33  ;;  %2078 = vmatpush.msra.mxu2 %v9705_v22  ;;  %v7056_v33 = vld [vmem:[%s9419_s22 + $0xf8] sm:$0xff] }
 0x2b7   :  { %2098 = vmatpush.msrb.mxu0 %v6609_v16  ;;  %2169 = vmatpush.msrb.mxu1 %v9706_v0 }
 0x2b8   :  { %2298 = vmatpush.msra.mxu3 %v9697_v55  ;;  %2079 = vmatpush.msra.mxu2 %v9707_v19  ;;  %v9710_v55 = vld [vmem:[#allocation47_spill] sm:$0xff] }
 0x2b9   :  { %2099 = vmatpush.msrb.mxu0 %v6629_v31  ;;  %2080 = vmatmul.f32.vlgmr.msra.gmra.mxu2 %v6962_v38  ;;  %v7065_v38 = vld [vmem:[%s9419_s22 + $0xe8] sm:$0xff] }
 0x2ba   :  { %2170 = vmatpush.msrb.mxu1 %v9708_v43  ;;  %2191 = vmatpush.msrb.mxu2 %v9709_v28 }
 0x2bb   :  { %2203 = vmatpush.msra.mxu0 %v7056_v33  ;;  %2299 = vmatpush.msra.mxu3 %v9700_v35  ;;  %v7074_v35 = vld [vmem:[%s9419_s22 + $0xd8] sm:$0xff] }
 0x2bc   :  { %2171 = vmatpush.msrb.mxu1 %v9710_v55  ;;  %2192 = vmatpush.msrb.mxu2 %v9711_v61 }
 0x2bd   :  { %2204 = vmatpush.msra.mxu0 %v7065_v38  ;;  %2300 = vmatpush.msra.mxu3 %v9702_v57  ;;  %v9715_v57 = vld [vmem:[#allocation39_spill] sm:$0xff] }
 0x2be   :  { %2172 = vmatpush.msrb.mxu1 %v9712_v11  ;;  %2193 = vmatpush.msrb.mxu2 %v9713_v10 }
 0x2bf   :  { %2205 = vmatpush.msra.mxu0 %v7074_v35  ;;  %2301 = vmatpush.msra.mxu3 %v9704_v29  ;;  %v9716_v29 = vld [vmem:[#allocation23_spill] sm:$0xff] }
 0x2c0   :  { %2173 = vmatpush.msrb.mxu1 %v9714_v34  ;;  %2194 = vmatpush.msrb.mxu2 %v6355_v26 }
 0x2c1   :  { %2206 = vmatpush.msra.mxu0 %v6184_v53  ;;  %2302 = vmatpush.msra.mxu3 %v9706_v0  ;;  %v9717_v53 = vld [vmem:[#allocation41_spill] sm:$0xff]  ;;  %v3910_v0 = vld [vmem:[%s9419_s22 + $0x210] sm:$0xff] }
 0x2c2   :  { %2100 = vmatmul.f32.vlgmr.msrb.gmra.mxu0 %v6950_v60  ;;  %3665 = vmatmul.msk.f32.vlgmr.msra.gmra.mxu1 %vm194_vm1, %v6911_v32  ;;  %v9718_v32 = vld [vmem:[#allocation11_spill] sm:$0xff]  ;;  %v9729_v60 = vld [vmem:[#allocation40_spill] sm:$0xff] }
 0x2c3   :  { %2174 = vmatpush.msrb.mxu1 %v9715_v57  ;;  %2195 = vmatpush.msrb.mxu2 %v6367_v7 }
 0x2c4   :  { %2207 = vmatpush.msra.mxu0 %v6193_v13  ;;  %2303 = vmatpush.msra.mxu3 %v9708_v43  ;;  %v9719_v13 = vld [vmem:[#allocation57_spill] sm:$0xff]  ;;  %v9735_v43 = vld [vmem:[#allocation44_spill] sm:$0xff] }
 0x2c5   :  { %2175 = vmatpush.msrb.mxu1 %v9716_v29  ;;  %2196 = vmatpush.msrb.mxu2 %v6376_v45  ;;  %v2136_v45 = vpop.permute.xlu2 %2135 }
 0x2c6   :  { %2208 = vmatpush.msra.mxu0 %v6202_v37  ;;  %2304 = vmatpush.msra.mxu3 %v9710_v55  ;;  %v9720_v37 = vld [vmem:[#allocation50_spill] sm:$0xff] }
 0x2c7   :  { %2176 = vmatpush.msrb.mxu1 %v9717_v53  ;;  %2197 = vmatpush.msrb.mxu2 %v9674_v6  ;;  %v7168_v6 = vpop.f32.mrf.mxu0  ;;  %v7269_v55 = vld [vmem:[%s9036_s3 + $0x30] sm:$0xff] }
 0x2c8   :  { %2209 = vmatpush.msra.mxu0 %v6213_v4  ;;  %2305 = vmatpush.msra.mxu3 %v9712_v11  ;;  %v9721_v4 = vld [vmem:[#allocation28_spill] sm:$0xff]  ;;  %v2129_v11 = vpop.permute.xlu1 %2128 }
 0x2c9   :  { %2177 = vmatpush.msrb.mxu1 %v9718_v32  ;;  %2198 = vmatpush.msrb.mxu2 %v6394_v39  ;;  %v7131_v39 = vld [vmem:[%s9036_s3 + $0xe0] sm:$0xff] }
 0x2ca   :  { %2210 = vmatpush.msra.mxu0 %v6223_v56  ;;  %2306 = vmatpush.msra.mxu3 %v9714_v34  ;;  %v9722_v56 = vld [vmem:[#allocation51_spill] sm:$0xff]  ;;  %v9727_v34 = vld [vmem:[#allocation53_spill] sm:$0xff] }
 0x2cb   :  { %2223 = vmatpush.msra.mxu2 %v9677_v52  ;;  %2178 = vmatpush.msrb.mxu1 %v9719_v13  ;;  %v9726_v52 = vld [vmem:[#allocation37_spill] sm:$0xff] }
 0x2cc   :  { %2211 = vmatpush.msra.mxu0 %v6234_v51  ;;  %2307 = vmatpush.msra.mxu3 %v9715_v57  ;;  %v9723_v51 = vld [vmem:[#allocation31_spill] sm:$0xff] }
 0x2cd   :  { %2224 = vmatpush.msra.mxu2 %v9679_v42  ;;  %2276 = vmatpush.msra.mxu1 %v9720_v37  ;;  %v7166_v42 = vpop.f32.mrf.mxu3 }
 0x2ce   :  { %2212 = vmatpush.msra.mxu0 %v6250_v48  ;;  %2308 = vmatpush.msra.mxu3 %v9716_v29  ;;  %v7122_v48 = vld [vmem:[%s9036_s3 + $0xf0] sm:$0xff]  ;;  %v7282_v29 = vld [vmem:[%s9036_s3 + $0x20] sm:$0xff] }
 0x2cf   :  { %2225 = vmatpush.msra.mxu2 %v6425_v21  ;;  %2277 = vmatpush.msra.mxu1 %v9721_v4  ;;  %v9724_v21 = vld [vmem:[#allocation52_spill] sm:$0xff] }
 0x2d0   :  { %2213 = vmatpush.msra.mxu0 %v9696_v1  ;;  %2309 = vmatpush.msra.mxu3 %v9717_v53  ;;  %v9730_v1 = vld [vmem:[#allocation54_spill] sm:$0xff] }
 0x2d1   :  { %2226 = vmatpush.msra.mxu2 %v6439_v59  ;;  %2278 = vmatpush.msra.mxu1 %v9722_v56  ;;  %v7140_v59 = vld [vmem:[%s9036_s3 + $0xd0] sm:$0xff] }
 0x2d2   :  { %2214 = vmatpush.msra.mxu0 %v9698_v27  ;;  %2310 = vmatpush.msra.mxu3 %v9718_v32  ;;  %v7186_v27 = vld [vmem:[%s9036_s3 + $0x90] sm:$0xff]  ;;  %v1665_v32 = vadd.f32 %v7168_v6, %v9579_v20 }
 0x2d3   :  { %2227 = vmatpush.msra.mxu2 %v6453_v15  ;;  %2279 = vmatpush.msra.mxu1 %v9723_v51  ;;  %v9725_v15 = vld [vmem:[#allocation16_spill] sm:$0xff]  ;;  %9731 = vst [vmem:[#allocation24_spill] sm:$0xff] %v7186_v27  ;;  %v3915_v51 = vld [vmem:[%s9419_s22 + $0xc8] sm:$0xff] }
 0x2d4   :  { %2215 = vmatpush.msra.mxu0 %v9701_v17  ;;  %2311 = vmatpush.msra.mxu3 %v9719_v13  ;;  %v7297_v13 = vld [vmem:[%s9036_s3 + $0x10] sm:$0xff] }
 0x2d5   :  { %2228 = vmatpush.msra.mxu2 %v6467_v40  ;;  %3667 = vmatmul.msk.f32.vlgmr.msrb.gmra.mxu3 %vm194_vm1, %v2136_v45  ;;  %v7146_v40 = vpop.f32.mrf.mxu2 }
 0x2d6   :  { %2280 = vmatpush.msra.mxu1 %v9724_v21  ;;  %2563 = vmatpush.msrb.mxu3 %v7122_v48 }
 0x2d7   :  { %2216 = vmatpush.msra.mxu0 %v9703_v63  ;;  %2229 = vmatpush.msra.mxu2 %v6482_v2  ;;  %v7153_v2 = vld [vmem:[%s9036_s3 + $0xc0] sm:$0xff]  ;;  %v9734_v63 = vld [vmem:[#allocation15_spill] sm:$0xff] }
 0x2d8   :  { %2281 = vmatpush.msra.mxu1 %v9725_v15  ;;  %2564 = vmatpush.msrb.mxu3 %v7131_v39 }
 0x2d9   :  { %2217 = vmatpush.msra.mxu0 %v9705_v22  ;;  %2230 = vmatpush.msra.mxu2 %v6498_v3  ;;  %v7162_v3 = vld [vmem:[%s9036_s3 + $0xb0] sm:$0xff]  ;;  %v7226_v22 = vpop.f32.mrf.mxu3 }
 0x2da   :  { %2282 = vmatpush.msra.mxu1 %v9726_v52  ;;  %2565 = vmatpush.msrb.mxu3 %v7140_v59  ;;  %9728 = vst [vmem:[#allocation13_spill] sm:$0xff] %v7162_v3  ;;  %v3917_v52 = vld [vmem:[%s9419_s22 + $0xb8] sm:$0xff] }
 0x2db   :  { %2218 = vmatpush.msra.mxu0 %v9707_v19  ;;  %2231 = vmatpush.msra.mxu2 %v6514_v41  ;;  %v7175_v41 = vld [vmem:[%s9036_s3 + $0xa0] sm:$0xff]  ;;  %v7241_v19 = vld [vmem:[%s9036_s3 + $0x50] sm:$0xff] }
 0x2dc   :  { %2283 = vmatpush.msra.mxu1 %v9727_v34  ;;  %2566 = vmatpush.msrb.mxu3 %v7153_v2  ;;  %v3918_v34 = vld [vmem:[%s9419_s22 + $0x1b8] sm:$0xff] }
 0x2dd   :  { %2324 = vmatpush.msrb.mxu0 %v9709_v28  ;;  %2232 = vmatpush.msra.mxu2 %v6528_v44  ;;  %v2139_v44 = vsel %vm190_vm2, %v7022_v5, %v2129_v11  ;;  %v7200_v5 = vpop.f32.mrf.mxu1  ;;  %v7202_v17 = vpop.f32.mrf.mxu2  ;;  %v3920_v11 = vld [vmem:[%s9419_s22 + $0x1a8] sm:$0xff] }
 0x2de   :  { %2284 = vmatpush.msra.mxu1 %v9729_v60  ;;  %2567 = vmatpush.msrb.mxu3 %v7162_v3  ;;  %v1685_v56 = vadd.f32 %v7202_v17, %v1665_v32  ;;  %v3919_v60 = vld [vmem:[%s9419_s22 + $0xa8] sm:$0xff] }
 0x2df   :  { %2325 = vmatpush.msrb.mxu0 %v9711_v61  ;;  %2233 = vmatpush.msra.mxu2 %v6546_v12  ;;  %v7195_v12 = vld [vmem:[%s9036_s3 + $0x80] sm:$0xff]  ;;  %v9738_v17 = vld [vmem:[#allocation30_spill] sm:$0xff] }
 0x2e0   :  { %2285 = vmatpush.msra.mxu1 %v9730_v1  ;;  %2568 = vmatpush.msrb.mxu3 %v7175_v41  ;;  %9732 = vst [vmem:[#allocation14_spill] sm:$0xff] %v7195_v12  ;;  %v3921_v1 = vld [vmem:[%s9419_s22 + $0x98] sm:$0xff]  ;;  %v3936_v32 = vld [vmem:[%s9419_s22 + $0x128] sm:$0xff] }
 0x2e1   :  { %2326 = vmatpush.msrb.mxu0 %v9713_v10  ;;  %2234 = vmatpush.msra.mxu2 %v6562_v23  ;;  %v2140_v10 = vsel %vm192_vm3, %v2139_v44, %v2136_v45  ;;  %v2265_v23 = vpop.permute.xlu2 %2264  ;;  %v1763_v53 = vpop.f32.mrf.mxu3 }
 0x2e2   :  { %2286 = vmatpush.msra.mxu1 %v9690_v36  ;;  %2569 = vmatpush.msrb.mxu3 %v7186_v27  ;;  %v2268_v36 = vpop.permute.xlu0 %2267  ;;  %v7257_v28 = vsel %vm330_vm4, %v9735_v43, %v2265_v23  ;;  %v3930_v43 = vld [vmem:[%s9419_s22 + $0x158] sm:$0xff] }
 0x2e3   :  { %2327 = vmatpush.msrb.mxu0 %v6355_v26  ;;  %3666 = vmatmul.msk.f32.vlgmr.msrb.gmra.mxu2 %vm194_vm1, %v2136_v45  ;;  %v7211_v26 = vld [vmem:[%s9036_s3 + $0x70] sm:$0xff]  ;;  %v7311_v45 = vld [vmem:[%s9036_s3] sm:$0xff] }
 0x2e4   :  { %2235 = vmatpush.msra.mxu2 %v6580_v14  ;;  %2287 = vmatpush.msra.mxu1 %v9691_v58  ;;  %9733 = vst [vmem:[#allocation49_spill] sm:$0xff] %v7211_v26  ;;  %v3909_v14 = vld [vmem:[%s9419_s22 + $0x220] sm:$0xff]  ;;  %v7224_v58 = vsel %vm190_vm2, %v2265_v23, %v2268_v36  ;;  %v3925_v23 = vld [vmem:[%s9419_s22 + $0x78] sm:$0xff] }
 0x2e5   :  { %2328 = vmatpush.msrb.mxu0 %v6367_v7  ;;  %2570 = vmatpush.msrb.mxu3 %v7195_v12  ;;  %v7221_v7 = vld [vmem:[%s9036_s3 + $0x60] sm:$0xff]  ;;  %v3926_v36 = vld [vmem:[%s9419_s22 + $0x178] sm:$0xff] }
 0x2e6   :  { %2179 = vmatmul.f32.vlgmr.msrb.gmra.mxu1 %v2140_v10  ;;  %2236 = vmatpush.msra.mxu2 %v6595_v8  ;;  %v7228_v8 = vpop.f32.mrf.mxu0 }
 0x2e7   :  { %2288 = vmatpush.msra.mxu1 %v9734_v63  ;;  %2329 = vmatpush.msrb.mxu0 %v3909_v14  ;;  %v9740_v14 = vld [vmem:[#allocation18_spill] sm:$0xff] }
 0x2e8   :  { %2571 = vmatpush.msrb.mxu3 %v7211_v26  ;;  %2237 = vmatpush.msra.mxu2 %v6609_v16  ;;  %v7253_v16 = vld [vmem:[%s9036_s3 + $0x40] sm:$0xff] }
 0x2e9   :  { %2289 = vmatpush.msra.mxu1 %v6619_v54  ;;  %2330 = vmatpush.msrb.mxu0 %v3910_v0  ;;  %v3911_v54 = vld [vmem:[%s9419_s22 + $0x200] sm:$0xff]  ;;  %v3928_v0 = vld [vmem:[%s9419_s22 + $0x168] sm:$0xff] }
 0x2ea   :  { %2572 = vmatpush.msrb.mxu3 %v7221_v7  ;;  %2219 = vmatmul.f32.vlgmr.msra.gmra.mxu0 %v7029_v50  ;;  %v1803_v50 = vpop.f32.mrf.mxu2 }
 0x2eb   :  { %3668 = vmatmul.msk.f32.vlgmr.msra.gmra.mxu3 %vm192_vm3, %v7224_v58  ;;  %2238 = vmatpush.msra.mxu2 %v6629_v31  ;;  %v1743_v31 = vpop.f32.mrf.mxu1  ;;  %v1804_v61 = vadd.f32 %v1803_v50, %v9579_v20  ;;  %v3929_v50 = vld [vmem:[%s9419_s22 + $0x58] sm:$0xff] }
 0x2ec   :  { %2290 = vmatpush.msra.mxu1 %v6635_v62  ;;  %2331 = vmatpush.msrb.mxu0 %v3911_v54  ;;  %v3912_v62 = vld [vmem:[%s9419_s22 + $0x1f8] sm:$0xff]  ;;  %v1744_v57 = vadd.f32 %v1743_v31, %v9627_v24  ;;  %v7383_v54 = vld [vmem:[%s9036_s3 + $0x1d0] sm:$0xff]  ;;  %v7396_v31 = vld [vmem:[%s9036_s3 + $0x1c0] sm:$0xff] }
 0x2ed   :  { %2573 = vmatpush.msrb.mxu3 %v7241_v19  ;;  %2239 = vmatmul.f32.vlgmr.msra.gmra.mxu2 %v2140_v10  ;;  %v3922_v10 = vld [vmem:[%s9419_s22 + $0x198] sm:$0xff]  ;;  %9742 = vst [vmem:[#allocation8_spill] sm:$0xff] %v7383_v54 }
 0x2ee   :  { %2336 = vmatpush.msrb.mxu2 %v7056_v33  ;;  %2356 = vmatpush.msra.mxu0 %v3912_v62  ;;  %v1823_v33 = vpop.f32.mrf.mxu0  ;;  %v1764_v4 = vadd.f32 %v1763_v53, %v1744_v57  ;;  %9743 = vst [vmem:[#allocation9_spill] sm:$0xff] %v7396_v31  ;;  %v3931_v62 = vld [vmem:[%s9419_s22 + $0x48] sm:$0xff]  ;;  %v3933_v57 = vld [vmem:[%s9419_s22 + $0x38] sm:$0xff]  ;;  %v7422_v53 = vld [vmem:[%s9036_s3 + $0x1a0] sm:$0xff] }
 0x2ef   :  { %2291 = vmatpush.msra.mxu1 %v6649_v30  ;;  %2574 = vmatpush.msrb.mxu3 %v7253_v16  ;;  %v3913_v30 = vld [vmem:[%s9419_s22 + $0x1e8] sm:$0xff]  ;;  %v1824_v37 = vadd.f32 %v1823_v33, %v1804_v61  ;;  %v7409_v33 = vld [vmem:[%s9036_s3 + $0x1b0] sm:$0xff]  ;;  %9745 = vst [vmem:[#allocation10_spill] sm:$0xff] %v7422_v53 }
 0x2f0   :  { %2292 = vmatmul.f32.vlgmr.msra.gmra.mxu1 %v7257_v28  ;;  %2337 = vmatpush.msrb.mxu2 %v7065_v38  ;;  %v1605_v38 = vadd.f32 %v7166_v42, %v9627_v24  ;;  %v1784_v6 = vadd.f32 %v7228_v8, %v1764_v4  ;;  %v3927_v8 = vld [vmem:[%s9419_s22 + $0x68] sm:$0xff]  ;;  %9744 = vst [vmem:[#allocation22_spill] sm:$0xff] %v7409_v33  ;;  %v3938_v4 = vld [vmem:[%s9419_s22 + $0x118] sm:$0xff] }
 0x2f1   :  { %2357 = vmatpush.msra.mxu0 %v3913_v30  ;;  %2384 = vmatpush.msrb.mxu1 %v6661_v49  ;;  %v3914_v49 = vld [vmem:[%s9419_s22 + $0x1d8] sm:$0xff]  ;;  %v3932_v61 = vld [vmem:[%s9419_s22 + $0x148] sm:$0xff] }
 0x2f2   :  { %2575 = vmatpush.msrb.mxu3 %v7269_v55  ;;  %2338 = vmatpush.msrb.mxu2 %v7074_v35  ;;  %v9736_v35 = vmov 0.0   ;;  %v1625_v15 = vadd.f32 %v7200_v5, %v1605_v38  ;;  %v3924_v5 = vld [vmem:[%s9419_s22 + $0x188] sm:$0xff]  ;;  %v3934_v30 = vld [vmem:[%s9419_s22 + $0x138] sm:$0xff] }
 0x2f3   :  { %2358 = vmatpush.msra.mxu0 %v3914_v49  ;;  %2385 = vmatpush.msrb.mxu1 %v6674_v9  ;;  %v3916_v9 = vld [vmem:[%s9419_s22 + $0x1c8] sm:$0xff]  ;;  %v1843_v21 = vpop.f32.mrf.mxu1  ;;  %v7435_v49 = vld [vmem:[%s9036_s3 + $0x190] sm:$0xff] }
 0x2f4   :  { %2576 = vmatpush.msrb.mxu3 %v7282_v29  ;;  %2332 = vmatmul.f32.vlgmr.msrb.gmra.mxu0 %v9736_v35  ;;  %v1844_v42 = vadd.f32 %v1843_v21, %v1824_v37  ;;  %v3935_v38 = vld [vmem:[%s9419_s22 + $0x28] sm:$0xff]  ;;  %9746 = vst [vmem:[#allocation21_spill] sm:$0xff] %v7435_v49  ;;  %v3937_v37 = vld [vmem:[%s9419_s22 + $0x18] sm:$0xff] }
 0x2f5   :  { %2339 = vmatpush.msrb.mxu2 %v3915_v51  ;;  %2359 = vmatpush.msra.mxu0 %v3916_v9  ;;  %v7450_v51 = vld [vmem:[%s9036_s3 + $0x180] sm:$0xff]  ;;  %v7455_v9 = vld [vmem:[%s9036_s3 + $0xf8] sm:$0xff]  ;;  %v3939_v21 = vld [vmem:[%s9419_s22 + $0x8] sm:$0xff] }
 0x2f6   :  { %2386 = vmatpush.msrb.mxu1 %v6685_v18  ;;  %2577 = vmatpush.msrb.mxu3 %v7297_v13  ;;  %v1705_v18 = vadd.f32 %v7226_v22, %v1685_v56  ;;  %v7370_v22 = vld [vmem:[%s9036_s3 + $0x1e0] sm:$0xff]  ;;  %v3678_v56 = vpop.permute.xlu1 %3677 }
 0x2f7   :  { %2340 = vmatpush.msrb.mxu2 %v3917_v52  ;;  %2360 = vmatpush.msra.mxu0 %v3918_v34  ;;  %9741 = vst [vmem:[#allocation17_spill] sm:$0xff] %v7370_v22  ;;  %v7466_v52 = vld [vmem:[%s9036_s3 + $0x1f8] sm:$0xff]  ;;  %v7473_v34 = vld [vmem:[%s9036_s3 + $0x170] sm:$0xff] }
 0x2f8   :  { %2387 = vmatpush.msrb.mxu1 %v6695_v25  ;;  %2578 = vmatpush.msrb.mxu3 %v7311_v45  ;;  %v1645_v25 = vadd.f32 %v7146_v40, %v1625_v15  ;;  %v2458_v44 = vmax.f32 %v1705_v18, %v1844_v42  ;;  %v3923_v40 = vld [vmem:[%s9419_s22 + $0x88] sm:$0xff]  ;;  %9747 = vst [vmem:[#allocation26_spill] sm:$0xff] %v7466_v52  ;;  %v3680_v42 = vunpack.i.h.bf16 %v3678_v56  ;;  %v3679_v18 = vunpack.i.l.bf16 %v3678_v56 }
 0x2f9   :  { %2341 = vmatpush.msrb.mxu2 %v3919_v60  ;;  %2361 = vmatpush.msra.mxu0 %v3920_v11  ;;  %v3940_v15 = vld [vmem:[%s9419_s22 + $0x108] sm:$0xff]  ;;  %9748 = vst [vmem:[#allocation5_spill] sm:$0xff] %v7473_v34  ;;  %v7492_v60 = vld [vmem:[%s9036_s3 + $0x160] sm:$0xff]  ;;  %v7499_v11 = vld [vmem:[%s9036_s3 + $0xd8] sm:$0xff] }
 0x2fa   :  { %2388 = vmatpush.msrb.mxu1 %v6704_v46  ;;  %2643 = vmatpush.msra.mxu3 %v7122_v48  ;;  %v7343_v46 = vmax.f32 %v1645_v25, %v1784_v6  ;;  %v7480_v6 = vld [vmem:[%s9036_s3 + $0xe8] sm:$0xff]  ;;  %v7504_v25 = vld [vmem:[%s9036_s3 + $0x1d8] sm:$0xff] }
 0x2fb   :  { %2342 = vmatpush.msrb.mxu2 %v3921_v1  ;;  %2362 = vmatpush.msra.mxu0 %v3922_v10  ;;  %v2405_v1 = vsel %vm2404_vm6, %v3679_v18, %v3680_v42  ;;  %v7519_v10 = vld [vmem:[%s9036_s3 + $0xc8] sm:$0xff] }
 0x2fc   :  { %2389 = vmatpush.msrb.mxu1 %v6714_v47  ;;  %2644 = vmatpush.msra.mxu3 %v7131_v39  ;;  %9737 = vst [vmem:[#allocation55_spill] sm:$0xff] %v7343_v46  ;;  %v7356_v47 = vld [vmem:[%s9036_s3 + $0x1f0] sm:$0xff]  ;;  %v3701_v63 = vpack.i.bf16 %v2458_v44, %v7343_v46  ;;  %v7641_v56 = vld [vmem:[%s9036_s3 + $0x168] sm:$0xff] }
 0x2fd   :  { %2343 = vmatpush.msrb.mxu2 %v3923_v40  ;;  %2363 = vmatpush.msra.mxu0 %v3924_v5  ;;  %9739 = vst [vmem:[#allocation56_spill] sm:$0xff] %v7356_v47  ;;  %v7511_v44 = vld [vmem:[%s9036_s3 + $0x150] sm:$0xff]  ;;  %v7524_v40 = vld [vmem:[%s9036_s3 + $0x1c8] sm:$0xff]  ;;  %v7533_v5 = vld [vmem:[%s9036_s3 + $0x140] sm:$0xff] }
 0x2fe   :  { %2390 = vmatpush.msrb.mxu1 %v9738_v17  ;;  %2645 = vmatpush.msra.mxu3 %v7140_v59  ;;  %v7538_v17 = vld [vmem:[%s9036_s3 + $0xb8] sm:$0xff]  ;;  %9756 = vst [vmem:[#allocation25_spill] sm:$0xff] %v7641_v56  ;;  %v7664_v42 = vld [vmem:[%s9036_s3 + $0x48] sm:$0xff] }
 0x2ff   :  { %2344 = vmatpush.msrb.mxu2 %v3925_v23  ;;  %2364 = vmatpush.msra.mxu0 %v3926_v36  ;;  %v9749_v23 = vld [vmem:[#allocation34_spill] sm:$0xff]  ;;  %9759 = vst [vmem:[#allocation12_spill] sm:$0xff] %v7664_v42 }
 0x300   :  { %2391 = vmatpush.msrb.mxu1 %v9740_v14  ;;  %2646 = vmatpush.msra.mxu3 %v7153_v2  ;;  %v2407_v36 = vmax.f32 %v9749_v23, %v2405_v1  ;;  %v7554_v14 = vld [vmem:[%s9036_s3 + $0x130] sm:$0xff]  ;;  %v7669_v18 = vld [vmem:[%s9036_s3 + $0x148] sm:$0xff]  ;;  %v7678_v1 = vld [vmem:[%s9036_s3 + $0x38] sm:$0xff] }
 0x301   :  { %2345 = vmatpush.msrb.mxu2 %v3927_v8  ;;  %2365 = vmatpush.msra.mxu0 %v3928_v0  ;;  %v7561_v8 = vld [vmem:[%s9036_s3 + $0xa8] sm:$0xff]  ;;  %9760 = vst [vmem:[#allocation33_spill] sm:$0xff] %v7678_v1  ;;  %v7683_v23 = vld [vmem:[%s9036_s3 + $0x138] sm:$0xff] }
 0x302   :  { %2583 = vmatpush.msra.mxu1 %v7356_v47  ;;  %2647 = vmatpush.msra.mxu3 %v7162_v3  ;;  %v7566_v0 = vld [vmem:[%s9036_s3 + $0x1a8] sm:$0xff]  ;;  %9761 = vst [vmem:[#allocation48_spill] sm:$0xff] %v7683_v23 }
 0x303   :  { %3702 = vrot.lane.b32.xlu0 %v3701_v63, %s4035_s30  ;;  %2346 = vmatpush.msrb.mxu2 %v3929_v50  ;;  %v7546_v63 = vld [vmem:[%s9036_s3 + $0x1b8] sm:$0xff]  ;;  %9750 = vst [vmem:[#allocation32_spill] sm:$0xff] %v7566_v0  ;;  %v7575_v50 = vmax.f32 %v2407_v36, 0.0  ;;  %v7692_v36 = vld [vmem:[%s9036_s3 + $0x28] sm:$0xff] }
 0x304   :  { %2584 = vmatpush.msra.mxu1 %v7370_v22  ;;  %2366 = vmatpush.msra.mxu0 %v3930_v43  ;;  %v7582_v43 = vld [vmem:[%s9036_s3 + $0x98] sm:$0xff]  ;;  %9762 = vst [vmem:[#allocation35_spill] sm:$0xff] %v7692_v36  ;;  %v7697_v46 = vld [vmem:[%s9036_s3 + $0x128] sm:$0xff] }
 0x305   :  { %2648 = vmatpush.msra.mxu3 %v7175_v41  ;;  %2347 = vmatpush.msrb.mxu2 %v3931_v62  ;;  %v7589_v62 = vld [vmem:[%s9036_s3 + $0x198] sm:$0xff]  ;;  %9763 = vst [vmem:[#allocation39_spill] sm:$0xff] %v7697_v46 }
 0x306   :  { %2585 = vmatpush.msra.mxu1 %v7383_v54  ;;  %2367 = vmatpush.msra.mxu0 %v3932_v61  ;;  %v7594_v61 = vld [vmem:[%s9036_s3 + $0x110] sm:$0xff] }
 0x307   :  { %2649 = vmatpush.msra.mxu3 %v7186_v27  ;;  %2348 = vmatpush.msrb.mxu2 %v3933_v57  ;;  %9751 = vst [vmem:[#allocation29_spill] sm:$0xff] %v7594_v61  ;;  %v7601_v57 = vld [vmem:[%s9036_s3 + $0x88] sm:$0xff] }
 0x308   :  { %2586 = vmatpush.msra.mxu1 %v7396_v31  ;;  %2368 = vmatpush.msra.mxu0 %v3934_v30  ;;  %9752 = vst [vmem:[#allocation7_spill] sm:$0xff] %v7601_v57  ;;  %v7608_v30 = vld [vmem:[%s9036_s3 + $0x188] sm:$0xff] }
 0x309   :  { %2650 = vmatpush.msra.mxu3 %v7195_v12  ;;  %2349 = vmatpush.msrb.mxu2 %v3935_v38  ;;  %9753 = vst [vmem:[#allocation36_spill] sm:$0xff] %v7608_v30  ;;  %v7613_v38 = vld [vmem:[%s9036_s3 + $0x100] sm:$0xff] }
 0x30a   :  { %2587 = vmatpush.msra.mxu1 %v7409_v33  ;;  %2369 = vmatpush.msra.mxu0 %v3936_v32  ;;  %9754 = vst [vmem:[#allocation20_spill] sm:$0xff] %v7613_v38  ;;  %v7620_v32 = vld [vmem:[%s9036_s3 + $0x78] sm:$0xff] }
 0x30b   :  { %2651 = vmatpush.msra.mxu3 %v7211_v26  ;;  %2350 = vmatpush.msrb.mxu2 %v3937_v37  ;;  %v7627_v37 = vld [vmem:[%s9036_s3 + $0x178] sm:$0xff] }
 0x30c   :  { %2588 = vmatpush.msra.mxu1 %v7422_v53  ;;  %2370 = vmatpush.msra.mxu0 %v3938_v4  ;;  %9755 = vst [vmem:[#allocation38_spill] sm:$0xff] %v7627_v37  ;;  %v7636_v4 = vld [vmem:[%s9036_s3 + $0x68] sm:$0xff] }
 0x30d   :  { %2652 = vmatpush.msra.mxu3 %v7221_v7  ;;  %2351 = vmatpush.msrb.mxu2 %v3939_v21  ;;  %v7650_v21 = vld [vmem:[%s9036_s3 + $0x58] sm:$0xff] }
 0x30e   :  { %2589 = vmatpush.msra.mxu1 %v7435_v49  ;;  %2371 = vmatpush.msra.mxu0 %v3940_v15  ;;  %9757 = vst [vmem:[#allocation19_spill] sm:$0xff] %v7650_v21  ;;  %v7655_v15 = vld [vmem:[%s9036_s3 + $0x158] sm:$0xff] }
 0x30f   :  { %2653 = vmatpush.msra.mxu3 %v7241_v19  ;;  %2352 = vmatmul.f32.vlgmr.msrb.gmra.mxu2 %v7257_v28  ;;  %v7485_v28 = vld [vmem:[%s9036_s3 + $0x1e8] sm:$0xff]  ;;  %9758 = vst [vmem:[#allocation47_spill] sm:$0xff] %v7655_v15 }
 0x310   :  { %2590 = vmatpush.msra.mxu1 %v7450_v51  ;;  %2603 = vmatpush.msra.mxu2 %v7455_v9 }
 0x311   :  { %2623 = vmatpush.msrb.mxu0 %v7466_v52  ;;  %2654 = vmatpush.msra.mxu3 %v7253_v16 }
 0x312   :  { %2579 = vmatmul.f32.vlgmr.msrb.gmra.mxu3 %v9736_v35  ;;  %2591 = vmatpush.msra.mxu1 %v7473_v34 }
 0x313   :  { %2604 = vmatpush.msra.mxu2 %v7480_v6  ;;  %2624 = vmatpush.msrb.mxu0 %v7485_v28 }
 0x314   :  { %2655 = vmatpush.msra.mxu3 %v7269_v55  ;;  %2592 = vmatpush.msra.mxu1 %v7492_v60 }
 0x315   :  { %2605 = vmatpush.msra.mxu2 %v7499_v11  ;;  %2625 = vmatpush.msrb.mxu0 %v7504_v25 }
 0x316   :  { %2656 = vmatpush.msra.mxu3 %v7282_v29  ;;  %2593 = vmatpush.msra.mxu1 %v7511_v44 }
 0x317   :  { %2606 = vmatpush.msra.mxu2 %v7519_v10  ;;  %2626 = vmatpush.msrb.mxu0 %v7524_v40 }
 0x318   :  { %2657 = vmatpush.msra.mxu3 %v7297_v13  ;;  %3669 = vmatmul.msk.f32.vlgmr.msra.gmra.mxu0 %vm192_vm3, %v7224_v58  ;;  %v7573_v58 = vld [vmem:[%s9036_s3 + $0x120] sm:$0xff] }
 0x319   :  { %2594 = vmatpush.msra.mxu1 %v7533_v5  ;;  %2607 = vmatpush.msra.mxu2 %v7538_v17 }
 0x31a   :  { %2627 = vmatpush.msrb.mxu0 %v7546_v63  ;;  %2392 = vmatmul.f32.vlgmr.msrb.gmra.mxu1 %v9736_v35 }
 0x31b   :  { %2658 = vmatpush.msra.mxu3 %v7311_v45  ;;  %2595 = vmatpush.msra.mxu1 %v7554_v14 }
 0x31c   :  { %2608 = vmatpush.msra.mxu2 %v7561_v8  ;;  %2628 = vmatpush.msrb.mxu0 %v7566_v0 }
 0x31d   :  { %2659 = vmatmul.f32.vlgmr.msra.gmra.mxu3 %v7575_v50  ;;  %2596 = vmatpush.msra.mxu1 %v7573_v58 }
 0x31e   :  { %2723 = vmatpush.msrb.mxu3 %v7122_v48  ;;  %2609 = vmatpush.msra.mxu2 %v7582_v43 }
 0x31f   :  { %2629 = vmatpush.msrb.mxu0 %v7589_v62  ;;  %2597 = vmatpush.msra.mxu1 %v7594_v61 }
 0x320   :  { %2724 = vmatpush.msrb.mxu3 %v7131_v39  ;;  %2610 = vmatpush.msra.mxu2 %v7601_v57 }
 0x321   :  { %2630 = vmatpush.msrb.mxu0 %v7608_v30  ;;  %2598 = vmatpush.msra.mxu1 %v7613_v38 }
 0x322   :  { %2725 = vmatpush.msrb.mxu3 %v7140_v59  ;;  %2611 = vmatpush.msra.mxu2 %v7620_v32 }
 0x323   :  { %2631 = vmatpush.msrb.mxu0 %v7627_v37  ;;  %2599 = vmatmul.f32.vlgmr.msra.gmra.mxu1 %v7575_v50 }
 0x324   :  { %2726 = vmatpush.msrb.mxu3 %v7153_v2  ;;  %2663 = vmatpush.msrb.mxu1 %v7356_v47 }
 0x325   :  { %2612 = vmatpush.msra.mxu2 %v7636_v4  ;;  %2632 = vmatpush.msrb.mxu0 %v7641_v56 }
 0x326   :  { %2727 = vmatpush.msrb.mxu3 %v7162_v3  ;;  %2664 = vmatpush.msrb.mxu1 %v7370_v22 }
 0x327   :  { %2613 = vmatpush.msra.mxu2 %v7650_v21  ;;  %2633 = vmatpush.msrb.mxu0 %v7655_v15 }
 0x328   :  { %2728 = vmatpush.msrb.mxu3 %v7175_v41  ;;  %2665 = vmatpush.msrb.mxu1 %v7383_v54 }
 0x329   :  { %2614 = vmatpush.msra.mxu2 %v7664_v42  ;;  %2634 = vmatpush.msrb.mxu0 %v7669_v18 }
 0x32a   :  { %2729 = vmatpush.msrb.mxu3 %v7186_v27  ;;  %2666 = vmatpush.msrb.mxu1 %v7396_v31  ;;  %v7706_v31 = vld [vmem:[%s9036_s3 + $0x18] sm:$0xff] }
 0x32b   :  { %2615 = vmatpush.msra.mxu2 %v7678_v1  ;;  %2635 = vmatpush.msrb.mxu0 %v7683_v23  ;;  %9764 = vst [vmem:[#allocation23_spill] sm:$0xff] %v7706_v31  ;;  %v7711_v27 = vld [vmem:[%s9036_s3 + $0x118] sm:$0xff]  ;;  %v3683_v23 = vpop.permute.xlu2 %3682 }
 0x32c   :  { %2730 = vmatpush.msrb.mxu3 %v7195_v12  ;;  %2667 = vmatpush.msrb.mxu1 %v7409_v33  ;;  %9765 = vst [vmem:[#allocation41_spill] sm:$0xff] %v7711_v27  ;;  %v7720_v33 = vld [vmem:[%s9036_s3 + $0x8] sm:$0xff] }
 0x32d   :  { %2616 = vmatpush.msra.mxu2 %v7692_v36  ;;  %2636 = vmatpush.msrb.mxu0 %v7697_v46  ;;  %9766 = vst [vmem:[#allocation11_spill] sm:$0xff] %v7720_v33  ;;  %v7725_v12 = vld [vmem:[%s9036_s3 + $0x108] sm:$0xff]  ;;  %v7729_v46 = vpop.f32.mrf.mxu2 }
 0x32e   :  { %2731 = vmatpush.msrb.mxu3 %v7211_v26  ;;  %2668 = vmatpush.msrb.mxu1 %v7422_v53  ;;  %v3685_v53 = vunpack.i.h.bf16 %v3683_v23  ;;  %v3684_v26 = vunpack.i.l.bf16 %v3683_v23 }
 0x32f   :  { %2617 = vmatpush.msra.mxu2 %v7706_v31  ;;  %2637 = vmatpush.msrb.mxu0 %v7711_v27  ;;  %v1882_v27 = vpop.f32.mrf.mxu3  ;;  %v1942_v31 = vpop.f32.mrf.mxu0 }
 0x330   :  { %2732 = vmatpush.msrb.mxu3 %v7221_v7  ;;  %2669 = vmatpush.msrb.mxu1 %v7435_v49  ;;  %v2417_v23 = vsel %vm2404_vm6, %v3684_v26, %v3685_v53 }
 0x331   :  { %2618 = vmatpush.msra.mxu2 %v7720_v33  ;;  %2638 = vmatpush.msrb.mxu0 %v7725_v12 }
 0x332   :  { %2733 = vmatpush.msrb.mxu3 %v7241_v19  ;;  %2619 = vmatmul.f32.vlgmr.msra.gmra.mxu2 %v9736_v35  ;;  %v9767_v35 = vld [vmem:[#allocation42_spill] sm:$0xff] }
 0x333   :  { %2639 = vmatmul.f32.vlgmr.msrb.gmra.mxu0 %v7575_v50  ;;  %2670 = vmatpush.msrb.mxu1 %v7450_v51 }
 0x334   :  { %2683 = vmatpush.msrb.mxu2 %v7455_v9  ;;  %2703 = vmatpush.msra.mxu0 %v7466_v52  ;;  %v2419_v52 = vmax.f32 %v9767_v35, %v2417_v23 }
 0x335   :  { %2734 = vmatpush.msrb.mxu3 %v7253_v16  ;;  %2671 = vmatpush.msrb.mxu1 %v7473_v34  ;;  %v1902_v34 = vpop.f32.mrf.mxu1  ;;  %v1962_v26 = vpop.f32.mrf.mxu2 }
 0x336   :  { %2684 = vmatpush.msrb.mxu2 %v7480_v6  ;;  %2704 = vmatpush.msra.mxu0 %v7485_v28  ;;  %v7759_v53 = vmax.f32 %v2419_v52, 0.0 }
 0x337   :  { %2735 = vmatpush.msrb.mxu3 %v7269_v55  ;;  %2672 = vmatpush.msrb.mxu1 %v7492_v60  ;;  %v1982_v23 = vpop.f32.mrf.mxu3  ;;  %v2061_v35 = vpop.f32.mrf.mxu0 }
 0x338   :  { %2685 = vmatpush.msrb.mxu2 %v7499_v11  ;;  %2705 = vmatpush.msra.mxu0 %v7504_v25 }
 0x339   :  { %2736 = vmatpush.msrb.mxu3 %v7282_v29  ;;  %2673 = vmatpush.msrb.mxu1 %v7511_v44 }
 0x33a   :  { %2686 = vmatpush.msrb.mxu2 %v7519_v10  ;;  %2706 = vmatpush.msra.mxu0 %v7524_v40 }
 0x33b   :  { %2737 = vmatpush.msrb.mxu3 %v7297_v13  ;;  %2674 = vmatpush.msrb.mxu1 %v7533_v5 }
 0x33c   :  { %2687 = vmatpush.msrb.mxu2 %v7538_v17  ;;  %2707 = vmatpush.msra.mxu0 %v7546_v63 }
 0x33d   :  { %2738 = vmatpush.msrb.mxu3 %v7311_v45  ;;  %2675 = vmatpush.msrb.mxu1 %v7554_v14  ;;  %v2081_v52 = vpop.f32.mrf.mxu2 }
 0x33e   :  { %2688 = vmatpush.msrb.mxu2 %v7561_v8  ;;  %2708 = vmatpush.msra.mxu0 %v7566_v0  ;;  %v2021_v0 = vpop.f32.mrf.mxu1 }
 0x33f   :  { %2739 = vmatmul.f32.vlgmr.msrb.gmra.mxu3 %v7759_v53  ;;  %2676 = vmatpush.msrb.mxu1 %v7573_v58 }
 0x340   :  { %2803 = vmatpush.msra.mxu3 %v7122_v48  ;;  %2689 = vmatpush.msrb.mxu2 %v7582_v43 }
 0x341   :  { %2709 = vmatpush.msra.mxu0 %v7589_v62  ;;  %2677 = vmatpush.msrb.mxu1 %v7594_v61  ;;  %v2082_v61 = vadd.f32 %v2081_v52, %v9579_v20  ;;  %v1943_v52 = vadd.f32 %v1942_v31, %v9579_v20  ;;  %v9770_v20 = vld [vmem:[#allocation48_spill] sm:$0xff] }
 0x342   :  { %2804 = vmatpush.msra.mxu3 %v7131_v39  ;;  %2690 = vmatpush.msrb.mxu2 %v7601_v57  ;;  %v2101_v57 = vpop.f32.mrf.mxu0 }
 0x343   :  { %2710 = vmatpush.msra.mxu0 %v7608_v30  ;;  %2678 = vmatpush.msrb.mxu1 %v7613_v38  ;;  %v2022_v30 = vadd.f32 %v2021_v0, %v9627_v24  ;;  %v2041_v38 = vpop.f32.mrf.mxu3 }
 0x344   :  { %2805 = vmatpush.msra.mxu3 %v7140_v59  ;;  %2691 = vmatpush.msrb.mxu2 %v7620_v32 }
 0x345   :  { %2711 = vmatpush.msra.mxu0 %v7627_v37  ;;  %2679 = vmatmul.f32.vlgmr.msrb.gmra.mxu1 %v7759_v53  ;;  %v1883_v37 = vadd.f32 %v1882_v27, %v9627_v24  ;;  %v2042_v0 = vadd.f32 %v2041_v38, %v2022_v30  ;;  %v9769_v27 = vld [vmem:[#allocation9_spill] sm:$0xff] }
 0x346   :  { %2806 = vmatpush.msra.mxu3 %v7153_v2  ;;  %2743 = vmatpush.msra.mxu1 %v7356_v47  ;;  %v2102_v47 = vadd.f32 %v2101_v57, %v2082_v61  ;;  %v2121_v31 = vpop.f32.mrf.mxu1  ;;  %v9771_v57 = vld [vmem:[#allocation14_spill] sm:$0xff] }
 0x347   :  { %2692 = vmatpush.msrb.mxu2 %v7636_v4  ;;  %2712 = vmatpush.msra.mxu0 %v7641_v56  ;;  %v1963_v56 = vadd.f32 %v1962_v26, %v1943_v52  ;;  %v1903_v24 = vadd.f32 %v1902_v34, %v1883_v37  ;;  %v2062_v38 = vadd.f32 %v2061_v35, %v2042_v0  ;;  %v9773_v26 = vld [vmem:[#allocation39_spill] sm:$0xff]  ;;  %v9774_v52 = vld [vmem:[#allocation49_spill] sm:$0xff]  ;;  %v3688_v34 = vpop.permute.xlu0 %3687 }
 0x348   :  { %2807 = vmatpush.msra.mxu3 %v7162_v3  ;;  %2744 = vmatpush.msra.mxu1 %v7370_v22  ;;  %v9768_v22 = vld [vmem:[#allocation24_spill] sm:$0xff]  ;;  %v2122_v61 = vadd.f32 %v2121_v31, %v2102_v47  ;;  %v9777_v47 = vld [vmem:[#allocation41_spill] sm:$0xff]  ;;  %v3689_v35 = vunpack.i.l.bf16 %v3688_v34 }
 0x349   :  { %2693 = vmatpush.msrb.mxu2 %v7650_v21  ;;  %2713 = vmatpush.msra.mxu0 %v7655_v15  ;;  %v1983_v30 = vadd.f32 %v1982_v23, %v1963_v56  ;;  %v1923_v37 = vadd.f32 %v7729_v46, %v1903_v24  ;;  %v3690_v23 = vunpack.i.h.bf16 %v3688_v34  ;;  %v9779_v46 = vld [vmem:[#allocation26_spill] sm:$0xff]  ;;  %v9780_v0 = vld [vmem:[#allocation5_spill] sm:$0xff]  ;;  %v9784_v34 = vld [vmem:[#allocation7_spill] sm:$0xff] }
 0x34a   :  { %2808 = vmatpush.msra.mxu3 %v7175_v41  ;;  %2745 = vmatpush.msra.mxu1 %v7383_v54  ;;  %v9772_v54 = vld [vmem:[#allocation22_spill] sm:$0xff] }
 0x34b   :  { %2694 = vmatpush.msrb.mxu2 %v7664_v42  ;;  %2714 = vmatpush.msra.mxu0 %v7669_v18  ;;  %v7810_v56 = vmax.f32 %v1923_v37, %v2062_v38  ;;  %v2429_v31 = vsel %vm2404_vm6, %v3689_v35, %v3690_v23  ;;  %v9783_v38 = vld [vmem:[#allocation29_spill] sm:$0xff]  ;;  %v9785_v37 = vld [vmem:[#allocation36_spill] sm:$0xff]  ;;  %v9787_v35 = vld [vmem:[#allocation38_spill] sm:$0xff] }
 0x34c   :  { %2809 = vmatpush.msra.mxu3 %v9768_v22  ;;  %2746 = vmatpush.msra.mxu1 %v9769_v27  ;;  %v9775_v27 = vld [vmem:[#allocation10_spill] sm:$0xff]  ;;  %v9786_v23 = vld [vmem:[#allocation20_spill] sm:$0xff] }
 0x34d   :  { %2695 = vmatpush.msrb.mxu2 %v7678_v1  ;;  %2715 = vmatpush.msra.mxu0 %v9770_v20  ;;  %v2470_v1 = vmax.f32 %v1983_v30, %v2122_v61  ;;  %v9776_v20 = vld [vmem:[#allocation23_spill] sm:$0xff]  ;;  %9778 = vst [vmem:[#allocation57_spill] sm:$0xff] %v7810_v56  ;;  %v9782_v30 = vld [vmem:[#allocation32_spill] sm:$0xff] }
 0x34e   :  { %2810 = vmatpush.msra.mxu3 %v9771_v57  ;;  %2747 = vmatpush.msra.mxu1 %v9772_v54 }
 0x34f   :  { %2696 = vmatpush.msrb.mxu2 %v7692_v36  ;;  %2716 = vmatpush.msra.mxu0 %v9773_v26  ;;  %v3706_v24 = vpack.i.bf16 %v2470_v1, %v7810_v56  ;;  %v9792_v56 = vld [vmem:[#allocation9_spill] sm:$0xff] }
 0x350   :  { %2811 = vmatpush.msra.mxu3 %v9774_v52  ;;  %2748 = vmatpush.msra.mxu1 %v9775_v27 }
 0x351   :  { %2697 = vmatpush.msrb.mxu2 %v9776_v20  ;;  %2717 = vmatpush.msra.mxu0 %v9777_v47 }
 0x352   :  { %2812 = vmatpush.msra.mxu3 %v7221_v7  ;;  %2749 = vmatpush.msra.mxu1 %v7435_v49 }
 0x353   :  { %2698 = vmatpush.msrb.mxu2 %v7720_v33  ;;  %2718 = vmatpush.msra.mxu0 %v7725_v12 }
 0x354   :  { %2813 = vmatpush.msra.mxu3 %v7241_v19  ;;  %2699 = vmatmul.f32.vlgmr.msrb.gmra.mxu2 %v7575_v50  ;;  %v9781_v50 = vld [vmem:[#allocation6_spill] sm:$0xff] }
 0x355   :  { %2719 = vmatmul.f32.vlgmr.msra.gmra.mxu0 %v7759_v53  ;;  %2750 = vmatpush.msra.mxu1 %v7450_v51  ;;  %v2431_v1 = vmax.f32 %v9781_v50, %v2429_v31  ;;  %v9789_v31 = vld [vmem:[#allocation25_spill] sm:$0xff] }
 0x356   :  { %2763 = vmatpush.msra.mxu2 %v7455_v9  ;;  %2783 = vmatpush.msrb.mxu0 %v9779_v46  ;;  %v9790_v50 = vld [vmem:[#allocation17_spill] sm:$0xff] }
 0x357   :  { %2814 = vmatpush.msra.mxu3 %v7253_v16  ;;  %2751 = vmatpush.msra.mxu1 %v9780_v0  ;;  %v7839_v61 = vmax.f32 %v2431_v1, 0.0  ;;  %v9791_v1 = vld [vmem:[#allocation8_spill] sm:$0xff] }
 0x358   :  { %2764 = vmatpush.msra.mxu2 %v7480_v6  ;;  %2784 = vmatpush.msrb.mxu0 %v7485_v28 }
 0x359   :  { %2815 = vmatpush.msra.mxu3 %v7269_v55  ;;  %3707 = vrot.lane.b32.xlu1 %v3706_v24, %s4035_s30  ;;  %v9788_v24 = vld [vmem:[#allocation56_spill] sm:$0xff] }
 0x35a   :  { %2752 = vmatpush.msra.mxu1 %v7492_v60  ;;  %2765 = vmatpush.msra.mxu2 %v7499_v11 }
 0x35b   :  { %2785 = vmatpush.msrb.mxu0 %v7504_v25  ;;  %2816 = vmatpush.msra.mxu3 %v7282_v29 }
 0x35c   :  { %2753 = vmatpush.msra.mxu1 %v7511_v44  ;;  %2766 = vmatpush.msra.mxu2 %v7519_v10 }
 0x35d   :  { %2786 = vmatpush.msrb.mxu0 %v7524_v40  ;;  %2817 = vmatpush.msra.mxu3 %v7297_v13 }
 0x35e   :  { %2754 = vmatpush.msra.mxu1 %v7533_v5  ;;  %2767 = vmatpush.msra.mxu2 %v7538_v17 }
 0x35f   :  { %2787 = vmatpush.msrb.mxu0 %v7546_v63  ;;  %2818 = vmatpush.msra.mxu3 %v7311_v45 }
 0x360   :  { %2755 = vmatpush.msra.mxu1 %v7554_v14  ;;  %2768 = vmatpush.msra.mxu2 %v7561_v8 }
 0x361   :  { %2788 = vmatpush.msrb.mxu0 %v9782_v30  ;;  %2819 = vmatmul.f32.vlgmr.msra.gmra.mxu3 %v7839_v61 }
 0x362   :  { %2883 = vmatpush.msrb.mxu3 %v7122_v48  ;;  %2756 = vmatpush.msra.mxu1 %v7573_v58 }
 0x363   :  { %2769 = vmatpush.msra.mxu2 %v7582_v43  ;;  %2789 = vmatpush.msrb.mxu0 %v7589_v62 }
 0x364   :  { %2884 = vmatpush.msrb.mxu3 %v7131_v39  ;;  %2757 = vmatpush.msra.mxu1 %v9783_v38 }
 0x365   :  { %2770 = vmatpush.msra.mxu2 %v9784_v34  ;;  %2790 = vmatpush.msrb.mxu0 %v9785_v37 }
 0x366   :  { %2885 = vmatpush.msrb.mxu3 %v7140_v59  ;;  %2758 = vmatpush.msra.mxu1 %v9786_v23 }
 0x367   :  { %2771 = vmatpush.msra.mxu2 %v7620_v32  ;;  %2791 = vmatpush.msrb.mxu0 %v9787_v35 }
 0x368   :  { %2886 = vmatpush.msrb.mxu3 %v7153_v2  ;;  %2759 = vmatmul.f32.vlgmr.msra.gmra.mxu1 %v7839_v61 }
 0x369   :  { %2823 = vmatpush.msrb.mxu1 %v9788_v24  ;;  %2772 = vmatpush.msra.mxu2 %v7636_v4 }
 0x36a   :  { %2792 = vmatpush.msrb.mxu0 %v9789_v31  ;;  %2887 = vmatpush.msrb.mxu3 %v7162_v3  ;;  %v9793_v31 = vld [vmem:[#allocation33_spill] sm:$0xff]  ;;  %v9794_v3 = vld [vmem:[#allocation48_spill] sm:$0xff] }
 0x36b   :  { %2824 = vmatpush.msrb.mxu1 %v9790_v50  ;;  %2773 = vmatpush.msra.mxu2 %v7650_v21 }
 0x36c   :  { %2793 = vmatpush.msrb.mxu0 %v7655_v15  ;;  %2888 = vmatpush.msrb.mxu3 %v7175_v41 }
 0x36d   :  { %2825 = vmatpush.msrb.mxu1 %v9791_v1  ;;  %2774 = vmatpush.msra.mxu2 %v7664_v42  ;;  %v3693_v42 = vpop.permute.xlu1 %3692 }
 0x36e   :  { %2794 = vmatpush.msrb.mxu0 %v7669_v18  ;;  %2889 = vmatpush.msrb.mxu3 %v9768_v22 }
 0x36f   :  { %2826 = vmatpush.msrb.mxu1 %v9792_v56  ;;  %2775 = vmatpush.msra.mxu2 %v9793_v31 }
 0x370   :  { %2795 = vmatpush.msrb.mxu0 %v9794_v3  ;;  %2890 = vmatpush.msrb.mxu3 %v9771_v57  ;;  %v3694_v57 = vunpack.i.l.bf16 %v3693_v42 }
 0x371   :  { %2827 = vmatpush.msrb.mxu1 %v9772_v54  ;;  %2776 = vmatpush.msra.mxu2 %v7692_v36  ;;  %v3695_v54 = vunpack.i.h.bf16 %v3693_v42  ;;  %v9795_v42 = vld [vmem:[#allocation46_spill] sm:$0xff] }
 0x372   :  { %2796 = vmatpush.msrb.mxu0 %v9773_v26  ;;  %2891 = vmatpush.msrb.mxu3 %v9774_v52 }
 0x373   :  { %2828 = vmatpush.msrb.mxu1 %v9775_v27  ;;  %2777 = vmatpush.msra.mxu2 %v9776_v20 }
 0x374   :  { %2797 = vmatpush.msrb.mxu0 %v9777_v47  ;;  %2892 = vmatpush.msrb.mxu3 %v7221_v7 }
 0x375   :  { %2829 = vmatpush.msrb.mxu1 %v7435_v49  ;;  %2778 = vmatpush.msra.mxu2 %v7720_v33  ;;  %v2441_v33 = vsel %vm2404_vm6, %v3694_v57, %v3695_v54  ;;  %v2160_v57 = vpop.f32.mrf.mxu3 }
 0x376   :  { %2798 = vmatpush.msrb.mxu0 %v7725_v12  ;;  %2893 = vmatpush.msrb.mxu3 %v7241_v19 }
 0x377   :  { %2779 = vmatmul.f32.vlgmr.msra.gmra.mxu2 %v7759_v53  ;;  %2799 = vmatmul.f32.vlgmr.msrb.gmra.mxu0 %v7839_v61  ;;  %v2443_v53 = vmax.f32 %v9795_v42, %v2441_v33  ;;  %v7919_v33 = vpop.f32.mrf.mxu2  ;;  %v2220_v42 = vpop.f32.mrf.mxu0 }
 0x378   :  { %2830 = vmatpush.msrb.mxu1 %v7450_v51  ;;  %2843 = vmatpush.msrb.mxu2 %v7455_v9 }
 0x379   :  { %2863 = vmatpush.msra.mxu0 %v9779_v46  ;;  %2894 = vmatpush.msrb.mxu3 %v7253_v16  ;;  %v7911_v54 = vmax.f32 %v2443_v53, 0.0  ;;  %v9797_v53 = vld [vmem:[#allocation13_spill] sm:$0xff] }
 0x37a   :  { %2831 = vmatpush.msrb.mxu1 %v9780_v0  ;;  %2844 = vmatpush.msrb.mxu2 %v7480_v6 }
 0x37b   :  { %2864 = vmatpush.msra.mxu0 %v7485_v28  ;;  %2895 = vmatpush.msrb.mxu3 %v7269_v55 }
 0x37c   :  { %2832 = vmatpush.msrb.mxu1 %v7492_v60  ;;  %2845 = vmatpush.msrb.mxu2 %v7499_v11 }
 0x37d   :  { %2865 = vmatpush.msra.mxu0 %v7504_v25  ;;  %2896 = vmatpush.msrb.mxu3 %v7282_v29 }
 0x37e   :  { %2833 = vmatpush.msrb.mxu1 %v7511_v44  ;;  %2846 = vmatpush.msrb.mxu2 %v7519_v10 }
 0x37f   :  { %2866 = vmatpush.msra.mxu0 %v7524_v40  ;;  %2897 = vmatpush.msrb.mxu3 %v7297_v13 }
 0x380   :  { %2834 = vmatpush.msrb.mxu1 %v7533_v5  ;;  %2847 = vmatpush.msrb.mxu2 %v7538_v17 }
 0x381   :  { %2867 = vmatpush.msra.mxu0 %v7546_v63  ;;  %2898 = vmatpush.msrb.mxu3 %v7311_v45 }
 0x382   :  { %2835 = vmatpush.msrb.mxu1 %v7554_v14  ;;  %2848 = vmatpush.msrb.mxu2 %v7561_v8 }
 0x383   :  { %2868 = vmatpush.msra.mxu0 %v9782_v30  ;;  %2899 = vmatmul.f32.vlgmr.msrb.gmra.mxu3 %v7911_v54 }
 0x384   :  { %2963 = vmatpush.msra.mxu3 %v7122_v48  ;;  %2836 = vmatpush.msrb.mxu1 %v7573_v58  ;;  %v7937_v48 = vpop.f32.mrf.mxu1 }
 0x385   :  { %2849 = vmatpush.msrb.mxu2 %v7582_v43  ;;  %2869 = vmatpush.msra.mxu0 %v7589_v62 }
 0x386   :  { %2964 = vmatpush.msra.mxu3 %v7131_v39  ;;  %2837 = vmatpush.msrb.mxu1 %v9783_v38  ;;  %v9796_v39 = vld [vmem:[#allocation25_spill] sm:$0xff] }
 0x387   :  { %2850 = vmatpush.msrb.mxu2 %v9784_v34  ;;  %2870 = vmatpush.msra.mxu0 %v9785_v37 }
 0x388   :  { %2965 = vmatpush.msra.mxu3 %v7140_v59  ;;  %2838 = vmatpush.msrb.mxu1 %v9786_v23  ;;  %v2240_v59 = vpop.f32.mrf.mxu2 }
 0x389   :  { %2851 = vmatpush.msrb.mxu2 %v7620_v32  ;;  %2871 = vmatpush.msra.mxu0 %v9787_v35 }
 0x38a   :  { %2966 = vmatpush.msra.mxu3 %v7153_v2  ;;  %2839 = vmatmul.f32.vlgmr.msrb.gmra.mxu1 %v7911_v54  ;;  %v9798_v2 = vld [vmem:[#allocation12_spill] sm:$0xff] }
 0x38b   :  { %2903 = vmatpush.msra.mxu1 %v9788_v24  ;;  %2852 = vmatpush.msrb.mxu2 %v7636_v4 }
 0x38c   :  { %2872 = vmatpush.msra.mxu0 %v9796_v39  ;;  %2967 = vmatpush.msra.mxu3 %v9797_v53  ;;  %v2260_v53 = vpop.f32.mrf.mxu3 }
 0x38d   :  { %2904 = vmatpush.msra.mxu1 %v9790_v50  ;;  %2853 = vmatpush.msrb.mxu2 %v7650_v21  ;;  %v2333_v50 = vpop.f32.mrf.mxu0  ;;  %v9799_v21 = vld [vmem:[#allocation14_spill] sm:$0xff] }
 0x38e   :  { %2873 = vmatpush.msra.mxu0 %v7655_v15  ;;  %2968 = vmatpush.msra.mxu3 %v7175_v41  ;;  %v9800_v15 = vld [vmem:[#allocation22_spill] sm:$0xff]  ;;  %v3698_v41 = vpop.permute.xlu2 %3697 }
 0x38f   :  { %2905 = vmatpush.msra.mxu1 %v9791_v1  ;;  %2854 = vmatpush.msrb.mxu2 %v9798_v2 }
 0x390   :  { %2874 = vmatpush.msra.mxu0 %v7669_v18  ;;  %2969 = vmatpush.msra.mxu3 %v9768_v22  ;;  %v2293_v22 = vpop.f32.mrf.mxu1 }
 0x391   :  { %2906 = vmatpush.msra.mxu1 %v9792_v56  ;;  %2855 = vmatpush.msrb.mxu2 %v9793_v31 }
 0x392   :  { %2875 = vmatpush.msra.mxu0 %v9794_v3  ;;  %2970 = vmatpush.msra.mxu3 %v9799_v21  ;;  %v2353_v3 = vpop.f32.mrf.mxu2  ;;  %v9801_v21 = vld [vmem:[#allocation11_spill] sm:$0xff] }
 0x393   :  { %2907 = vmatpush.msra.mxu1 %v9800_v15  ;;  %2856 = vmatpush.msrb.mxu2 %v7692_v36  ;;  %v3700_v36 = vunpack.i.h.bf16 %v3698_v41  ;;  %v3699_v15 = vunpack.i.l.bf16 %v3698_v41 }
 0x394   :  { %2876 = vmatpush.msra.mxu0 %v9773_v26  ;;  %2971 = vmatpush.msra.mxu3 %v9774_v52  ;;  %v9802_v52 = vld [vmem:[#allocation43_spill] sm:$0xff] }
 0x395   :  { %2908 = vmatpush.msra.mxu1 %v9775_v27  ;;  %2857 = vmatpush.msrb.mxu2 %v9776_v20  ;;  %v2354_v20 = vadd.f32 %v2353_v3, %v9802_v52  ;;  %v2453_v41 = vsel %vm2404_vm6, %v3699_v15, %v3700_v36  ;;  %v9804_v15 = vld [vmem:[#allocation27_spill] sm:$0xff] }
 0x396   :  { %2877 = vmatpush.msra.mxu0 %v9777_v47  ;;  %2972 = vmatpush.msra.mxu3 %v7221_v7  ;;  %v2373_v7 = vpop.f32.mrf.mxu0  ;;  %v2455_v36 = vmax.f32 %v9804_v15, %v2453_v41  ;;  %v9808_v41 = vld [vmem:[#allocation48_spill] sm:$0xff] }
 0x397   :  { %2909 = vmatpush.msra.mxu1 %v7435_v49  ;;  %2858 = vmatpush.msrb.mxu2 %v9801_v21  ;;  %v9803_v49 = vld [vmem:[#allocation45_spill] sm:$0xff] }
 0x398   :  { %2878 = vmatpush.msra.mxu0 %v7725_v12  ;;  %2973 = vmatpush.msra.mxu3 %v7241_v19  ;;  %v2294_v47 = vadd.f32 %v2293_v22, %v9803_v49  ;;  %v2313_v19 = vpop.f32.mrf.mxu3  ;;  %v2161_v3 = vadd.f32 %v2160_v57, %v9803_v49  ;;  %v2374_v22 = vadd.f32 %v2373_v7, %v2354_v20  ;;  %v7992_v49 = vmax.f32 %v2455_v36, 0.0  ;;  %v8063_v7 = vld [vmem:[%s9036_s3 + $0x90] sm:$0xff]  ;;  %v8090_v15 = vld [vmem:[%s9036_s3 + $0x60] sm:$0xff] }
 0x399   :  { %2859 = vmatmul.f32.vlgmr.msrb.gmra.mxu2 %v7839_v61  ;;  %2879 = vmatmul.f32.vlgmr.msra.gmra.mxu0 %v7911_v54  ;;  %v2221_v61 = vadd.f32 %v2220_v42, %v9802_v52  ;;  %v8034_v42 = vld [vmem:[%s9036_s3 + $0xc0] sm:$0xff]  ;;  %v9807_v52 = vld [vmem:[#allocation47_spill] sm:$0xff] }
 0x39a   :  { %2910 = vmatpush.msra.mxu1 %v7450_v51  ;;  %2923 = vmatpush.msra.mxu2 %v7455_v9  ;;  %v9813_v36 = vld [vmem:[#allocation21_spill] sm:$0xff] }
 0x39b   :  { %2943 = vmatpush.msrb.mxu0 %v9779_v46  ;;  %2974 = vmatpush.msra.mxu3 %v7253_v16  ;;  %v2393_v16 = vpop.f32.mrf.mxu1  ;;  %v2314_v46 = vadd.f32 %v2313_v19, %v2294_v47  ;;  %v9809_v19 = vld [vmem:[#allocation22_spill] sm:$0xff] }
 0x39c   :  { %2911 = vmatpush.msra.mxu1 %v9780_v0  ;;  %2924 = vmatpush.msra.mxu2 %v7480_v6  ;;  %v2241_v0 = vadd.f32 %v2240_v59, %v2221_v61  ;;  %v2394_v20 = vadd.f32 %v2393_v16, %v2374_v22  ;;  %v9805_v59 = vld [vmem:[#allocation17_spill] sm:$0xff]  ;;  %v3703_v61 = vpop.permute.xlu0 %3702  ;;  %v9811_v22 = vld [vmem:[#allocation23_spill] sm:$0xff] }
 0x39d   :  { %2944 = vmatpush.msrb.mxu0 %v7485_v28  ;;  %2975 = vmatpush.msra.mxu3 %v7269_v55  ;;  %v2181_v55 = vadd.f32 %v7937_v48, %v2161_v3  ;;  %v2334_v57 = vadd.f32 %v2333_v50, %v2314_v46  ;;  %v8015_v46 = vld [vmem:[%s9036_s3 + $0xe0] sm:$0xff]  ;;  %v8045_v48 = vld [vmem:[%s9036_s3 + $0xb0] sm:$0xff] }
 0x39e   :  { %2912 = vmatpush.msra.mxu1 %v7492_v60  ;;  %2925 = vmatpush.msra.mxu2 %v7499_v11  ;;  %v2261_v47 = vadd.f32 %v2260_v53, %v2241_v0  ;;  %v8004_v0 = vld [vmem:[%s9036_s3 + $0xf0] sm:$0xff]  ;;  %v9812_v16 = vld [vmem:[#allocation41_spill] sm:$0xff] }
 0x39f   :  { %2945 = vmatpush.msrb.mxu0 %v7504_v25  ;;  %2976 = vmatpush.msra.mxu3 %v7282_v29  ;;  %v2201_v29 = vadd.f32 %v7919_v33, %v2181_v55  ;;  %v8025_v33 = vld [vmem:[%s9036_s3 + $0xd0] sm:$0xff]  ;;  %v3705_v55 = vunpack.i.h.bf16 %v3703_v61 }
 0x3a0   :  { %2913 = vmatpush.msra.mxu1 %v7511_v44  ;;  %2926 = vmatpush.msra.mxu2 %v7519_v10  ;;  %v9806_v53 = vld [vmem:[#allocation19_spill] sm:$0xff] }
 0x3a1   :  { %2946 = vmatpush.msrb.mxu0 %v7524_v40  ;;  %2977 = vmatpush.msra.mxu3 %v7297_v13  ;;  %v2482_v13 = vmax.f32 %v2261_v47, %v2394_v20  ;;  %v9810_v3 = vld [vmem:[#allocation35_spill] sm:$0xff]  ;;  %v9814_v47 = vld [vmem:[#allocation26_spill] sm:$0xff] }
 0x3a2   :  { %2914 = vmatpush.msra.mxu1 %v7533_v5  ;;  %2927 = vmatpush.msra.mxu2 %v7538_v17  ;;  %v8099_v20 = vld [vmem:[%s9036_s3 + $0x50] sm:$0xff] }
 0x3a3   :  { %2947 = vmatpush.msrb.mxu0 %v7546_v63  ;;  %2978 = vmatpush.msra.mxu3 %v7311_v45  ;;  %v8008_v45 = vmax.f32 %v2201_v29, %v2334_v57  ;;  %v8110_v57 = vld [vmem:[%s9036_s3 + $0x40] sm:$0xff] }
 0x3a4   :  { %2915 = vmatpush.msra.mxu1 %v7554_v14  ;;  %2928 = vmatpush.msra.mxu2 %v7561_v8  ;;  %v9815_v29 = vld [vmem:[#allocation5_spill] sm:$0xff] }
 0x3a5   :  { %2948 = vmatpush.msrb.mxu0 %v9782_v30  ;;  %2979 = vmatmul.f32.vlgmr.msra.gmra.mxu3 %v7992_v49  ;;  %v3711_v50 = vpack.i.bf16 %v2482_v13, %v8008_v45 }
 0x3a6   :  { %3043 = vmatpush.msrb.mxu3 %v8004_v0  ;;  %2916 = vmatpush.msra.mxu1 %v7573_v58 }
 0x3a7   :  { %2929 = vmatpush.msra.mxu2 %v7582_v43  ;;  %2949 = vmatpush.msrb.mxu0 %v7589_v62 }
 0x3a8   :  { %3044 = vmatpush.msrb.mxu3 %v8015_v46  ;;  %2917 = vmatpush.msra.mxu1 %v9783_v38 }
 0x3a9   :  { %2930 = vmatpush.msra.mxu2 %v9784_v34  ;;  %2950 = vmatpush.msrb.mxu0 %v9785_v37 }
 0x3aa   :  { %3045 = vmatpush.msrb.mxu3 %v8025_v33  ;;  %2918 = vmatpush.msra.mxu1 %v9786_v23 }
 0x3ab   :  { %2931 = vmatpush.msra.mxu2 %v7620_v32  ;;  %2951 = vmatpush.msrb.mxu0 %v9787_v35 }
 0x3ac   :  { %3046 = vmatpush.msrb.mxu3 %v8034_v42  ;;  %2919 = vmatmul.f32.vlgmr.msra.gmra.mxu1 %v7992_v49 }
 0x3ad   :  { %2983 = vmatpush.msrb.mxu1 %v9788_v24  ;;  %3712 = vrot.lane.b32.xlu2 %v3711_v50, %s4035_s30  ;;  %v8054_v24 = vld [vmem:[%s9036_s3 + $0xa0] sm:$0xff] }
 0x3ae   :  { %2932 = vmatpush.msra.mxu2 %v7636_v4  ;;  %2952 = vmatpush.msrb.mxu0 %v9796_v39 }
 0x3af   :  { %3047 = vmatpush.msrb.mxu3 %v8045_v48  ;;  %2984 = vmatpush.msrb.mxu1 %v9805_v59 }
 0x3b0   :  { %2933 = vmatpush.msra.mxu2 %v9806_v53  ;;  %2953 = vmatpush.msrb.mxu0 %v9807_v52 }
 0x3b1   :  { %3048 = vmatpush.msrb.mxu3 %v8054_v24  ;;  %2985 = vmatpush.msrb.mxu1 %v9791_v1  ;;  %v8072_v1 = vld [vmem:[%s9036_s3 + $0x80] sm:$0xff] }
 0x3b2   :  { %2934 = vmatpush.msra.mxu2 %v9798_v2  ;;  %2954 = vmatpush.msrb.mxu0 %v7669_v18 }
 0x3b3   :  { %3049 = vmatpush.msrb.mxu3 %v8063_v7  ;;  %2986 = vmatpush.msrb.mxu1 %v9792_v56  ;;  %v8081_v56 = vld [vmem:[%s9036_s3 + $0x70] sm:$0xff] }
 0x3b4   :  { %2935 = vmatpush.msra.mxu2 %v9793_v31  ;;  %2955 = vmatpush.msrb.mxu0 %v9808_v41 }
 0x3b5   :  { %3050 = vmatpush.msrb.mxu3 %v8072_v1  ;;  %2987 = vmatpush.msrb.mxu1 %v9809_v19  ;;  %v8309_v19 = vld [vmem:[%s9036_s3 + $0x150] sm:$0xff] }
 0x3b6   :  { %2936 = vmatpush.msra.mxu2 %v9810_v3  ;;  %2956 = vmatpush.msrb.mxu0 %v9773_v26 }
 0x3b7   :  { %3051 = vmatpush.msrb.mxu3 %v8081_v56  ;;  %2988 = vmatpush.msrb.mxu1 %v9775_v27  ;;  %v3704_v27 = vunpack.i.l.bf16 %v3703_v61  ;;  %v8321_v61 = vld [vmem:[%s9036_s3 + $0x1c8] sm:$0xff] }
 0x3b8   :  { %2937 = vmatpush.msra.mxu2 %v9811_v22  ;;  %2957 = vmatpush.msrb.mxu0 %v9812_v16 }
 0x3b9   :  { %3052 = vmatpush.msrb.mxu3 %v8090_v15  ;;  %2989 = vmatpush.msrb.mxu1 %v9813_v36  ;;  %v2465_v13 = vsel %vm2404_vm6, %v3704_v27, %v3705_v55  ;;  %v8342_v36 = vld [vmem:[%s9036_s3 + $0x1b8] sm:$0xff]  ;;  %v8351_v27 = vld [vmem:[%s9036_s3 + $0x130] sm:$0xff] }
 0x3ba   :  { %2938 = vmatpush.msra.mxu2 %v9801_v21  ;;  %2958 = vmatpush.msrb.mxu0 %v7725_v12 }
 0x3bb   :  { %3053 = vmatpush.msrb.mxu3 %v8099_v20  ;;  %2939 = vmatmul.f32.vlgmr.msra.gmra.mxu2 %v7911_v54 }
 0x3bc   :  { %2959 = vmatmul.f32.vlgmr.msrb.gmra.mxu0 %v7992_v49  ;;  %2990 = vmatpush.msrb.mxu1 %v7450_v51  ;;  %v8120_v51 = vld [vmem:[%s9036_s3 + $0x30] sm:$0xff] }
 0x3bd   :  { %3003 = vmatpush.msrb.mxu2 %v7455_v9  ;;  %3023 = vmatpush.msra.mxu0 %v9814_v47  ;;  %v9816_v9 = vld [vmem:[#allocation55_spill] sm:$0xff]  ;;  %v8358_v47 = vld [vmem:[%s9036_s3 + $0xa8] sm:$0xff] }
 0x3be   :  { %3054 = vmatpush.msrb.mxu3 %v8110_v57  ;;  %2991 = vmatpush.msrb.mxu1 %v9815_v29  ;;  %v2467_v54 = vmax.f32 %v9816_v9, %v2465_v13  ;;  %v8371_v29 = vld [vmem:[%s9036_s3 + $0x120] sm:$0xff]  ;;  %v8377_v13 = vld [vmem:[%s9036_s3 + $0x98] sm:$0xff]  ;;  %v8389_v9 = vld [vmem:[%s9036_s3 + $0x110] sm:$0xff] }
 0x3bf   :  { %3004 = vmatpush.msrb.mxu2 %v7480_v6  ;;  %3024 = vmatpush.msra.mxu0 %v7485_v28  ;;  %v8130_v6 = vld [vmem:[%s9036_s3 + $0x20] sm:$0xff]  ;;  %v8139_v28 = vld [vmem:[%s9036_s3 + $0x10] sm:$0xff] }
 0x3c0   :  { %3055 = vmatpush.msrb.mxu3 %v8120_v51  ;;  %2992 = vmatpush.msrb.mxu1 %v7492_v60  ;;  %v8145_v60 = vmax.f32 %v2467_v54, 0.0  ;;  %v8396_v54 = vld [vmem:[%s9036_s3 + $0x88] sm:$0xff] }
 0x3c1   :  { %3005 = vmatpush.msrb.mxu2 %v7499_v11  ;;  %3025 = vmatpush.msra.mxu0 %v7504_v25  ;;  %v8150_v11 = vld [vmem:[%s9036_s3] sm:$0xff]  ;;  %v8174_v25 = vld [vmem:[%s9036_s3 + $0x1f0] sm:$0xff] }
 0x3c2   :  { %3056 = vmatpush.msrb.mxu3 %v8130_v6  ;;  %2993 = vmatpush.msrb.mxu1 %v7511_v44  ;;  %v2620_v44 = vpop.f32.mrf.mxu2 }
 0x3c3   :  { %3006 = vmatpush.msrb.mxu2 %v7519_v10  ;;  %3026 = vmatpush.msra.mxu0 %v7524_v40  ;;  %v8183_v10 = vld [vmem:[%s9036_s3 + $0x1e0] sm:$0xff]  ;;  %v2580_v40 = vpop.f32.mrf.mxu3 }
 0x3c4   :  { %3057 = vmatpush.msrb.mxu3 %v8139_v28  ;;  %2994 = vmatpush.msrb.mxu1 %v7533_v5  ;;  %v8192_v5 = vld [vmem:[%s9036_s3 + $0x1d0] sm:$0xff] }
 0x3c5   :  { %3007 = vmatpush.msrb.mxu2 %v7538_v17  ;;  %3027 = vmatpush.msra.mxu0 %v7546_v63  ;;  %v8201_v17 = vld [vmem:[%s9036_s3 + $0x1c0] sm:$0xff]  ;;  %v2600_v63 = vpop.f32.mrf.mxu1 }
 0x3c6   :  { %3058 = vmatpush.msrb.mxu3 %v8150_v11  ;;  %2995 = vmatpush.msrb.mxu1 %v7554_v14  ;;  %v2640_v14 = vpop.f32.mrf.mxu0 }
 0x3c7   :  { %3008 = vmatpush.msrb.mxu2 %v7561_v8  ;;  %3028 = vmatpush.msra.mxu0 %v9782_v30  ;;  %v8210_v8 = vld [vmem:[%s9036_s3 + $0x1b0] sm:$0xff] }
 0x3c8   :  { %3059 = vmatmul.f32.vlgmr.msrb.gmra.mxu3 %v8145_v60  ;;  %2996 = vmatpush.msrb.mxu1 %v7573_v58  ;;  %v2557_v58 = vld [vmem:[%s9037_s4] sm:$0x3] }
 0x3c9   :  { %3123 = vmatpush.msra.mxu3 %v8004_v0  ;;  %3009 = vmatpush.msrb.mxu2 %v7582_v43  ;;  %v8222_v43 = vld [vmem:[%s9036_s3 + $0x1a0] sm:$0xff]  ;;  %v8269_v0 = vld [vmem:[%s9036_s3 + $0x170] sm:$0xff] }
 0x3ca   :  { %3029 = vmatpush.msra.mxu0 %v7589_v62  ;;  %2997 = vmatpush.msrb.mxu1 %v9783_v38 }
 0x3cb   :  { %3124 = vmatpush.msra.mxu3 %v8015_v46  ;;  %3010 = vmatpush.msrb.mxu2 %v9784_v34  ;;  %v2660_v38 = vpop.f32.mrf.mxu3 }
 0x3cc   :  { %3030 = vmatpush.msra.mxu0 %v9785_v37  ;;  %2998 = vmatpush.msrb.mxu1 %v9786_v23 }
 0x3cd   :  { %3125 = vmatpush.msra.mxu3 %v8025_v33  ;;  %3011 = vmatpush.msrb.mxu2 %v7620_v32  ;;  %v8225_v32 = vperm.slane %v2557_v58, 1  ;;  %v8276_v33 = vld [vmem:[%s9036_s3 + $0xe8] sm:$0xff] }
 0x3ce   :  { %3031 = vmatpush.msra.mxu0 %v9787_v35  ;;  %2999 = vmatmul.f32.vlgmr.msrb.gmra.mxu1 %v8145_v60  ;;  %v8248_v35 = vld [vmem:[%s9036_s3 + $0x180] sm:$0xff] }
 0x3cf   :  { %3126 = vmatpush.msra.mxu3 %v8034_v42  ;;  %3063 = vmatpush.msra.mxu1 %v8174_v25  ;;  %v2621_v23 = vadd.f32 %v2620_v44, %v8225_v32  ;;  %v8282_v42 = vld [vmem:[%s9036_s3 + $0x1e8] sm:$0xff]  ;;  %v8420_v44 = vld [vmem:[%s9036_s3 + $0x178] sm:$0xff] }
 0x3d0   :  { %3012 = vmatpush.msrb.mxu2 %v7636_v4  ;;  %3032 = vmatpush.msra.mxu0 %v9796_v39  ;;  %v3708_v4 = vpop.permute.xlu1 %3707  ;;  %v8260_v39 = vld [vmem:[%s9036_s3 + $0x1f8] sm:$0xff] }
 0x3d1   :  { %3127 = vmatpush.msra.mxu3 %v8045_v48  ;;  %3064 = vmatpush.msra.mxu1 %v8183_v10  ;;  %v3710_v34 = vunpack.i.h.bf16 %v3708_v4  ;;  %v3709_v37 = vunpack.i.l.bf16 %v3708_v4  ;;  %v2641_v48 = vadd.f32 %v2640_v14, %v2621_v23  ;;  %v8440_v14 = vld [vmem:[%s9036_s3 + $0x58] sm:$0xff] }
 0x3d2   :  { %3013 = vmatpush.msrb.mxu2 %v9806_v53  ;;  %3033 = vmatpush.msra.mxu0 %v9807_v52  ;;  %v8289_v53 = vld [vmem:[%s9036_s3 + $0x160] sm:$0xff]  ;;  %v8295_v52 = vld [vmem:[%s9036_s3 + $0xd8] sm:$0xff] }
 0x3d3   :  { %3128 = vmatpush.msra.mxu3 %v8054_v24  ;;  %3065 = vmatpush.msra.mxu1 %v8192_v5  ;;  %v2477_v50 = vsel %vm2404_vm6, %v3709_v37, %v3710_v34  ;;  %v8301_v24 = vld [vmem:[%s9036_s3 + $0x1d8] sm:$0xff]  ;;  %v8499_v34 = vld [vmem:[%s9036_s3 + $0x8] sm:$0xff] }
 0x3d4   :  { %3014 = vmatpush.msrb.mxu2 %v9798_v2  ;;  %3034 = vmatpush.msra.mxu0 %v7669_v18  ;;  %v8233_v18 = vld [vmem:[%s9036_s3 + $0x190] sm:$0xff]  ;;  %v2720_v2 = vpop.f32.mrf.mxu0  ;;  %v8472_v4 = vld [vmem:[%s9036_s3 + $0x138] sm:$0xff] }
 0x3d5   :  { %3129 = vmatpush.msra.mxu3 %v8063_v7  ;;  %3066 = vmatpush.msra.mxu1 %v8201_v17 }
 0x3d6   :  { %3015 = vmatpush.msrb.mxu2 %v9793_v31  ;;  %3035 = vmatpush.msra.mxu0 %v9808_v41  ;;  %v8254_v31 = vld [vmem:[%s9036_s3 + $0xf8] sm:$0xff]  ;;  %v9817_v41 = vld [vmem:[#allocation57_spill] sm:$0xff] }
 0x3d7   :  { %3130 = vmatpush.msra.mxu3 %v8072_v1  ;;  %3067 = vmatpush.msra.mxu1 %v8210_v8  ;;  %v2700_v62 = vpop.f32.mrf.mxu2  ;;  %v2479_v1 = vmax.f32 %v9817_v41, %v2477_v50  ;;  %v3266_v41 = vld [vmem:[%s9038_s5 + $0x78] sm:$0xff] }
 0x3d8   :  { %3016 = vmatpush.msrb.mxu2 %v9810_v3  ;;  %3036 = vmatpush.msra.mxu0 %v9773_v26  ;;  %v8236_v26 = vperm.slane %v2557_v58, 0  ;;  %v2701_v30 = vadd.f32 %v2700_v62, %v8225_v32  ;;  %v8446_v58 = vld [vmem:[%s9036_s3 + $0x158] sm:$0xff]  ;;  %v8459_v62 = vld [vmem:[%s9036_s3 + $0x148] sm:$0xff] }
 0x3d9   :  { %3131 = vmatpush.msra.mxu3 %v8081_v56  ;;  %3068 = vmatpush.msra.mxu1 %v8222_v43  ;;  %v8315_v56 = vld [vmem:[%s9036_s3 + $0xc8] sm:$0xff]  ;;  %v8345_v55 = vmax.f32 %v2479_v1, 0.0  ;;  %v3265_v1 = vld [vmem:[%s9038_s5 + $0x70] sm:$0xff] }
 0x3da   :  { %3017 = vmatpush.msrb.mxu2 %v9811_v22  ;;  %3037 = vmatpush.msra.mxu0 %v9812_v16  ;;  %v2721_v46 = vadd.f32 %v2720_v2, %v2701_v30  ;;  %v8330_v16 = vld [vmem:[%s9036_s3 + $0x140] sm:$0xff]  ;;  %v4000_v30 = vld [vmem:[%s9036_s3 + $0x128] sm:$0xff] }
 0x3db   :  { %3132 = vmatpush.msra.mxu3 %v8090_v15  ;;  %3069 = vmatpush.msra.mxu1 %v8233_v18  ;;  %v8336_v15 = vld [vmem:[%s9036_s3 + $0xb8] sm:$0xff] }
 0x3dc   :  { %3018 = vmatpush.msrb.mxu2 %v9801_v21  ;;  %3038 = vmatpush.msra.mxu0 %v7725_v12  ;;  %v2680_v12 = vpop.f32.mrf.mxu1  ;;  %v2581_v21 = vadd.f32 %v2580_v40, %v8236_v26  ;;  %v3204_v3 = vmax.f32 %v2641_v48, %v2721_v46  ;;  %v8427_v40 = vld [vmem:[%s9036_s3 + $0x68] sm:$0xff] }
 0x3dd   :  { %3133 = vmatpush.msra.mxu3 %v8099_v20  ;;  %3019 = vmatmul.f32.vlgmr.msrb.gmra.mxu2 %v7992_v49  ;;  %v2661_v49 = vadd.f32 %v2660_v38, %v8236_v26  ;;  %v8489_v38 = vld [vmem:[%s9036_s3 + $0x18] sm:$0xff] }
 0x3de   :  { %3039 = vmatmul.f32.vlgmr.msra.gmra.mxu0 %v8145_v60  ;;  %3070 = vmatpush.msra.mxu1 %v8248_v35  ;;  %v2601_v7 = vadd.f32 %v2600_v63, %v2581_v21  ;;  %v8433_v63 = vld [vmem:[%s9036_s3 + $0x168] sm:$0xff] }
 0x3df   :  { %3083 = vmatpush.msra.mxu2 %v8254_v31  ;;  %3103 = vmatpush.msrb.mxu0 %v8260_v39  ;;  %v2681_v59 = vadd.f32 %v2680_v12, %v2661_v49 }
 0x3e0   :  { %3134 = vmatpush.msra.mxu3 %v8110_v57  ;;  %3071 = vmatpush.msra.mxu1 %v8269_v0  ;;  %v8364_v57 = vld [vmem:[%s9036_s3 + $0x1a8] sm:$0xff] }
 0x3e1   :  { %3084 = vmatpush.msra.mxu2 %v8276_v33  ;;  %3104 = vmatpush.msrb.mxu0 %v8282_v42  ;;  %v8324_v22 = vmax.f32 %v2601_v7, %v2681_v59 }
 0x3e2   :  { %3135 = vmatpush.msra.mxu3 %v8120_v51  ;;  %3072 = vmatpush.msra.mxu1 %v8289_v53  ;;  %v8383_v51 = vld [vmem:[%s9036_s3 + $0x198] sm:$0xff] }
 0x3e3   :  { %3085 = vmatpush.msra.mxu2 %v8295_v52  ;;  %3105 = vmatpush.msrb.mxu0 %v8301_v24  ;;  %v3716_v20 = vpack.i.bf16 %v3204_v3, %v8324_v22  ;;  %v3264_v3 = vld [vmem:[%s9038_s5 + $0x68] sm:$0xff] }
 0x3e4   :  { %3136 = vmatpush.msra.mxu3 %v8130_v6  ;;  %3073 = vmatpush.msra.mxu1 %v8309_v19  ;;  %v8402_v6 = vld [vmem:[%s9036_s3 + $0x188] sm:$0xff] }
 0x3e5   :  { %3086 = vmatpush.msra.mxu2 %v8315_v56  ;;  %3106 = vmatpush.msrb.mxu0 %v8321_v61 }
 0x3e6   :  { %3137 = vmatpush.msra.mxu3 %v8139_v28  ;;  %3074 = vmatpush.msra.mxu1 %v8330_v16  ;;  %v8408_v28 = vld [vmem:[%s9036_s3 + $0x100] sm:$0xff] }
 0x3e7   :  { %3087 = vmatpush.msra.mxu2 %v8336_v15  ;;  %3107 = vmatpush.msrb.mxu0 %v8342_v36 }
 0x3e8   :  { %3138 = vmatpush.msra.mxu3 %v8150_v11  ;;  %3075 = vmatpush.msra.mxu1 %v8351_v27  ;;  %v8414_v11 = vld [vmem:[%s9036_s3 + $0x78] sm:$0xff] }
 0x3e9   :  { %3088 = vmatpush.msra.mxu2 %v8358_v47  ;;  %3108 = vmatpush.msrb.mxu0 %v8364_v57 }
 0x3ea   :  { %3139 = vmatmul.f32.vlgmr.msra.gmra.mxu3 %v8345_v55  ;;  %3076 = vmatpush.msra.mxu1 %v8371_v29 }
 0x3eb   :  { %3089 = vmatpush.msra.mxu2 %v8377_v13  ;;  %3109 = vmatpush.msrb.mxu0 %v8383_v51 }
 0x3ec   :  { %3077 = vmatpush.msra.mxu1 %v8389_v9  ;;  %3717 = vrot.lane.b32.xlu0 %v3716_v20, %s4031_s25  ;;  %v3256_v20 = vld [vmem:[%s9038_s5 + $0x28] sm:$0xff] }
 0x3ed   :  { %3090 = vmatpush.msra.mxu2 %v8396_v54  ;;  %3110 = vmatpush.msrb.mxu0 %v8402_v6 }
 0x3ee   :  { %3078 = vmatpush.msra.mxu1 %v8408_v28  ;;  %3319 = vmatpush.msrb.mxu3 %v3266_v41 }
 0x3ef   :  { %3091 = vmatpush.msra.mxu2 %v8414_v11  ;;  %3111 = vmatpush.msrb.mxu0 %v8420_v44 }
 0x3f0   :  { %3079 = vmatmul.f32.vlgmr.msra.gmra.mxu1 %v8345_v55  ;;  %3320 = vmatpush.msrb.mxu3 %v3265_v1 }
 0x3f1   :  { %3092 = vmatpush.msra.mxu2 %v8427_v40  ;;  %3112 = vmatpush.msrb.mxu0 %v8433_v63 }
 0x3f2   :  { %3143 = vmatpush.msrb.mxu1 %v8174_v25  ;;  %v8453_v25 = vld [vmem:[%s9036_s3 + $0x48] sm:$0xff]  ;;  %3321 = vmatpush.msrb.mxu3 %v3264_v3  ;;  %v3298_v3 = vld [vmem:[%s9038_s5 + $0x178] sm:$0xff] }
 0x3f3   :  { %3093 = vmatpush.msra.mxu2 %v8440_v14  ;;  %3113 = vmatpush.msrb.mxu0 %v8446_v58 }
 0x3f4   :  { %3144 = vmatpush.msrb.mxu1 %v8183_v10  ;;  %v8466_v10 = vld [vmem:[%s9036_s3 + $0x38] sm:$0xff] }
 0x3f5   :  { %3094 = vmatpush.msra.mxu2 %v8453_v25  ;;  %3114 = vmatpush.msrb.mxu0 %v8459_v62 }
 0x3f6   :  { %3145 = vmatpush.msrb.mxu1 %v8192_v5  ;;  %v8479_v5 = vld [vmem:[%s9036_s3 + $0x28] sm:$0xff] }
 0x3f7   :  { %3095 = vmatpush.msra.mxu2 %v8466_v10  ;;  %3115 = vmatpush.msrb.mxu0 %v8472_v4 }
 0x3f8   :  { %3146 = vmatpush.msrb.mxu1 %v8201_v17  ;;  %v4002_v17 = vld [vmem:[%s9036_s3 + $0x118] sm:$0xff] }
 0x3f9   :  { %3096 = vmatpush.msra.mxu2 %v8479_v5  ;;  %3116 = vmatpush.msrb.mxu0 %v4000_v30 }
 0x3fa   :  { %3147 = vmatpush.msrb.mxu1 %v8210_v8  ;;  %v4004_v8 = vld [vmem:[%s9036_s3 + $0x108] sm:$0xff] }
 0x3fb   :  { %3097 = vmatpush.msra.mxu2 %v8489_v38  ;;  %3117 = vmatpush.msrb.mxu0 %v4002_v17 }
 0x3fc   :  { %3148 = vmatpush.msrb.mxu1 %v8222_v43 }
 0x3fd   :  { %3098 = vmatpush.msra.mxu2 %v8499_v34  ;;  %3118 = vmatpush.msrb.mxu0 %v4004_v8 }
 0x3fe   :  { %3099 = vmatmul.f32.vlgmr.msra.gmra.mxu2 %v8145_v60  ;;  %3119 = vmatmul.f32.vlgmr.msrb.gmra.mxu0 %v8345_v55 }
 0x3ff   :  { %3163 = vmatpush.msrb.mxu2 %v8254_v31  ;;  %3183 = vmatpush.msra.mxu0 %v8260_v39  ;;  %v2780_v31 = vpop.f32.mrf.mxu2  ;;  %v2800_v39 = vpop.f32.mrf.mxu0 }
 0x400   :  { %3149 = vmatpush.msrb.mxu1 %v8233_v18 }
 0x401   :  { %3164 = vmatpush.msrb.mxu2 %v8276_v33  ;;  %3184 = vmatpush.msra.mxu0 %v8282_v42 }
 0x402   :  { %3150 = vmatpush.msrb.mxu1 %v8248_v35  ;;  %v2740_v35 = vpop.f32.mrf.mxu3 }
 0x403   :  { %3165 = vmatpush.msrb.mxu2 %v8295_v52  ;;  %3185 = vmatpush.msra.mxu0 %v8301_v24  ;;  %v2741_v50 = vadd.f32 %v2740_v35, %v8236_v26 }
 0x404   :  { %3151 = vmatpush.msrb.mxu1 %v8269_v0  ;;  %v2781_v0 = vadd.f32 %v2780_v31, %v8225_v32 }
 0x405   :  { %3166 = vmatpush.msrb.mxu2 %v8315_v56  ;;  %3186 = vmatpush.msra.mxu0 %v8321_v61  ;;  %v3263_v56 = vld [vmem:[%s9038_s5 + $0x60] sm:$0xff]  ;;  %v3262_v61 = vld [vmem:[%s9038_s5 + $0x58] sm:$0xff] }
 0x406   :  { %3152 = vmatpush.msrb.mxu1 %v8289_v53  ;;  %v2801_v53 = vadd.f32 %v2800_v39, %v2781_v0  ;;  %3322 = vmatpush.msrb.mxu3 %v3263_v56  ;;  %v3271_v0 = vld [vmem:[%s9038_s5 + $0xa0] sm:$0xff]  ;;  %v3297_v56 = vld [vmem:[%s9038_s5 + $0x170] sm:$0xff] }
 0x407   :  { %3167 = vmatpush.msrb.mxu2 %v8336_v15  ;;  %3187 = vmatpush.msra.mxu0 %v8342_v36  ;;  %v3713_v60 = vpop.permute.xlu2 %3712  ;;  %v3260_v15 = vld [vmem:[%s9038_s5 + $0x48] sm:$0xff]  ;;  %v3259_v36 = vld [vmem:[%s9038_s5 + $0x40] sm:$0xff] }
 0x408   :  { %3153 = vmatpush.msrb.mxu1 %v8309_v19  ;;  %v3715_v43 = vunpack.i.h.bf16 %v3713_v60  ;;  %v3714_v18 = vunpack.i.l.bf16 %v3713_v60  ;;  %3323 = vmatpush.msrb.mxu3 %v3262_v61  ;;  %v3296_v61 = vld [vmem:[%s9038_s5 + $0x168] sm:$0xff] }
 0x409   :  { %3168 = vmatpush.msrb.mxu2 %v8358_v47  ;;  %3188 = vmatpush.msra.mxu0 %v8364_v57  ;;  %v3255_v47 = vld [vmem:[%s9038_s5 + $0x20] sm:$0xff]  ;;  %v3254_v57 = vld [vmem:[%s9038_s5 + $0x18] sm:$0xff] }
 0x40a   :  { %3154 = vmatpush.msrb.mxu1 %v8330_v16  ;;  %v2489_v37 = vsel %vm2404_vm6, %v3714_v18, %v3715_v43  ;;  %v2820_v2 = vpop.f32.mrf.mxu3  ;;  %v3261_v16 = vld [vmem:[%s9038_s5 + $0x50] sm:$0xff] }
 0x40b   :  { %3169 = vmatpush.msrb.mxu2 %v8377_v13  ;;  %3189 = vmatpush.msra.mxu0 %v8383_v51  ;;  %v2491_v23 = vmax.f32 %v8008_v45, %v2489_v37  ;;  %v2760_v45 = vpop.f32.mrf.mxu1  ;;  %v2821_v49 = vadd.f32 %v2820_v2, %v8236_v26  ;;  %v3252_v13 = vld [vmem:[%s9038_s5 + $0x8] sm:$0xff]  ;;  %v3251_v51 = vld [vmem:[%s9038_s5] sm:$0xff] }
 0x40c   :  { %3155 = vmatpush.msrb.mxu1 %v8351_v27  ;;  %v2761_v59 = vadd.f32 %v2760_v45, %v2741_v50  ;;  %3324 = vmatpush.msrb.mxu3 %v3261_v16  ;;  %v3257_v27 = vld [vmem:[%s9038_s5 + $0x30] sm:$0xff]  ;;  %v3270_v50 = vld [vmem:[%s9038_s5 + $0x98] sm:$0xff] }
 0x40d   :  { %3170 = vmatpush.msrb.mxu2 %v8396_v54  ;;  %3190 = vmatpush.msra.mxu0 %v8402_v6  ;;  %v2492_v12 = vmax.f32 %v2491_v23, 0.0  ;;  %v3281_v54 = vld [vmem:[%s9038_s5 + $0xf0] sm:$0xff]  ;;  %v3280_v6 = vld [vmem:[%s9038_s5 + $0xe8] sm:$0xff]  ;;  %v3294_v16 = vld [vmem:[%s9038_s5 + $0x158] sm:$0xff] }
 0x40e   :  { %3156 = vmatpush.msrb.mxu1 %v8371_v29  ;;  %3325 = vmatpush.msrb.mxu3 %v3260_v15  ;;  %v3253_v29 = vld [vmem:[%s9038_s5 + $0x10] sm:$0xff] }
 0x40f   :  { %3171 = vmatpush.msrb.mxu2 %v8414_v11  ;;  %3191 = vmatpush.msra.mxu0 %v8420_v44  ;;  %v3278_v44 = vld [vmem:[%s9038_s5 + $0xd8] sm:$0xff]  ;;  %v3273_v45 = vld [vmem:[%s9038_s5 + $0xb0] sm:$0xff] }
 0x410   :  { %3157 = vmatpush.msrb.mxu1 %v8389_v9  ;;  %3326 = vmatpush.msrb.mxu3 %v3259_v36  ;;  %v3282_v9 = vld [vmem:[%s9038_s5 + $0xf8] sm:$0xff]  ;;  %v3293_v15 = vld [vmem:[%s9038_s5 + $0x150] sm:$0xff]  ;;  %v3292_v36 = vld [vmem:[%s9038_s5 + $0x148] sm:$0xff] }
 0x411   :  { %3172 = vmatpush.msrb.mxu2 %v8427_v40  ;;  %3192 = vmatpush.msra.mxu0 %v8433_v63  ;;  %v3277_v63 = vld [vmem:[%s9038_s5 + $0xd0] sm:$0xff] }
 0x412   :  { %3158 = vmatpush.msrb.mxu1 %v8408_v28  ;;  %v3279_v28 = vld [vmem:[%s9038_s5 + $0xe0] sm:$0xff]  ;;  %v2900_v11 = vpop.f32.mrf.mxu3 }
 0x413   :  { %3173 = vmatpush.msrb.mxu2 %v8440_v14  ;;  %3193 = vmatpush.msra.mxu0 %v8446_v58  ;;  %v2840_v21 = vpop.f32.mrf.mxu1  ;;  %v2901_v43 = vadd.f32 %v2900_v11, %v8236_v26 }
 0x414   :  { %3159 = vmatmul.f32.vlgmr.msrb.gmra.mxu1 %v2492_v12  ;;  %v2841_v33 = vadd.f32 %v2840_v21, %v2821_v49  ;;  %v3272_v49 = vld [vmem:[%s9038_s5 + $0xa8] sm:$0xff] }
 0x415   :  { %3174 = vmatpush.msrb.mxu2 %v8453_v25  ;;  %3194 = vmatpush.msra.mxu0 %v8459_v62  ;;  %v3276_v25 = vld [vmem:[%s9038_s5 + $0xc8] sm:$0xff]  ;;  %v3275_v62 = vld [vmem:[%s9038_s5 + $0xc0] sm:$0xff] }
 0x416   :  { %v2880_v48 = vpop.f32.mrf.mxu0  ;;  %v8553_v24 = vmax.f32 %v2761_v59, %v2841_v33  ;;  %3339 = vmatpush.msra.mxu1 %v3282_v9  ;;  %v3267_v59 = vld [vmem:[%s9038_s5 + $0x80] sm:$0xff] }
 0x417   :  { %3175 = vmatpush.msrb.mxu2 %v8466_v10  ;;  %3195 = vmatpush.msra.mxu0 %v8472_v4  ;;  %v3274_v4 = vld [vmem:[%s9038_s5 + $0xb8] sm:$0xff] }
 0x418   :  { %3340 = vmatpush.msra.mxu1 %v3281_v54  ;;  %v3287_v54 = vld [vmem:[%s9038_s5 + $0x120] sm:$0xff] }
 0x419   :  { %3176 = vmatpush.msrb.mxu2 %v8479_v5  ;;  %3196 = vmatpush.msra.mxu0 %v4000_v30 }
 0x41a   :  { %3341 = vmatpush.msra.mxu1 %v3280_v6 }
 0x41b   :  { %3177 = vmatpush.msrb.mxu2 %v8489_v38  ;;  %3197 = vmatpush.msra.mxu0 %v4002_v17 }
 0x41c   :  { %v2860_v46 = vpop.f32.mrf.mxu2  ;;  %3342 = vmatpush.msra.mxu1 %v3279_v28 }
 0x41d   :  { %3178 = vmatpush.msrb.mxu2 %v8499_v34  ;;  %3198 = vmatpush.msra.mxu0 %v4004_v8  ;;  %v2861_v42 = vadd.f32 %v2860_v46, %v8225_v32 }
 0x41e   :  { %3179 = vmatmul.f32.vlgmr.msrb.gmra.mxu2 %v8345_v55  ;;  %3199 = vmatmul.f32.vlgmr.msra.gmra.mxu0 %v2492_v12  ;;  %v3258_v55 = vld [vmem:[%s9038_s5 + $0x38] sm:$0xff] }
 0x41f   :  { %v2881_v52 = vadd.f32 %v2880_v48, %v2861_v42  ;;  %3327 = vmatpush.msrb.mxu3 %v3258_v55  ;;  %3343 = vmatpush.msra.mxu1 %v3278_v44  ;;  %v3269_v42 = vld [vmem:[%s9038_s5 + $0x90] sm:$0xff]  ;;  %v3268_v48 = vld [vmem:[%s9038_s5 + $0x88] sm:$0xff] }
 0x420   :  { %3359 = vmatpush.msra.mxu2 %v3298_v3  ;;  %v3414_v3 = vld [vmem:[%s9040_s7 + $0x70] sm:$0xff] }
 0x421   :  { %v3216_v7 = vmax.f32 %v2801_v53, %v2881_v52  ;;  %3328 = vmatpush.msrb.mxu3 %v3257_v27  ;;  %3344 = vmatpush.msra.mxu1 %v3277_v63  ;;  %v3291_v27 = vld [vmem:[%s9038_s5 + $0x140] sm:$0xff] }
 0x422   :  { %3360 = vmatpush.msra.mxu2 %v3297_v56  ;;  %v3413_v56 = vld [vmem:[%s9040_s7 + $0x68] sm:$0xff] }
 0x423   :  { %v3726_v19 = vpack.i.bf16 %v3216_v7, %v8553_v24  ;;  %3329 = vmatpush.msrb.mxu3 %v3256_v20  ;;  %3345 = vmatpush.msra.mxu1 %v3276_v25 }
 0x424   :  { %3361 = vmatpush.msra.mxu2 %v3296_v61  ;;  %v3412_v61 = vld [vmem:[%s9040_s7 + $0x60] sm:$0xff] }
 0x425   :  { %3727 = vrot.lane.b32.xlu2 %v3726_v19, %s4031_s25  ;;  %3330 = vmatpush.msrb.mxu3 %v3255_v47  ;;  %v3290_v47 = vld [vmem:[%s9038_s5 + $0x138] sm:$0xff] }
 0x426   :  { %3346 = vmatpush.msra.mxu1 %v3275_v62 }
 0x427   :  { %3331 = vmatpush.msrb.mxu3 %v3254_v57 }
 0x428   :  { %v2980_v10 = vpop.f32.mrf.mxu3  ;;  %3347 = vmatpush.msra.mxu1 %v3274_v4 }
 0x429   :  { %3332 = vmatpush.msrb.mxu3 %v3253_v29  ;;  %v2920_v40 = vpop.f32.mrf.mxu1  ;;  %v2981_v38 = vadd.f32 %v2980_v10, %v8236_v26  ;;  %v3289_v29 = vld [vmem:[%s9038_s5 + $0x130] sm:$0xff] }
 0x42a   :  { %v2921_v31 = vadd.f32 %v2920_v40, %v2901_v43  ;;  %3348 = vmatpush.msra.mxu1 %v3273_v45  ;;  %v3311_v43 = vld [vmem:[%s9038_s5 + $0x1e0] sm:$0xff] }
 0x42b   :  { %3333 = vmatpush.msrb.mxu3 %v3252_v13 }
 0x42c   :  { %3349 = vmatpush.msra.mxu1 %v3272_v49  ;;  %v3306_v49 = vld [vmem:[%s9038_s5 + $0x1b8] sm:$0xff] }
 0x42d   :  { %3334 = vmatpush.msrb.mxu3 %v3251_v51  ;;  %v3288_v51 = vld [vmem:[%s9038_s5 + $0x128] sm:$0xff] }
 0x42e   :  { %3350 = vmatpush.msra.mxu1 %v3271_v0  ;;  %v3305_v0 = vld [vmem:[%s9038_s5 + $0x1b0] sm:$0xff] }
 0x430   :  { %3351 = vmatpush.msra.mxu1 %v3270_v50  ;;  %v3302_v50 = vld [vmem:[%s9038_s5 + $0x198] sm:$0xff] }
 0x432   :  { %3352 = vmatpush.msra.mxu1 %v3269_v42  ;;  %v3300_v42 = vld [vmem:[%s9038_s5 + $0x188] sm:$0xff] }
 0x434   :  { %3353 = vmatpush.msra.mxu1 %v3268_v48  ;;  %v3299_v48 = vld [vmem:[%s9038_s5 + $0x180] sm:$0xff] }
 0x436   :  { %3354 = vmatpush.msra.mxu1 %v3267_v59 }
 0x439   :  { %v2960_v58 = vpop.f32.mrf.mxu0 }
 0x43e   :  { %v2940_v14 = vpop.f32.mrf.mxu2 }
 0x43f   :  { %v2941_v17 = vadd.f32 %v2940_v14, %v8225_v32 }
 0x441   :  { %v2961_v39 = vadd.f32 %v2960_v58, %v2941_v17  ;;  %v3283_v17 = vld [vmem:[%s9038_s5 + $0x100] sm:$0xff] }
 0x44b   :  { %v3000_v5 = vpop.f32.mrf.mxu1  ;;  %v3060_v55 = vpop.f32.mrf.mxu3 }
 0x44c   :  { %v3001_v18 = vadd.f32 %v3000_v5, %v2981_v38  ;;  %v3061_v40 = vadd.f32 %v3060_v55, %v8236_v26  ;;  %v3286_v38 = vld [vmem:[%s9038_s5 + $0x118] sm:$0xff] }
 0x44d   :  { %v3407_v55 = vld [vmem:[%s9040_s7 + $0x38] sm:$0xff] }
 0x44e   :  { %v8647_v46 = vmax.f32 %v2921_v31, %v3001_v18  ;;  %v3310_v31 = vld [vmem:[%s9038_s5 + $0x1d8] sm:$0xff] }
 0x45b   :  { %v3040_v35 = vpop.f32.mrf.mxu0 }
 0x45e   :  { %v3718_v30 = vpop.permute.xlu0 %3717 }
 0x45f   :  { %v3720_v34 = vunpack.i.h.bf16 %v3718_v30  ;;  %v3719_v8 = vunpack.i.l.bf16 %v3718_v30 }
 0x460   :  { %v3020_v60 = vpop.f32.mrf.mxu2 }
 0x461   :  { %v3211_v37 = vsel %vm192_vm3, %v3719_v8, %v3720_v34  ;;  %v3021_v23 = vadd.f32 %v3020_v60, %v8225_v32  ;;  %v3314_v34 = vld [vmem:[%s9038_s5 + $0x1f8] sm:$0xff]  ;;  %v3313_v8 = vld [vmem:[%s9038_s5 + $0x1f0] sm:$0xff]  ;;  %v3312_v60 = vld [vmem:[%s9038_s5 + $0x1e8] sm:$0xff] }
 0x462   :  { %v3213_v12 = vmax.f32 %v8324_v22, %v3211_v37  ;;  %3379 = vmatpush.msrb.mxu0 %v3314_v34 }
 0x463   :  { %v3041_v2 = vadd.f32 %v3040_v35, %v3021_v23 }
 0x464   :  { %v3214_v21 = vmax.f32 %v3213_v12, 0.0  ;;  %3380 = vmatpush.msrb.mxu0 %v3313_v8 }
 0x465   :  { %v3228_v22 = vmax.f32 %v2961_v39, %v3041_v2  ;;  %v3309_v39 = vld [vmem:[%s9038_s5 + $0x1d0] sm:$0xff]  ;;  %v3308_v2 = vld [vmem:[%s9038_s5 + $0x1c8] sm:$0xff] }
 0x466   :  { %3335 = vmatmul.f32.vlgmr.msrb.gmra.mxu3 %v3214_v21  ;;  %3381 = vmatpush.msrb.mxu0 %v3312_v60  ;;  %v3307_v21 = vld [vmem:[%s9038_s5 + $0x1c0] sm:$0xff] }
 0x467   :  { %v3721_v33 = vpack.i.bf16 %v3228_v22, %v8647_v46  ;;  %v3303_v22 = vld [vmem:[%s9038_s5 + $0x1a0] sm:$0xff] }
 0x468   :  { %3382 = vmatpush.msrb.mxu0 %v3311_v43  ;;  %v3443_v43 = vld [vmem:[%s9042_s9 + $0x10] sm:$0xff] }
 0x469   :  { %3722 = vrot.lane.b32.xlu1 %v3721_v33, %s4031_s25  ;;  %v3301_v33 = vld [vmem:[%s9038_s5 + $0x190] sm:$0xff] }
 0x46a   :  { %3383 = vmatpush.msrb.mxu0 %v3310_v31  ;;  %v3493_v31 = vld [vmem:[%s9044_s11 + $0x58] sm:$0xff] }
 0x46c   :  { %3384 = vmatpush.msrb.mxu0 %v3309_v39  ;;  %v3492_v39 = vld [vmem:[%s9044_s11 + $0x50] sm:$0xff] }
 0x46d   :  { %v3080_v20 = vpop.f32.mrf.mxu1  ;;  %v3140_v9 = vpop.f32.mrf.mxu3 }
 0x46e   :  { %v3141_v28 = vadd.f32 %v3140_v9, %v8236_v26  ;;  %v3081_v25 = vadd.f32 %v3080_v20, %v3061_v40  ;;  %v3285_v26 = vld [vmem:[%s9038_s5 + $0x110] sm:$0xff]  ;;  %3385 = vmatpush.msrb.mxu0 %v3308_v2  ;;  %v3405_v20 = vld [vmem:[%s9040_s7 + $0x28] sm:$0xff]  ;;  %v3456_v9 = vld [vmem:[%s9042_s9 + $0x78] sm:$0xff] }
 0x46f   :  { %3461 = vmatpush.msrb.mxu1 %v3456_v9  ;;  %v3450_v40 = vld [vmem:[%s9042_s9 + $0x48] sm:$0xff] }
 0x470   :  { %3386 = vmatpush.msrb.mxu0 %v3307_v21  ;;  %v3491_v2 = vld [vmem:[%s9044_s11 + $0x48] sm:$0xff]  ;;  %v3490_v21 = vld [vmem:[%s9044_s11 + $0x40] sm:$0xff] }
 0x471   :  { %v3524_v9 = vld [vmem:[%s9046_s13 + $0x8] sm:$0xff] }
 0x472   :  { %3387 = vmatpush.msrb.mxu0 %v3306_v49  ;;  %v3489_v49 = vld [vmem:[%s9044_s11 + $0x38] sm:$0xff] }
 0x474   :  { %3388 = vmatpush.msrb.mxu0 %v3305_v0  ;;  %v3488_v0 = vld [vmem:[%s9044_s11 + $0x30] sm:$0xff] }
 0x47b   :  { %v3120_v13 = vpop.f32.mrf.mxu0 }
 0x47f   :  { %v3728_v53 = vpop.permute.xlu2 %3727 }
 0x480   :  { %v3730_v52 = vunpack.i.h.bf16 %v3728_v53  ;;  %v3729_v7 = vunpack.i.l.bf16 %v3728_v53 }
 0x481   :  { %v3100_v57 = vpop.f32.mrf.mxu2 }
 0x482   :  { %v3223_v41 = vsel %vm192_vm3, %v3729_v7, %v3730_v52  ;;  %v3101_v11 = vadd.f32 %v3100_v57, %v8225_v32  ;;  %v3403_v57 = vld [vmem:[%s9040_s7 + $0x18] sm:$0xff] }
 0x483   :  { %v3225_v1 = vmax.f32 %v8553_v24, %v3223_v41  ;;  %v3295_v24 = vld [vmem:[%s9038_s5 + $0x160] sm:$0xff] }
 0x484   :  { %3362 = vmatpush.msra.mxu2 %v3295_v24  ;;  %v3121_v62 = vadd.f32 %v3120_v13, %v3101_v11  ;;  %v3411_v24 = vld [vmem:[%s9040_s7 + $0x58] sm:$0xff]  ;;  %v3401_v13 = vld [vmem:[%s9040_s7 + $0x8] sm:$0xff] }
 0x485   :  { %v3226_v19 = vmax.f32 %v3225_v1, 0.0  ;;  %v3452_v11 = vld [vmem:[%s9042_s9 + $0x58] sm:$0xff] }
 0x486   :  { %3363 = vmatpush.msra.mxu2 %v3294_v16  ;;  %v3410_v16 = vld [vmem:[%s9040_s7 + $0x50] sm:$0xff] }
 0x487   :  { %3355 = vmatmul.f32.vlgmr.msra.gmra.mxu1 %v3226_v19  ;;  %v3415_v19 = vld [vmem:[%s9040_s7 + $0x78] sm:$0xff] }
 0x488   :  { %3364 = vmatpush.msra.mxu2 %v3293_v15  ;;  %3420 = vmatpush.msra.mxu3 %v3415_v19  ;;  %v3409_v15 = vld [vmem:[%s9040_s7 + $0x48] sm:$0xff] }
 0x489   :  { %v3536_v19 = vld [vmem:[%s9046_s13 + $0x68] sm:$0xff] }
 0x48a   :  { %3365 = vmatpush.msra.mxu2 %v3292_v36  ;;  %3421 = vmatpush.msra.mxu3 %v3414_v3  ;;  %v3408_v36 = vld [vmem:[%s9040_s7 + $0x40] sm:$0xff] }
 0x48b   :  { %v3535_v3 = vld [vmem:[%s9046_s13 + $0x60] sm:$0xff] }
 0x48c   :  { %3366 = vmatpush.msra.mxu2 %v3291_v27  ;;  %3422 = vmatpush.msra.mxu3 %v3413_v56  ;;  %v3406_v27 = vld [vmem:[%s9040_s7 + $0x30] sm:$0xff]  ;;  %v3534_v56 = vld [vmem:[%s9046_s13 + $0x58] sm:$0xff] }
 0x48e   :  { %3367 = vmatpush.msra.mxu2 %v3290_v47  ;;  %3423 = vmatpush.msra.mxu3 %v3412_v61  ;;  %v3404_v47 = vld [vmem:[%s9040_s7 + $0x20] sm:$0xff]  ;;  %v3533_v61 = vld [vmem:[%s9046_s13 + $0x50] sm:$0xff] }
 0x490   :  { %3368 = vmatpush.msra.mxu2 %v3289_v29  ;;  %3424 = vmatpush.msra.mxu3 %v3411_v24  ;;  %v3402_v29 = vld [vmem:[%s9040_s7 + $0x10] sm:$0xff]  ;;  %v3532_v24 = vld [vmem:[%s9046_s13 + $0x48] sm:$0xff] }
 0x491   :  { %v3160_v6 = vpop.f32.mrf.mxu1 }
 0x492   :  { %3369 = vmatpush.msra.mxu2 %v3288_v51  ;;  %v3161_v63 = vadd.f32 %v3160_v6, %v3141_v28  ;;  %3425 = vmatpush.msra.mxu3 %v3410_v16  ;;  %v3400_v51 = vld [vmem:[%s9040_s7] sm:$0xff]  ;;  %v3454_v6 = vld [vmem:[%s9042_s9 + $0x68] sm:$0xff] }
 0x493   :  { %v3453_v28 = vld [vmem:[%s9042_s9 + $0x60] sm:$0xff] }
 0x494   :  { %3370 = vmatpush.msra.mxu2 %v3287_v54  ;;  %v3239_v4 = vmax.f32 %v3081_v25, %v3161_v63  ;;  %3426 = vmatpush.msra.mxu3 %v3409_v15  ;;  %v3455_v54 = vld [vmem:[%s9042_s9 + $0x70] sm:$0xff]  ;;  %v3449_v63 = vld [vmem:[%s9042_s9 + $0x40] sm:$0xff]  ;;  %v3530_v15 = vld [vmem:[%s9046_s13 + $0x38] sm:$0xff] }
 0x495   :  { %3462 = vmatpush.msrb.mxu1 %v3455_v54  ;;  %v3736_v25 = vld [vmem:[%s9039_s6] ss:$0 sm:$0xff] }
 0x496   :  { %3371 = vmatpush.msra.mxu2 %v3286_v38  ;;  %3427 = vmatpush.msra.mxu3 %v3408_v36  ;;  %v3444_v38 = vld [vmem:[%s9042_s9 + $0x18] sm:$0xff]  ;;  %v3531_v16 = vld [vmem:[%s9046_s13 + $0x40] sm:$0xff]  ;;  %v3529_v36 = vld [vmem:[%s9046_s13 + $0x30] sm:$0xff] }
 0x497   :  { %3463 = vmatpush.msrb.mxu1 %v3454_v6  ;;  %v3523_v54 = vld [vmem:[%s9046_s13] sm:$0xff]  ;;  %v3579_v6 = vld [vmem:[%s9048_s15 + $0x78] sm:$0xff] }
 0x498   :  { %3372 = vmatpush.msra.mxu2 %v3285_v26  ;;  %3428 = vmatpush.msra.mxu3 %v3407_v55  ;;  %v3528_v55 = vld [vmem:[%s9046_s13 + $0x28] sm:$0xff] }
 0x499   :  { %3464 = vmatpush.msrb.mxu1 %v3453_v28  ;;  %v3578_v28 = vld [vmem:[%s9048_s15 + $0x70] sm:$0xff] }
 0x49a   :  { %3429 = vmatpush.msra.mxu3 %v3406_v27  ;;  %v3527_v27 = vld [vmem:[%s9046_s13 + $0x20] sm:$0xff] }
 0x49b   :  { %v3200_v58 = vpop.f32.mrf.mxu0  ;;  %3465 = vmatpush.msrb.mxu1 %v3452_v11  ;;  %v3577_v11 = vld [vmem:[%s9048_s15 + $0x68] sm:$0xff] }
 0x49c   :  { %3430 = vmatpush.msra.mxu3 %v3405_v20  ;;  %v3526_v20 = vld [vmem:[%s9046_s13 + $0x18] sm:$0xff] }
 0x49e   :  { %3431 = vmatpush.msra.mxu3 %v3404_v47  ;;  %v3738_v47 = vld [vmem:[%s9043_s10] ss:$0 sm:$0xff] }
 0x4a0   :  { %3432 = vmatpush.msra.mxu3 %v3403_v57 }
 0x4a1   :  { %v3180_v44 = vpop.f32.mrf.mxu2 }
 0x4a2   :  { %v3181_v14 = vadd.f32 %v3180_v44, %v8225_v32  ;;  %v3284_v32 = vld [vmem:[%s9038_s5 + $0x108] sm:$0xff]  ;;  %3433 = vmatpush.msra.mxu3 %v3402_v29  ;;  %v3451_v44 = vld [vmem:[%s9042_s9 + $0x50] sm:$0xff] }
 0x4a3   :  { %3373 = vmatpush.msra.mxu2 %v3284_v32  ;;  %3466 = vmatpush.msrb.mxu1 %v3451_v44  ;;  %v3576_v44 = vld [vmem:[%s9048_s15 + $0x60] sm:$0xff] }
 0x4a4   :  { %v3201_v10 = vadd.f32 %v3200_v58, %v3181_v14  ;;  %3434 = vmatpush.msra.mxu3 %v3401_v13  ;;  %v3448_v14 = vld [vmem:[%s9042_s9 + $0x38] sm:$0xff]  ;;  %v3447_v58 = vld [vmem:[%s9042_s9 + $0x30] sm:$0xff] }
 0x4a5   :  { %3374 = vmatpush.msra.mxu2 %v3283_v17  ;;  %3467 = vmatpush.msrb.mxu1 %v3450_v40  ;;  %v3575_v40 = vld [vmem:[%s9048_s15 + $0x58] sm:$0xff] }
 0x4a6   :  { %v3240_v5 = vmax.f32 %v3121_v62, %v3201_v10  ;;  %3435 = vmatpush.msra.mxu3 %v3400_v51  ;;  %v3446_v62 = vld [vmem:[%s9042_s9 + $0x28] sm:$0xff]  ;;  %v3525_v51 = vld [vmem:[%s9046_s13 + $0x10] sm:$0xff] }
 0x4a7   :  { %3468 = vmatpush.msrb.mxu1 %v3449_v63  ;;  %v3574_v63 = vld [vmem:[%s9048_s15 + $0x50] sm:$0xff] }
 0x4a8   :  { %v3731_v30 = vpack.i.bf16 %v3240_v5, %v3239_v4  ;;  %3584 = vmatpush.msrb.mxu3 %v3579_v6 }
 0x4a9   :  { %3469 = vmatpush.msrb.mxu1 %v3448_v14  ;;  %v3573_v14 = vld [vmem:[%s9048_s15 + $0x48] sm:$0xff] }
 0x4aa   :  { %3732 = vrot.lane.b32.xlu0 %v3731_v30, %s4031_s25  ;;  %3585 = vmatpush.msrb.mxu3 %v3578_v28 }
 0x4ab   :  { %3470 = vmatpush.msrb.mxu1 %v3447_v58  ;;  %v3572_v58 = vld [vmem:[%s9048_s15 + $0x40] sm:$0xff] }
 0x4ac   :  { %3586 = vmatpush.msrb.mxu3 %v3577_v11 }
 0x4ad   :  { %3471 = vmatpush.msrb.mxu1 %v3446_v62  ;;  %v3570_v62 = vld [vmem:[%s9048_s15 + $0x30] sm:$0xff] }
 0x4ae   :  { %3587 = vmatpush.msrb.mxu3 %v3576_v44 }
 0x4b0   :  { %3588 = vmatpush.msrb.mxu3 %v3575_v40 }
 0x4b2   :  { %3589 = vmatpush.msrb.mxu3 %v3574_v63 }
 0x4b4   :  { %3590 = vmatpush.msrb.mxu3 %v3573_v14 }
 0x4b6   :  { %3591 = vmatpush.msrb.mxu3 %v3572_v58 }
 0x4db   :  { %v3723_v18 = vpop.permute.xlu1 %3722 }
 0x4dc   :  { %v3725_v37 = vunpack.i.h.bf16 %v3723_v18  ;;  %v3724_v23 = vunpack.i.l.bf16 %v3723_v18  ;;  %v3442_v18 = vld [vmem:[%s9042_s9 + $0x8] sm:$0xff] }
 0x4de   :  { %v3235_v35 = vsel %vm192_vm3, %v3724_v23, %v3725_v37  ;;  %v3441_v37 = vld [vmem:[%s9042_s9] sm:$0xff]  ;;  %v3497_v23 = vld [vmem:[%s9044_s11 + $0x78] sm:$0xff] }
 0x4df   :  { %v3237_v12 = vmax.f32 %v8647_v46, %v3235_v35  ;;  %v3304_v46 = vld [vmem:[%s9038_s5 + $0x1a8] sm:$0xff]  ;;  %v3496_v35 = vld [vmem:[%s9044_s11 + $0x70] sm:$0xff]  ;;  %3502 = vmatpush.msrb.mxu2 %v3497_v23  ;;  %v3741_v23 = vld [vmem:[%s9049_s16] ss:$0 sm:$0xff] }
 0x4e0   :  { %3389 = vmatpush.msrb.mxu0 %v3304_v46  ;;  %v3487_v46 = vld [vmem:[%s9044_s11 + $0x28] sm:$0xff] }
 0x4e1   :  { %v3238_v45 = vmax.f32 %v3237_v12, 0.0  ;;  %v3495_v12 = vld [vmem:[%s9044_s11 + $0x68] sm:$0xff]  ;;  %3503 = vmatpush.msrb.mxu2 %v3496_v35 }
 0x4e2   :  { %3390 = vmatpush.msrb.mxu0 %v3303_v22  ;;  %v3486_v22 = vld [vmem:[%s9044_s11 + $0x20] sm:$0xff] }
 0x4e3   :  { %3375 = vmatmul.f32.vlgmr.msra.gmra.mxu2 %v3238_v45  ;;  %v3494_v45 = vld [vmem:[%s9044_s11 + $0x60] sm:$0xff] }
 0x4e4   :  { %3391 = vmatpush.msrb.mxu0 %v3302_v50  ;;  %3504 = vmatpush.msrb.mxu2 %v3495_v12  ;;  %v3485_v50 = vld [vmem:[%s9044_s11 + $0x18] sm:$0xff] }
 0x4e6   :  { %3392 = vmatpush.msrb.mxu0 %v3301_v33  ;;  %3505 = vmatpush.msrb.mxu2 %v3494_v45  ;;  %v3737_v33 = vld [vmem:[%s9041_s8] ss:$0 sm:$0xff] }
 0x4e8   :  { %3393 = vmatpush.msrb.mxu0 %v3300_v42  ;;  %3506 = vmatpush.msrb.mxu2 %v3493_v31 }
 0x4e9   :  { %v3336_v10 = vpop.f32.mrf.mxu3 }
 0x4ea   :  { %3394 = vmatpush.msrb.mxu0 %v3299_v48  ;;  %v3337_v30 = vadd.f32 %v3736_v25, %v3336_v10  ;;  %3507 = vmatpush.msrb.mxu2 %v3492_v39  ;;  %v3571_v25 = vld [vmem:[%s9048_s15 + $0x38] sm:$0xff]  ;;  %v3569_v10 = vld [vmem:[%s9048_s15 + $0x28] sm:$0xff] }
 0x4eb   :  { %3592 = vmatpush.msrb.mxu3 %v3571_v25 }
 0x4ec   :  { %3508 = vmatpush.msrb.mxu2 %v3491_v2 }
 0x4ed   :  { %3593 = vmatpush.msrb.mxu3 %v3570_v62 }
 0x4ee   :  { %3509 = vmatpush.msrb.mxu2 %v3490_v21 }
 0x4ef   :  { %3594 = vmatpush.msrb.mxu3 %v3569_v10 }
 0x4f0   :  { %3510 = vmatpush.msrb.mxu2 %v3489_v49 }
 0x4f2   :  { %3511 = vmatpush.msrb.mxu2 %v3488_v0 }
 0x4f4   :  { %3512 = vmatpush.msrb.mxu2 %v3487_v46 }
 0x4f6   :  { %3513 = vmatpush.msrb.mxu2 %v3486_v22 }
 0x4f8   :  { %3514 = vmatpush.msrb.mxu2 %v3485_v50 }
 0x504   :  { %v3356_v5 = vpop.f32.mrf.mxu1 }
 0x505   :  { %v3357_v32 = vadd.f32 %v3356_v5, %v3337_v30  ;;  %v3567_v5 = vld [vmem:[%s9048_s15 + $0x18] sm:$0xff]  ;;  %v3739_v30 = vld [vmem:[%s9045_s12] ss:$0 sm:$0xff] }
 0x51c   :  { %v3733_v59 = vpop.permute.xlu0 %3732 }
 0x51d   :  { %v3735_v53 = vunpack.i.h.bf16 %v3733_v59  ;;  %v3734_v52 = vunpack.i.l.bf16 %v3733_v59 }
 0x51f   :  { %v3247_v7 = vsel %vm192_vm3, %v3734_v52, %v3735_v53  ;;  %v3484_v53 = vld [vmem:[%s9044_s11 + $0x10] sm:$0xff]  ;;  %v3483_v52 = vld [vmem:[%s9044_s11 + $0x8] sm:$0xff] }
 0x520   :  { %v3249_v41 = vmax.f32 %v3239_v4, %v3247_v7  ;;  %v3445_v4 = vld [vmem:[%s9042_s9 + $0x20] sm:$0xff]  ;;  %3515 = vmatpush.msrb.mxu2 %v3484_v53  ;;  %s3625_s9 = sshll.u32 %s9050_s17, 4  ;;  %s3626_s9 = int_to_ptr.hbm [resolvable:$true] %s3625_s9 }
 0x521   :  { %3472 = vmatpush.msrb.mxu1 %v3445_v4  ;;  %v3482_v7 = vld [vmem:[%s9044_s11] sm:$0xff] }
 0x522   :  { %v3250_v1 = vmax.f32 %v3249_v41, 0.0  ;;  %3516 = vmatpush.msrb.mxu2 %v3483_v52  ;;  %v3538_v41 = vld [vmem:[%s9046_s13 + $0x78] sm:$0xff]  ;;  %v3568_v4 = vld [vmem:[%s9048_s15 + $0x20] sm:$0xff] }
 0x523   :  { %3473 = vmatpush.msrb.mxu1 %v3444_v38  ;;  %3543 = vmatpush.msra.mxu0 %v3538_v41 }
 0x524   :  { %3395 = vmatmul.f32.vlgmr.msrb.gmra.mxu0 %v3250_v1  ;;  %3517 = vmatpush.msrb.mxu2 %v3482_v7  ;;  %v3537_v1 = vld [vmem:[%s9046_s13 + $0x70] sm:$0xff] }
 0x525   :  { %3474 = vmatpush.msrb.mxu1 %v3443_v43  ;;  %3544 = vmatpush.msra.mxu0 %v3537_v1 }
 0x526   :  { %3595 = vmatpush.msrb.mxu3 %v3568_v4 }
 0x527   :  { %3475 = vmatpush.msrb.mxu1 %v3442_v18  ;;  %3545 = vmatpush.msra.mxu0 %v3536_v19 }
 0x528   :  { %3596 = vmatpush.msrb.mxu3 %v3567_v5 }
 0x529   :  { %3476 = vmatpush.msrb.mxu1 %v3441_v37  ;;  %3546 = vmatpush.msra.mxu0 %v3535_v3 }
 0x52b   :  { %3547 = vmatpush.msra.mxu0 %v3534_v56 }
 0x52d   :  { %3548 = vmatpush.msra.mxu0 %v3533_v61 }
 0x52f   :  { %3549 = vmatpush.msra.mxu0 %v3532_v24 }
 0x531   :  { %3550 = vmatpush.msra.mxu0 %v3531_v16 }
 0x533   :  { %3551 = vmatpush.msra.mxu0 %v3530_v15 }
 0x535   :  { %3552 = vmatpush.msra.mxu0 %v3529_v36 }
 0x537   :  { %3553 = vmatpush.msra.mxu0 %v3528_v55 }
 0x539   :  { %3554 = vmatpush.msra.mxu0 %v3527_v27 }
 0x53b   :  { %3555 = vmatpush.msra.mxu0 %v3526_v20 }
 0x53d   :  { %3556 = vmatpush.msra.mxu0 %v3525_v51 }
 0x53f   :  { %3557 = vmatpush.msra.mxu0 %v3524_v9 }
 0x541   :  { %3558 = vmatpush.msra.mxu0 %v3523_v54 }
 0x566   :  { %v3376_v26 = vpop.f32.mrf.mxu2 }
 0x567   :  { %v3377_v17 = vadd.f32 %v3376_v26, %v3357_v32 }
 0x5a1   :  { %v3396_v34 = vpop.f32.mrf.mxu0 }
 0x5a2   :  { %v3397_v8 = vadd.f32 %v3396_v34, %v3377_v17  ;;  %v3566_v17 = vld [vmem:[%s9048_s15 + $0x10] sm:$0xff]  ;;  %v3565_v34 = vld [vmem:[%s9048_s15 + $0x8] sm:$0xff] }
 0x5a3   :  { %3597 = vmatpush.msrb.mxu3 %v3566_v17 }
 0x5a4   :  { %v3399_v60 = vmax.f32 %v3397_v8, 0.0  ;;  %v3564_v8 = vld [vmem:[%s9048_s15] sm:$0xff] }
 0x5a5   :  { %3598 = vmatpush.msrb.mxu3 %v3565_v34 }
 0x5a6   :  { %3436 = vmatmul.f32.vlgmr.msra.gmra.mxu3 %v3399_v60  ;;  %v3740_v60 = vld [vmem:[%s9047_s14] ss:$0 sm:$0xff]  ;;  %s4036_s14 = smov [#allocation2]  }
 0x5a7   :  { %3599 = vmatpush.msrb.mxu3 %v3564_v8  ;;  %s3623_s15 = sshll.u32 %s4036_s14, 4  ;;  %s3624_s15 = int_to_ptr.vmem [resolvable:$true] %s3623_s15 }
 0x629   :  { %v3437_v42 = vpop.f32.mrf.mxu3 }
 0x62a   :  { %v3438_v48 = vadd.f32 %v3737_v33, %v3437_v42 }
 0x62c   :  { %v3440_v59 = vmax.f32 %v3438_v48, 0.0 }
 0x62e   :  { %3477 = vmatmul.f32.vlgmr.msrb.gmra.mxu1 %v3440_v59 }
 0x6ab   :  { %v3478_v57 = vpop.f32.mrf.mxu1 }
 0x6ac   :  { %v3479_v29 = vadd.f32 %v3738_v47, %v3478_v57 }
 0x6ae   :  { %v3481_v13 = vmax.f32 %v3479_v29, 0.0 }
 0x6b0   :  { %3518 = vmatmul.f32.vlgmr.msrb.gmra.mxu2 %v3481_v13 }
 0x733   :  { %v3519_v38 = vpop.f32.mrf.mxu2 }
 0x734   :  { %v3520_v26 = vadd.f32 %v3739_v30, %v3519_v38 }
 0x736   :  { %v3522_v32 = vmax.f32 %v3520_v26, 0.0 }
 0x738   :  { %3559 = vmatmul.f32.vlgmr.msra.gmra.mxu0 %v3522_v32 }
 0x7b5   :  { %v3560_v43 = vpop.f32.mrf.mxu0 }
 0x7b6   :  { %v3561_v18 = vadd.f32 %v3740_v60, %v3560_v43 }
 0x7b8   :  { %v3563_v37 = vmax.f32 %v3561_v18, 0.0 }
 0x7ba   :  { %3600 = vmatmul.f32.vlgmr.msrb.gmra.mxu3 %v3563_v37 }
 0x83d   :  { %v3601_v35 = vpop.f32.mrf.mxu3 }
 0x83e   :  { %v3602_v12 = vadd.f32 %v3741_v23, %v3601_v35 }
 0x840   :  { %v3605_v45 = vsel %vm3604_vm7, %v3602_v12, -inf }
 0x841   :  { %3606 = vmax.xlane.f32.xlu1 %v3605_v45 }
 0x8b4   :  { %v3607_v31 = vpop.xlane.xlu1 %3606 }
 0x8b5   :  { %v3608_v39 = vsub.f32 %v3602_v12, %v3607_v31 }
 0x8b7   :  { %v3609_v2 = vmul.f32 1.442695, %v3608_v39 }
 0x8b9   :  { %3742 = vpow2.f32 %v3609_v2 }
 0x8bf   :  { %v3743_v21 = vpop.eup %3742 }
 0x8c0   :  { %v3611_v49 = vsel %vm3604_vm7, %v3743_v21, 0.0 }
 0x8c1   :  { %3612 = vadd.xlane.f32.xlu2 %v3611_v49 }
 0x934   :  { %v3613_v0 = vpop.xlane.xlu2 %3612 }
 0x935   :  { %3744 = vlog2.f32 %v3613_v0 }
 0x93b   :  { %v3745_v46 = vpop.eup %3744 }
 0x93c   :  { %v3615_v22 = vmul.f32 0.6931472, %v3745_v46 }
 0x93e   :  { %v3616_v50 = vsub.f32 %v3608_v39, %v3615_v22 }
 0x940   :  { %3617 = vst.msk [vmem:[#allocation2] sm:$0x3] %vm3604_vm7, %v3616_v50 }
 0x941   :  { %3628 = dma.vmem_to_hbm [thread:$0]  %s3624_s15, 32, %s3626_s9, [#allocation3]  }
 0x942   :  { %4029 = dma.done.wait [#allocation3], 32  }
 0x943   :  { %4030 = vsyncadd [#allocation3], 4294967264 }
 0x944   :  { %3633 = vsyncpa [#allocation3], 1 }

</bundles_post_ra>
